<compile_context>
chip_gen: v7x
topology: tpu7x:2x2x1
jax: 0.10.0
libtpu: 0.0.40
codegen_flags: <defaults>
</compile_context>

<pallas_src>
import functools

import jax
import jax.numpy as jnp
from jax.experimental import pallas as pl
from jax.experimental.pallas import tpu as pltpu


def _rup(v, m):
    return (v + m - 1) // m * m


def _padded_bytes(shape, dtype):
    """VMEM bytes of a buffer after (sublane, lane) padding of the last 2 dims."""
    item = jnp.dtype(dtype).itemsize
    sublane = 8 * max(1, 4 // item)          # 8 for f32, 16 for bf16
    dims = list(shape)
    dims[-1] = _rup(dims[-1], 128)
    if len(dims) >= 2:
        dims[-2] = _rup(dims[-2], sublane)
    n = 1
    for d in dims:
        n *= d
    return n * item


def _vmem_capacity_bytes():
    try:
        info_fn = getattr(pltpu, "get_tpu_info", None)
        if info_fn is not None:
            cap = getattr(info_fn(), "vmem_capacity_bytes", None)
            if cap:
                return int(cap)
    except Exception:
        pass
    return 64 << 20      # conservative default (v7x per-TC VMEM)


def _head_kernel(stream_is_feat, n_chunks, chunk_lanes,
                 x_ref, feat_ref, wf_ref, wx_ref, b_ref, o_ref, acc_ref):
    """One (batch-tile, spatial-step) grid point.

    x_ref    : (TB, 9,  Sx|Tx)   f32   raw-input block (mean_x branch)
    feat_ref : (TB, F,  Sf|Tf)   f32   trunk feature-map block
    wf_ref   : (F, OUT_PAD)      bf16  (w_fc1 @ w_fc2[:512]) / Sf
    wx_ref   : (9, OUT_PAD)      bf16  w_fc2[512:] / Sx
    b_ref    : (1, OUT_PAD)      f32   b_fc1 @ w_fc2[:512] + b_fc2
    o_ref    : (TB, OUT_PAD)     f32   lane-dense (128-padded) output block
    acc_ref  : (TB, C_stream, chunk_lanes) f32 VPU accumulator for the streamed input
    """
    s = pl.program_id(1)
    stream_ref = feat_ref if stream_is_feat else x_ref

    @pl.when(s == 0)
    def _init():
        acc_ref[...] = jnp.zeros_like(acc_ref)

    # VPU accumulation: add each lane-aligned chunk of this spatial tile onto
    # the accumulator (pure VALU adds; no per-step XLU lane reduction).
    for ci in range(n_chunks):
        acc_ref[...] += stream_ref[:, :, ci * chunk_lanes:(ci + 1) * chunk_lanes]

    @pl.when(s == pl.num_programs(1) - 1)
    def _epilogue():
        small_ref = x_ref if stream_is_feat else feat_ref
        stream_sum = jnp.sum(acc_ref[...], axis=-1)        # one lane reduce, once
        small_sum = jnp.sum(small_ref[...], axis=-1)
        sum_f = stream_sum if stream_is_feat else small_sum     # (TB, F)
        sum_x = small_sum if stream_is_feat else stream_sum     # (TB, 9)
        # Avg-pool 1/S scales and resnet fc are folded into wf/wx/b (wrapper),
        # and the concat is folded into two dots on the split final-fc weight.
        # TODO(synk): dropout=True path (nn.Dropout(0.5) before self.fc) not
        # implemented; this is the eval / dropout=False path.
        out = (jnp.dot(sum_f.astype(jnp.bfloat16), wf_ref[...],
                       preferred_element_type=jnp.float32)
               + jnp.dot(sum_x.astype(jnp.bfloat16), wx_ref[...],
                         preferred_element_type=jnp.float32)
               + b_ref[...])
        o_ref[...] = out.astype(o_ref.dtype)


def _select_tiling(b_pad, s_stream, footprint_fn, budget):
    """Pick (batch tile, #spatial steps) fitting `budget` VMEM bytes."""
    divs = [d for d in range(min(b_pad, 128), 7, -1)
            if b_pad % d == 0 and d % 8 == 0]
    # Prefer >= 2 entries on the parallel batch axis (v7x megacore), then larger tb.
    tb_cands = ([d for d in divs if b_pad // d >= 2]
                + [d for d in divs if b_pad // d < 2])
    # Full contiguous slab first (pipelining already comes from the batch axis),
    # then lane-aligned (multiple-of-128) spatial splits, coarsest first.
    ns_cands = [n for n in range(1, s_stream + 1)
                if s_stream % n == 0 and (n == 1 or (s_stream // n) % 128 == 0)]
    for tb in tb_cands:
        for n_s in ns_cands:
            if footprint_fn(tb, s_stream // n_s) <= budget:
                return tb, n_s
    return min(tb_cands), ns_cands[-1]       # finest valid fallback


def aug_resnet2_head(x, feat, params):
    """x: (B, 9, H, W) f32; feat: (B, F, Hf, Wf) f32 (ResNet-18 trunk output).

    params: w_fc1 (F, 512), b_fc1 (512,), w_fc2 (512+9, outSize), b_fc2 (outSize,)
            — weights stored (in, out).
    Returns (B, outSize) f32 matching AugResnet2.forward (dropout=False path).
    """
    B, c_x, h, w = x.shape
    bf_, c_f, hf, wf_sp = feat.shape
    assert bf_ == B, "x and feat must share the batch dimension"
    f_in, f_mid = params["w_fc1"].shape
    assert f_in == c_f
    assert params["w_fc2"].shape[0] == f_mid + c_x
    out_size = params["w_fc2"].shape[1]
    out_pad = _rup(out_size, 128)
    s_x, s_f = h * w, hf * wf_sp

    # ---- one-off parameter prep: fuse resnet fc into the final fc (there is
    # no nonlinearity between them) and fold in the avg-pool 1/S scales.
    # f32 math, single bf16 cast. ---------------------------------------------
    w1 = params["w_fc1"].astype(jnp.float32)                     # (F, 512)
    b1 = params["b_fc1"].astype(jnp.float32)                     # (512,)
    w2 = params["w_fc2"].astype(jnp.float32)                     # (521, out)
    b2 = params["b_fc2"].astype(jnp.float32)                     # (out,)
    wf_f32 = (w1 @ w2[:f_mid]) / float(s_f)                      # (F, out)
    wx_f32 = w2[f_mid:] / float(s_x)                             # (9, out)
    bias_f32 = b1 @ w2[:f_mid] + b2                              # (out,)

    wf_p = jnp.zeros((c_f, out_pad), jnp.bfloat16).at[:, :out_size].set(
        wf_f32.astype(jnp.bfloat16))
    wx_p = jnp.zeros((c_x, out_pad), jnp.bfloat16).at[:, :out_size].set(
        wx_f32.astype(jnp.bfloat16))
    b_p = jnp.zeros((1, out_pad), jnp.float32).at[0, :out_size].set(bias_f32)

    # ---- choose streamed vs resident input (larger one gets spatial tiling) --
    stream_is_feat = (_padded_bytes((c_f, s_f), jnp.float32)
                      >= _padded_bytes((c_x, s_x), jnp.float32))
    c_stream, s_stream = (c_f, s_f) if stream_is_feat else (c_x, s_x)
    c_small, s_small = (c_x, s_x) if stream_is_feat else (c_f, s_f)

    # ---- batch padding + generation-aware, budget-checked tiling -------------
    b_pad = _rup(B, 8)
    cap = _vmem_capacity_bytes()

    def footprint(tb, t_stream):
        cl = 128 if t_stream % 128 == 0 else t_stream
        return (2 * _padded_bytes((tb, c_stream, t_stream), jnp.float32)  # streamed tile, 2x buffered
                + 2 * _padded_bytes((tb, c_small, s_small), jnp.float32)  # resident block
                + 2 * _padded_bytes((c_f, out_pad), jnp.bfloat16)         # wf
                + 2 * _padded_bytes((c_x, out_pad), jnp.bfloat16)         # wx
                + 2 * _padded_bytes((1, out_pad), jnp.float32)            # bias
                + 2 * _padded_bytes((tb, out_pad), jnp.float32)           # output block
                + _padded_bytes((tb, c_stream, cl), jnp.float32))         # accumulator scratch

    tb, n_s = _select_tiling(b_pad, s_stream, footprint, budget=(cap * 7) // 10)
    t_stream = s_stream // n_s
    chunk_lanes = 128 if t_stream % 128 == 0 else t_stream
    n_chunks = t_stream // chunk_lanes

    fp = footprint(tb, t_stream)
    vmem_limit = int(min(cap - cap // 8, max(32 << 20, fp + (8 << 20))))

    # ---- data prep ------------------------------------------------------------
    x3 = x.reshape(B, c_x, s_x)
    f3 = feat.reshape(B, c_f, s_f)
    if b_pad != B:
        x3 = jnp.pad(x3, ((0, b_pad - B), (0, 0), (0, 0)))
        f3 = jnp.pad(f3, ((0, b_pad - B), (0, 0), (0, 0)))

    const = lambda b, s: (0, 0)          # weights/bias stay VMEM-resident
    if stream_is_feat:
        x_spec = pl.BlockSpec((tb, c_x, s_x), lambda b, s: (b, 0, 0))
        feat_spec = pl.BlockSpec((tb, c_f, t_stream), lambda b, s: (b, 0, s))
    else:
        x_spec = pl.BlockSpec((tb, c_x, t_stream), lambda b, s: (b, 0, s))
        feat_spec = pl.BlockSpec((tb, c_f, s_f), lambda b, s: (b, 0, 0))

    kernel = functools.partial(_head_kernel, stream_is_feat, n_chunks, chunk_lanes)

    grid_spec = pltpu.PrefetchScalarGridSpec(
        num_scalar_prefetch=0,
        grid=(b_pad // tb, n_s),
        in_specs=[
            x_spec,                                   # raw input stream / block
            feat_spec,                                # trunk feature stream / block
            pl.BlockSpec((c_f, out_pad), const),      # fused cnn weight
            pl.BlockSpec((c_x, out_pad), const),      # mean_x weight
            pl.BlockSpec((1, out_pad), const),        # fused bias
        ],
        out_specs=pl.BlockSpec((tb, out_pad), lambda b, s: (b, 0)),
        scratch_shapes=[pltpu.VMEM((tb, c_stream, chunk_lanes), jnp.float32)],
    )

    out_padded = pl.pallas_call(
        kernel,
        grid_spec=grid_spec,
        out_shape=jax.ShapeDtypeStruct((b_pad, out_pad), jnp.float32),
        compiler_params=pltpu.CompilerParams(
            dimension_semantics=("parallel", "arbitrary"),
            vmem_limit_bytes=vmem_limit),
    )(x3, f3, wf_p, wx_p, b_p)

    return out_padded[:B, :out_size]


def init_params(key, num_ftrs=512, mean_channels=9, out_size=8):
    """Synthetic PyTorch-Linear-style init; weights stored as (in, out)."""
    ks = jax.random.split(key, 4)

    def lin(kw, kb, fan_in, fan_out):
        bound = 1.0 / jnp.sqrt(fan_in)
        w = jax.random.uniform(kw, (fan_in, fan_out), jnp.float32, -bound, bound)
        b = jax.random.uniform(kb, (fan_out,), jnp.float32, -bound, bound)
        return w, b

    w_fc1, b_fc1 = lin(ks[0], ks[1], num_ftrs, 512)                  # resnet_18.fc
    w_fc2, b_fc2 = lin(ks[2], ks[3], 512 + mean_channels, out_size)  # self.fc
    return dict(w_fc1=w_fc1, b_fc1=b_fc1, w_fc2=w_fc2, b_fc2=b_fc2)


def aug_resnet2_head_ref(x, feat, p):
    """Pure-JAX f32 reference for the implemented part of AugResnet2.forward."""
    mean_x = jnp.mean(x, axis=(2, 3))                  # (B, 9)
    pooled = jnp.mean(feat, axis=(2, 3))               # (B, 512)
    cnn = pooled @ p["w_fc1"] + p["b_fc1"]             # (B, 512)
    cat = jnp.concatenate([cnn, mean_x], axis=1)       # (B, 521)
    return cat @ p["w_fc2"] + p["b_fc2"]               # (B, outSize)


if __name__ == "__main__":
    B, C_IN, H, W = 2, 9, 16, 16        # AugResnet2's conv1 expects 9 input channels
    NUM_FTRS, OUT_SIZE = 512, 8         # resnet18 fc.in_features = 512
    HF, WF = 16, 16                     # stand-in trunk feature-map spatial size

    key = jax.random.PRNGKey(0)
    kx, kf, kp = jax.random.split(key, 3)
    x = jax.random.normal(kx, (B, C_IN, H, W), dtype=jnp.float32)
    feat = jax.random.normal(kf, (B, NUM_FTRS, HF, WF), dtype=jnp.float32)
    params = init_params(kp, NUM_FTRS, C_IN, OUT_SIZE)

    out = aug_resnet2_head(x, feat, params)
    out = jax.block_until_ready(out)

    ref = aug_resnet2_head_ref(x, feat, params)
    assert out.shape == (B, OUT_SIZE)
    # bf16 matmul inputs (f32 accumulation, f32-precomputed fused weights)
    # => relaxed but tight-enough tolerance.
    assert jnp.allclose(out, ref, atol=5e-3, rtol=5e-2), (
        "mismatch vs reference, max abs err = "
        f"{float(jnp.max(jnp.abs(out - ref)))}")

    print("KERNEL_OK")
</pallas_src>

<mosaic_0001>
module attributes {stable_mosaic.version = 11 : i64} {
  func.func @_head_kernel(%arg0: i32, %arg1: i32, %arg2: memref<8x9x256xf32, #tpu.memory_space<vmem>>, %arg3: memref<8x512x256xf32, #tpu.memory_space<vmem>>, %arg4: memref<512x128xbf16, #tpu.memory_space<vmem>>, %arg5: memref<9x128xbf16, #tpu.memory_space<vmem>>, %arg6: memref<1x128xf32, #tpu.memory_space<vmem>>, %arg7: memref<8x128xf32, #tpu.memory_space<vmem>>, %arg8: memref<8x512x128xf32, #tpu.memory_space<vmem>>) attributes {dimension_semantics = [#tpu.dimension_semantics<parallel>, #tpu.dimension_semantics<arbitrary>], iteration_bounds = array<i64: 1, 1>, scalar_prefetch = 0 : i64, scratch_operands = 1 : i64, tpu.core_type = #tpu.core_type<tc>, window_params = [{transform_indices = @transform_0, window_bounds = array<i64: 8, 9, 256>}, {transform_indices = @transform_1, window_bounds = array<i64: 8, 512, 256>}, {pipeline_mode = #tpu.pipeline_mode<synchronous>, transform_indices = @transform_2, window_bounds = array<i64: 512, 128>}, {pipeline_mode = #tpu.pipeline_mode<synchronous>, transform_indices = @transform_3, window_bounds = array<i64: 9, 128>}, {pipeline_mode = #tpu.pipeline_mode<synchronous>, transform_indices = @transform_4, window_bounds = array<i64: 1, 128>}, {transform_indices = @transform_5, window_bounds = array<i64: 8, 128>}]} {
    %c0_i32 = arith.constant 0 : i32
    %0 = arith.cmpi eq, %arg1, %c0_i32 : i32
    %1 = arith.extui %0 : i1 to i32
    %c0_i32_0 = arith.constant 0 : i32
    %2 = arith.cmpi ne, %1, %c0_i32_0 : i32
    scf.if %2 {
      %cst = arith.constant 0.000000e+00 : f32
      %14 = vector.broadcast %cst : f32 to vector<8x512x128xf32>
      %c0_19 = arith.constant 0 : index
      %c0_20 = arith.constant 0 : index
      %c0_21 = arith.constant 0 : index
      %15 = vector.load %arg8[%c0_19, %c0_20, %c0_21] : memref<8x512x128xf32, #tpu.memory_space<vmem>>, vector<8x512x128xf32>
      tpu.vector_store %arg8[%c0_19, %c0_20, %c0_21], %14 {strides = array<i32>} : memref<8x512x128xf32, #tpu.memory_space<vmem>>, vector<8x512x128xf32>,
    } else {
    }
    %c0 = arith.constant 0 : index
    %c0_1 = arith.constant 0 : index
    %c0_2 = arith.constant 0 : index
    %3 = vector.load %arg8[%c0, %c0_1, %c0_2] : memref<8x512x128xf32, #tpu.memory_space<vmem>>, vector<8x512x128xf32>
    %c0_3 = arith.constant 0 : index
    %c0_4 = arith.constant 0 : index
    %c0_5 = arith.constant 0 : index
    %4 = vector.load %arg3[%c0_3, %c0_4, %c0_5] : memref<8x512x256xf32, #tpu.memory_space<vmem>>, vector<8x512x128xf32>
    %5 = arith.addf %3, %4 : vector<8x512x128xf32>
    %c0_6 = arith.constant 0 : index
    %c0_7 = arith.constant 0 : index
    %c0_8 = arith.constant 0 : index
    %6 = vector.load %arg8[%c0_6, %c0_7, %c0_8] : memref<8x512x128xf32, #tpu.memory_space<vmem>>, vector<8x512x128xf32>
    tpu.vector_store %arg8[%c0_6, %c0_7, %c0_8], %5 {strides = array<i32>} : memref<8x512x128xf32, #tpu.memory_space<vmem>>, vector<8x512x128xf32>,
    %c0_9 = arith.constant 0 : index
    %c0_10 = arith.constant 0 : index
    %c0_11 = arith.constant 0 : index
    %7 = vector.load %arg8[%c0_9, %c0_10, %c0_11] : memref<8x512x128xf32, #tpu.memory_space<vmem>>, vector<8x512x128xf32>
    %c0_12 = arith.constant 0 : index
    %c0_13 = arith.constant 0 : index
    %c128 = arith.constant 128 : index
    %8 = vector.load %arg3[%c0_12, %c0_13, %c128] : memref<8x512x256xf32, #tpu.memory_space<vmem>>, vector<8x512x128xf32>
    %9 = arith.addf %7, %8 : vector<8x512x128xf32>
    %c0_14 = arith.constant 0 : index
    %c0_15 = arith.constant 0 : index
    %c0_16 = arith.constant 0 : index
    %10 = vector.load %arg8[%c0_14, %c0_15, %c0_16] : memref<8x512x128xf32, #tpu.memory_space<vmem>>, vector<8x512x128xf32>
    tpu.vector_store %arg8[%c0_14, %c0_15, %c0_16], %9 {strides = array<i32>} : memref<8x512x128xf32, #tpu.memory_space<vmem>>, vector<8x512x128xf32>,
    %c0_i32_17 = arith.constant 0 : i32
    %11 = arith.cmpi eq, %arg1, %c0_i32_17 : i32
    %12 = arith.extui %11 : i1 to i32
    %c0_i32_18 = arith.constant 0 : i32
    %13 = arith.cmpi ne, %12, %c0_i32_18 : i32
    scf.if %13 {
      %c0_19 = arith.constant 0 : index
      %c0_20 = arith.constant 0 : index
      %c0_21 = arith.constant 0 : index
      %14 = vector.load %arg8[%c0_19, %c0_20, %c0_21] : memref<8x512x128xf32, #tpu.memory_space<vmem>>, vector<8x512x128xf32>
      %cst = arith.constant dense<0.000000e+00> : vector<8x512xf32>
      %15 = vector.multi_reduction <add>, %14, %cst [2] : vector<8x512x128xf32> to vector<8x512xf32>
      %c0_22 = arith.constant 0 : index
      %c0_23 = arith.constant 0 : index
      %c0_24 = arith.constant 0 : index
      %16 = vector.load %arg2[%c0_22, %c0_23, %c0_24] : memref<8x9x256xf32, #tpu.memory_space<vmem>>, vector<8x9x256xf32>
      %cst_25 = arith.constant dense<0.000000e+00> : vector<8x9xf32>
      %17 = vector.multi_reduction <add>, %16, %cst_25 [2] : vector<8x9x256xf32> to vector<8x9xf32>
      %18 = arith.truncf %15 : vector<8x512xf32> to vector<8x512xbf16>
      %c0_26 = arith.constant 0 : index
      %c0_27 = arith.constant 0 : index
      %19 = vector.load %arg4[%c0_26, %c0_27] : memref<512x128xbf16, #tpu.memory_space<vmem>>, vector<512x128xbf16>
      %cst_28 = arith.constant dense<0.000000e+00> : vector<8x128xf32>
      %20 = tpu.matmul %18, %19, %cst_28 {dimension_numbers = #tpu.dot_dimension_numbers<[1], [0], [0], [1], [0, 0, 1, 1], [], []>} : vector<8x512xbf16>, vector<512x128xbf16>, vector<8x128xf32> -> vector<8x128xf32>
      %21 = arith.truncf %17 : vector<8x9xf32> to vector<8x9xbf16>
      %c0_29 = arith.constant 0 : index
      %c0_30 = arith.constant 0 : index
      %22 = vector.load %arg5[%c0_29, %c0_30] : memref<9x128xbf16, #tpu.memory_space<vmem>>, vector<9x128xbf16>
      %cst_31 = arith.constant dense<0.000000e+00> : vector<8x128xf32>
      %23 = tpu.matmul %21, %22, %cst_31 {dimension_numbers = #tpu.dot_dimension_numbers<[1], [0], [0], [1], [0, 0, 1, 1], [], []>} : vector<8x9xbf16>, vector<9x128xbf16>, vector<8x128xf32> -> vector<8x128xf32>
      %24 = arith.addf %20, %23 : vector<8x128xf32>
      %c0_32 = arith.constant 0 : index
      %c0_33 = arith.constant 0 : index
      %25 = vector.load %arg6[%c0_32, %c0_33] : memref<1x128xf32, #tpu.memory_space<vmem>>, vector<1x128xf32>
      %26 = vector.broadcast %25 : vector<1x128xf32> to vector<8x128xf32>
      %27 = arith.addf %24, %26 : vector<8x128xf32>
      %c0_34 = arith.constant 0 : index
      %c0_35 = arith.constant 0 : index
      %28 = vector.load %arg7[%c0_34, %c0_35] : memref<8x128xf32, #tpu.memory_space<vmem>>, vector<8x128xf32>
      tpu.vector_store %arg7[%c0_34, %c0_35], %27 {strides = array<i32>} : memref<8x128xf32, #tpu.memory_space<vmem>>, vector<8x128xf32>,
    } else {
    }
    return
  }
  func.func @transform_0(%arg0: i32, %arg1: i32) -> (i32, i32, i32) {
    %c0_i32 = arith.constant 0 : i32
    %c0_i32_0 = arith.constant 0 : i32
    %c0_i32_1 = arith.constant 0 : i32
    return %arg0, %c0_i32, %c0_i32_0 : i32, i32, i32
  }
  func.func @transform_1(%arg0: i32, %arg1: i32) -> (i32, i32, i32) {
    %c0_i32 = arith.constant 0 : i32
    %c0_i32_0 = arith.constant 0 : i32
    return %arg0, %c0_i32, %arg1 : i32, i32, i32
  }
  func.func @transform_2(%arg0: i32, %arg1: i32) -> (i32, i32) {
    %c0_i32 = arith.constant 0 : i32
    %c0_i32_0 = arith.constant 0 : i32
    %c0_i32_1 = arith.constant 0 : i32
    return %c0_i32, %c0_i32_0 : i32, i32
  }
  func.func @transform_3(%arg0: i32, %arg1: i32) -> (i32, i32) {
    %c0_i32 = arith.constant 0 : i32
    %c0_i32_0 = arith.constant 0 : i32
    %c0_i32_1 = arith.constant 0 : i32
    return %c0_i32, %c0_i32_0 : i32, i32
  }
  func.func @transform_4(%arg0: i32, %arg1: i32) -> (i32, i32) {
    %c0_i32 = arith.constant 0 : i32
    %c0_i32_0 = arith.constant 0 : i32
    %c0_i32_1 = arith.constant 0 : i32
    return %c0_i32, %c0_i32_0 : i32, i32
  }
  func.func @transform_5(%arg0: i32, %arg1: i32) -> (i32, i32) {
    %c0_i32 = arith.constant 0 : i32
    %c0_i32_0 = arith.constant 0 : i32
    return %arg0, %c0_i32 : i32, i32
  }
}

</mosaic_0001>

<bundles_post_ra>
// kernel: tpu_custom_call.1
= control target key start
LH: loop header
LB: loop body
LE: loop exit
PB: predicated region body
PF: predicated region fallthrough
CT: control target
= control target key end

     0   :  { %10 = vsyncpa [#allocation4], 0  ;;  %s12350_s0 = inlined_call_operand.vmem [shape: f32[8,9,256], index: 0, kind: input, shape index: {}]   ;;  %s12351_s1 = inlined_call_operand.hbm [shape: f32[8,512,256], index: 1, kind: input, shape index: {}]   ;;  %s12352_s2 = inlined_call_operand.hbm [shape: bf16[512,128], index: 2, kind: input, shape index: {}]   ;;  %s12353_s3 = inlined_call_operand.hbm [shape: bf16[9,128], index: 3, kind: input, shape index: {}]   ;;  %s12354_s4 = inlined_call_operand.hbm [shape: f32[1,128], index: 4, kind: input, shape index: {}]   ;;  %s12355_s5 = inlined_call_operand.hbm [shape: f32[8,128], index: 5, kind: output, shape index: {}]  }
   0x1   :  { %11 = vsyncpa [#allocation7], 0 }
   0x2   :  { %12 = vsyncpa [#allocation10], 0 }
   0x3   :  { %13 = vsyncpa [#allocation5], 0  ;;  %s10732_s18 = smov [#allocation6]   ;;  %s10614_s22 = scalar_lea.hbm %s12352_s2, 4096 }
   0x4   :  { %s33_s19 = sshll.u32 %s10732_s18, 4  ;;  %p10615_p0 = scmp.ne.s32.totalorder %s12352_s2, %s10614_s22  ;;  %s34_s19 = int_to_ptr.vmem [resolvable:$true] %s33_s19 }
   0x5   :  { %p10618_p1 = scmp.lt.u32.totalorder %s10614_s22, %s12352_s2 }
   0x7   :  { %p10620_p2 = pnand %p10618_p1, %p10615_p0 }
   0x9   :  { %10623 = shalt.err (!%p10620_p2)
}
   0xa   :  { %s10624_s27 = scalar_lea.vmem %s34_s19, 4096  ;;  %p10629_p4 = scmp.lt.s32.totalorder %s34_s19, %s34_s19 }
   0xb   :  { %p10625_p3 = scmp.ne.s32.totalorder %s34_s19, %s10624_s27  ;;  %p10630_p5 = scmp.lt.s32.totalorder %s10624_s27, %s10624_s27 }
   0xd   :  { %p10631_p6 = por %p10630_p5, %p10629_p4 }
   0xf   :  { %p10632_p7 = pnand %p10631_p6, %p10625_p3 }
  0x11   :  { %10635 = shalt.err (!%p10632_p7)
}
  0x12   :  { %s10733_s28 = smov 64   ;;  %s10734_s29 = smov 4  }
  0x13   :  { %39 = dma.hbm_to_vmem [thread:$0]  %s12352_s2, 4096, %s34_s19, [#allocation7], %s10733_s28, %s10733_s28, %s10734_s29  }
  0x14   :  { %s10735_s7 = smov [#allocation3]   ;;  %s10636_s11 = scalar_lea.hbm %s12351_s1, 131072 }
  0x15   :  { %s21_s8 = sshll.u32 %s10735_s7, 4  ;;  %p10637_p8 = scmp.ne.s32.totalorder %s12351_s1, %s10636_s11  ;;  %s22_s8 = int_to_ptr.vmem [resolvable:$true] %s21_s8 }
  0x16   :  { %p10640_p9 = scmp.lt.u32.totalorder %s10636_s11, %s12351_s1 }
  0x18   :  { %p10642_p10 = pnand %p10640_p9, %p10637_p8 }
  0x1a   :  { %10645 = shalt.err (!%p10642_p10)
}
  0x1b   :  { %s10646_s16 = scalar_lea.vmem %s22_s8, 131072  ;;  %p10651_p12 = scmp.lt.s32.totalorder %s22_s8, %s22_s8 }
  0x1c   :  { %p10647_p11 = scmp.ne.s32.totalorder %s22_s8, %s10646_s16  ;;  %p10652_p13 = scmp.lt.s32.totalorder %s10646_s16, %s10646_s16 }
  0x1e   :  { %p10653_p0 = por %p10652_p13, %p10651_p12 }
  0x20   :  { %p10654_p1 = pnand %p10653_p0, %p10647_p11 }
  0x22   :  { %10657 = shalt.err (!%p10654_p1)
}
  0x23   :  { %s10736_s2 = smov 256   ;;  %s10737_s17 = smov 16  }
  0x24   :  { %27 = dma.hbm_to_vmem [thread:$0]  %s12351_s1, 131072, %s22_s8, [#allocation4], %s10736_s2, %s10736_s2, %s10737_s17  }
  0x25   :  { %s10738_s20 = smov [#allocation8]   ;;  %s10739_s22 = smov [#allocation9]  }
  0x26   :  { %s45_s21 = sshll.u32 %s10738_s20, 4  ;;  %s58_s23 = sshll.u32 %s10739_s22, 4  ;;  %s46_s21 = int_to_ptr.vmem [resolvable:$true] %s45_s21  ;;  %s59_s23 = int_to_ptr.vmem [resolvable:$true] %s58_s23 }
  0x27   :  { %s10658_s26 = scalar_lea.hbm %s12353_s3, 128 }
  0x28   :  { %p10659_p2 = scmp.ne.s32.totalorder %s12353_s3, %s10658_s26  ;;  %p10662_p3 = scmp.lt.u32.totalorder %s10658_s26, %s12353_s3 }
  0x2a   :  { %p10664_p4 = pnand %p10662_p3, %p10659_p2 }
  0x2c   :  { %10667 = shalt.err (!%p10664_p4)
}
  0x2d   :  { %s10668_s1 = scalar_lea.vmem %s46_s21, 128  ;;  %p10673_p6 = scmp.lt.s32.totalorder %s46_s21, %s46_s21 }
  0x2e   :  { %p10669_p5 = scmp.ne.s32.totalorder %s46_s21, %s10668_s1  ;;  %p10674_p7 = scmp.lt.s32.totalorder %s10668_s1, %s10668_s1 }
  0x30   :  { %p10675_p8 = por %p10674_p7, %p10673_p6 }
  0x32   :  { %p10676_p9 = pnand %p10675_p8, %p10669_p5 }
  0x34   :  { %10679 = shalt.err (!%p10676_p9)
}
  0x35   :  { %51 = dma.hbm_to_vmem [thread:$0]  %s12353_s3, 128, %s46_s21, [#allocation7], %s10733_s28, %s10733_s28, %s10734_s29  }
  0x36   :  { %s10680_s12 = scalar_lea.hbm %s12354_s4, 16 }
  0x37   :  { %p10681_p10 = scmp.ne.s32.totalorder %s12354_s4, %s10680_s12  ;;  %p10684_p11 = scmp.lt.u32.totalorder %s10680_s12, %s12354_s4 }
  0x39   :  { %p10686_p12 = pnand %p10684_p11, %p10681_p10 }
  0x3b   :  { %10689 = shalt.err (!%p10686_p12)
}
  0x3c   :  { %s10690_s2 = scalar_lea.vmem %s59_s23, 16  ;;  %s10694_s17 = scalar_lea.vmem %s59_s23, 32 }
  0x3d   :  { %p10691_p13 = scmp.ne.s32.totalorder %s59_s23, %s10690_s2  ;;  %p10695_p0 = scmp.lt.s32.totalorder %s59_s23, %s59_s23 }
  0x3e   :  { %p10696_p1 = scmp.lt.s32.totalorder %s10694_s17, %s10690_s2 }
  0x40   :  { %p10697_p2 = por %p10696_p1, %p10695_p0 }
  0x42   :  { %p10698_p3 = pnand %p10697_p2, %p10691_p13 }
  0x44   :  { %10701 = shalt.err (!%p10698_p3)
}
  0x45   :  { %61 = dma.hbm_to_vmem [thread:$0]  %s12354_s4, 16, %s59_s23, [#allocation10]  }
  0x46   :  { %10724 = dma.done.wait [#allocation4], 131072  }
  0x47   :  { %10725 = vsyncadd [#allocation4], 4294836224 }
  0x48   :  { %10726 = dma.done.wait [#allocation7], 4224  }
  0x49   :  { %10727 = vsyncadd [#allocation7], 4294963072 }
  0x4a   :  { %10728 = dma.done.wait [#allocation10], 16  }
  0x4b   :  { %10729 = vsyncadd [#allocation10], 4294967280  ;;  %v1105_v0 = vld [vmem:[#allocation3 + $0x20] sm:$0xff]  ;;  %v3153_v1 = vld [vmem:[#allocation3 + $0x28] sm:$0xff]  ;;  %v6677_v34 = vlaneseq  ;;  %vm6688_vm0 = vcmask 130112   ;;  %vm7606_vm1 = vcmask 195712  }
  0x4c   :  { %v1103_v2 = vld [vmem:[#allocation3] sm:$0xff]  ;;  %v3665_v3 = vadd.f32 %v3153_v1, %v1105_v0  ;;  %v3151_v4 = vld [vmem:[#allocation3 + $0x8] sm:$0xff]  ;;  %v1106_v5 = vld [vmem:[#allocation3 + $0x30] sm:$0xff]  ;;  %vm7613_vm2 = vcmask 261312   ;;  %vm7620_vm3 = vcmask 326912   ;;  %vm12361_vm4 = vcmask 392512  }
  0x4d   :  { %v3154_v6 = vld [vmem:[#allocation3 + $0x38] sm:$0xff]  ;;  %v3663_v7 = vadd.f32 %v3151_v4, %v1103_v2  ;;  %v1104_v8 = vld [vmem:[#allocation3 + $0x10] sm:$0xff]  ;;  %v1107_v14 = vld [vmem:[#allocation3 + $0x40] sm:$0xff]  ;;  %v10828_v39 = vand.u32 127, %v6677_v34  ;;  %v10830_v40 = vshrl.u32 %v6677_v34, 7  ;;  %vm7634_vm5 = vcmask 458112  }
  0x4e   :  { %v3152_v9 = vld [vmem:[#allocation3 + $0x18] sm:$0xff]  ;;  %5206 = vadd.xlane.f32.xlu1 %v3665_v3  ;;  %v3666_v10 = vadd.f32 %v3154_v6, %v1106_v5  ;;  %v1108_v12 = vld [vmem:[#allocation3 + $0x50] sm:$0xff]  ;;  %v3155_v15 = vld [vmem:[#allocation3 + $0x48] sm:$0xff]  ;;  %vm12360_vm6 = vcmask 523712   ;;  %vm12359_vm7 = vcmask 589312   ;;  %vm7655_vm8 = vcmask 654912  }
  0x4f   :  { %5202 = vadd.xlane.f32.xlu0 %v3663_v7  ;;  %v3664_v11 = vadd.f32 %v3152_v9, %v1104_v8  ;;  %v3156_v13 = vld [vmem:[#allocation3 + $0x58] sm:$0xff]  ;;  %v3667_v17 = vadd.f32 %v3155_v15, %v1107_v14  ;;  %v1110_v18 = vld [vmem:[#allocation3 + $0x70] sm:$0xff]  ;;  %v1109_v20 = vld [vmem:[#allocation3 + $0x60] sm:$0xff]  ;;  %v7601_v43 = vadd.s32 4294967280, %v10828_v39  ;;  %v7608_v44 = vadd.s32 4294967272, %v10828_v39 }
  0x50   :  { %v3668_v16 = vadd.f32 %v3156_v13, %v1108_v12  ;;  %v3158_v19 = vld [vmem:[#allocation3 + $0x78] sm:$0xff]  ;;  %v3157_v21 = vld [vmem:[#allocation3 + $0x68] sm:$0xff]  ;;  %v1112_v24 = vld [vmem:[#allocation3 + $0x90] sm:$0xff]  ;;  %v7615_v53 = vadd.s32 4294967264, %v10828_v39  ;;  %v7622_v55 = vadd.s32 4294967256, %v10828_v39  ;;  %v7629_v0 = vadd.s32 4294967248, %v10828_v39 }
  0x51   :  { %v3670_v22 = vadd.f32 %v3158_v19, %v1110_v18  ;;  %v3669_v23 = vadd.f32 %v3157_v21, %v1109_v20  ;;  %v3160_v25 = vld [vmem:[#allocation3 + $0x98] sm:$0xff]  ;;  %v1111_v26 = vld [vmem:[#allocation3 + $0x80] sm:$0xff]  ;;  %v3159_v27 = vld [vmem:[#allocation3 + $0x88] sm:$0xff]  ;;  %v10835_v49 = vsub.s32 %v7601_v43, %v10830_v40  ;;  %v10838_v50 = vsub.s32 %v7608_v44, %v10830_v40 }
  0x52   :  { %5208 = vadd.xlane.f32.xlu1 %v3666_v10  ;;  %v3672_v28 = vadd.f32 %v3160_v25, %v1112_v24  ;;  %v3671_v29 = vadd.f32 %v3159_v27, %v1111_v26  ;;  %v1114_v30 = vld [vmem:[#allocation3 + $0xb0] sm:$0xff]  ;;  %v3162_v31 = vld [vmem:[#allocation3 + $0xb8] sm:$0xff]  ;;  %v1113_v32 = vld [vmem:[#allocation3 + $0xa0] sm:$0xff]  ;;  %v10843_v59 = vsub.s32 %v7615_v53, %v10830_v40  ;;  %v10846_v62 = vsub.s32 %v7622_v55, %v10830_v40 }
  0x53   :  { %5204 = vadd.xlane.f32.xlu0 %v3664_v11  ;;  %v3161_v33 = vld [vmem:[#allocation3 + $0xa8] sm:$0xff]  ;;  %v3674_v35 = vadd.f32 %v3162_v31, %v1114_v30  ;;  %v1116_v37 = vld [vmem:[#allocation3 + $0xd0] sm:$0xff]  ;;  %v3164_v38 = vld [vmem:[#allocation3 + $0xd8] sm:$0xff]  ;;  %v7636_v1 = vadd.s32 4294967240, %v10828_v39  ;;  %v10851_v7 = vsub.s32 %v7629_v0, %v10830_v40  ;;  %v7643_v9 = vadd.s32 4294967232, %v10828_v39 }
  0x54   :  { %v3673_v36 = vadd.f32 %v3161_v33, %v1113_v32  ;;  %v1115_v41 = vld [vmem:[#allocation3 + $0xc0] sm:$0xff]  ;;  %v3163_v42 = vld [vmem:[#allocation3 + $0xc8] sm:$0xff]  ;;  %v3676_v45 = vadd.f32 %v3164_v38, %v1116_v37  ;;  %v1118_v47 = vld [vmem:[#allocation3 + $0xf0] sm:$0xff]  ;;  %v7650_v11 = vadd.s32 4294967224, %v10828_v39  ;;  %v7657_v19 = vadd.s32 4294967216, %v10828_v39 }
  0x55   :  { %v3675_v46 = vadd.f32 %v3163_v42, %v1115_v41  ;;  %v3166_v48 = vld [vmem:[#allocation3 + $0xf8] sm:$0xff]  ;;  %v1117_v51 = vld [vmem:[#allocation3 + $0xe0] sm:$0xff]  ;;  %v3165_v52 = vld [vmem:[#allocation3 + $0xe8] sm:$0xff]  ;;  %v10854_v8 = vsub.s32 %v7636_v1, %v10830_v40  ;;  %v10859_v15 = vsub.s32 %v7643_v9, %v10830_v40  ;;  %v7664_v20 = vadd.s32 4294967208, %v10828_v39 }
  0x56   :  { %5212 = vadd.xlane.f32.xlu1 %v3668_v16  ;;  %v3678_v54 = vadd.f32 %v3166_v48, %v1118_v47  ;;  %v3677_v56 = vadd.f32 %v3165_v52, %v1117_v51  ;;  %v1120_v57 = vld [vmem:[#allocation3 + $0x110] sm:$0xff]  ;;  %v3168_v58 = vld [vmem:[#allocation3 + $0x118] sm:$0xff]  ;;  %v1119_v60 = vld [vmem:[#allocation3 + $0x100] sm:$0xff]  ;;  %v10862_v18 = vsub.s32 %v7650_v11, %v10830_v40  ;;  %v10867_v25 = vsub.s32 %v7657_v19, %v10830_v40 }
  0x57   :  { %5210 = vadd.xlane.f32.xlu0 %v3667_v17  ;;  %v3167_v61 = vld [vmem:[#allocation3 + $0x108] sm:$0xff]  ;;  %v3680_v63 = vadd.f32 %v3168_v58, %v1120_v57  ;;  %v1122_v3 = vld [vmem:[#allocation3 + $0x130] sm:$0xff]  ;;  %v3170_v4 = vld [vmem:[#allocation3 + $0x138] sm:$0xff]  ;;  %v10870_v26 = vsub.s32 %v7664_v20, %v10830_v40  ;;  %v7678_v30 = vadd.s32 4294967192, %v10828_v39  ;;  %v7685_v41 = vadd.s32 4294967184, %v10828_v39 }
  0x58   :  { %v3679_v2 = vadd.f32 %v3167_v61, %v1119_v60  ;;  %v1121_v5 = vld [vmem:[#allocation3 + $0x120] sm:$0xff]  ;;  %v3169_v6 = vld [vmem:[#allocation3 + $0x128] sm:$0xff]  ;;  %v3682_v10 = vadd.f32 %v3170_v4, %v1122_v3  ;;  %v1124_v13 = vld [vmem:[#allocation3 + $0x150] sm:$0xff]  ;;  %v7692_v42 = vadd.s32 4294967176, %v10828_v39  ;;  %vm7662_vm9 = vcmask 720512  }
  0x59   :  { %v3681_v12 = vadd.f32 %v3169_v6, %v1121_v5  ;;  %v3172_v14 = vld [vmem:[#allocation3 + $0x158] sm:$0xff]  ;;  %v1123_v16 = vld [vmem:[#allocation3 + $0x140] sm:$0xff]  ;;  %v3171_v17 = vld [vmem:[#allocation3 + $0x148] sm:$0xff]  ;;  %v10883_v47 = vsub.s32 %v7685_v41, %v10830_v40  ;;  %vm7669_vm10 = vcmask 786112   ;;  %vm7676_vm11 = vcmask 851712  }
  0x5a   :  { %5216 = vadd.xlane.f32.xlu1 %v3670_v22  ;;  %v3684_v21 = vadd.f32 %v3172_v14, %v1124_v13  ;;  %v3683_v22 = vadd.f32 %v3171_v17, %v1123_v16  ;;  %v3174_v24 = vld [vmem:[#allocation3 + $0x178] sm:$0xff]  ;;  %v1125_v27 = vld [vmem:[#allocation3 + $0x160] sm:$0xff]  ;;  %v1128_v33 = vld [vmem:[#allocation3 + $0x190] sm:$0xff]  ;;  %v10886_v48 = vsub.s32 %v7692_v42, %v10830_v40  ;;  %vm7683_vm12 = vcmask 917312  }
  0x5b   :  { %5214 = vadd.xlane.f32.xlu0 %v3669_v23  ;;  %v1126_v23 = vld [vmem:[#allocation3 + $0x170] sm:$0xff]  ;;  %v3176_v34 = vld [vmem:[#allocation3 + $0x198] sm:$0xff]  ;;  %v1127_v37 = vld [vmem:[#allocation3 + $0x180] sm:$0xff]  ;;  %vm12363_vm13 = vcmask 982912   ;;  %vm12362_vm14 = vcmask 1048512   ;;  %vm12356_vm15 = vcmask 1041409  }
  0x5c   :  { %v3686_v31 = vadd.f32 %v3174_v24, %v1126_v23  ;;  %v3175_v38 = vld [vmem:[#allocation3 + $0x188] sm:$0xff]  ;;  %v3688_v43 = vadd.f32 %v3176_v34, %v1128_v33  ;;  %v1129_v51 = vld [vmem:[#allocation3 + $0x1a0] sm:$0xff]  ;;  %v1132_v55 = vld [vmem:[#allocation3 + $0x1d0] sm:$0xff] }
  0x5d   :  { %v3687_v44 = vadd.f32 %v3175_v38, %v1127_v37  ;;  %v3177_v52 = vld [vmem:[#allocation3 + $0x1a8] sm:$0xff]  ;;  %v1131_v57 = vld [vmem:[#allocation3 + $0x1c0] sm:$0xff]  ;;  %v3182_v0 = vld [vmem:[#allocation3 + $0x1f8] sm:$0xff] }
  0x5e   :  { %5220 = vadd.xlane.f32.xlu1 %v3672_v28  ;;  %v3173_v28 = vld [vmem:[#allocation3 + $0x168] sm:$0xff]  ;;  %v1133_v1 = vld [vmem:[#allocation3 + $0x1e0] sm:$0xff]  ;;  %v1136_v5 = vld [vmem:[#allocation3 + $0x210] sm:$0xff] }
  0x5f   :  { %5218 = vadd.xlane.f32.xlu0 %v3671_v29  ;;  %v7671_v29 = vadd.s32 4294967200, %v10828_v39  ;;  %v3685_v32 = vadd.f32 %v3173_v28, %v1125_v27  ;;  %v3179_v58 = vld [vmem:[#allocation3 + $0x1c8] sm:$0xff]  ;;  %v3184_v6 = vld [vmem:[#allocation3 + $0x218] sm:$0xff]  ;;  %v1135_v9 = vld [vmem:[#allocation3 + $0x200] sm:$0xff] }
  0x60   :  { %v3691_v61 = vadd.f32 %v3179_v58, %v1131_v57  ;;  %v3696_v11 = vadd.f32 %v3184_v6, %v1136_v5  ;;  %v3186_v13 = vld [vmem:[#allocation3 + $0x238] sm:$0xff]  ;;  %v1137_v16 = vld [vmem:[#allocation3 + $0x220] sm:$0xff]  ;;  %v3185_v17 = vld [vmem:[#allocation3 + $0x228] sm:$0xff] }
  0x61   :  { %v1140_v19 = vld [vmem:[#allocation3 + $0x250] sm:$0xff]  ;;  %v3188_v20 = vld [vmem:[#allocation3 + $0x258] sm:$0xff]  ;;  %v1139_v23 = vld [vmem:[#allocation3 + $0x240] sm:$0xff] }
  0x62   :  { %5224 = vadd.xlane.f32.xlu1 %v3674_v35  ;;  %v10875_v35 = vsub.s32 %v7671_v29, %v10830_v40  ;;  %v3187_v24 = vld [vmem:[#allocation3 + $0x248] sm:$0xff]  ;;  %v1142_v27 = vld [vmem:[#allocation3 + $0x270] sm:$0xff]  ;;  %v3190_v28 = vld [vmem:[#allocation3 + $0x278] sm:$0xff]  ;;  %v3700_v29 = vadd.f32 %v3188_v20, %v1140_v19 }
  0x63   :  { %5222 = vadd.xlane.f32.xlu0 %v3673_v36  ;;  %v10878_v36 = vsub.s32 %v7678_v30, %v10830_v40  ;;  %v3699_v30 = vadd.f32 %v3187_v24, %v1139_v23  ;;  %v1144_v33 = vld [vmem:[#allocation3 + $0x290] sm:$0xff]  ;;  %v3192_v34 = vld [vmem:[#allocation3 + $0x298] sm:$0xff]  ;;  %v3702_v37 = vadd.f32 %v3190_v28, %v1142_v27  ;;  %v1143_v41 = vld [vmem:[#allocation3 + $0x280] sm:$0xff] }
  0x64   :  { %v3191_v42 = vld [vmem:[#allocation3 + $0x288] sm:$0xff]  ;;  %v1147_v57 = vld [vmem:[#allocation3 + $0x2c0] sm:$0xff] }
  0x65   :  { %v3195_v58 = vld [vmem:[#allocation3 + $0x2c8] sm:$0xff]  ;;  %v1155_v23 = vld [vmem:[#allocation3 + $0x340] sm:$0xff] }
  0x66   :  { %5228 = vadd.xlane.f32.xlu1 %v3676_v45  ;;  %v1130_v45 = vld [vmem:[#allocation3 + $0x1b0] sm:$0xff]  ;;  %v3203_v24 = vld [vmem:[#allocation3 + $0x348] sm:$0xff] }
  0x67   :  { %5226 = vadd.xlane.f32.xlu0 %v3675_v46  ;;  %v3178_v46 = vld [vmem:[#allocation3 + $0x1b8] sm:$0xff]  ;;  %v3715_v28 = vadd.f32 %v3203_v24, %v1155_v23  ;;  %v1171_v23 = vld [vmem:[#allocation3 + $0x440] sm:$0xff]  ;;  %v3219_v24 = vld [vmem:[#allocation3 + $0x448] sm:$0xff] }
  0x68   :  { %v3690_v53 = vadd.f32 %v3178_v46, %v1130_v45  ;;  %v3704_v45 = vadd.f32 %v3192_v34, %v1144_v33  ;;  %v3703_v46 = vadd.f32 %v3191_v42, %v1143_v41  ;;  %v1159_v41 = vld [vmem:[#allocation3 + $0x380] sm:$0xff]  ;;  %v3207_v42 = vld [vmem:[#allocation3 + $0x388] sm:$0xff] }
  0x6a   :  { %5232 = vadd.xlane.f32.xlu1 %v3678_v54  ;;  %v3689_v54 = vadd.f32 %v3177_v52, %v1129_v51  ;;  %v1145_v51 = vld [vmem:[#allocation3 + $0x2a0] sm:$0xff]  ;;  %v3193_v52 = vld [vmem:[#allocation3 + $0x2a8] sm:$0xff] }
  0x6b   :  { %5230 = vadd.xlane.f32.xlu0 %v3677_v56  ;;  %v3180_v56 = vld [vmem:[#allocation3 + $0x1d8] sm:$0xff] }
  0x6c   :  { %v3692_v60 = vadd.f32 %v3180_v56, %v1132_v55  ;;  %v3705_v56 = vadd.f32 %v3193_v52, %v1145_v51  ;;  %v1161_v51 = vld [vmem:[#allocation3 + $0x3a0] sm:$0xff]  ;;  %v3209_v52 = vld [vmem:[#allocation3 + $0x3a8] sm:$0xff] }
  0x6e   :  { %5236 = vadd.xlane.f32.xlu1 %v3680_v63  ;;  %v1134_v63 = vld [vmem:[#allocation3 + $0x1f0] sm:$0xff] }
  0x6f   :  { %5234 = vadd.xlane.f32.xlu0 %v3679_v2  ;;  %v3181_v2 = vld [vmem:[#allocation3 + $0x1e8] sm:$0xff]  ;;  %v3694_v3 = vadd.f32 %v3182_v0, %v1134_v63  ;;  %v3707_v0 = vadd.f32 %v3195_v58, %v1147_v57  ;;  %v1163_v57 = vld [vmem:[#allocation3 + $0x3c0] sm:$0xff] }
  0x70   :  { %v3693_v4 = vadd.f32 %v3181_v2, %v1133_v1  ;;  %v1149_v1 = vld [vmem:[#allocation3 + $0x2e0] sm:$0xff]  ;;  %v3197_v2 = vld [vmem:[#allocation3 + $0x2e8] sm:$0xff] }
  0x71   :  { %v3709_v6 = vadd.f32 %v3197_v2, %v1149_v1  ;;  %v3211_v58 = vld [vmem:[#allocation3 + $0x3c8] sm:$0xff]  ;;  %v1165_v1 = vld [vmem:[#allocation3 + $0x3e0] sm:$0xff] }
  0x72   :  { %5240 = vadd.xlane.f32.xlu1 %v3682_v10  ;;  %v3183_v10 = vld [vmem:[#allocation3 + $0x208] sm:$0xff] }
  0x73   :  { %5238 = vadd.xlane.f32.xlu0 %v3681_v12  ;;  %v1138_v12 = vld [vmem:[#allocation3 + $0x230] sm:$0xff]  ;;  %v3695_v14 = vadd.f32 %v3183_v10, %v1135_v9  ;;  %v1151_v9 = vld [vmem:[#allocation3 + $0x300] sm:$0xff]  ;;  %v3199_v10 = vld [vmem:[#allocation3 + $0x308] sm:$0xff] }
  0x74   :  { %v3213_v2 = vld [vmem:[#allocation3 + $0x3e8] sm:$0xff] }
  0x76   :  { %5244 = vadd.xlane.f32.xlu1 %v3684_v21  ;;  %v3698_v21 = vadd.f32 %v3186_v13, %v1138_v12  ;;  %v3711_v13 = vadd.f32 %v3199_v10, %v1151_v9  ;;  %v1167_v9 = vld [vmem:[#allocation3 + $0x400] sm:$0xff]  ;;  %v3215_v10 = vld [vmem:[#allocation3 + $0x408] sm:$0xff] }
  0x77   :  { %5242 = vadd.xlane.f32.xlu0 %v3683_v22  ;;  %v3697_v22 = vadd.f32 %v3185_v17, %v1137_v16  ;;  %v1153_v16 = vld [vmem:[#allocation3 + $0x320] sm:$0xff]  ;;  %v3201_v17 = vld [vmem:[#allocation3 + $0x328] sm:$0xff] }
  0x78   :  { %v3713_v20 = vadd.f32 %v3201_v17, %v1153_v16  ;;  %v1169_v16 = vld [vmem:[#allocation3 + $0x420] sm:$0xff]  ;;  %v3217_v17 = vld [vmem:[#allocation3 + $0x428] sm:$0xff] }
  0x7a   :  { %5248 = vadd.xlane.f32.xlu1 %v3686_v31  ;;  %v1141_v31 = vld [vmem:[#allocation3 + $0x260] sm:$0xff] }
  0x7b   :  { %5246 = vadd.xlane.f32.xlu0 %v3685_v32  ;;  %v3189_v32 = vld [vmem:[#allocation3 + $0x268] sm:$0xff] }
  0x7c   :  { %v3701_v38 = vadd.f32 %v3189_v32, %v1141_v31  ;;  %v1157_v31 = vld [vmem:[#allocation3 + $0x360] sm:$0xff]  ;;  %v3205_v32 = vld [vmem:[#allocation3 + $0x368] sm:$0xff] }
  0x7d   :  { %v3717_v34 = vadd.f32 %v3205_v32, %v1157_v31  ;;  %v1173_v31 = vld [vmem:[#allocation3 + $0x460] sm:$0xff]  ;;  %v3221_v32 = vld [vmem:[#allocation3 + $0x468] sm:$0xff] }
  0x7e   :  { %5252 = vadd.xlane.f32.xlu1 %v3688_v43  ;;  %v1146_v43 = vld [vmem:[#allocation3 + $0x2b0] sm:$0xff] }
  0x7f   :  { %5250 = vadd.xlane.f32.xlu0 %v3687_v44  ;;  %v3194_v44 = vld [vmem:[#allocation3 + $0x2b8] sm:$0xff] }
  0x80   :  { %v3706_v55 = vadd.f32 %v3194_v44, %v1146_v43  ;;  %v3719_v44 = vadd.f32 %v3207_v42, %v1159_v41  ;;  %v1175_v41 = vld [vmem:[#allocation3 + $0x480] sm:$0xff]  ;;  %v3223_v42 = vld [vmem:[#allocation3 + $0x488] sm:$0xff] }
  0x82   :  { %5256 = vadd.xlane.f32.xlu1 %v3690_v53  ;;  %v1148_v53 = vld [vmem:[#allocation3 + $0x2d0] sm:$0xff] }
  0x83   :  { %5254 = vadd.xlane.f32.xlu0 %v3689_v54  ;;  %v3196_v54 = vld [vmem:[#allocation3 + $0x2d8] sm:$0xff] }
  0x84   :  { %v3708_v63 = vadd.f32 %v3196_v54, %v1148_v53  ;;  %v3721_v54 = vadd.f32 %v3209_v52, %v1161_v51  ;;  %v3226_v51 = vld [vmem:[#allocation3 + $0x4b8] sm:$0xff] }
  0x86   :  { %5260 = vadd.xlane.f32.xlu1 %v3692_v60  ;;  %v1150_v60 = vld [vmem:[#allocation3 + $0x2f0] sm:$0xff] }
  0x87   :  { %5258 = vadd.xlane.f32.xlu0 %v3691_v61  ;;  %v3198_v61 = vld [vmem:[#allocation3 + $0x2f8] sm:$0xff] }
  0x88   :  { %v3710_v5 = vadd.f32 %v3198_v61, %v1150_v60  ;;  %v3723_v61 = vadd.f32 %v3211_v58, %v1163_v57 }
  0x8a   :  { %5264 = vadd.xlane.f32.xlu1 %v3694_v3  ;;  %v1152_v3 = vld [vmem:[#allocation3 + $0x310] sm:$0xff] }
  0x8b   :  { %5262 = vadd.xlane.f32.xlu0 %v3693_v4  ;;  %v3200_v4 = vld [vmem:[#allocation3 + $0x318] sm:$0xff] }
  0x8c   :  { %v3712_v12 = vadd.f32 %v3200_v4, %v1152_v3  ;;  %v3725_v4 = vadd.f32 %v3213_v2, %v1165_v1  ;;  %v1179_v1 = vld [vmem:[#allocation3 + $0x4c0] sm:$0xff]  ;;  %v3227_v2 = vld [vmem:[#allocation3 + $0x4c8] sm:$0xff] }
  0x8e   :  { %5268 = vadd.xlane.f32.xlu1 %v3696_v11  ;;  %v1154_v11 = vld [vmem:[#allocation3 + $0x330] sm:$0xff] }
  0x8f   :  { %5266 = vadd.xlane.f32.xlu0 %v3695_v14  ;;  %v3202_v14 = vld [vmem:[#allocation3 + $0x338] sm:$0xff] }
  0x90   :  { %v3714_v19 = vadd.f32 %v3202_v14, %v1154_v11  ;;  %v3218_v14 = vld [vmem:[#allocation3 + $0x438] sm:$0xff] }
  0x92   :  { %5272 = vadd.xlane.f32.xlu1 %v3698_v21  ;;  %v1156_v21 = vld [vmem:[#allocation3 + $0x350] sm:$0xff] }
  0x93   :  { %5270 = vadd.xlane.f32.xlu0 %v3697_v22  ;;  %v3204_v22 = vld [vmem:[#allocation3 + $0x358] sm:$0xff] }
  0x94   :  { %v3716_v27 = vadd.f32 %v3204_v22, %v1156_v21  ;;  %v1172_v21 = vld [vmem:[#allocation3 + $0x450] sm:$0xff]  ;;  %v3220_v22 = vld [vmem:[#allocation3 + $0x458] sm:$0xff] }
  0x96   :  { %5276 = vadd.xlane.f32.xlu1 %v3700_v29  ;;  %v1158_v29 = vld [vmem:[#allocation3 + $0x370] sm:$0xff] }
  0x97   :  { %5274 = vadd.xlane.f32.xlu0 %v3699_v30  ;;  %v3206_v30 = vld [vmem:[#allocation3 + $0x378] sm:$0xff] }
  0x98   :  { %v3718_v33 = vadd.f32 %v3206_v30, %v1158_v29  ;;  %v1174_v29 = vld [vmem:[#allocation3 + $0x470] sm:$0xff]  ;;  %v3222_v30 = vld [vmem:[#allocation3 + $0x478] sm:$0xff] }
  0x9a   :  { %5280 = vadd.xlane.f32.xlu1 %v3702_v37  ;;  %v1160_v37 = vld [vmem:[#allocation3 + $0x390] sm:$0xff] }
  0x9b   :  { %5278 = vadd.xlane.f32.xlu0 %v3701_v38  ;;  %v3208_v38 = vld [vmem:[#allocation3 + $0x398] sm:$0xff] }
  0x9c   :  { %v3720_v43 = vadd.f32 %v3208_v38, %v1160_v37  ;;  %v1176_v37 = vld [vmem:[#allocation3 + $0x490] sm:$0xff]  ;;  %v3224_v38 = vld [vmem:[#allocation3 + $0x498] sm:$0xff] }
  0x9e   :  { %5284 = vadd.xlane.f32.xlu1 %v3704_v45  ;;  %v1162_v45 = vld [vmem:[#allocation3 + $0x3b0] sm:$0xff] }
  0x9f   :  { %5282 = vadd.xlane.f32.xlu0 %v3703_v46  ;;  %v3210_v46 = vld [vmem:[#allocation3 + $0x3b8] sm:$0xff] }
  0xa0   :  { %v3722_v53 = vadd.f32 %v3210_v46, %v1162_v45  ;;  %v3735_v45 = vadd.f32 %v3223_v42, %v1175_v41  ;;  %v1178_v46 = vld [vmem:[#allocation3 + $0x4b0] sm:$0xff]  ;;  %v1183_v41 = vld [vmem:[#allocation3 + $0x500] sm:$0xff]  ;;  %v3231_v42 = vld [vmem:[#allocation3 + $0x508] sm:$0xff] }
  0xa2   :  { %5288 = vadd.xlane.f32.xlu1 %v3706_v55  ;;  %v1164_v55 = vld [vmem:[#allocation3 + $0x3d0] sm:$0xff] }
  0xa3   :  { %5286 = vadd.xlane.f32.xlu0 %v3705_v56  ;;  %v3212_v56 = vld [vmem:[#allocation3 + $0x3d8] sm:$0xff] }
  0xa4   :  { %v3724_v60 = vadd.f32 %v3212_v56, %v1164_v55  ;;  %v6683_v55 = vadd.s32 4294967288, %v10828_v39  ;;  %v3738_v56 = vadd.f32 %v3226_v51, %v1178_v46 }
  0xa6   :  { %5292 = vadd.xlane.f32.xlu1 %v3708_v63  ;;  %v1166_v63 = vld [vmem:[#allocation3 + $0x3f0] sm:$0xff] }
  0xa7   :  { %5290 = vadd.xlane.f32.xlu0 %v3707_v0  ;;  %v3214_v0 = vld [vmem:[#allocation3 + $0x3f8] sm:$0xff] }
  0xa8   :  { %v3726_v3 = vadd.f32 %v3214_v0, %v1166_v63 }
  0xaa   :  { %5296 = vadd.xlane.f32.xlu1 %v3710_v5  ;;  %v1168_v5 = vld [vmem:[#allocation3 + $0x410] sm:$0xff] }
  0xab   :  { %5294 = vadd.xlane.f32.xlu0 %v3709_v6  ;;  %v3216_v6 = vld [vmem:[#allocation3 + $0x418] sm:$0xff] }
  0xac   :  { %v3728_v11 = vadd.f32 %v3216_v6, %v1168_v5 }
  0xae   :  { %5300 = vadd.xlane.f32.xlu1 %v3712_v12  ;;  %v3727_v12 = vadd.f32 %v3215_v10, %v1167_v9 }
  0xaf   :  { %5298 = vadd.xlane.f32.xlu0 %v3711_v13  ;;  %v1170_v13 = vld [vmem:[#allocation3 + $0x430] sm:$0xff] }
  0xb2   :  { %5304 = vadd.xlane.f32.xlu1 %v3714_v19  ;;  %v3730_v19 = vadd.f32 %v3218_v14, %v1170_v13  ;;  %v3739_v14 = vadd.f32 %v3227_v2, %v1179_v1 }
  0xb3   :  { %5302 = vadd.xlane.f32.xlu0 %v3713_v20  ;;  %v3729_v20 = vadd.f32 %v3217_v17, %v1169_v16  ;;  %v1182_v16 = vld [vmem:[#allocation3 + $0x4f0] sm:$0xff]  ;;  %v3230_v17 = vld [vmem:[#allocation3 + $0x4f8] sm:$0xff] }
  0xb6   :  { %5308 = vadd.xlane.f32.xlu1 %v3716_v27  ;;  %v3732_v27 = vadd.f32 %v3220_v22, %v1172_v21  ;;  %v3229_v21 = vld [vmem:[#allocation3 + $0x4e8] sm:$0xff] }
  0xb7   :  { %5306 = vadd.xlane.f32.xlu0 %v3715_v28  ;;  %v3731_v28 = vadd.f32 %v3219_v24, %v1171_v23 }
  0xba   :  { %5312 = vadd.xlane.f32.xlu1 %v3718_v33  ;;  %v3734_v33 = vadd.f32 %v3222_v30, %v1174_v29 }
  0xbb   :  { %5310 = vadd.xlane.f32.xlu0 %v3717_v34  ;;  %v3733_v34 = vadd.f32 %v3221_v32, %v1173_v31 }
  0xbe   :  { %5316 = vadd.xlane.f32.xlu1 %v3720_v43  ;;  %v3736_v43 = vadd.f32 %v3224_v38, %v1176_v37 }
  0xbf   :  { %5314 = vadd.xlane.f32.xlu0 %v3719_v44 }
  0xc2   :  { %5320 = vadd.xlane.f32.xlu1 %v3722_v53  ;;  %v1177_v53 = vld [vmem:[#allocation3 + $0x4a0] sm:$0xff] }
  0xc3   :  { %5318 = vadd.xlane.f32.xlu0 %v3721_v54  ;;  %v3225_v54 = vld [vmem:[#allocation3 + $0x4a8] sm:$0xff] }
  0xc4   :  { %v3737_v58 = vadd.f32 %v3225_v54, %v1177_v53 }
  0xc6   :  { %5324 = vadd.xlane.f32.xlu1 %v3724_v60  ;;  %v1180_v60 = vld [vmem:[#allocation3 + $0x4d0] sm:$0xff] }
  0xc7   :  { %5322 = vadd.xlane.f32.xlu0 %v3723_v61  ;;  %v3228_v61 = vld [vmem:[#allocation3 + $0x4d8] sm:$0xff] }
  0xc8   :  { %v3740_v10 = vadd.f32 %v3228_v61, %v1180_v60 }
  0xca   :  { %5328 = vadd.xlane.f32.xlu1 %v3726_v3  ;;  %v10891_v3 = vsub.s32 %v10828_v39, %v10830_v40 }
  0xcb   :  { %5326 = vadd.xlane.f32.xlu0 %v3725_v4  ;;  %v10894_v4 = vsub.s32 %v6683_v55, %v10830_v40  ;;  %v1181_v40 = vld [vmem:[#allocation3 + $0x4e0] sm:$0xff] }
  0xcc   :  { %v3741_v32 = vadd.f32 %v3229_v21, %v1181_v40 }
  0xce   :  { %5332 = vadd.xlane.f32.xlu1 %v3728_v11 }
  0xcf   :  { %5330 = vadd.xlane.f32.xlu0 %v3727_v12 }
  0xd2   :  { %5336 = vadd.xlane.f32.xlu1 %v3730_v19 }
  0xd3   :  { %5334 = vadd.xlane.f32.xlu0 %v3729_v20 }
  0xd6   :  { %5340 = vadd.xlane.f32.xlu1 %v3732_v27  ;;  %v3742_v27 = vadd.f32 %v3230_v17, %v1182_v16  ;;  %v3236_v16 = vld [vmem:[#allocation3 + $0x558] sm:$0xff] }
  0xd7   :  { %5338 = vadd.xlane.f32.xlu0 %v3731_v28 }
  0xda   :  { %5344 = vadd.xlane.f32.xlu1 %v3734_v33  ;;  %v1184_v33 = vld [vmem:[#allocation3 + $0x510] sm:$0xff] }
  0xdb   :  { %5342 = vadd.xlane.f32.xlu0 %v3733_v34  ;;  %v5207_v44 = vpop.xlane.xlu1 %5206  ;;  %v3232_v34 = vld [vmem:[#allocation3 + $0x518] sm:$0xff] }
  0xdc   :  { %v5203_v52 = vpop.xlane.xlu0 %5202  ;;  %v3744_v51 = vadd.f32 %v3232_v34, %v1184_v33 }
  0xde   :  { %5348 = vadd.xlane.f32.xlu1 %v3736_v43 }
  0xdf   :  { %5346 = vadd.xlane.f32.xlu0 %v3735_v45  ;;  %v5209_v57 = vpop.xlane.xlu1 %5208 }
  0xe0   :  { %v6324_v63 = vpack.c.bf16 %v5209_v57, %v5207_v44  ;;  %v5205_v0 = vpop.xlane.xlu0 %5204  ;;  %v1186_v57 = vld [vmem:[#allocation3 + $0x530] sm:$0xff] }
  0xe1   :  { %v6323_v5 = vpack.c.bf16 %v5205_v0, %v5203_v52  ;;  %v3233_v0 = vld [vmem:[#allocation3 + $0x528] sm:$0xff] }
  0xe2   :  { %v7082_v6 = vunpack.c.l.b16 %v6324_v63  ;;  %v7083_v9 = vunpack.c.h.b16 %v6324_v63  ;;  %5352 = vadd.xlane.f32.xlu1 %v3738_v56  ;;  %v3743_v56 = vadd.f32 %v3231_v42, %v1183_v41  ;;  %v1185_v63 = vld [vmem:[#allocation3 + $0x520] sm:$0xff] }
  0xe3   :  { %v7080_v11 = vunpack.c.l.b16 %v6323_v5  ;;  %v7081_v12 = vunpack.c.h.b16 %v6323_v5  ;;  %5350 = vadd.xlane.f32.xlu0 %v3737_v58  ;;  %v5213_v13 = vpop.xlane.xlu1 %5212  ;;  %v3234_v58 = vld [vmem:[#allocation3 + $0x538] sm:$0xff] }
  0xe4   :  { %v7605_v19 = vrot.slane %v7082_v6, %v10835_v49  ;;  %v7612_v39 = vrot.slane %v7083_v9, %v10838_v50  ;;  %v5211_v20 = vpop.xlane.xlu0 %5210  ;;  %v3746_v6 = vadd.f32 %v3234_v58, %v1186_v57  ;;  %v1191_v58 = vld [vmem:[#allocation3 + $0x580] sm:$0xff] }
  0xe5   :  { %v7595_v22 = vrot.slane %v7080_v11, %v10891_v3  ;;  %v7599_v23 = vrot.slane %v7081_v12, %v10894_v4  ;;  %v6325_v24 = vpack.c.bf16 %v5213_v13, %v5211_v20  ;;  %v3745_v13 = vadd.f32 %v3233_v0, %v1185_v63  ;;  %v3235_v20 = vld [vmem:[#allocation3 + $0x548] sm:$0xff] }
  0xe6   :  { %5356 = vadd.xlane.f32.xlu1 %v3740_v10 }
  0xe7   :  { %v7600_v28 = vsel %vm6688_vm0, %v7599_v23, %v7595_v22  ;;  %v7084_v29 = vunpack.c.l.b16 %v6325_v24  ;;  %v7085_v30 = vunpack.c.h.b16 %v6325_v24  ;;  %5354 = vadd.xlane.f32.xlu0 %v3739_v14  ;;  %v5217_v31 = vpop.xlane.xlu1 %5216  ;;  %v1188_v14 = vld [vmem:[#allocation3 + $0x550] sm:$0xff] }
  0xe8   :  { %v7607_v37 = vsel %vm7606_vm1, %v7605_v19, %v7600_v28  ;;  %v5215_v38 = vpop.xlane.xlu0 %5214  ;;  %v3748_v23 = vadd.f32 %v3236_v16, %v1188_v14  ;;  %v1193_v16 = vld [vmem:[#allocation3 + $0x5a0] sm:$0xff] }
  0xe9   :  { %v7614_v43 = vsel %vm7613_vm2, %v7612_v39, %v7607_v37  ;;  %v7619_v44 = vrot.slane %v7084_v29, %v10843_v59  ;;  %v7626_v45 = vrot.slane %v7085_v30, %v10846_v62  ;;  %v6326_v46 = vpack.c.bf16 %v5217_v31, %v5215_v38  ;;  %v1187_v39 = vld [vmem:[#allocation3 + $0x540] sm:$0xff]  ;;  %v1190_v31 = vld [vmem:[#allocation3 + $0x570] sm:$0xff]  ;;  %v3237_v38 = vld [vmem:[#allocation3 + $0x568] sm:$0xff] }
  0xea   :  { %5360 = vadd.xlane.f32.xlu1 %v3742_v27  ;;  %v3747_v30 = vadd.f32 %v3235_v20, %v1187_v39  ;;  %v1189_v37 = vld [vmem:[#allocation3 + $0x560] sm:$0xff] }
  0xeb   :  { %v7621_v52 = vsel %vm7620_vm3, %v7619_v44, %v7614_v43  ;;  %v7086_v53 = vunpack.c.l.b16 %v6326_v46  ;;  %v7087_v54 = vunpack.c.h.b16 %v6326_v46  ;;  %5358 = vadd.xlane.f32.xlu0 %v3741_v32  ;;  %v5221_v55 = vpop.xlane.xlu1 %5220  ;;  %v3238_v32 = vld [vmem:[#allocation3 + $0x578] sm:$0xff] }
  0xec   :  { %v7628_v60 = vsel %vm12361_vm4, %v7626_v45, %v7621_v52  ;;  %v5219_v61 = vpop.xlane.xlu0 %5218  ;;  %v3750_v44 = vadd.f32 %v3238_v32, %v1190_v31  ;;  %v1195_v32 = vld [vmem:[#allocation3 + $0x5c0] sm:$0xff] }
  0xed   :  { %v7633_v1 = vrot.slane %v7086_v53, %v10851_v7  ;;  %v7640_v2 = vrot.slane %v7087_v54, %v10854_v8  ;;  %v6327_v5 = vpack.c.bf16 %v5221_v55, %v5219_v61  ;;  %v3749_v53 = vadd.f32 %v3237_v38, %v1189_v37  ;;  %v1192_v54 = vld [vmem:[#allocation3 + $0x590] sm:$0xff]  ;;  %v3240_v55 = vld [vmem:[#allocation3 + $0x598] sm:$0xff] }
  0xee   :  { %5364 = vadd.xlane.f32.xlu1 %v3744_v51 }
  0xef   :  { %v7635_v9 = vsel %vm7634_vm5, %v7633_v1, %v7628_v60  ;;  %v7088_v10 = vunpack.c.l.b16 %v6327_v5  ;;  %v7089_v11 = vunpack.c.h.b16 %v6327_v5  ;;  %5362 = vadd.xlane.f32.xlu0 %v3743_v56  ;;  %v5225_v12 = vpop.xlane.xlu1 %5224  ;;  %v3239_v60 = vld [vmem:[#allocation3 + $0x588] sm:$0xff]  ;;  %v3752_v1 = vadd.f32 %v3240_v55, %v1192_v54 }
  0xf0   :  { %v7642_v17 = vsel %vm12360_vm6, %v7640_v2, %v7635_v9  ;;  %v5223_v19 = vpop.xlane.xlu0 %5222  ;;  %v3245_v54 = vld [vmem:[#allocation3 + $0x5e8] sm:$0xff] }
  0xf1   :  { %v7647_v40 = vrot.slane %v7088_v10, %v10859_v15  ;;  %v7654_v21 = vrot.slane %v7089_v11, %v10862_v18  ;;  %v6328_v22 = vpack.c.bf16 %v5225_v12, %v5223_v19  ;;  %v3751_v10 = vadd.f32 %v3239_v60, %v1191_v58  ;;  %v1194_v11 = vld [vmem:[#allocation3 + $0x5b0] sm:$0xff]  ;;  %v3242_v12 = vld [vmem:[#allocation3 + $0x5b8] sm:$0xff] }
  0xf2   :  { %5368 = vadd.xlane.f32.xlu1 %v3746_v6 }
  0xf3   :  { %v7649_v24 = vsel %vm12359_vm7, %v7647_v40, %v7642_v17  ;;  %v7090_v27 = vunpack.c.l.b16 %v6328_v22  ;;  %v7091_v28 = vunpack.c.h.b16 %v6328_v22  ;;  %5366 = vadd.xlane.f32.xlu0 %v3745_v13  ;;  %v5229_v29 = vpop.xlane.xlu1 %5228  ;;  %v3241_v17 = vld [vmem:[#allocation3 + $0x5a8] sm:$0xff]  ;;  %v3754_v40 = vadd.f32 %v3242_v12, %v1194_v11  ;;  %v1199_v11 = vld [vmem:[#allocation3 + $0x600] sm:$0xff] }
  0xf4   :  { %v7656_v33 = vsel %vm7655_vm8, %v7654_v21, %v7649_v24  ;;  %v5227_v34 = vpop.xlane.xlu0 %5226  ;;  %v3247_v12 = vld [vmem:[#allocation3 + $0x608] sm:$0xff] }
  0xf5   :  { %v7661_v41 = vrot.slane %v7090_v27, %v10867_v25  ;;  %v7668_v42 = vrot.slane %v7091_v28, %v10870_v26  ;;  %v6329_v43 = vpack.c.bf16 %v5229_v29, %v5227_v34  ;;  %v3753_v27 = vadd.f32 %v3241_v17, %v1193_v16  ;;  %v1196_v28 = vld [vmem:[#allocation3 + $0x5d0] sm:$0xff]  ;;  %v3244_v29 = vld [vmem:[#allocation3 + $0x5d8] sm:$0xff] }
  0xf6   :  { %5372 = vadd.xlane.f32.xlu1 %v3748_v23 }
  0xf7   :  { %v7663_v45 = vsel %vm7662_vm9, %v7661_v41, %v7656_v33  ;;  %v7092_v46 = vunpack.c.l.b16 %v6329_v43  ;;  %v7093_v51 = vunpack.c.h.b16 %v6329_v43  ;;  %5370 = vadd.xlane.f32.xlu0 %v3747_v30  ;;  %v5233_v52 = vpop.xlane.xlu1 %5232  ;;  %v3243_v33 = vld [vmem:[#allocation3 + $0x5c8] sm:$0xff]  ;;  %v3756_v41 = vadd.f32 %v3244_v29, %v1196_v28  ;;  %v1201_v28 = vld [vmem:[#allocation3 + $0x620] sm:$0xff] }
  0xf8   :  { %v7670_v56 = vsel %vm7669_vm10, %v7668_v42, %v7663_v45  ;;  %v5231_v57 = vpop.xlane.xlu0 %5230  ;;  %v3755_v45 = vadd.f32 %v3243_v33, %v1195_v32  ;;  %v3249_v29 = vld [vmem:[#allocation3 + $0x628] sm:$0xff] }
  0xf9   :  { %v7675_v61 = vrot.slane %v7092_v46, %v10875_v35  ;;  %v7682_v63 = vrot.slane %v7093_v51, %v10878_v36  ;;  %v6330_v0 = vpack.c.bf16 %v5233_v52, %v5231_v57  ;;  %v1198_v46 = vld [vmem:[#allocation3 + $0x5f0] sm:$0xff]  ;;  %v3246_v51 = vld [vmem:[#allocation3 + $0x5f8] sm:$0xff] }
  0xfa   :  { %5376 = vadd.xlane.f32.xlu1 %v3750_v44  ;;  %v3758_v60 = vadd.f32 %v3246_v51, %v1198_v46 }
  0xfb   :  { %v7677_v2 = vsel %vm7676_vm11, %v7675_v61, %v7670_v56  ;;  %v7094_v5 = vunpack.c.l.b16 %v6330_v0  ;;  %v7095_v6 = vunpack.c.h.b16 %v6330_v0  ;;  %5374 = vadd.xlane.f32.xlu0 %v3749_v53  ;;  %v5237_v9 = vpop.xlane.xlu1 %5236  ;;  %v1197_v53 = vld [vmem:[#allocation3 + $0x5e0] sm:$0xff] }
  0xfc   :  { %v7684_v13 = vsel %vm7683_vm12, %v7682_v63, %v7677_v2  ;;  %v5235_v14 = vpop.xlane.xlu0 %5234  ;;  %v3757_v2 = vadd.f32 %v3245_v54, %v1197_v53  ;;  %v3251_v53 = vld [vmem:[#allocation3 + $0x648] sm:$0xff] }
  0xfd   :  { %v7689_v19 = vrot.slane %v7094_v5, %v10883_v47  ;;  %v7696_v39 = vrot.slane %v7095_v6, %v10886_v48  ;;  %v6331_v20 = vpack.c.bf16 %v5237_v9, %v5235_v14  ;;  %v1200_v5 = vld [vmem:[#allocation3 + $0x610] sm:$0xff]  ;;  %v3248_v6 = vld [vmem:[#allocation3 + $0x618] sm:$0xff] }
  0xfe   :  { %5380 = vadd.xlane.f32.xlu1 %v3752_v1  ;;  %v3760_v17 = vadd.f32 %v3248_v6, %v1200_v5 }
  0xff   :  { %v7691_v21 = vsel %vm12363_vm13, %v7689_v19, %v7684_v13  ;;  %v7096_v22 = vunpack.c.l.b16 %v6331_v20  ;;  %v7097_v23 = vunpack.c.h.b16 %v6331_v20  ;;  %5378 = vadd.xlane.f32.xlu0 %v3751_v10  ;;  %v5241_v24 = vpop.xlane.xlu1 %5240 }
 0x100   :  { %v10927_v30 = vsel %vm12362_vm14, %v7696_v39, %v7691_v21  ;;  %v5239_v31 = vpop.xlane.xlu0 %5238  ;;  %v3759_v21 = vadd.f32 %v3247_v12, %v1199_v11 }
 0x101   :  { %v6332_v34 = vpack.c.bf16 %v5241_v24, %v5239_v31  ;;  %v7702_v37 = vrot.slane %v7096_v22, %v10891_v3  ;;  %v7706_v38 = vrot.slane %v7097_v23, %v10894_v4  ;;  %v1202_v22 = vld [vmem:[#allocation3 + $0x630] sm:$0xff]  ;;  %v3250_v23 = vld [vmem:[#allocation3 + $0x638] sm:$0xff] }
 0x102   :  { %5384 = vadd.xlane.f32.xlu1 %v3754_v40 }
 0x103   :  { %v7098_v42 = vunpack.c.l.b16 %v6332_v34  ;;  %v7099_v43 = vunpack.c.h.b16 %v6332_v34  ;;  %5382 = vadd.xlane.f32.xlu0 %v3753_v27  ;;  %v5245_v44 = vpop.xlane.xlu1 %5244  ;;  %v7707_v58 = vsel %vm6688_vm0, %v7706_v38, %v7702_v37  ;;  %v3762_v34 = vadd.f32 %v3250_v23, %v1202_v22 }
 0x104   :  { %v5243_v52 = vpop.xlane.xlu0 %5242 }
 0x105   :  { %v7711_v55 = vrot.slane %v7098_v42, %v10835_v49  ;;  %v7716_v56 = vrot.slane %v7099_v43, %v10838_v50  ;;  %v6333_v57 = vpack.c.bf16 %v5245_v44, %v5243_v52  ;;  %v3761_v43 = vadd.f32 %v3249_v29, %v1201_v28  ;;  %v1204_v44 = vld [vmem:[#allocation3 + $0x650] sm:$0xff]  ;;  %v1203_v52 = vld [vmem:[#allocation3 + $0x640] sm:$0xff] }
 0x106   :  { %5388 = vadd.xlane.f32.xlu1 %v3756_v41 }
 0x107   :  { %v7712_v61 = vsel %vm7606_vm1, %v7711_v55, %v7707_v58  ;;  %v7100_v63 = vunpack.c.l.b16 %v6333_v57  ;;  %v7101_v0 = vunpack.c.h.b16 %v6333_v57  ;;  %5386 = vadd.xlane.f32.xlu0 %v3755_v45  ;;  %v5249_v1 = vpop.xlane.xlu1 %5248  ;;  %v3252_v45 = vld [vmem:[#allocation3 + $0x658] sm:$0xff] }
 0x108   :  { %v7717_v9 = vsel %vm7613_vm2, %v7716_v56, %v7712_v61  ;;  %v5247_v10 = vpop.xlane.xlu0 %5246  ;;  %v3764_v57 = vadd.f32 %v3252_v45, %v1204_v44 }
 0x109   :  { %v7721_v13 = vrot.slane %v7100_v63, %v10843_v59  ;;  %v7726_v14 = vrot.slane %v7101_v0, %v10846_v62  ;;  %v6334_v16 = vpack.c.bf16 %v5249_v1, %v5247_v10  ;;  %v3763_v0 = vadd.f32 %v3251_v53, %v1203_v52  ;;  %v1206_v1 = vld [vmem:[#allocation3 + $0x670] sm:$0xff]  ;;  %v3253_v10 = vld [vmem:[#allocation3 + $0x668] sm:$0xff] }
 0x10a   :  { %5392 = vadd.xlane.f32.xlu1 %v3758_v60 }
 0x10b   :  { %v7722_v19 = vsel %vm7620_vm3, %v7721_v13, %v7717_v9  ;;  %v7102_v39 = vunpack.c.l.b16 %v6334_v16  ;;  %v7103_v20 = vunpack.c.h.b16 %v6334_v16  ;;  %5390 = vadd.xlane.f32.xlu0 %v3757_v2  ;;  %v5253_v40 = vpop.xlane.xlu1 %5252  ;;  %v3254_v2 = vld [vmem:[#allocation3 + $0x678] sm:$0xff]  ;;  %v1205_v9 = vld [vmem:[#allocation3 + $0x660] sm:$0xff] }
 0x10c   :  { %v7727_v24 = vsel %vm12361_vm4, %v7726_v14, %v7722_v19  ;;  %v5251_v27 = vpop.xlane.xlu0 %5250  ;;  %v3766_v14 = vadd.f32 %v3254_v2, %v1206_v1 }
 0x10d   :  { %v7731_v31 = vrot.slane %v7102_v39, %v10851_v7  ;;  %v7736_v32 = vrot.slane %v7103_v20, %v10854_v8  ;;  %v6335_v33 = vpack.c.bf16 %v5253_v40, %v5251_v27  ;;  %v3765_v20 = vadd.f32 %v3253_v10, %v1205_v9  ;;  %v1208_v40 = vld [vmem:[#allocation3 + $0x690] sm:$0xff]  ;;  %v3255_v27 = vld [vmem:[#allocation3 + $0x688] sm:$0xff] }
 0x10e   :  { %5396 = vadd.xlane.f32.xlu1 %v3760_v17 }
 0x10f   :  { %v7732_v37 = vsel %vm7634_vm5, %v7731_v31, %v7727_v24  ;;  %v7104_v38 = vunpack.c.l.b16 %v6335_v33  ;;  %v7105_v41 = vunpack.c.h.b16 %v6335_v33  ;;  %5394 = vadd.xlane.f32.xlu0 %v3759_v21  ;;  %v5257_v42 = vpop.xlane.xlu1 %5256  ;;  %v3256_v21 = vld [vmem:[#allocation3 + $0x698] sm:$0xff]  ;;  %v1207_v24 = vld [vmem:[#allocation3 + $0x680] sm:$0xff] }
 0x110   :  { %v7737_v46 = vsel %vm12360_vm6, %v7736_v32, %v7732_v37  ;;  %v5255_v51 = vpop.xlane.xlu0 %5254  ;;  %v3768_v32 = vadd.f32 %v3256_v21, %v1208_v40  ;;  %v1213_v40 = vld [vmem:[#allocation3 + $0x6e0] sm:$0xff]  ;;  %v3261_v21 = vld [vmem:[#allocation3 + $0x6e8] sm:$0xff] }
 0x111   :  { %v7741_v54 = vrot.slane %v7104_v38, %v10859_v15  ;;  %v7746_v55 = vrot.slane %v7105_v41, %v10862_v18  ;;  %v6336_v56 = vpack.c.bf16 %v5257_v42, %v5255_v51  ;;  %v3767_v41 = vadd.f32 %v3255_v27, %v1207_v24  ;;  %v1210_v42 = vld [vmem:[#allocation3 + $0x6b0] sm:$0xff]  ;;  %v3257_v51 = vld [vmem:[#allocation3 + $0x6a8] sm:$0xff] }
 0x112   :  { %5400 = vadd.xlane.f32.xlu1 %v3762_v34 }
 0x113   :  { %v7742_v58 = vsel %vm12359_vm7, %v7741_v54, %v7737_v46  ;;  %v7106_v60 = vunpack.c.l.b16 %v6336_v56  ;;  %v7107_v61 = vunpack.c.h.b16 %v6336_v56  ;;  %5398 = vadd.xlane.f32.xlu0 %v3761_v43  ;;  %v5261_v63 = vpop.xlane.xlu1 %5260  ;;  %v3258_v43 = vld [vmem:[#allocation3 + $0x6b8] sm:$0xff]  ;;  %v1209_v46 = vld [vmem:[#allocation3 + $0x6a0] sm:$0xff] }
 0x114   :  { %v7747_v5 = vsel %vm7655_vm8, %v7746_v55, %v7742_v58  ;;  %v5259_v6 = vpop.xlane.xlu0 %5258  ;;  %v3770_v55 = vadd.f32 %v3258_v43, %v1210_v42  ;;  %v1215_v43 = vld [vmem:[#allocation3 + $0x700] sm:$0xff] }
 0x115   :  { %v7751_v11 = vrot.slane %v7106_v60, %v10867_v25  ;;  %v7756_v12 = vrot.slane %v7107_v61, %v10870_v26  ;;  %v6337_v13 = vpack.c.bf16 %v5261_v63, %v5259_v6  ;;  %v3769_v61 = vadd.f32 %v3257_v51, %v1209_v46  ;;  %v1212_v63 = vld [vmem:[#allocation3 + $0x6d0] sm:$0xff]  ;;  %v3259_v6 = vld [vmem:[#allocation3 + $0x6c8] sm:$0xff] }
 0x116   :  { %5404 = vadd.xlane.f32.xlu1 %v3764_v57 }
 0x117   :  { %v7752_v16 = vsel %vm7662_vm9, %v7751_v11, %v7747_v5  ;;  %v7108_v17 = vunpack.c.l.b16 %v6337_v13  ;;  %v7109_v19 = vunpack.c.h.b16 %v6337_v13  ;;  %5402 = vadd.xlane.f32.xlu0 %v3763_v0  ;;  %v5265_v39 = vpop.xlane.xlu1 %5264  ;;  %v3260_v0 = vld [vmem:[#allocation3 + $0x6d8] sm:$0xff]  ;;  %v1211_v5 = vld [vmem:[#allocation3 + $0x6c0] sm:$0xff] }
 0x118   :  { %v7757_v22 = vsel %vm7669_vm10, %v7756_v12, %v7752_v16  ;;  %v5263_v23 = vpop.xlane.xlu0 %5262  ;;  %v3772_v12 = vadd.f32 %v3260_v0, %v1212_v63  ;;  %v1217_v0 = vld [vmem:[#allocation3 + $0x720] sm:$0xff] }
 0x119   :  { %v7761_v28 = vrot.slane %v7108_v17, %v10875_v35  ;;  %v7766_v29 = vrot.slane %v7109_v19, %v10878_v36  ;;  %v6338_v31 = vpack.c.bf16 %v5265_v39, %v5263_v23  ;;  %v3771_v17 = vadd.f32 %v3259_v6, %v1211_v5  ;;  %v1214_v19 = vld [vmem:[#allocation3 + $0x6f0] sm:$0xff]  ;;  %v3262_v39 = vld [vmem:[#allocation3 + $0x6f8] sm:$0xff] }
 0x11a   :  { %5408 = vadd.xlane.f32.xlu1 %v3766_v14 }
 0x11b   :  { %v7762_v33 = vsel %vm7676_vm11, %v7761_v28, %v7757_v22  ;;  %v7110_v34 = vunpack.c.l.b16 %v6338_v31  ;;  %v7111_v37 = vunpack.c.h.b16 %v6338_v31  ;;  %5406 = vadd.xlane.f32.xlu0 %v3765_v20  ;;  %v5269_v38 = vpop.xlane.xlu1 %5268  ;;  %v3774_v28 = vadd.f32 %v3262_v39, %v1214_v19  ;;  %v3268_v19 = vld [vmem:[#allocation3 + $0x758] sm:$0xff] }
 0x11c   :  { %v7767_v44 = vsel %vm7683_vm12, %v7766_v29, %v7762_v33  ;;  %v5267_v45 = vpop.xlane.xlu0 %5266 }
 0x11d   :  { %v7771_v52 = vrot.slane %v7110_v34, %v10883_v47  ;;  %v7776_v53 = vrot.slane %v7111_v37, %v10886_v48  ;;  %v6339_v54 = vpack.c.bf16 %v5269_v38, %v5267_v45  ;;  %v3773_v34 = vadd.f32 %v3261_v21, %v1213_v40  ;;  %v1216_v37 = vld [vmem:[#allocation3 + $0x710] sm:$0xff]  ;;  %v3264_v38 = vld [vmem:[#allocation3 + $0x718] sm:$0xff]  ;;  %v1219_v40 = vld [vmem:[#allocation3 + $0x740] sm:$0xff] }
 0x11e   :  { %5412 = vadd.xlane.f32.xlu1 %v3768_v32  ;;  %v3267_v21 = vld [vmem:[#allocation3 + $0x748] sm:$0xff] }
 0x11f   :  { %v7772_v56 = vsel %vm12363_vm13, %v7771_v52, %v7767_v44  ;;  %v7112_v57 = vunpack.c.l.b16 %v6339_v54  ;;  %v7113_v58 = vunpack.c.h.b16 %v6339_v54  ;;  %5410 = vadd.xlane.f32.xlu0 %v3767_v41  ;;  %v5273_v60 = vpop.xlane.xlu1 %5272  ;;  %v3263_v44 = vld [vmem:[#allocation3 + $0x708] sm:$0xff]  ;;  %v3776_v52 = vadd.f32 %v3264_v38, %v1216_v37  ;;  %v3270_v37 = vld [vmem:[#allocation3 + $0x778] sm:$0xff] }
 0x120   :  { %v10960_v1 = vsel %vm12362_vm14, %v7776_v53, %v7772_v56  ;;  %v5271_v2 = vpop.xlane.xlu0 %5270 }
 0x121   :  { %v6340_v9 = vpack.c.bf16 %v5273_v60, %v5271_v2  ;;  %v7781_v10 = vrot.slane %v7112_v57, %v10891_v3  ;;  %v7785_v11 = vrot.slane %v7113_v58, %v10894_v4  ;;  %v3775_v57 = vadd.f32 %v3263_v44, %v1215_v43  ;;  %v1218_v58 = vld [vmem:[#allocation3 + $0x730] sm:$0xff]  ;;  %v3266_v60 = vld [vmem:[#allocation3 + $0x738] sm:$0xff]  ;;  %v3265_v2 = vld [vmem:[#allocation3 + $0x728] sm:$0xff] }
 0x122   :  { %5416 = vadd.xlane.f32.xlu1 %v3770_v55  ;;  %v3269_v43 = vld [vmem:[#allocation3 + $0x768] sm:$0xff] }
 0x123   :  { %v7114_v13 = vunpack.c.l.b16 %v6340_v9  ;;  %v7115_v14 = vunpack.c.h.b16 %v6340_v9  ;;  %5414 = vadd.xlane.f32.xlu0 %v3769_v61  ;;  %v5277_v16 = vpop.xlane.xlu1 %5276  ;;  %v7786_v27 = vsel %vm6688_vm0, %v7785_v11, %v7781_v10  ;;  %v3778_v10 = vadd.f32 %v3266_v60, %v1218_v58  ;;  %v3272_v58 = vld [vmem:[#allocation3 + $0x798] sm:$0xff] }
 0x124   :  { %v5275_v20 = vpop.xlane.xlu0 %5274 }
 0x125   :  { %v7790_v22 = vrot.slane %v7114_v13, %v10835_v49  ;;  %v7795_v23 = vrot.slane %v7115_v14, %v10838_v50  ;;  %v6341_v24 = vpack.c.bf16 %v5277_v16, %v5275_v20  ;;  %v3777_v16 = vadd.f32 %v3265_v2, %v1217_v0  ;;  %v3271_v0 = vld [vmem:[#allocation3 + $0x788] sm:$0xff] }
 0x126   :  { %5420 = vadd.xlane.f32.xlu1 %v3772_v12 }
 0x127   :  { %v7791_v29 = vsel %vm7606_vm1, %v7790_v22, %v7786_v27  ;;  %v7116_v31 = vunpack.c.l.b16 %v6341_v24  ;;  %v7117_v32 = vunpack.c.h.b16 %v6341_v24  ;;  %5418 = vadd.xlane.f32.xlu0 %v3771_v17  ;;  %v5281_v33 = vpop.xlane.xlu1 %5280  ;;  %v1220_v17 = vld [vmem:[#allocation3 + $0x750] sm:$0xff] }
 0x128   :  { %v7796_v41 = vsel %vm7613_vm2, %v7795_v23, %v7791_v29  ;;  %v5279_v42 = vpop.xlane.xlu0 %5278  ;;  %v3780_v27 = vadd.f32 %v3268_v19, %v1220_v17  ;;  %v3274_v17 = vld [vmem:[#allocation3 + $0x7b8] sm:$0xff] }
 0x129   :  { %v7800_v45 = vrot.slane %v7116_v31, %v10843_v59  ;;  %v7805_v46 = vrot.slane %v7117_v32, %v10846_v62  ;;  %v6342_v51 = vpack.c.bf16 %v5281_v33, %v5279_v42  ;;  %v3779_v33 = vadd.f32 %v3267_v21, %v1219_v40  ;;  %v1221_v42 = vld [vmem:[#allocation3 + $0x760] sm:$0xff]  ;;  %v3273_v40 = vld [vmem:[#allocation3 + $0x7a8] sm:$0xff] }
 0x12a   :  { %5424 = vadd.xlane.f32.xlu1 %v3774_v28 }
 0x12b   :  { %v7801_v53 = vsel %vm7620_vm3, %v7800_v45, %v7796_v41  ;;  %v7118_v54 = vunpack.c.l.b16 %v6342_v51  ;;  %v7119_v55 = vunpack.c.h.b16 %v6342_v51  ;;  %5422 = vadd.xlane.f32.xlu0 %v3773_v34  ;;  %v5285_v56 = vpop.xlane.xlu1 %5284  ;;  %v1222_v34 = vld [vmem:[#allocation3 + $0x770] sm:$0xff] }
 0x12c   :  { %v7806_v61 = vsel %vm12361_vm4, %v7805_v46, %v7801_v53  ;;  %v5283_v63 = vpop.xlane.xlu0 %5282  ;;  %v3782_v51 = vadd.f32 %v3270_v37, %v1222_v34  ;;  %v3276_v34 = vld [vmem:[#allocation3 + $0x7d8] sm:$0xff] }
 0x12d   :  { %v7810_v5 = vrot.slane %v7118_v54, %v10851_v7  ;;  %v7815_v6 = vrot.slane %v7119_v55, %v10854_v8  ;;  %v6343_v9 = vpack.c.bf16 %v5285_v56, %v5283_v63  ;;  %v3781_v56 = vadd.f32 %v3269_v43, %v1221_v42  ;;  %v1223_v63 = vld [vmem:[#allocation3 + $0x780] sm:$0xff]  ;;  %v3275_v42 = vld [vmem:[#allocation3 + $0x7c8] sm:$0xff] }
 0x12e   :  { %5428 = vadd.xlane.f32.xlu1 %v3776_v52 }
 0x12f   :  { %v7811_v11 = vsel %vm7634_vm5, %v7810_v5, %v7806_v61  ;;  %v7120_v12 = vunpack.c.l.b16 %v6343_v9  ;;  %v7121_v13 = vunpack.c.h.b16 %v6343_v9  ;;  %5426 = vadd.xlane.f32.xlu0 %v3775_v57  ;;  %v5289_v14 = vpop.xlane.xlu1 %5288  ;;  %v1224_v57 = vld [vmem:[#allocation3 + $0x790] sm:$0xff] }
 0x130   :  { %v7816_v39 = vsel %vm12360_vm6, %v7815_v6, %v7811_v11  ;;  %v5287_v20 = vpop.xlane.xlu0 %5286  ;;  %v3784_v9 = vadd.f32 %v3272_v58, %v1224_v57  ;;  %v1229_v58 = vld [vmem:[#allocation3 + $0x7e0] sm:$0xff] }
 0x131   :  { %v7820_v22 = vrot.slane %v7120_v12, %v10859_v15  ;;  %v7825_v23 = vrot.slane %v7121_v13, %v10862_v18  ;;  %v6344_v24 = vpack.c.bf16 %v5289_v14, %v5287_v20  ;;  %v3783_v14 = vadd.f32 %v3271_v0, %v1223_v63  ;;  %v1225_v20 = vld [vmem:[#allocation3 + $0x7a0] sm:$0xff] }
 0x132   :  { %5432 = vadd.xlane.f32.xlu1 %v3778_v10 }
 0x133   :  { %v7821_v28 = vsel %vm12359_vm7, %v7820_v22, %v7816_v39  ;;  %v7122_v29 = vunpack.c.l.b16 %v6344_v24  ;;  %v7123_v31 = vunpack.c.h.b16 %v6344_v24  ;;  %5430 = vadd.xlane.f32.xlu0 %v3777_v16  ;;  %v5293_v32 = vpop.xlane.xlu1 %5292  ;;  %v1226_v16 = vld [vmem:[#allocation3 + $0x7b0] sm:$0xff] }
 0x134   :  { %v7826_v38 = vsel %vm7655_vm8, %v7825_v23, %v7821_v28  ;;  %v5291_v41 = vpop.xlane.xlu0 %5290  ;;  %v3786_v24 = vadd.f32 %v3274_v17, %v1226_v16 }
 0x135   :  { %v7830_v44 = vrot.slane %v7122_v29, %v10867_v25  ;;  %v7835_v45 = vrot.slane %v7123_v31, %v10870_v26  ;;  %v6345_v46 = vpack.c.bf16 %v5293_v32, %v5291_v41  ;;  %v3785_v32 = vadd.f32 %v3273_v40, %v1225_v20  ;;  %v1227_v41 = vld [vmem:[#allocation3 + $0x7c0] sm:$0xff] }
 0x136   :  { %5436 = vadd.xlane.f32.xlu1 %v3780_v27 }
 0x137   :  { %v7831_v52 = vsel %vm7662_vm9, %v7830_v44, %v7826_v38  ;;  %v7124_v53 = vunpack.c.l.b16 %v6345_v46  ;;  %v7125_v54 = vunpack.c.h.b16 %v6345_v46  ;;  %5434 = vadd.xlane.f32.xlu0 %v3779_v33  ;;  %v5297_v55 = vpop.xlane.xlu1 %5296  ;;  %v1228_v33 = vld [vmem:[#allocation3 + $0x7d0] sm:$0xff] }
 0x138   :  { %v7836_v60 = vsel %vm7669_vm10, %v7835_v45, %v7831_v52  ;;  %v5295_v61 = vpop.xlane.xlu0 %5294  ;;  %v3788_v46 = vadd.f32 %v3276_v34, %v1228_v33 }
 0x139   :  { %v7840_v2 = vrot.slane %v7124_v53, %v10875_v35  ;;  %v7845_v5 = vrot.slane %v7125_v54, %v10878_v36  ;;  %v6346_v6 = vpack.c.bf16 %v5297_v55, %v5295_v61  ;;  %v3787_v54 = vadd.f32 %v3275_v42, %v1227_v41  ;;  %v1230_v55 = vld [vmem:[#allocation3 + $0x7f0] sm:$0xff]  ;;  %v3281_v41 = vld [vmem:[#allocation3 + $0x828] sm:$0xff] }
 0x13a   :  { %5440 = vadd.xlane.f32.xlu1 %v3782_v51 }
 0x13b   :  { %v7841_v10 = vsel %vm7676_vm11, %v7840_v2, %v7836_v60  ;;  %v7126_v11 = vunpack.c.l.b16 %v6346_v6  ;;  %v7127_v12 = vunpack.c.h.b16 %v6346_v6  ;;  %5438 = vadd.xlane.f32.xlu0 %v3781_v56  ;;  %v5301_v13 = vpop.xlane.xlu1 %5300  ;;  %v3278_v56 = vld [vmem:[#allocation3 + $0x7f8] sm:$0xff]  ;;  %v3277_v60 = vld [vmem:[#allocation3 + $0x7e8] sm:$0xff] }
 0x13c   :  { %v7846_v19 = vsel %vm7683_vm12, %v7845_v5, %v7841_v10  ;;  %v5299_v39 = vpop.xlane.xlu0 %5298  ;;  %v3790_v5 = vadd.f32 %v3278_v56, %v1230_v55  ;;  %v1236_v55 = vld [vmem:[#allocation3 + $0x850] sm:$0xff]  ;;  %v3284_v56 = vld [vmem:[#allocation3 + $0x858] sm:$0xff] }
 0x13d   :  { %v7850_v21 = vrot.slane %v7126_v11, %v10883_v47  ;;  %v7855_v22 = vrot.slane %v7127_v12, %v10886_v48  ;;  %v6347_v23 = vpack.c.bf16 %v5301_v13, %v5299_v39  ;;  %v3789_v12 = vadd.f32 %v3277_v60, %v1229_v58  ;;  %v1232_v13 = vld [vmem:[#allocation3 + $0x810] sm:$0xff]  ;;  %v3279_v39 = vld [vmem:[#allocation3 + $0x808] sm:$0xff]  ;;  %v1235_v60 = vld [vmem:[#allocation3 + $0x840] sm:$0xff] }
 0x13e   :  { %5444 = vadd.xlane.f32.xlu1 %v3784_v9 }
 0x13f   :  { %v7851_v27 = vsel %vm12363_vm13, %v7850_v21, %v7846_v19  ;;  %v7128_v28 = vunpack.c.l.b16 %v6347_v23  ;;  %v7129_v29 = vunpack.c.h.b16 %v6347_v23  ;;  %5442 = vadd.xlane.f32.xlu0 %v3783_v14  ;;  %v5305_v31 = vpop.xlane.xlu1 %5304  ;;  %v3280_v14 = vld [vmem:[#allocation3 + $0x818] sm:$0xff]  ;;  %v1231_v19 = vld [vmem:[#allocation3 + $0x800] sm:$0xff] }
 0x140   :  { %v10993_v37 = vsel %vm12362_vm14, %v7855_v22, %v7851_v27  ;;  %v5303_v38 = vpop.xlane.xlu0 %5302  ;;  %v3792_v22 = vadd.f32 %v3280_v14, %v1232_v13  ;;  %v1238_v13 = vld [vmem:[#allocation3 + $0x870] sm:$0xff]  ;;  %v3286_v14 = vld [vmem:[#allocation3 + $0x878] sm:$0xff] }
 0x141   :  { %v6348_v43 = vpack.c.bf16 %v5305_v31, %v5303_v38  ;;  %v7860_v44 = vrot.slane %v7128_v28, %v10891_v3  ;;  %v7864_v45 = vrot.slane %v7129_v29, %v10894_v4  ;;  %v3791_v29 = vadd.f32 %v3279_v39, %v1231_v19  ;;  %v1234_v31 = vld [vmem:[#allocation3 + $0x830] sm:$0xff]  ;;  %v1233_v38 = vld [vmem:[#allocation3 + $0x820] sm:$0xff]  ;;  %v3285_v39 = vld [vmem:[#allocation3 + $0x868] sm:$0xff] }
 0x142   :  { %5448 = vadd.xlane.f32.xlu1 %v3786_v24  ;;  %v1237_v19 = vld [vmem:[#allocation3 + $0x860] sm:$0xff] }
 0x143   :  { %v7130_v51 = vunpack.c.l.b16 %v6348_v43  ;;  %v7131_v52 = vunpack.c.h.b16 %v6348_v43  ;;  %5446 = vadd.xlane.f32.xlu0 %v3785_v32  ;;  %v5309_v53 = vpop.xlane.xlu1 %5308  ;;  %v7865_v2 = vsel %vm6688_vm0, %v7864_v45, %v7860_v44  ;;  %v3282_v32 = vld [vmem:[#allocation3 + $0x838] sm:$0xff] }
 0x144   :  { %v5307_v57 = vpop.xlane.xlu0 %5306  ;;  %v3794_v45 = vadd.f32 %v3282_v32, %v1234_v31  ;;  %v1240_v31 = vld [vmem:[#allocation3 + $0x890] sm:$0xff]  ;;  %v3288_v32 = vld [vmem:[#allocation3 + $0x898] sm:$0xff] }
 0x145   :  { %v7869_v61 = vrot.slane %v7130_v51, %v10835_v49  ;;  %v7874_v63 = vrot.slane %v7131_v52, %v10838_v50  ;;  %v6349_v0 = vpack.c.bf16 %v5309_v53, %v5307_v57 }
 0x146   :  { %5452 = vadd.xlane.f32.xlu1 %v3788_v46 }
 0x147   :  { %v7870_v6 = vsel %vm7606_vm1, %v7869_v61, %v7865_v2  ;;  %v7132_v9 = vunpack.c.l.b16 %v6349_v0  ;;  %v7133_v10 = vunpack.c.h.b16 %v6349_v0  ;;  %5450 = vadd.xlane.f32.xlu0 %v3787_v54  ;;  %v5313_v11 = vpop.xlane.xlu1 %5312  ;;  %v3793_v54 = vadd.f32 %v3281_v41, %v1233_v38  ;;  %v3283_v61 = vld [vmem:[#allocation3 + $0x848] sm:$0xff]  ;;  %v1239_v38 = vld [vmem:[#allocation3 + $0x880] sm:$0xff] }
 0x148   :  { %v7875_v16 = vsel %vm7613_vm2, %v7874_v63, %v7870_v6  ;;  %v5311_v17 = vpop.xlane.xlu0 %5310  ;;  %v3287_v41 = vld [vmem:[#allocation3 + $0x888] sm:$0xff] }
 0x149   :  { %v7879_v20 = vrot.slane %v7132_v9, %v10843_v59  ;;  %v7884_v40 = vrot.slane %v7133_v10, %v10846_v62  ;;  %v6350_v21 = vpack.c.bf16 %v5313_v11, %v5311_v17 }
 0x14a   :  { %5456 = vadd.xlane.f32.xlu1 %v3790_v5  ;;  %v3796_v5 = vadd.f32 %v3284_v56, %v1236_v55  ;;  %v1242_v55 = vld [vmem:[#allocation3 + $0x8b0] sm:$0xff]  ;;  %v3290_v56 = vld [vmem:[#allocation3 + $0x8b8] sm:$0xff] }
 0x14b   :  { %v7880_v23 = vsel %vm7620_vm3, %v7879_v20, %v7875_v16  ;;  %v7134_v24 = vunpack.c.l.b16 %v6350_v21  ;;  %v7135_v27 = vunpack.c.h.b16 %v6350_v21  ;;  %5454 = vadd.xlane.f32.xlu0 %v3789_v12  ;;  %v5317_v28 = vpop.xlane.xlu1 %5316  ;;  %v3795_v12 = vadd.f32 %v3283_v61, %v1235_v60  ;;  %v1241_v60 = vld [vmem:[#allocation3 + $0x8a0] sm:$0xff]  ;;  %v3289_v61 = vld [vmem:[#allocation3 + $0x8a8] sm:$0xff] }
 0x14c   :  { %v7885_v33 = vsel %vm12361_vm4, %v7884_v40, %v7880_v23  ;;  %v5315_v34 = vpop.xlane.xlu0 %5314 }
 0x14d   :  { %v7889_v42 = vrot.slane %v7134_v24, %v10851_v7  ;;  %v7894_v43 = vrot.slane %v7135_v27, %v10854_v8  ;;  %v6351_v44 = vpack.c.bf16 %v5317_v28, %v5315_v34 }
 0x14e   :  { %5460 = vadd.xlane.f32.xlu1 %v3792_v22  ;;  %v3798_v22 = vadd.f32 %v3286_v14, %v1238_v13  ;;  %v1244_v13 = vld [vmem:[#allocation3 + $0x8d0] sm:$0xff]  ;;  %v3292_v14 = vld [vmem:[#allocation3 + $0x8d8] sm:$0xff] }
 0x14f   :  { %v7890_v46 = vsel %vm7634_vm5, %v7889_v42, %v7885_v33  ;;  %v7136_v51 = vunpack.c.l.b16 %v6351_v44  ;;  %v7137_v52 = vunpack.c.h.b16 %v6351_v44  ;;  %5458 = vadd.xlane.f32.xlu0 %v3791_v29  ;;  %v5321_v53 = vpop.xlane.xlu1 %5320  ;;  %v3797_v29 = vadd.f32 %v3285_v39, %v1237_v19  ;;  %v1243_v19 = vld [vmem:[#allocation3 + $0x8c0] sm:$0xff]  ;;  %v3291_v39 = vld [vmem:[#allocation3 + $0x8c8] sm:$0xff] }
 0x150   :  { %v7895_v57 = vsel %vm12360_vm6, %v7894_v43, %v7890_v46  ;;  %v5319_v58 = vpop.xlane.xlu0 %5318 }
 0x151   :  { %v7899_v63 = vrot.slane %v7136_v51, %v10859_v15  ;;  %v7904_v0 = vrot.slane %v7137_v52, %v10862_v18  ;;  %v6352_v2 = vpack.c.bf16 %v5321_v53, %v5319_v58 }
 0x152   :  { %5464 = vadd.xlane.f32.xlu1 %v3794_v45  ;;  %v3800_v45 = vadd.f32 %v3288_v32, %v1240_v31  ;;  %v3294_v31 = vld [vmem:[#allocation3 + $0x8f8] sm:$0xff] }
 0x153   :  { %v7900_v6 = vsel %vm12359_vm7, %v7899_v63, %v7895_v57  ;;  %v7138_v9 = vunpack.c.l.b16 %v6352_v2  ;;  %v7139_v10 = vunpack.c.h.b16 %v6352_v2  ;;  %5462 = vadd.xlane.f32.xlu0 %v3793_v54  ;;  %v5325_v11 = vpop.xlane.xlu1 %5324  ;;  %v3799_v54 = vadd.f32 %v3287_v41, %v1239_v38 }
 0x154   :  { %v7905_v16 = vsel %vm7655_vm8, %v7904_v0, %v7900_v6  ;;  %v5323_v17 = vpop.xlane.xlu0 %5322 }
 0x155   :  { %v7909_v20 = vrot.slane %v7138_v9, %v10867_v25  ;;  %v7914_v40 = vrot.slane %v7139_v10, %v10870_v26  ;;  %v6353_v21 = vpack.c.bf16 %v5325_v11, %v5323_v17 }
 0x156   :  { %5468 = vadd.xlane.f32.xlu1 %v3796_v5  ;;  %v3802_v5 = vadd.f32 %v3290_v56, %v1242_v55  ;;  %v3296_v55 = vld [vmem:[#allocation3 + $0x918] sm:$0xff] }
 0x157   :  { %v7910_v23 = vsel %vm7662_vm9, %v7909_v20, %v7905_v16  ;;  %v7140_v24 = vunpack.c.l.b16 %v6353_v21  ;;  %v7141_v27 = vunpack.c.h.b16 %v6353_v21  ;;  %5466 = vadd.xlane.f32.xlu0 %v3795_v12  ;;  %v5329_v28 = vpop.xlane.xlu1 %5328  ;;  %v3801_v12 = vadd.f32 %v3289_v61, %v1241_v60  ;;  %v3295_v60 = vld [vmem:[#allocation3 + $0x908] sm:$0xff] }
 0x158   :  { %v7915_v33 = vsel %vm7669_vm10, %v7914_v40, %v7910_v23  ;;  %v5327_v34 = vpop.xlane.xlu0 %5326 }
 0x159   :  { %v7919_v42 = vrot.slane %v7140_v24, %v10875_v35  ;;  %v7924_v43 = vrot.slane %v7141_v27, %v10878_v36  ;;  %v6354_v44 = vpack.c.bf16 %v5329_v28, %v5327_v34  ;;  %v3803_v28 = vadd.f32 %v3291_v39, %v1243_v19  ;;  %v3293_v34 = vld [vmem:[#allocation3 + $0x8e8] sm:$0xff]  ;;  %v1249_v19 = vld [vmem:[#allocation3 + $0x920] sm:$0xff] }
 0x15a   :  { %5472 = vadd.xlane.f32.xlu1 %v3798_v22  ;;  %v3804_v22 = vadd.f32 %v3292_v14, %v1244_v13  ;;  %v3298_v13 = vld [vmem:[#allocation3 + $0x938] sm:$0xff]  ;;  %v3297_v39 = vld [vmem:[#allocation3 + $0x928] sm:$0xff] }
 0x15b   :  { %v7920_v46 = vsel %vm7676_vm11, %v7919_v42, %v7915_v33  ;;  %v7142_v51 = vunpack.c.l.b16 %v6354_v44  ;;  %v7143_v52 = vunpack.c.h.b16 %v6354_v44  ;;  %5470 = vadd.xlane.f32.xlu0 %v3797_v29  ;;  %v5333_v53 = vpop.xlane.xlu1 %5332  ;;  %v1246_v29 = vld [vmem:[#allocation3 + $0x8f0] sm:$0xff]  ;;  %v1245_v33 = vld [vmem:[#allocation3 + $0x8e0] sm:$0xff] }
 0x15c   :  { %v7925_v57 = vsel %vm7683_vm12, %v7924_v43, %v7920_v46  ;;  %v5331_v58 = vpop.xlane.xlu0 %5330  ;;  %v3806_v44 = vadd.f32 %v3294_v31, %v1246_v29  ;;  %v3809_v29 = vadd.f32 %v3297_v39, %v1249_v19  ;;  %v1252_v31 = vld [vmem:[#allocation3 + $0x950] sm:$0xff]  ;;  %v1255_v39 = vld [vmem:[#allocation3 + $0x980] sm:$0xff] }
 0x15d   :  { %v7929_v63 = vrot.slane %v7142_v51, %v10883_v47  ;;  %v7934_v0 = vrot.slane %v7143_v52, %v10886_v48  ;;  %v6355_v2 = vpack.c.bf16 %v5333_v53, %v5331_v58  ;;  %v3805_v53 = vadd.f32 %v3293_v34, %v1245_v33  ;;  %v1247_v58 = vld [vmem:[#allocation3 + $0x900] sm:$0xff] }
 0x15e   :  { %5476 = vadd.xlane.f32.xlu1 %v3800_v45 }
 0x15f   :  { %v7930_v6 = vsel %vm12363_vm13, %v7929_v63, %v7925_v57  ;;  %v7144_v9 = vunpack.c.l.b16 %v6355_v2  ;;  %v7145_v10 = vunpack.c.h.b16 %v6355_v2  ;;  %5474 = vadd.xlane.f32.xlu0 %v3799_v54  ;;  %v5337_v11 = vpop.xlane.xlu1 %5336  ;;  %v1248_v54 = vld [vmem:[#allocation3 + $0x910] sm:$0xff] }
 0x160   :  { %v11026_v16 = vsel %vm12362_vm14, %v7934_v0, %v7930_v6  ;;  %v5335_v17 = vpop.xlane.xlu0 %5334  ;;  %v3808_v2 = vadd.f32 %v3296_v55, %v1248_v54  ;;  %v1254_v55 = vld [vmem:[#allocation3 + $0x970] sm:$0xff] }
 0x161   :  { %v6356_v20 = vpack.c.bf16 %v5337_v11, %v5335_v17  ;;  %v7939_v40 = vrot.slane %v7144_v9, %v10891_v3  ;;  %v7943_v21 = vrot.slane %v7145_v10, %v10894_v4  ;;  %v3807_v11 = vadd.f32 %v3295_v60, %v1247_v58  ;;  %v1253_v60 = vld [vmem:[#allocation3 + $0x960] sm:$0xff] }
 0x162   :  { %5480 = vadd.xlane.f32.xlu1 %v3802_v5 }
 0x163   :  { %v7146_v23 = vunpack.c.l.b16 %v6356_v20  ;;  %v7147_v24 = vunpack.c.h.b16 %v6356_v20  ;;  %5478 = vadd.xlane.f32.xlu0 %v3801_v12  ;;  %v5341_v27 = vpop.xlane.xlu1 %5340  ;;  %v7944_v43 = vsel %vm6688_vm0, %v7943_v21, %v7939_v40  ;;  %v1250_v12 = vld [vmem:[#allocation3 + $0x930] sm:$0xff] }
 0x164   :  { %v5339_v32 = vpop.xlane.xlu0 %5338 }
 0x165   :  { %v7948_v38 = vrot.slane %v7146_v23, %v10835_v49  ;;  %v7953_v41 = vrot.slane %v7147_v24, %v10838_v50  ;;  %v6357_v42 = vpack.c.bf16 %v5341_v27, %v5339_v32  ;;  %v3300_v32 = vld [vmem:[#allocation3 + $0x958] sm:$0xff] }
 0x166   :  { %5484 = vadd.xlane.f32.xlu1 %v3804_v22  ;;  %v3810_v22 = vadd.f32 %v3298_v13, %v1250_v12  ;;  %v1256_v13 = vld [vmem:[#allocation3 + $0x990] sm:$0xff] }
 0x167   :  { %v7949_v45 = vsel %vm7606_vm1, %v7948_v38, %v7944_v43  ;;  %v7148_v46 = vunpack.c.l.b16 %v6357_v42  ;;  %v7149_v51 = vunpack.c.h.b16 %v6357_v42  ;;  %5482 = vadd.xlane.f32.xlu0 %v3803_v28  ;;  %v5345_v52 = vpop.xlane.xlu1 %5344  ;;  %v1251_v38 = vld [vmem:[#allocation3 + $0x940] sm:$0xff] }
 0x168   :  { %v7954_v56 = vsel %vm7613_vm2, %v7953_v41, %v7949_v45  ;;  %v5343_v57 = vpop.xlane.xlu0 %5342  ;;  %v3299_v41 = vld [vmem:[#allocation3 + $0x948] sm:$0xff]  ;;  %v3812_v45 = vadd.f32 %v3300_v32, %v1252_v31  ;;  %v1258_v32 = vld [vmem:[#allocation3 + $0x9b0] sm:$0xff] }
 0x169   :  { %v7958_v61 = vrot.slane %v7148_v46, %v10843_v59  ;;  %v7963_v63 = vrot.slane %v7149_v51, %v10846_v62  ;;  %v6358_v0 = vpack.c.bf16 %v5345_v52, %v5343_v57  ;;  %v3811_v54 = vadd.f32 %v3299_v41, %v1251_v38  ;;  %v1257_v41 = vld [vmem:[#allocation3 + $0x9a0] sm:$0xff] }
 0x16a   :  { %5488 = vadd.xlane.f32.xlu1 %v3806_v44 }
 0x16b   :  { %v7959_v5 = vsel %vm7620_vm3, %v7958_v61, %v7954_v56  ;;  %v7150_v6 = vunpack.c.l.b16 %v6358_v0  ;;  %v7151_v9 = vunpack.c.h.b16 %v6358_v0  ;;  %5486 = vadd.xlane.f32.xlu0 %v3805_v53  ;;  %v5349_v10 = vpop.xlane.xlu1 %5348  ;;  %v3302_v56 = vld [vmem:[#allocation3 + $0x978] sm:$0xff]  ;;  %v3301_v61 = vld [vmem:[#allocation3 + $0x968] sm:$0xff] }
 0x16c   :  { %v7964_v14 = vsel %vm12361_vm4, %v7963_v63, %v7959_v5  ;;  %v5347_v17 = vpop.xlane.xlu0 %5346  ;;  %v3814_v5 = vadd.f32 %v3302_v56, %v1254_v55  ;;  %v3813_v12 = vadd.f32 %v3301_v61, %v1253_v60  ;;  %v1260_v56 = vld [vmem:[#allocation3 + $0x9d0] sm:$0xff]  ;;  %v1259_v61 = vld [vmem:[#allocation3 + $0x9c0] sm:$0xff] }
 0x16d   :  { %v7968_v20 = vrot.slane %v7150_v6, %v10851_v7  ;;  %v7973_v40 = vrot.slane %v7151_v9, %v10854_v8  ;;  %v6359_v21 = vpack.c.bf16 %v5349_v10, %v5347_v17 }
 0x16e   :  { %5492 = vadd.xlane.f32.xlu1 %v3808_v2 }
 0x16f   :  { %v7969_v23 = vsel %vm7634_vm5, %v7968_v20, %v7964_v14  ;;  %v7152_v24 = vunpack.c.l.b16 %v6359_v21  ;;  %v7153_v27 = vunpack.c.h.b16 %v6359_v21  ;;  %5490 = vadd.xlane.f32.xlu0 %v3807_v11  ;;  %v5353_v28 = vpop.xlane.xlu1 %5352  ;;  %v3304_v14 = vld [vmem:[#allocation3 + $0x998] sm:$0xff]  ;;  %v3303_v20 = vld [vmem:[#allocation3 + $0x988] sm:$0xff] }
 0x170   :  { %v7974_v33 = vsel %vm12360_vm6, %v7973_v40, %v7969_v23  ;;  %v5351_v34 = vpop.xlane.xlu0 %5350  ;;  %v3816_v23 = vadd.f32 %v3304_v14, %v1256_v13  ;;  %v3815_v31 = vadd.f32 %v3303_v20, %v1255_v39  ;;  %v1262_v14 = vld [vmem:[#allocation3 + $0x9f0] sm:$0xff]  ;;  %v1261_v39 = vld [vmem:[#allocation3 + $0x9e0] sm:$0xff]  ;;  %v3309_v20 = vld [vmem:[#allocation3 + $0x9e8] sm:$0xff] }
 0x171   :  { %v7978_v42 = vrot.slane %v7152_v24, %v10859_v15  ;;  %v7983_v43 = vrot.slane %v7153_v27, %v10862_v18  ;;  %v6360_v44 = vpack.c.bf16 %v5353_v28, %v5351_v34 }
 0x172   :  { %5496 = vadd.xlane.f32.xlu1 %v3810_v22 }
 0x173   :  { %v7979_v46 = vsel %vm12359_vm7, %v7978_v42, %v7974_v33  ;;  %v7154_v51 = vunpack.c.l.b16 %v6360_v44  ;;  %v7155_v52 = vunpack.c.h.b16 %v6360_v44  ;;  %5494 = vadd.xlane.f32.xlu0 %v3809_v29  ;;  %v5357_v53 = vpop.xlane.xlu1 %5356  ;;  %v3306_v33 = vld [vmem:[#allocation3 + $0x9b8] sm:$0xff]  ;;  %v3305_v42 = vld [vmem:[#allocation3 + $0x9a8] sm:$0xff] }
 0x174   :  { %v7984_v57 = vsel %vm7655_vm8, %v7983_v43, %v7979_v46  ;;  %v5355_v58 = vpop.xlane.xlu0 %5354  ;;  %v3818_v46 = vadd.f32 %v3306_v33, %v1258_v32  ;;  %v3817_v55 = vadd.f32 %v3305_v42, %v1257_v41  ;;  %v1264_v32 = vld [vmem:[#allocation3 + $0xa10] sm:$0xff]  ;;  %v3312_v33 = vld [vmem:[#allocation3 + $0xa18] sm:$0xff]  ;;  %v1263_v41 = vld [vmem:[#allocation3 + $0xa00] sm:$0xff] }
 0x175   :  { %v7988_v63 = vrot.slane %v7154_v51, %v10867_v25  ;;  %v7993_v0 = vrot.slane %v7155_v52, %v10870_v26  ;;  %v6361_v2 = vpack.c.bf16 %v5357_v53, %v5355_v58  ;;  %v3311_v42 = vld [vmem:[#allocation3 + $0xa08] sm:$0xff] }
 0x176   :  { %5500 = vadd.xlane.f32.xlu1 %v3812_v45 }
 0x177   :  { %v7989_v6 = vsel %vm7662_vm9, %v7988_v63, %v7984_v57  ;;  %v7156_v9 = vunpack.c.l.b16 %v6361_v2  ;;  %v7157_v10 = vunpack.c.h.b16 %v6361_v2  ;;  %5498 = vadd.xlane.f32.xlu0 %v3811_v54  ;;  %v5361_v11 = vpop.xlane.xlu1 %5360  ;;  %v3308_v57 = vld [vmem:[#allocation3 + $0x9d8] sm:$0xff]  ;;  %v3307_v63 = vld [vmem:[#allocation3 + $0x9c8] sm:$0xff] }
 0x178   :  { %v7994_v17 = vsel %vm7669_vm10, %v7993_v0, %v7989_v6  ;;  %v5359_v19 = vpop.xlane.xlu0 %5358  ;;  %v3819_v13 = vadd.f32 %v3307_v63, %v1259_v61  ;;  %v1265_v61 = vld [vmem:[#allocation3 + $0xa20] sm:$0xff]  ;;  %v3313_v63 = vld [vmem:[#allocation3 + $0xa28] sm:$0xff] }
 0x179   :  { %v7998_v40 = vrot.slane %v7156_v9, %v10875_v35  ;;  %v8003_v21 = vrot.slane %v7157_v10, %v10878_v36  ;;  %v6362_v22 = vpack.c.bf16 %v5361_v11, %v5359_v19  ;;  %v3820_v9 = vadd.f32 %v3308_v57, %v1260_v56  ;;  %v1266_v56 = vld [vmem:[#allocation3 + $0xa30] sm:$0xff]  ;;  %v3314_v57 = vld [vmem:[#allocation3 + $0xa38] sm:$0xff] }
 0x17a   :  { %5504 = vadd.xlane.f32.xlu1 %v3814_v5 }
 0x17b   :  { %v7999_v24 = vsel %vm7676_vm11, %v7998_v40, %v7994_v17  ;;  %v7158_v27 = vunpack.c.l.b16 %v6362_v22  ;;  %v7159_v28 = vunpack.c.h.b16 %v6362_v22  ;;  %5502 = vadd.xlane.f32.xlu0 %v3813_v12  ;;  %v5365_v29 = vpop.xlane.xlu1 %5364  ;;  %v3310_v17 = vld [vmem:[#allocation3 + $0x9f8] sm:$0xff] }
 0x17c   :  { %v8004_v34 = vsel %vm7683_vm12, %v8003_v21, %v7999_v24  ;;  %v5363_v38 = vpop.xlane.xlu0 %5362 }
 0x17d   :  { %v8008_v43 = vrot.slane %v7158_v27, %v10883_v47  ;;  %v8013_v44 = vrot.slane %v7159_v28, %v10886_v48  ;;  %v6363_v45 = vpack.c.bf16 %v5365_v29, %v5363_v38 }
 0x17e   :  { %5508 = vadd.xlane.f32.xlu1 %v3816_v23  ;;  %v3822_v23 = vadd.f32 %v3310_v17, %v1262_v14  ;;  %v3825_v14 = vadd.f32 %v3313_v63, %v1265_v61  ;;  %v1268_v17 = vld [vmem:[#allocation3 + $0xa50] sm:$0xff]  ;;  %v1271_v63 = vld [vmem:[#allocation3 + $0xa80] sm:$0xff] }
 0x17f   :  { %v8009_v51 = vsel %vm12363_vm13, %v8008_v43, %v8004_v34  ;;  %v7160_v52 = vunpack.c.l.b16 %v6363_v45  ;;  %v7161_v53 = vunpack.c.h.b16 %v6363_v45  ;;  %5506 = vadd.xlane.f32.xlu0 %v3815_v31  ;;  %v5369_v54 = vpop.xlane.xlu1 %5368  ;;  %v3821_v31 = vadd.f32 %v3309_v20, %v1261_v39 }
 0x180   :  { %v8014_v58 = vsel %vm12362_vm14, %v8013_v44, %v8009_v51  ;;  %v5367_v60 = vpop.xlane.xlu0 %5366 }
 0x181   :  { %v11061_v0 = vsel %vm12356_vm15, %v8014_v58, %v10927_v30  ;;  %v6364_v2 = vpack.c.bf16 %v5369_v54, %v5367_v60  ;;  %v8018_v5 = vrot.slane %v7160_v52, %v10891_v3  ;;  %v8022_v6 = vrot.slane %v7161_v53, %v10894_v4 }
 0x182   :  { %5512 = vadd.xlane.f32.xlu1 %v3818_v46  ;;  %v3824_v46 = vadd.f32 %v3312_v33, %v1264_v32  ;;  %v1270_v33 = vld [vmem:[#allocation3 + $0xa70] sm:$0xff] }
 0x183   :  { %v7162_v10 = vunpack.c.l.b16 %v6364_v2  ;;  %v7163_v11 = vunpack.c.h.b16 %v6364_v2  ;;  %5510 = vadd.xlane.f32.xlu0 %v3817_v55  ;;  %v5373_v12 = vpop.xlane.xlu1 %5372  ;;  %v8023_v22 = vsel %vm6688_vm0, %v8022_v6, %v8018_v5  ;;  %v3823_v55 = vadd.f32 %v3311_v42, %v1263_v41  ;;  %v1269_v42 = vld [vmem:[#allocation3 + $0xa60] sm:$0xff] }
 0x184   :  { %v5371_v19 = vpop.xlane.xlu0 %5370 }
 0x185   :  { %v8027_v30 = vrot.slane %v7162_v10, %v10835_v49  ;;  %v8032_v40 = vrot.slane %v7163_v11, %v10838_v50  ;;  %v6365_v21 = vpack.c.bf16 %v5373_v12, %v5371_v19  ;;  %v3316_v19 = vld [vmem:[#allocation3 + $0xa58] sm:$0xff] }
 0x186   :  { %5516 = vadd.xlane.f32.xlu1 %v3820_v9  ;;  %v3826_v9 = vadd.f32 %v3314_v57, %v1266_v56  ;;  %v1272_v57 = vld [vmem:[#allocation3 + $0xa90] sm:$0xff] }
 0x187   :  { %v8028_v24 = vsel %vm7606_vm1, %v8027_v30, %v8023_v22  ;;  %v7164_v27 = vunpack.c.l.b16 %v6365_v21  ;;  %v7165_v28 = vunpack.c.h.b16 %v6365_v21  ;;  %5514 = vadd.xlane.f32.xlu0 %v3819_v13  ;;  %v5377_v29 = vpop.xlane.xlu1 %5376  ;;  %v1267_v30 = vld [vmem:[#allocation3 + $0xa40] sm:$0xff] }
 0x188   :  { %v8033_v34 = vsel %vm7613_vm2, %v8032_v40, %v8028_v24  ;;  %v5375_v38 = vpop.xlane.xlu0 %5374  ;;  %v3315_v40 = vld [vmem:[#allocation3 + $0xa48] sm:$0xff]  ;;  %v3828_v24 = vadd.f32 %v3316_v19, %v1268_v17  ;;  %v1274_v19 = vld [vmem:[#allocation3 + $0xab0] sm:$0xff] }
 0x189   :  { %v8037_v43 = vrot.slane %v7164_v27, %v10843_v59  ;;  %v8042_v44 = vrot.slane %v7165_v28, %v10846_v62  ;;  %v6366_v45 = vpack.c.bf16 %v5377_v29, %v5375_v38  ;;  %v3827_v32 = vadd.f32 %v3315_v40, %v1267_v30  ;;  %v1273_v40 = vld [vmem:[#allocation3 + $0xaa0] sm:$0xff] }
 0x18a   :  { %5520 = vadd.xlane.f32.xlu1 %v3822_v23 }
 0x18b   :  { %v8038_v51 = vsel %vm7620_vm3, %v8037_v43, %v8033_v34  ;;  %v7166_v52 = vunpack.c.l.b16 %v6366_v45  ;;  %v7167_v53 = vunpack.c.h.b16 %v6366_v45  ;;  %5518 = vadd.xlane.f32.xlu0 %v3821_v31  ;;  %v5381_v54 = vpop.xlane.xlu1 %5380  ;;  %v3318_v34 = vld [vmem:[#allocation3 + $0xa78] sm:$0xff]  ;;  %v3317_v43 = vld [vmem:[#allocation3 + $0xa68] sm:$0xff] }
 0x18c   :  { %v8043_v58 = vsel %vm12361_vm4, %v8042_v44, %v8038_v51  ;;  %v5379_v60 = vpop.xlane.xlu0 %5378  ;;  %v3830_v51 = vadd.f32 %v3318_v34, %v1270_v33  ;;  %v3829_v56 = vadd.f32 %v3317_v43, %v1269_v42  ;;  %v1276_v34 = vld [vmem:[#allocation3 + $0xad0] sm:$0xff]  ;;  %v1275_v43 = vld [vmem:[#allocation3 + $0xac0] sm:$0xff] }
 0x18d   :  { %v8047_v2 = vrot.slane %v7166_v52, %v10851_v7  ;;  %v8052_v5 = vrot.slane %v7167_v53, %v10854_v8  ;;  %v6367_v6 = vpack.c.bf16 %v5381_v54, %v5379_v60 }
 0x18e   :  { %5524 = vadd.xlane.f32.xlu1 %v3824_v46 }
 0x18f   :  { %v8048_v10 = vsel %vm7634_vm5, %v8047_v2, %v8043_v58  ;;  %v7168_v11 = vunpack.c.l.b16 %v6367_v6  ;;  %v7169_v12 = vunpack.c.h.b16 %v6367_v6  ;;  %5522 = vadd.xlane.f32.xlu0 %v3823_v55  ;;  %v5385_v13 = vpop.xlane.xlu1 %5384  ;;  %v3320_v58 = vld [vmem:[#allocation3 + $0xa98] sm:$0xff]  ;;  %v3319_v2 = vld [vmem:[#allocation3 + $0xa88] sm:$0xff] }
 0x190   :  { %v8053_v39 = vsel %vm12360_vm6, %v8052_v5, %v8048_v10  ;;  %v5383_v20 = vpop.xlane.xlu0 %5382  ;;  %v3832_v10 = vadd.f32 %v3320_v58, %v1272_v57  ;;  %v3831_v17 = vadd.f32 %v3319_v2, %v1271_v63  ;;  %v1278_v58 = vld [vmem:[#allocation3 + $0xaf0] sm:$0xff]  ;;  %v1277_v63 = vld [vmem:[#allocation3 + $0xae0] sm:$0xff]  ;;  %v3325_v2 = vld [vmem:[#allocation3 + $0xae8] sm:$0xff] }
 0x191   :  { %v8057_v21 = vrot.slane %v7168_v11, %v10859_v15  ;;  %v8062_v22 = vrot.slane %v7169_v12, %v10862_v18  ;;  %v6368_v23 = vpack.c.bf16 %v5385_v13, %v5383_v20 }
 0x192   :  { %5528 = vadd.xlane.f32.xlu1 %v3826_v9 }
 0x193   :  { %v8058_v27 = vsel %vm12359_vm7, %v8057_v21, %v8053_v39  ;;  %v7170_v28 = vunpack.c.l.b16 %v6368_v23  ;;  %v7171_v29 = vunpack.c.h.b16 %v6368_v23  ;;  %5526 = vadd.xlane.f32.xlu0 %v3825_v14  ;;  %v5389_v31 = vpop.xlane.xlu1 %5388  ;;  %v3322_v39 = vld [vmem:[#allocation3 + $0xab8] sm:$0xff]  ;;  %v3321_v21 = vld [vmem:[#allocation3 + $0xaa8] sm:$0xff] }
 0x194   :  { %v8063_v38 = vsel %vm7655_vm8, %v8062_v22, %v8058_v27  ;;  %v5387_v41 = vpop.xlane.xlu0 %5386  ;;  %v3834_v27 = vadd.f32 %v3322_v39, %v1274_v19  ;;  %v3833_v33 = vadd.f32 %v3321_v21, %v1273_v40  ;;  %v1280_v19 = vld [vmem:[#allocation3 + $0xb10] sm:$0xff]  ;;  %v3328_v39 = vld [vmem:[#allocation3 + $0xb18] sm:$0xff]  ;;  %v1279_v40 = vld [vmem:[#allocation3 + $0xb00] sm:$0xff] }
 0x195   :  { %v8067_v44 = vrot.slane %v7170_v28, %v10867_v25  ;;  %v8072_v45 = vrot.slane %v7171_v29, %v10870_v26  ;;  %v6369_v46 = vpack.c.bf16 %v5389_v31, %v5387_v41  ;;  %v3327_v21 = vld [vmem:[#allocation3 + $0xb08] sm:$0xff] }
 0x196   :  { %5532 = vadd.xlane.f32.xlu1 %v3828_v24 }
 0x197   :  { %v8068_v52 = vsel %vm7662_vm9, %v8067_v44, %v8063_v38  ;;  %v7172_v53 = vunpack.c.l.b16 %v6369_v46  ;;  %v7173_v54 = vunpack.c.h.b16 %v6369_v46  ;;  %5530 = vadd.xlane.f32.xlu0 %v3827_v32  ;;  %v5393_v55 = vpop.xlane.xlu1 %5392  ;;  %v3324_v38 = vld [vmem:[#allocation3 + $0xad8] sm:$0xff]  ;;  %v3323_v44 = vld [vmem:[#allocation3 + $0xac8] sm:$0xff] }
 0x198   :  { %v8073_v60 = vsel %vm7669_vm10, %v8072_v45, %v8068_v52  ;;  %v5391_v61 = vpop.xlane.xlu0 %5390  ;;  %v3835_v57 = vadd.f32 %v3323_v44, %v1275_v43  ;;  %v1281_v43 = vld [vmem:[#allocation3 + $0xb20] sm:$0xff]  ;;  %v3329_v44 = vld [vmem:[#allocation3 + $0xb28] sm:$0xff] }
 0x199   :  { %v8077_v5 = vrot.slane %v7172_v53, %v10875_v35  ;;  %v8082_v6 = vrot.slane %v7173_v54, %v10878_v36  ;;  %v6370_v9 = vpack.c.bf16 %v5393_v55, %v5391_v61  ;;  %v3836_v53 = vadd.f32 %v3324_v38, %v1276_v34  ;;  %v1282_v34 = vld [vmem:[#allocation3 + $0xb30] sm:$0xff]  ;;  %v3330_v38 = vld [vmem:[#allocation3 + $0xb38] sm:$0xff] }
 0x19a   :  { %5536 = vadd.xlane.f32.xlu1 %v3830_v51 }
 0x19b   :  { %v8078_v11 = vsel %vm7676_vm11, %v8077_v5, %v8073_v60  ;;  %v7174_v12 = vunpack.c.l.b16 %v6370_v9  ;;  %v7175_v13 = vunpack.c.h.b16 %v6370_v9  ;;  %5534 = vadd.xlane.f32.xlu0 %v3829_v56  ;;  %v5397_v14 = vpop.xlane.xlu1 %5396  ;;  %v3326_v60 = vld [vmem:[#allocation3 + $0xaf8] sm:$0xff] }
 0x19c   :  { %v8083_v20 = vsel %vm7683_vm12, %v8082_v6, %v8078_v11  ;;  %v5395_v30 = vpop.xlane.xlu0 %5394 }
 0x19d   :  { %v8087_v22 = vrot.slane %v7174_v12, %v10883_v47  ;;  %v8092_v23 = vrot.slane %v7175_v13, %v10886_v48  ;;  %v6371_v24 = vpack.c.bf16 %v5397_v14, %v5395_v30 }
 0x19e   :  { %5540 = vadd.xlane.f32.xlu1 %v3832_v10  ;;  %v3838_v10 = vadd.f32 %v3326_v60, %v1278_v58  ;;  %v3841_v58 = vadd.f32 %v3329_v44, %v1281_v43  ;;  %v1284_v60 = vld [vmem:[#allocation3 + $0xb50] sm:$0xff]  ;;  %v1287_v44 = vld [vmem:[#allocation3 + $0xb80] sm:$0xff] }
 0x19f   :  { %v8088_v28 = vsel %vm12363_vm13, %v8087_v22, %v8083_v20  ;;  %v7176_v29 = vunpack.c.l.b16 %v6371_v24  ;;  %v7177_v31 = vunpack.c.h.b16 %v6371_v24  ;;  %5538 = vadd.xlane.f32.xlu0 %v3831_v17  ;;  %v5401_v32 = vpop.xlane.xlu1 %5400  ;;  %v3837_v17 = vadd.f32 %v3325_v2, %v1277_v63 }
 0x1a0   :  { %v8093_v41 = vsel %vm12362_vm14, %v8092_v23, %v8088_v28  ;;  %v5399_v42 = vpop.xlane.xlu0 %5398 }
 0x1a1   :  { %v11096_v45 = vsel %vm12356_vm15, %v8093_v41, %v10960_v1  ;;  %v6372_v46 = vpack.c.bf16 %v5401_v32, %v5399_v42  ;;  %v8097_v51 = vrot.slane %v7176_v29, %v10891_v3  ;;  %v8101_v52 = vrot.slane %v7177_v31, %v10894_v4 }
 0x1a2   :  { %5544 = vadd.xlane.f32.xlu1 %v3834_v27  ;;  %v3840_v27 = vadd.f32 %v3328_v39, %v1280_v19  ;;  %v1286_v39 = vld [vmem:[#allocation3 + $0xb70] sm:$0xff] }
 0x1a3   :  { %v7178_v54 = vunpack.c.l.b16 %v6372_v46  ;;  %v7179_v55 = vunpack.c.h.b16 %v6372_v46  ;;  %5542 = vadd.xlane.f32.xlu0 %v3833_v33  ;;  %v5405_v56 = vpop.xlane.xlu1 %5404  ;;  %v8102_v9 = vsel %vm6688_vm0, %v8101_v52, %v8097_v51  ;;  %v3839_v33 = vadd.f32 %v3327_v21, %v1279_v40  ;;  %v1285_v21 = vld [vmem:[#allocation3 + $0xb60] sm:$0xff] }
 0x1a4   :  { %v5403_v61 = vpop.xlane.xlu0 %5402 }
 0x1a5   :  { %v8106_v1 = vrot.slane %v7178_v54, %v10835_v49  ;;  %v8111_v5 = vrot.slane %v7179_v55, %v10838_v50  ;;  %v6373_v6 = vpack.c.bf16 %v5405_v56, %v5403_v61  ;;  %v3332_v61 = vld [vmem:[#allocation3 + $0xb58] sm:$0xff] }
 0x1a6   :  { %5548 = vadd.xlane.f32.xlu1 %v3836_v53  ;;  %v3842_v53 = vadd.f32 %v3330_v38, %v1282_v34  ;;  %v1288_v38 = vld [vmem:[#allocation3 + $0xb90] sm:$0xff] }
 0x1a7   :  { %v8107_v11 = vsel %vm7606_vm1, %v8106_v1, %v8102_v9  ;;  %v7180_v12 = vunpack.c.l.b16 %v6373_v6  ;;  %v7181_v13 = vunpack.c.h.b16 %v6373_v6  ;;  %5546 = vadd.xlane.f32.xlu0 %v3835_v57  ;;  %v5409_v14 = vpop.xlane.xlu1 %5408  ;;  %v1283_v1 = vld [vmem:[#allocation3 + $0xb40] sm:$0xff] }
 0x1a8   :  { %v8112_v20 = vsel %vm7613_vm2, %v8111_v5, %v8107_v11  ;;  %v5407_v30 = vpop.xlane.xlu0 %5406  ;;  %v3331_v5 = vld [vmem:[#allocation3 + $0xb48] sm:$0xff]  ;;  %v3844_v11 = vadd.f32 %v3332_v61, %v1284_v60  ;;  %v1290_v61 = vld [vmem:[#allocation3 + $0xbb0] sm:$0xff] }
 0x1a9   :  { %v8116_v22 = vrot.slane %v7180_v12, %v10843_v59  ;;  %v8121_v23 = vrot.slane %v7181_v13, %v10846_v62  ;;  %v6374_v24 = vpack.c.bf16 %v5409_v14, %v5407_v30  ;;  %v3843_v19 = vadd.f32 %v3331_v5, %v1283_v1  ;;  %v1289_v5 = vld [vmem:[#allocation3 + $0xba0] sm:$0xff] }
 0x1aa   :  { %5552 = vadd.xlane.f32.xlu1 %v3838_v10 }
 0x1ab   :  { %v8117_v28 = vsel %vm7620_vm3, %v8116_v22, %v8112_v20  ;;  %v7182_v29 = vunpack.c.l.b16 %v6374_v24  ;;  %v7183_v31 = vunpack.c.h.b16 %v6374_v24  ;;  %5550 = vadd.xlane.f32.xlu0 %v3837_v17  ;;  %v5413_v32 = vpop.xlane.xlu1 %5412  ;;  %v3334_v20 = vld [vmem:[#allocation3 + $0xb78] sm:$0xff]  ;;  %v3333_v22 = vld [vmem:[#allocation3 + $0xb68] sm:$0xff] }
 0x1ac   :  { %v8122_v41 = vsel %vm12361_vm4, %v8121_v23, %v8117_v28  ;;  %v5411_v42 = vpop.xlane.xlu0 %5410  ;;  %v3846_v28 = vadd.f32 %v3334_v20, %v1286_v39  ;;  %v3845_v34 = vadd.f32 %v3333_v22, %v1285_v21  ;;  %v1292_v20 = vld [vmem:[#allocation3 + $0xbd0] sm:$0xff]  ;;  %v1291_v22 = vld [vmem:[#allocation3 + $0xbc0] sm:$0xff] }
 0x1ad   :  { %v8126_v46 = vrot.slane %v7182_v29, %v10851_v7  ;;  %v8131_v51 = vrot.slane %v7183_v31, %v10854_v8  ;;  %v6375_v52 = vpack.c.bf16 %v5413_v32, %v5411_v42 }
 0x1ae   :  { %5556 = vadd.xlane.f32.xlu1 %v3840_v27 }
 0x1af   :  { %v8127_v54 = vsel %vm7634_vm5, %v8126_v46, %v8122_v41  ;;  %v7184_v55 = vunpack.c.l.b16 %v6375_v52  ;;  %v7185_v56 = vunpack.c.h.b16 %v6375_v52  ;;  %5554 = vadd.xlane.f32.xlu0 %v3839_v33  ;;  %v5417_v57 = vpop.xlane.xlu1 %5416  ;;  %v3336_v41 = vld [vmem:[#allocation3 + $0xb98] sm:$0xff]  ;;  %v3335_v46 = vld [vmem:[#allocation3 + $0xb88] sm:$0xff] }
 0x1b0   :  { %v8132_v63 = vsel %vm12360_vm6, %v8131_v51, %v8127_v54  ;;  %v5415_v2 = vpop.xlane.xlu0 %5414  ;;  %v3848_v54 = vadd.f32 %v3336_v41, %v1288_v38  ;;  %v3847_v60 = vadd.f32 %v3335_v46, %v1287_v44  ;;  %v1294_v41 = vld [vmem:[#allocation3 + $0xbf0] sm:$0xff]  ;;  %v1293_v44 = vld [vmem:[#allocation3 + $0xbe0] sm:$0xff]  ;;  %v3341_v46 = vld [vmem:[#allocation3 + $0xbe8] sm:$0xff] }
 0x1b1   :  { %v8136_v6 = vrot.slane %v7184_v55, %v10859_v15  ;;  %v8141_v9 = vrot.slane %v7185_v56, %v10862_v18  ;;  %v6376_v10 = vpack.c.bf16 %v5417_v57, %v5415_v2 }
 0x1b2   :  { %5560 = vadd.xlane.f32.xlu1 %v3842_v53 }
 0x1b3   :  { %v8137_v12 = vsel %vm12359_vm7, %v8136_v6, %v8132_v63  ;;  %v7186_v13 = vunpack.c.l.b16 %v6376_v10  ;;  %v7187_v14 = vunpack.c.h.b16 %v6376_v10  ;;  %5558 = vadd.xlane.f32.xlu0 %v3841_v58  ;;  %v5421_v17 = vpop.xlane.xlu1 %5420  ;;  %v3338_v63 = vld [vmem:[#allocation3 + $0xbb8] sm:$0xff]  ;;  %v3337_v6 = vld [vmem:[#allocation3 + $0xba8] sm:$0xff] }
 0x1b4   :  { %v8142_v30 = vsel %vm7655_vm8, %v8141_v9, %v8137_v12  ;;  %v5419_v40 = vpop.xlane.xlu0 %5418  ;;  %v3850_v12 = vadd.f32 %v3338_v63, %v1290_v61  ;;  %v3849_v39 = vadd.f32 %v3337_v6, %v1289_v5  ;;  %v1296_v61 = vld [vmem:[#allocation3 + $0xc10] sm:$0xff]  ;;  %v3344_v63 = vld [vmem:[#allocation3 + $0xc18] sm:$0xff]  ;;  %v1295_v5 = vld [vmem:[#allocation3 + $0xc00] sm:$0xff] }
 0x1b5   :  { %v8146_v23 = vrot.slane %v7186_v13, %v10867_v25  ;;  %v8151_v24 = vrot.slane %v7187_v14, %v10870_v26  ;;  %v6377_v27 = vpack.c.bf16 %v5421_v17, %v5419_v40  ;;  %v3343_v6 = vld [vmem:[#allocation3 + $0xc08] sm:$0xff] }
 0x1b6   :  { %5564 = vadd.xlane.f32.xlu1 %v3844_v11 }
 0x1b7   :  { %v8147_v29 = vsel %vm7662_vm9, %v8146_v23, %v8142_v30  ;;  %v7188_v31 = vunpack.c.l.b16 %v6377_v27  ;;  %v7189_v32 = vunpack.c.h.b16 %v6377_v27  ;;  %5562 = vadd.xlane.f32.xlu0 %v3843_v19  ;;  %v5425_v33 = vpop.xlane.xlu1 %5424  ;;  %v3340_v30 = vld [vmem:[#allocation3 + $0xbd8] sm:$0xff]  ;;  %v3339_v23 = vld [vmem:[#allocation3 + $0xbc8] sm:$0xff] }
 0x1b8   :  { %v8152_v42 = vsel %vm7669_vm10, %v8151_v24, %v8147_v29  ;;  %v5423_v43 = vpop.xlane.xlu0 %5422  ;;  %v3851_v38 = vadd.f32 %v3339_v23, %v1291_v22  ;;  %v1297_v22 = vld [vmem:[#allocation3 + $0xc20] sm:$0xff]  ;;  %v3345_v23 = vld [vmem:[#allocation3 + $0xc28] sm:$0xff] }
 0x1b9   :  { %v8156_v51 = vrot.slane %v7188_v31, %v10875_v35  ;;  %v8161_v52 = vrot.slane %v7189_v32, %v10878_v36  ;;  %v6378_v53 = vpack.c.bf16 %v5425_v33, %v5423_v43  ;;  %v3852_v31 = vadd.f32 %v3340_v30, %v1292_v20  ;;  %v1298_v20 = vld [vmem:[#allocation3 + $0xc30] sm:$0xff]  ;;  %v3346_v30 = vld [vmem:[#allocation3 + $0xc38] sm:$0xff] }
 0x1ba   :  { %5568 = vadd.xlane.f32.xlu1 %v3846_v28 }
 0x1bb   :  { %v8157_v55 = vsel %vm7676_vm11, %v8156_v51, %v8152_v42  ;;  %v7190_v56 = vunpack.c.l.b16 %v6378_v53  ;;  %v7191_v57 = vunpack.c.h.b16 %v6378_v53  ;;  %5566 = vadd.xlane.f32.xlu0 %v3845_v34  ;;  %v5429_v58 = vpop.xlane.xlu1 %5428  ;;  %v3342_v42 = vld [vmem:[#allocation3 + $0xbf8] sm:$0xff] }
 0x1bc   :  { %v8162_v2 = vsel %vm7683_vm12, %v8161_v52, %v8157_v55  ;;  %v5427_v1 = vpop.xlane.xlu0 %5426 }
 0x1bd   :  { %v8166_v9 = vrot.slane %v7190_v56, %v10883_v47  ;;  %v8171_v10 = vrot.slane %v7191_v57, %v10886_v48  ;;  %v6379_v11 = vpack.c.bf16 %v5429_v58, %v5427_v1 }
 0x1be   :  { %5572 = vadd.xlane.f32.xlu1 %v3848_v54  ;;  %v3854_v54 = vadd.f32 %v3342_v42, %v1294_v41  ;;  %v3857_v41 = vadd.f32 %v3345_v23, %v1297_v22  ;;  %v1300_v42 = vld [vmem:[#allocation3 + $0xc50] sm:$0xff]  ;;  %v1303_v23 = vld [vmem:[#allocation3 + $0xc80] sm:$0xff] }
 0x1bf   :  { %v8167_v13 = vsel %vm12363_vm13, %v8166_v9, %v8162_v2  ;;  %v7192_v14 = vunpack.c.l.b16 %v6379_v11  ;;  %v7193_v17 = vunpack.c.h.b16 %v6379_v11  ;;  %5570 = vadd.xlane.f32.xlu0 %v3847_v60  ;;  %v5433_v19 = vpop.xlane.xlu1 %5432  ;;  %v3853_v60 = vadd.f32 %v3341_v46, %v1293_v44 }
 0x1c0   :  { %v8172_v40 = vsel %vm12362_vm14, %v8171_v10, %v8167_v13  ;;  %v5431_v21 = vpop.xlane.xlu0 %5430 }
 0x1c1   :  { %v11131_v24 = vsel %vm12356_vm15, %v8172_v40, %v10993_v37  ;;  %v6380_v27 = vpack.c.bf16 %v5433_v19, %v5431_v21  ;;  %v8176_v28 = vrot.slane %v7192_v14, %v10891_v3  ;;  %v8180_v29 = vrot.slane %v7193_v17, %v10894_v4 }
 0x1c2   :  { %5576 = vadd.xlane.f32.xlu1 %v3850_v12  ;;  %v3856_v12 = vadd.f32 %v3344_v63, %v1296_v61  ;;  %v1302_v63 = vld [vmem:[#allocation3 + $0xc70] sm:$0xff] }
 0x1c3   :  { %v7194_v32 = vunpack.c.l.b16 %v6380_v27  ;;  %v7195_v33 = vunpack.c.h.b16 %v6380_v27  ;;  %5574 = vadd.xlane.f32.xlu0 %v3849_v39  ;;  %v5437_v34 = vpop.xlane.xlu1 %5436  ;;  %v8181_v53 = vsel %vm6688_vm0, %v8180_v29, %v8176_v28  ;;  %v3855_v39 = vadd.f32 %v3343_v6, %v1295_v5  ;;  %v1301_v6 = vld [vmem:[#allocation3 + $0xc60] sm:$0xff] }
 0x1c4   :  { %v5435_v43 = vpop.xlane.xlu0 %5434 }
 0x1c5   :  { %v8185_v37 = vrot.slane %v7194_v32, %v10835_v49  ;;  %v8190_v51 = vrot.slane %v7195_v33, %v10838_v50  ;;  %v6381_v52 = vpack.c.bf16 %v5437_v34, %v5435_v43  ;;  %v3348_v43 = vld [vmem:[#allocation3 + $0xc58] sm:$0xff] }
 0x1c6   :  { %5580 = vadd.xlane.f32.xlu1 %v3852_v31  ;;  %v3858_v31 = vadd.f32 %v3346_v30, %v1298_v20  ;;  %v1304_v30 = vld [vmem:[#allocation3 + $0xc90] sm:$0xff] }
 0x1c7   :  { %v8186_v55 = vsel %vm7606_vm1, %v8185_v37, %v8181_v53  ;;  %v7196_v56 = vunpack.c.l.b16 %v6381_v52  ;;  %v7197_v57 = vunpack.c.h.b16 %v6381_v52  ;;  %5578 = vadd.xlane.f32.xlu0 %v3851_v38  ;;  %v5441_v58 = vpop.xlane.xlu1 %5440  ;;  %v1299_v37 = vld [vmem:[#allocation3 + $0xc40] sm:$0xff] }
 0x1c8   :  { %v8191_v2 = vsel %vm7613_vm2, %v8190_v51, %v8186_v55  ;;  %v5439_v1 = vpop.xlane.xlu0 %5438  ;;  %v3347_v51 = vld [vmem:[#allocation3 + $0xc48] sm:$0xff]  ;;  %v3860_v55 = vadd.f32 %v3348_v43, %v1300_v42  ;;  %v1306_v43 = vld [vmem:[#allocation3 + $0xcb0] sm:$0xff] }
 0x1c9   :  { %v8195_v9 = vrot.slane %v7196_v56, %v10843_v59  ;;  %v8200_v10 = vrot.slane %v7197_v57, %v10846_v62  ;;  %v6382_v11 = vpack.c.bf16 %v5441_v58, %v5439_v1  ;;  %v3859_v61 = vadd.f32 %v3347_v51, %v1299_v37  ;;  %v1305_v51 = vld [vmem:[#allocation3 + $0xca0] sm:$0xff] }
 0x1ca   :  { %5584 = vadd.xlane.f32.xlu1 %v3854_v54 }
 0x1cb   :  { %v8196_v13 = vsel %vm7620_vm3, %v8195_v9, %v8191_v2  ;;  %v7198_v14 = vunpack.c.l.b16 %v6382_v11  ;;  %v7199_v17 = vunpack.c.h.b16 %v6382_v11  ;;  %5582 = vadd.xlane.f32.xlu0 %v3853_v60  ;;  %v5445_v19 = vpop.xlane.xlu1 %5444  ;;  %v3350_v2 = vld [vmem:[#allocation3 + $0xc78] sm:$0xff]  ;;  %v3349_v9 = vld [vmem:[#allocation3 + $0xc68] sm:$0xff] }
 0x1cc   :  { %v8201_v40 = vsel %vm12361_vm4, %v8200_v10, %v8196_v13  ;;  %v5443_v21 = vpop.xlane.xlu0 %5442  ;;  %v3862_v13 = vadd.f32 %v3350_v2, %v1302_v63  ;;  %v3861_v20 = vadd.f32 %v3349_v9, %v1301_v6  ;;  %v1308_v2 = vld [vmem:[#allocation3 + $0xcd0] sm:$0xff]  ;;  %v1307_v9 = vld [vmem:[#allocation3 + $0xcc0] sm:$0xff] }
 0x1cd   :  { %v8205_v27 = vrot.slane %v7198_v14, %v10851_v7  ;;  %v8210_v28 = vrot.slane %v7199_v17, %v10854_v8  ;;  %v6383_v29 = vpack.c.bf16 %v5445_v19, %v5443_v21 }
 0x1ce   :  { %5588 = vadd.xlane.f32.xlu1 %v3856_v12 }
 0x1cf   :  { %v8206_v32 = vsel %vm7634_vm5, %v8205_v27, %v8201_v40  ;;  %v7200_v33 = vunpack.c.l.b16 %v6383_v29  ;;  %v7201_v34 = vunpack.c.h.b16 %v6383_v29  ;;  %5586 = vadd.xlane.f32.xlu0 %v3855_v39  ;;  %v5449_v38 = vpop.xlane.xlu1 %5448  ;;  %v3352_v40 = vld [vmem:[#allocation3 + $0xc98] sm:$0xff]  ;;  %v3351_v27 = vld [vmem:[#allocation3 + $0xc88] sm:$0xff] }
 0x1d0   :  { %v8211_v44 = vsel %vm12360_vm6, %v8210_v28, %v8206_v32  ;;  %v5447_v46 = vpop.xlane.xlu0 %5446  ;;  %v3864_v32 = vadd.f32 %v3352_v40, %v1304_v30  ;;  %v3863_v42 = vadd.f32 %v3351_v27, %v1303_v23  ;;  %v1310_v40 = vld [vmem:[#allocation3 + $0xcf0] sm:$0xff]  ;;  %v1309_v23 = vld [vmem:[#allocation3 + $0xce0] sm:$0xff]  ;;  %v3357_v27 = vld [vmem:[#allocation3 + $0xce8] sm:$0xff] }
 0x1d1   :  { %v8215_v52 = vrot.slane %v7200_v33, %v10859_v15  ;;  %v8220_v53 = vrot.slane %v7201_v34, %v10862_v18  ;;  %v6384_v54 = vpack.c.bf16 %v5449_v38, %v5447_v46 }
 0x1d2   :  { %5592 = vadd.xlane.f32.xlu1 %v3858_v31 }
 0x1d3   :  { %v8216_v56 = vsel %vm12359_vm7, %v8215_v52, %v8211_v44  ;;  %v7202_v57 = vunpack.c.l.b16 %v6384_v54  ;;  %v7203_v58 = vunpack.c.h.b16 %v6384_v54  ;;  %5590 = vadd.xlane.f32.xlu0 %v3857_v41  ;;  %v5453_v60 = vpop.xlane.xlu1 %5452  ;;  %v3354_v44 = vld [vmem:[#allocation3 + $0xcb8] sm:$0xff]  ;;  %v3353_v52 = vld [vmem:[#allocation3 + $0xca8] sm:$0xff] }
 0x1d4   :  { %v8221_v1 = vsel %vm7655_vm8, %v8220_v53, %v8216_v56  ;;  %v5451_v5 = vpop.xlane.xlu0 %5450  ;;  %v3866_v56 = vadd.f32 %v3354_v44, %v1306_v43  ;;  %v3865_v63 = vadd.f32 %v3353_v52, %v1305_v51  ;;  %v1312_v43 = vld [vmem:[#allocation3 + $0xd10] sm:$0xff]  ;;  %v3360_v44 = vld [vmem:[#allocation3 + $0xd18] sm:$0xff]  ;;  %v1311_v51 = vld [vmem:[#allocation3 + $0xd00] sm:$0xff] }
 0x1d5   :  { %v8225_v10 = vrot.slane %v7202_v57, %v10867_v25  ;;  %v8230_v11 = vrot.slane %v7203_v58, %v10870_v26  ;;  %v6385_v12 = vpack.c.bf16 %v5453_v60, %v5451_v5  ;;  %v3359_v52 = vld [vmem:[#allocation3 + $0xd08] sm:$0xff] }
 0x1d6   :  { %5596 = vadd.xlane.f32.xlu1 %v3860_v55 }
 0x1d7   :  { %v8226_v14 = vsel %vm7662_vm9, %v8225_v10, %v8221_v1  ;;  %v7204_v17 = vunpack.c.l.b16 %v6385_v12  ;;  %v7205_v19 = vunpack.c.h.b16 %v6385_v12  ;;  %5594 = vadd.xlane.f32.xlu0 %v3859_v61  ;;  %v5457_v39 = vpop.xlane.xlu1 %5456  ;;  %v3356_v1 = vld [vmem:[#allocation3 + $0xcd8] sm:$0xff]  ;;  %v3355_v10 = vld [vmem:[#allocation3 + $0xcc8] sm:$0xff] }
 0x1d8   :  { %v8231_v21 = vsel %vm7669_vm10, %v8230_v11, %v8226_v14  ;;  %v5455_v22 = vpop.xlane.xlu0 %5454  ;;  %v3867_v30 = vadd.f32 %v3355_v10, %v1307_v9  ;;  %v1313_v9 = vld [vmem:[#allocation3 + $0xd20] sm:$0xff]  ;;  %v3361_v10 = vld [vmem:[#allocation3 + $0xd28] sm:$0xff] }
 0x1d9   :  { %v8235_v28 = vrot.slane %v7204_v17, %v10875_v35  ;;  %v8240_v29 = vrot.slane %v7205_v19, %v10878_v36  ;;  %v6386_v31 = vpack.c.bf16 %v5457_v39, %v5455_v22  ;;  %v3868_v17 = vadd.f32 %v3356_v1, %v1308_v2  ;;  %v1314_v2 = vld [vmem:[#allocation3 + $0xd30] sm:$0xff]  ;;  %v3362_v1 = vld [vmem:[#allocation3 + $0xd38] sm:$0xff] }
 0x1da   :  { %5600 = vadd.xlane.f32.xlu1 %v3862_v13 }
 0x1db   :  { %v8236_v33 = vsel %vm7676_vm11, %v8235_v28, %v8231_v21  ;;  %v7206_v34 = vunpack.c.l.b16 %v6386_v31  ;;  %v7207_v38 = vunpack.c.h.b16 %v6386_v31  ;;  %5598 = vadd.xlane.f32.xlu0 %v3861_v20  ;;  %v5461_v41 = vpop.xlane.xlu1 %5460  ;;  %v3358_v21 = vld [vmem:[#allocation3 + $0xcf8] sm:$0xff] }
 0x1dc   :  { %v8241_v46 = vsel %vm7683_vm12, %v8240_v29, %v8236_v33  ;;  %v5459_v37 = vpop.xlane.xlu0 %5458 }
 0x1dd   :  { %v8245_v53 = vrot.slane %v7206_v34, %v10883_v47  ;;  %v8250_v54 = vrot.slane %v7207_v38, %v10886_v48  ;;  %v6387_v55 = vpack.c.bf16 %v5461_v41, %v5459_v37 }
 0x1de   :  { %5604 = vadd.xlane.f32.xlu1 %v3864_v32  ;;  %v3870_v32 = vadd.f32 %v3358_v21, %v1310_v40  ;;  %v3873_v40 = vadd.f32 %v3361_v10, %v1313_v9  ;;  %v1316_v21 = vld [vmem:[#allocation3 + $0xd50] sm:$0xff]  ;;  %v1319_v10 = vld [vmem:[#allocation3 + $0xd80] sm:$0xff] }
 0x1df   :  { %v8246_v57 = vsel %vm12363_vm13, %v8245_v53, %v8241_v46  ;;  %v7208_v58 = vunpack.c.l.b16 %v6387_v55  ;;  %v7209_v60 = vunpack.c.h.b16 %v6387_v55  ;;  %5602 = vadd.xlane.f32.xlu0 %v3863_v42  ;;  %v5465_v61 = vpop.xlane.xlu1 %5464  ;;  %v3869_v42 = vadd.f32 %v3357_v27, %v1309_v23 }
 0x1e0   :  { %v8251_v5 = vsel %vm12362_vm14, %v8250_v54, %v8246_v57  ;;  %v5463_v6 = vpop.xlane.xlu0 %5462 }
 0x1e1   :  { %v11166_v11 = vsel %vm12356_vm15, %v8251_v5, %v11026_v16  ;;  %v6388_v12 = vpack.c.bf16 %v5465_v61, %v5463_v6  ;;  %v8255_v13 = vrot.slane %v7208_v58, %v10891_v3  ;;  %v8259_v14 = vrot.slane %v7209_v60, %v10894_v4 }
 0x1e2   :  { %5608 = vadd.xlane.f32.xlu1 %v3866_v56  ;;  %v3872_v56 = vadd.f32 %v3360_v44, %v1312_v43  ;;  %v1318_v44 = vld [vmem:[#allocation3 + $0xd70] sm:$0xff]  ;;  %vm12357_vm15 = vcmask 1042434  }
 0x1e3   :  { %v7210_v19 = vunpack.c.l.b16 %v6388_v12  ;;  %v7211_v39 = vunpack.c.h.b16 %v6388_v12  ;;  %5606 = vadd.xlane.f32.xlu0 %v3865_v63  ;;  %v5469_v20 = vpop.xlane.xlu1 %5468  ;;  %v8260_v31 = vsel %vm6688_vm0, %v8259_v14, %v8255_v13  ;;  %v3871_v63 = vadd.f32 %v3359_v52, %v1311_v51  ;;  %v1317_v52 = vld [vmem:[#allocation3 + $0xd60] sm:$0xff] }
 0x1e4   :  { %v5467_v22 = vpop.xlane.xlu0 %5466 }
 0x1e5   :  { %v8264_v16 = vrot.slane %v7210_v19, %v10835_v49  ;;  %v8269_v28 = vrot.slane %v7211_v39, %v10838_v50  ;;  %v6389_v29 = vpack.c.bf16 %v5469_v20, %v5467_v22  ;;  %v3364_v22 = vld [vmem:[#allocation3 + $0xd58] sm:$0xff] }
 0x1e6   :  { %5612 = vadd.xlane.f32.xlu1 %v3868_v17  ;;  %v3874_v17 = vadd.f32 %v3362_v1, %v1314_v2  ;;  %v1320_v1 = vld [vmem:[#allocation3 + $0xd90] sm:$0xff] }
 0x1e7   :  { %v8265_v33 = vsel %vm7606_vm1, %v8264_v16, %v8260_v31  ;;  %v7212_v34 = vunpack.c.l.b16 %v6389_v29  ;;  %v7213_v38 = vunpack.c.h.b16 %v6389_v29  ;;  %5610 = vadd.xlane.f32.xlu0 %v3867_v30  ;;  %v5473_v41 = vpop.xlane.xlu1 %5472  ;;  %v1315_v16 = vld [vmem:[#allocation3 + $0xd40] sm:$0xff] }
 0x1e8   :  { %v8270_v46 = vsel %vm7613_vm2, %v8269_v28, %v8265_v33  ;;  %v5471_v37 = vpop.xlane.xlu0 %5470  ;;  %v3363_v28 = vld [vmem:[#allocation3 + $0xd48] sm:$0xff]  ;;  %v3876_v33 = vadd.f32 %v3364_v22, %v1316_v21  ;;  %v1322_v22 = vld [vmem:[#allocation3 + $0xdb0] sm:$0xff] }
 0x1e9   :  { %v8274_v53 = vrot.slane %v7212_v34, %v10843_v59  ;;  %v8279_v54 = vrot.slane %v7213_v38, %v10846_v62  ;;  %v6390_v55 = vpack.c.bf16 %v5473_v41, %v5471_v37  ;;  %v3875_v43 = vadd.f32 %v3363_v28, %v1315_v16  ;;  %v1321_v28 = vld [vmem:[#allocation3 + $0xda0] sm:$0xff] }
 0x1ea   :  { %5616 = vadd.xlane.f32.xlu1 %v3870_v32 }
 0x1eb   :  { %v8275_v57 = vsel %vm7620_vm3, %v8274_v53, %v8270_v46  ;;  %v7214_v58 = vunpack.c.l.b16 %v6390_v55  ;;  %v7215_v60 = vunpack.c.h.b16 %v6390_v55  ;;  %5614 = vadd.xlane.f32.xlu0 %v3869_v42  ;;  %v5477_v61 = vpop.xlane.xlu1 %5476  ;;  %v3366_v46 = vld [vmem:[#allocation3 + $0xd78] sm:$0xff]  ;;  %v3365_v53 = vld [vmem:[#allocation3 + $0xd68] sm:$0xff] }
 0x1ec   :  { %v8280_v5 = vsel %vm12361_vm4, %v8279_v54, %v8275_v57  ;;  %v5475_v6 = vpop.xlane.xlu0 %5474  ;;  %v3878_v57 = vadd.f32 %v3366_v46, %v1318_v44  ;;  %v3877_v2 = vadd.f32 %v3365_v53, %v1317_v52  ;;  %v1324_v46 = vld [vmem:[#allocation3 + $0xdd0] sm:$0xff]  ;;  %v1323_v53 = vld [vmem:[#allocation3 + $0xdc0] sm:$0xff] }
 0x1ed   :  { %v8284_v12 = vrot.slane %v7214_v58, %v10851_v7  ;;  %v8289_v13 = vrot.slane %v7215_v60, %v10854_v8  ;;  %v6391_v14 = vpack.c.bf16 %v5477_v61, %v5475_v6 }
 0x1ee   :  { %5620 = vadd.xlane.f32.xlu1 %v3872_v56 }
 0x1ef   :  { %v8285_v19 = vsel %vm7634_vm5, %v8284_v12, %v8280_v5  ;;  %v7216_v39 = vunpack.c.l.b16 %v6391_v14  ;;  %v7217_v20 = vunpack.c.h.b16 %v6391_v14  ;;  %5618 = vadd.xlane.f32.xlu0 %v3871_v63  ;;  %v5481_v30 = vpop.xlane.xlu1 %5480  ;;  %v3368_v5 = vld [vmem:[#allocation3 + $0xd98] sm:$0xff]  ;;  %v3367_v12 = vld [vmem:[#allocation3 + $0xd88] sm:$0xff] }
 0x1f0   :  { %v8290_v23 = vsel %vm12360_vm6, %v8289_v13, %v8285_v19  ;;  %v5479_v27 = vpop.xlane.xlu0 %5478  ;;  %v3880_v19 = vadd.f32 %v3368_v5, %v1320_v1  ;;  %v3879_v21 = vadd.f32 %v3367_v12, %v1319_v10  ;;  %v1326_v5 = vld [vmem:[#allocation3 + $0xdf0] sm:$0xff]  ;;  %v1325_v10 = vld [vmem:[#allocation3 + $0xde0] sm:$0xff]  ;;  %v3373_v12 = vld [vmem:[#allocation3 + $0xde8] sm:$0xff] }
 0x1f1   :  { %v8294_v29 = vrot.slane %v7216_v39, %v10859_v15  ;;  %v8299_v31 = vrot.slane %v7217_v20, %v10862_v18  ;;  %v6392_v32 = vpack.c.bf16 %v5481_v30, %v5479_v27 }
 0x1f2   :  { %5624 = vadd.xlane.f32.xlu1 %v3874_v17 }
 0x1f3   :  { %v8295_v34 = vsel %vm12359_vm7, %v8294_v29, %v8290_v23  ;;  %v7218_v38 = vunpack.c.l.b16 %v6392_v32  ;;  %v7219_v41 = vunpack.c.h.b16 %v6392_v32  ;;  %5622 = vadd.xlane.f32.xlu0 %v3873_v40  ;;  %v5485_v42 = vpop.xlane.xlu1 %5484  ;;  %v3370_v23 = vld [vmem:[#allocation3 + $0xdb8] sm:$0xff]  ;;  %v3369_v29 = vld [vmem:[#allocation3 + $0xda8] sm:$0xff] }
 0x1f4   :  { %v8300_v37 = vsel %vm7655_vm8, %v8299_v31, %v8295_v34  ;;  %v5483_v51 = vpop.xlane.xlu0 %5482  ;;  %v3882_v34 = vadd.f32 %v3370_v23, %v1322_v22  ;;  %v3881_v44 = vadd.f32 %v3369_v29, %v1321_v28  ;;  %v1328_v22 = vld [vmem:[#allocation3 + $0xe10] sm:$0xff]  ;;  %v3376_v23 = vld [vmem:[#allocation3 + $0xe18] sm:$0xff]  ;;  %v1327_v28 = vld [vmem:[#allocation3 + $0xe00] sm:$0xff] }
 0x1f5   :  { %v8304_v54 = vrot.slane %v7218_v38, %v10867_v25  ;;  %v8309_v55 = vrot.slane %v7219_v41, %v10870_v26  ;;  %v6393_v56 = vpack.c.bf16 %v5485_v42, %v5483_v51  ;;  %v3375_v29 = vld [vmem:[#allocation3 + $0xe08] sm:$0xff] }
 0x1f6   :  { %5628 = vadd.xlane.f32.xlu1 %v3876_v33 }
 0x1f7   :  { %v8305_v58 = vsel %vm7662_vm9, %v8304_v54, %v8300_v37  ;;  %v7220_v60 = vunpack.c.l.b16 %v6393_v56  ;;  %v7221_v61 = vunpack.c.h.b16 %v6393_v56  ;;  %5626 = vadd.xlane.f32.xlu0 %v3875_v43  ;;  %v5489_v63 = vpop.xlane.xlu1 %5488  ;;  %v3372_v37 = vld [vmem:[#allocation3 + $0xdd8] sm:$0xff]  ;;  %v3371_v54 = vld [vmem:[#allocation3 + $0xdc8] sm:$0xff] }
 0x1f8   :  { %v8310_v6 = vsel %vm7669_vm10, %v8309_v55, %v8305_v58  ;;  %v5487_v9 = vpop.xlane.xlu0 %5486  ;;  %v3883_v1 = vadd.f32 %v3371_v54, %v1323_v53  ;;  %v1329_v53 = vld [vmem:[#allocation3 + $0xe20] sm:$0xff]  ;;  %v3377_v54 = vld [vmem:[#allocation3 + $0xe28] sm:$0xff] }
 0x1f9   :  { %v8314_v13 = vrot.slane %v7220_v60, %v10875_v35  ;;  %v8319_v14 = vrot.slane %v7221_v61, %v10878_v36  ;;  %v6394_v17 = vpack.c.bf16 %v5489_v63, %v5487_v9  ;;  %v3884_v60 = vadd.f32 %v3372_v37, %v1324_v46  ;;  %v1330_v46 = vld [vmem:[#allocation3 + $0xe30] sm:$0xff]  ;;  %v3378_v37 = vld [vmem:[#allocation3 + $0xe38] sm:$0xff] }
 0x1fa   :  { %5632 = vadd.xlane.f32.xlu1 %v3878_v57 }
 0x1fb   :  { %v8315_v39 = vsel %vm7676_vm11, %v8314_v13, %v8310_v6  ;;  %v7222_v20 = vunpack.c.l.b16 %v6394_v17  ;;  %v7223_v30 = vunpack.c.h.b16 %v6394_v17  ;;  %5630 = vadd.xlane.f32.xlu0 %v3877_v2  ;;  %v5493_v40 = vpop.xlane.xlu1 %5492  ;;  %v3374_v6 = vld [vmem:[#allocation3 + $0xdf8] sm:$0xff] }
 0x1fc   :  { %v8320_v27 = vsel %vm7683_vm12, %v8319_v14, %v8315_v39  ;;  %v5491_v16 = vpop.xlane.xlu0 %5490 }
 0x1fd   :  { %v8324_v31 = vrot.slane %v7222_v20, %v10883_v47  ;;  %v8329_v32 = vrot.slane %v7223_v30, %v10886_v48  ;;  %v6395_v33 = vpack.c.bf16 %v5493_v40, %v5491_v16 }
 0x1fe   :  { %5636 = vadd.xlane.f32.xlu1 %v3880_v19  ;;  %v3886_v19 = vadd.f32 %v3374_v6, %v1326_v5  ;;  %v3889_v5 = vadd.f32 %v3377_v54, %v1329_v53  ;;  %v1332_v6 = vld [vmem:[#allocation3 + $0xe50] sm:$0xff]  ;;  %v1335_v54 = vld [vmem:[#allocation3 + $0xe80] sm:$0xff] }
 0x1ff   :  { %v8325_v38 = vsel %vm12363_vm13, %v8324_v31, %v8320_v27  ;;  %v7224_v41 = vunpack.c.l.b16 %v6395_v33  ;;  %v7225_v42 = vunpack.c.h.b16 %v6395_v33  ;;  %5634 = vadd.xlane.f32.xlu0 %v3879_v21  ;;  %v5497_v43 = vpop.xlane.xlu1 %5496  ;;  %v3885_v21 = vadd.f32 %v3373_v12, %v1325_v10 }
 0x200   :  { %v8330_v51 = vsel %vm12362_vm14, %v8329_v32, %v8325_v38  ;;  %v5495_v52 = vpop.xlane.xlu0 %5494 }
 0x201   :  { %v11201_v55 = vsel %vm12357_vm15, %v8330_v51, %v11061_v0  ;;  %v6396_v56 = vpack.c.bf16 %v5497_v43, %v5495_v52  ;;  %v8334_v57 = vrot.slane %v7224_v41, %v10891_v3  ;;  %v8338_v58 = vrot.slane %v7225_v42, %v10894_v4 }
 0x202   :  { %5640 = vadd.xlane.f32.xlu1 %v3882_v34  ;;  %v3888_v34 = vadd.f32 %v3376_v23, %v1328_v22  ;;  %v1334_v23 = vld [vmem:[#allocation3 + $0xe70] sm:$0xff] }
 0x203   :  { %v7226_v61 = vunpack.c.l.b16 %v6396_v56  ;;  %v7227_v63 = vunpack.c.h.b16 %v6396_v56  ;;  %5638 = vadd.xlane.f32.xlu0 %v3881_v44  ;;  %v5501_v2 = vpop.xlane.xlu1 %5500  ;;  %v8339_v17 = vsel %vm6688_vm0, %v8338_v58, %v8334_v57  ;;  %v3887_v44 = vadd.f32 %v3375_v29, %v1327_v28  ;;  %v1333_v29 = vld [vmem:[#allocation3 + $0xe60] sm:$0xff] }
 0x204   :  { %v5499_v9 = vpop.xlane.xlu0 %5498 }
 0x205   :  { %v8343_v0 = vrot.slane %v7226_v61, %v10835_v49  ;;  %v8348_v13 = vrot.slane %v7227_v63, %v10838_v50  ;;  %v6397_v14 = vpack.c.bf16 %v5501_v2, %v5499_v9  ;;  %v3380_v9 = vld [vmem:[#allocation3 + $0xe58] sm:$0xff] }
 0x206   :  { %5644 = vadd.xlane.f32.xlu1 %v3884_v60  ;;  %v3890_v60 = vadd.f32 %v3378_v37, %v1330_v46  ;;  %v1336_v37 = vld [vmem:[#allocation3 + $0xe90] sm:$0xff] }
 0x207   :  { %v8344_v39 = vsel %vm7606_vm1, %v8343_v0, %v8339_v17  ;;  %v7228_v20 = vunpack.c.l.b16 %v6397_v14  ;;  %v7229_v30 = vunpack.c.h.b16 %v6397_v14  ;;  %5642 = vadd.xlane.f32.xlu0 %v3883_v1  ;;  %v5505_v40 = vpop.xlane.xlu1 %5504  ;;  %v1331_v0 = vld [vmem:[#allocation3 + $0xe40] sm:$0xff] }
 0x208   :  { %v8349_v27 = vsel %vm7613_vm2, %v8348_v13, %v8344_v39  ;;  %v5503_v16 = vpop.xlane.xlu0 %5502  ;;  %v3379_v13 = vld [vmem:[#allocation3 + $0xe48] sm:$0xff]  ;;  %v3892_v39 = vadd.f32 %v3380_v9, %v1332_v6  ;;  %v1338_v9 = vld [vmem:[#allocation3 + $0xeb0] sm:$0xff] }
 0x209   :  { %v8353_v31 = vrot.slane %v7228_v20, %v10843_v59  ;;  %v8358_v32 = vrot.slane %v7229_v30, %v10846_v62  ;;  %v6398_v33 = vpack.c.bf16 %v5505_v40, %v5503_v16  ;;  %v3891_v22 = vadd.f32 %v3379_v13, %v1331_v0  ;;  %v1337_v13 = vld [vmem:[#allocation3 + $0xea0] sm:$0xff] }
 0x20a   :  { %5648 = vadd.xlane.f32.xlu1 %v3886_v19 }
 0x20b   :  { %v8354_v38 = vsel %vm7620_vm3, %v8353_v31, %v8349_v27  ;;  %v7230_v41 = vunpack.c.l.b16 %v6398_v33  ;;  %v7231_v42 = vunpack.c.h.b16 %v6398_v33  ;;  %5646 = vadd.xlane.f32.xlu0 %v3885_v21  ;;  %v5509_v43 = vpop.xlane.xlu1 %5508  ;;  %v3382_v27 = vld [vmem:[#allocation3 + $0xe78] sm:$0xff]  ;;  %v3381_v31 = vld [vmem:[#allocation3 + $0xe68] sm:$0xff] }
 0x20c   :  { %v8359_v51 = vsel %vm12361_vm4, %v8358_v32, %v8354_v38  ;;  %v5507_v52 = vpop.xlane.xlu0 %5506  ;;  %v3894_v38 = vadd.f32 %v3382_v27, %v1334_v23  ;;  %v3893_v46 = vadd.f32 %v3381_v31, %v1333_v29  ;;  %v1340_v27 = vld [vmem:[#allocation3 + $0xed0] sm:$0xff]  ;;  %v1339_v31 = vld [vmem:[#allocation3 + $0xec0] sm:$0xff] }
 0x20d   :  { %v8363_v56 = vrot.slane %v7230_v41, %v10851_v7  ;;  %v8368_v57 = vrot.slane %v7231_v42, %v10854_v8  ;;  %v6399_v58 = vpack.c.bf16 %v5509_v43, %v5507_v52 }
 0x20e   :  { %5652 = vadd.xlane.f32.xlu1 %v3888_v34 }
 0x20f   :  { %v8364_v61 = vsel %vm7634_vm5, %v8363_v56, %v8359_v51  ;;  %v7232_v63 = vunpack.c.l.b16 %v6399_v58  ;;  %v7233_v2 = vunpack.c.h.b16 %v6399_v58  ;;  %5650 = vadd.xlane.f32.xlu0 %v3887_v44  ;;  %v5513_v1 = vpop.xlane.xlu1 %5512  ;;  %v3384_v51 = vld [vmem:[#allocation3 + $0xe98] sm:$0xff]  ;;  %v3383_v56 = vld [vmem:[#allocation3 + $0xe88] sm:$0xff] }
 0x210   :  { %v8369_v10 = vsel %vm12360_vm6, %v8368_v57, %v8364_v61  ;;  %v5511_v12 = vpop.xlane.xlu0 %5510  ;;  %v3896_v61 = vadd.f32 %v3384_v51, %v1336_v37  ;;  %v3895_v6 = vadd.f32 %v3383_v56, %v1335_v54  ;;  %v1342_v51 = vld [vmem:[#allocation3 + $0xef0] sm:$0xff]  ;;  %v1341_v54 = vld [vmem:[#allocation3 + $0xee0] sm:$0xff]  ;;  %v3389_v56 = vld [vmem:[#allocation3 + $0xee8] sm:$0xff] }
 0x211   :  { %v8373_v14 = vrot.slane %v7232_v63, %v10859_v15  ;;  %v8378_v17 = vrot.slane %v7233_v2, %v10862_v18  ;;  %v6400_v19 = vpack.c.bf16 %v5513_v1, %v5511_v12 }
 0x212   :  { %5656 = vadd.xlane.f32.xlu1 %v3890_v60 }
 0x213   :  { %v8374_v20 = vsel %vm12359_vm7, %v8373_v14, %v8369_v10  ;;  %v7234_v30 = vunpack.c.l.b16 %v6400_v19  ;;  %v7235_v40 = vunpack.c.h.b16 %v6400_v19  ;;  %5654 = vadd.xlane.f32.xlu0 %v3889_v5  ;;  %v5517_v21 = vpop.xlane.xlu1 %5516  ;;  %v3386_v10 = vld [vmem:[#allocation3 + $0xeb8] sm:$0xff]  ;;  %v3385_v14 = vld [vmem:[#allocation3 + $0xea8] sm:$0xff] }
 0x214   :  { %v8379_v16 = vsel %vm7655_vm8, %v8378_v17, %v8374_v20  ;;  %v5515_v28 = vpop.xlane.xlu0 %5514  ;;  %v3898_v20 = vadd.f32 %v3386_v10, %v1338_v9  ;;  %v3897_v23 = vadd.f32 %v3385_v14, %v1337_v13  ;;  %v1344_v9 = vld [vmem:[#allocation3 + $0xf10] sm:$0xff]  ;;  %v3392_v10 = vld [vmem:[#allocation3 + $0xf18] sm:$0xff]  ;;  %v1343_v13 = vld [vmem:[#allocation3 + $0xf00] sm:$0xff] }
 0x215   :  { %v8383_v32 = vrot.slane %v7234_v30, %v10867_v25  ;;  %v8388_v33 = vrot.slane %v7235_v40, %v10870_v26  ;;  %v6401_v34 = vpack.c.bf16 %v5517_v21, %v5515_v28  ;;  %v3391_v14 = vld [vmem:[#allocation3 + $0xf08] sm:$0xff] }
 0x216   :  { %5660 = vadd.xlane.f32.xlu1 %v3892_v39 }
 0x217   :  { %v8384_v41 = vsel %vm7662_vm9, %v8383_v32, %v8379_v16  ;;  %v7236_v42 = vunpack.c.l.b16 %v6401_v34  ;;  %v7237_v43 = vunpack.c.h.b16 %v6401_v34  ;;  %5658 = vadd.xlane.f32.xlu0 %v3891_v22  ;;  %v5521_v44 = vpop.xlane.xlu1 %5520  ;;  %v3388_v16 = vld [vmem:[#allocation3 + $0xed8] sm:$0xff]  ;;  %v3387_v32 = vld [vmem:[#allocation3 + $0xec8] sm:$0xff] }
 0x218   :  { %v8389_v52 = vsel %vm7669_vm10, %v8388_v33, %v8384_v41  ;;  %v5519_v53 = vpop.xlane.xlu0 %5518  ;;  %v3900_v41 = vadd.f32 %v3388_v16, %v1340_v27  ;;  %v3899_v37 = vadd.f32 %v3387_v32, %v1339_v31  ;;  %v1346_v27 = vld [vmem:[#allocation3 + $0xf30] sm:$0xff]  ;;  %v3394_v16 = vld [vmem:[#allocation3 + $0xf38] sm:$0xff]  ;;  %v1345_v31 = vld [vmem:[#allocation3 + $0xf20] sm:$0xff] }
 0x219   :  { %v8393_v57 = vrot.slane %v7236_v42, %v10875_v35  ;;  %v8398_v58 = vrot.slane %v7237_v43, %v10878_v36  ;;  %v6402_v60 = vpack.c.bf16 %v5521_v44, %v5519_v53  ;;  %v3393_v32 = vld [vmem:[#allocation3 + $0xf28] sm:$0xff] }
 0x21a   :  { %5664 = vadd.xlane.f32.xlu1 %v3894_v38 }
 0x21b   :  { %v8394_v63 = vsel %vm7676_vm11, %v8393_v57, %v8389_v52  ;;  %v7238_v2 = vunpack.c.l.b16 %v6402_v60  ;;  %v7239_v1 = vunpack.c.h.b16 %v6402_v60  ;;  %5662 = vadd.xlane.f32.xlu0 %v3893_v46  ;;  %v5525_v5 = vpop.xlane.xlu1 %5524  ;;  %v3390_v52 = vld [vmem:[#allocation3 + $0xef8] sm:$0xff] }
 0x21c   :  { %v8399_v12 = vsel %vm7683_vm12, %v8398_v58, %v8394_v63  ;;  %v5523_v0 = vpop.xlane.xlu0 %5522 }
 0x21d   :  { %v8403_v17 = vrot.slane %v7238_v2, %v10883_v47  ;;  %v8408_v19 = vrot.slane %v7239_v1, %v10886_v48  ;;  %v6403_v39 = vpack.c.bf16 %v5525_v5, %v5523_v0 }
 0x21e   :  { %5668 = vadd.xlane.f32.xlu1 %v3896_v61 }
 0x21f   :  { %v8404_v30 = vsel %vm12363_vm13, %v8403_v17, %v8399_v12  ;;  %v7240_v40 = vunpack.c.l.b16 %v6403_v39  ;;  %v7241_v21 = vunpack.c.h.b16 %v6403_v39  ;;  %5666 = vadd.xlane.f32.xlu0 %v3895_v6  ;;  %v5529_v22 = vpop.xlane.xlu1 %5528  ;;  %v3901_v6 = vadd.f32 %v3389_v56, %v1341_v54 }
 0x220   :  { %v8409_v28 = vsel %vm12362_vm14, %v8408_v19, %v8404_v30  ;;  %v5527_v29 = vpop.xlane.xlu0 %5526 }
 0x221   :  { %v6404_v33 = vpack.c.bf16 %v5529_v22, %v5527_v29  ;;  %v8413_v34 = vrot.slane %v7240_v40, %v10891_v3  ;;  %v8417_v38 = vrot.slane %v7241_v21, %v10894_v4  ;;  %v11238_v42 = vsel %vm12357_vm15, %v8409_v28, %v11096_v45 }
 0x222   :  { %5672 = vadd.xlane.f32.xlu1 %v3898_v20  ;;  %v3902_v45 = vadd.f32 %v3390_v52, %v1342_v51  ;;  %v3904_v20 = vadd.f32 %v3392_v10, %v1344_v9  ;;  %v3905_v51 = vadd.f32 %v3393_v32, %v1345_v31  ;;  %v1348_v52 = vld [vmem:[#allocation3 + $0xf50] sm:$0xff]  ;;  %v1351_v32 = vld [vmem:[#allocation3 + $0xf80] sm:$0xff] }
 0x223   :  { %v7242_v43 = vunpack.c.l.b16 %v6404_v33  ;;  %v7243_v44 = vunpack.c.h.b16 %v6404_v33  ;;  %5670 = vadd.xlane.f32.xlu0 %v3897_v23  ;;  %v5533_v46 = vpop.xlane.xlu1 %5532  ;;  %v8418_v61 = vsel %vm6688_vm0, %v8417_v38, %v8413_v34  ;;  %v3903_v23 = vadd.f32 %v3391_v14, %v1343_v13  ;;  %v1350_v10 = vld [vmem:[#allocation3 + $0xf70] sm:$0xff]  ;;  %v1349_v14 = vld [vmem:[#allocation3 + $0xf60] sm:$0xff] }
 0x224   :  { %v5531_v53 = vpop.xlane.xlu0 %5530 }
 0x225   :  { %v8422_v57 = vrot.slane %v7242_v43, %v10835_v49  ;;  %v8427_v58 = vrot.slane %v7243_v44, %v10838_v50  ;;  %v6405_v60 = vpack.c.bf16 %v5533_v46, %v5531_v53  ;;  %v3396_v53 = vld [vmem:[#allocation3 + $0xf58] sm:$0xff] }
 0x226   :  { %5676 = vadd.xlane.f32.xlu1 %v3900_v41  ;;  %v3906_v41 = vadd.f32 %v3394_v16, %v1346_v27  ;;  %v1352_v16 = vld [vmem:[#allocation3 + $0xf90] sm:$0xff] }
 0x227   :  { %v8423_v63 = vsel %vm7606_vm1, %v8422_v57, %v8418_v61  ;;  %v7244_v2 = vunpack.c.l.b16 %v6405_v60  ;;  %v7245_v1 = vunpack.c.h.b16 %v6405_v60  ;;  %5674 = vadd.xlane.f32.xlu0 %v3899_v37  ;;  %v5537_v5 = vpop.xlane.xlu1 %5536  ;;  %v1347_v57 = vld [vmem:[#allocation3 + $0xf40] sm:$0xff] }
 0x228   :  { %v8428_v12 = vsel %vm7613_vm2, %v8427_v58, %v8423_v63  ;;  %v5535_v0 = vpop.xlane.xlu0 %5534  ;;  %v3395_v58 = vld [vmem:[#allocation3 + $0xf48] sm:$0xff]  ;;  %v3908_v63 = vadd.f32 %v3396_v53, %v1348_v52  ;;  %v1354_v53 = vld [vmem:[#allocation3 + $0xfb0] sm:$0xff] }
 0x229   :  { %v8432_v17 = vrot.slane %v7244_v2, %v10843_v59  ;;  %v8437_v19 = vrot.slane %v7245_v1, %v10846_v62  ;;  %v6406_v39 = vpack.c.bf16 %v5537_v5, %v5535_v0  ;;  %v3907_v9 = vadd.f32 %v3395_v58, %v1347_v57  ;;  %v1353_v58 = vld [vmem:[#allocation3 + $0xfa0] sm:$0xff] }
 0x22a   :  { %5680 = vadd.xlane.f32.xlu1 %v3902_v45 }
 0x22b   :  { %v8433_v30 = vsel %vm7620_vm3, %v8432_v17, %v8428_v12  ;;  %v7246_v40 = vunpack.c.l.b16 %v6406_v39  ;;  %v7247_v21 = vunpack.c.h.b16 %v6406_v39  ;;  %5678 = vadd.xlane.f32.xlu0 %v3901_v6  ;;  %v5541_v22 = vpop.xlane.xlu1 %5540  ;;  %v3398_v12 = vld [vmem:[#allocation3 + $0xf78] sm:$0xff]  ;;  %v3397_v17 = vld [vmem:[#allocation3 + $0xf68] sm:$0xff] }
 0x22c   :  { %v8438_v28 = vsel %vm12361_vm4, %v8437_v19, %v8433_v30  ;;  %v5539_v29 = vpop.xlane.xlu0 %5538  ;;  %v3910_v30 = vadd.f32 %v3398_v12, %v1350_v10  ;;  %v3909_v27 = vadd.f32 %v3397_v17, %v1349_v14  ;;  %v1356_v12 = vld [vmem:[#allocation3 + $0xfd0] sm:$0xff]  ;;  %v1355_v17 = vld [vmem:[#allocation3 + $0xfc0] sm:$0xff] }
 0x22d   :  { %v8442_v33 = vrot.slane %v7246_v40, %v10851_v7  ;;  %v8447_v34 = vrot.slane %v7247_v21, %v10854_v8  ;;  %v6407_v38 = vpack.c.bf16 %v5541_v22, %v5539_v29 }
 0x22e   :  { %5684 = vadd.xlane.f32.xlu1 %v3904_v20 }
 0x22f   :  { %v8443_v43 = vsel %vm7634_vm5, %v8442_v33, %v8438_v28  ;;  %v7248_v44 = vunpack.c.l.b16 %v6407_v38  ;;  %v7249_v46 = vunpack.c.h.b16 %v6407_v38  ;;  %5682 = vadd.xlane.f32.xlu0 %v3903_v23  ;;  %v5545_v37 = vpop.xlane.xlu1 %5544  ;;  %v3400_v28 = vld [vmem:[#allocation3 + $0xf98] sm:$0xff]  ;;  %v3399_v33 = vld [vmem:[#allocation3 + $0xf88] sm:$0xff] }
 0x230   :  { %v8448_v54 = vsel %vm12360_vm6, %v8447_v34, %v8443_v43  ;;  %v5543_v56 = vpop.xlane.xlu0 %5542  ;;  %v3912_v43 = vadd.f32 %v3400_v28, %v1352_v16  ;;  %v3911_v52 = vadd.f32 %v3399_v33, %v1351_v32  ;;  %v1358_v28 = vld [vmem:[#allocation3 + $0xff0] sm:$0xff]  ;;  %v1357_v32 = vld [vmem:[#allocation3 + $0xfe0] sm:$0xff]  ;;  %v3405_v33 = vld [vmem:[#allocation3 + $0xfe8] sm:$0xff] }
 0x231   :  { %v8452_v60 = vrot.slane %v7248_v44, %v10859_v15  ;;  %v8457_v61 = vrot.slane %v7249_v46, %v10862_v18  ;;  %v6408_v45 = vpack.c.bf16 %v5545_v37, %v5543_v56 }
 0x232   :  { %5688 = vadd.xlane.f32.xlu1 %v3906_v41 }
 0x233   :  { %v8453_v2 = vsel %vm12359_vm7, %v8452_v60, %v8448_v54  ;;  %v7250_v1 = vunpack.c.l.b16 %v6408_v45  ;;  %v7251_v5 = vunpack.c.h.b16 %v6408_v45  ;;  %5686 = vadd.xlane.f32.xlu0 %v3905_v51  ;;  %v5549_v6 = vpop.xlane.xlu1 %5548  ;;  %v3402_v54 = vld [vmem:[#allocation3 + $0xfb8] sm:$0xff]  ;;  %v3401_v60 = vld [vmem:[#allocation3 + $0xfa8] sm:$0xff] }
 0x234   :  { %v8458_v0 = vsel %vm7655_vm8, %v8457_v61, %v8453_v2  ;;  %v5547_v13 = vpop.xlane.xlu0 %5546  ;;  %v3914_v2 = vadd.f32 %v3402_v54, %v1354_v53  ;;  %v3913_v10 = vadd.f32 %v3401_v60, %v1353_v58  ;;  %v1360_v53 = vld [vmem:[#allocation3 + $0x1010] sm:$0xff]  ;;  %v3408_v54 = vld [vmem:[#allocation3 + $0x1018] sm:$0xff]  ;;  %v1359_v58 = vld [vmem:[#allocation3 + $0x1000] sm:$0xff] }
 0x235   :  { %v8462_v19 = vrot.slane %v7250_v1, %v10867_v25  ;;  %v8467_v39 = vrot.slane %v7251_v5, %v10870_v26  ;;  %v6409_v20 = vpack.c.bf16 %v5549_v6, %v5547_v13  ;;  %v3407_v60 = vld [vmem:[#allocation3 + $0x1008] sm:$0xff] }
 0x236   :  { %5692 = vadd.xlane.f32.xlu1 %v3908_v63 }
 0x237   :  { %v8463_v40 = vsel %vm7662_vm9, %v8462_v19, %v8458_v0  ;;  %v7252_v21 = vunpack.c.l.b16 %v6409_v20  ;;  %v7253_v22 = vunpack.c.h.b16 %v6409_v20  ;;  %5690 = vadd.xlane.f32.xlu0 %v3907_v9  ;;  %v5553_v23 = vpop.xlane.xlu1 %5552  ;;  %v3404_v0 = vld [vmem:[#allocation3 + $0xfd8] sm:$0xff]  ;;  %v3403_v19 = vld [vmem:[#allocation3 + $0xfc8] sm:$0xff] }
 0x238   :  { %v8468_v29 = vsel %vm7669_vm10, %v8467_v39, %v8463_v40  ;;  %v5551_v31 = vpop.xlane.xlu0 %5550  ;;  %v3915_v16 = vadd.f32 %v3403_v19, %v1355_v17  ;;  %v1361_v17 = vld [vmem:[#allocation3 + $0x1020] sm:$0xff]  ;;  %v3409_v19 = vld [vmem:[#allocation3 + $0x1028] sm:$0xff] }
 0x239   :  { %v8472_v34 = vrot.slane %v7252_v21, %v10875_v35  ;;  %v8477_v38 = vrot.slane %v7253_v22, %v10878_v36  ;;  %v6410_v41 = vpack.c.bf16 %v5553_v23, %v5551_v31  ;;  %v3916_v21 = vadd.f32 %v3404_v0, %v1356_v12  ;;  %v1362_v12 = vld [vmem:[#allocation3 + $0x1030] sm:$0xff]  ;;  %v3410_v0 = vld [vmem:[#allocation3 + $0x1038] sm:$0xff] }
 0x23a   :  { %5696 = vadd.xlane.f32.xlu1 %v3910_v30 }
 0x23b   :  { %v8473_v44 = vsel %vm7676_vm11, %v8472_v34, %v8468_v29  ;;  %v7254_v46 = vunpack.c.l.b16 %v6410_v41  ;;  %v7255_v37 = vunpack.c.h.b16 %v6410_v41  ;;  %5694 = vadd.xlane.f32.xlu0 %v3909_v27  ;;  %v5557_v51 = vpop.xlane.xlu1 %5556  ;;  %v3406_v29 = vld [vmem:[#allocation3 + $0xff8] sm:$0xff] }
 0x23c   :  { %v8478_v56 = vsel %vm7683_vm12, %v8477_v38, %v8473_v44  ;;  %v5555_v57 = vpop.xlane.xlu0 %5554 }
 0x23d   :  { %v8482_v61 = vrot.slane %v7254_v46, %v10883_v47  ;;  %v8487_v45 = vrot.slane %v7255_v37, %v10886_v48  ;;  %v6411_v63 = vpack.c.bf16 %v5557_v51, %v5555_v57 }
 0x23e   :  { %5700 = vadd.xlane.f32.xlu1 %v3912_v43  ;;  %v3918_v43 = vadd.f32 %v3406_v29, %v1358_v28  ;;  %v3921_v28 = vadd.f32 %v3409_v19, %v1361_v17  ;;  %v1364_v29 = vld [vmem:[#allocation3 + $0x1050] sm:$0xff]  ;;  %v1367_v19 = vld [vmem:[#allocation3 + $0x1080] sm:$0xff] }
 0x23f   :  { %v8483_v1 = vsel %vm12363_vm13, %v8482_v61, %v8478_v56  ;;  %v7256_v5 = vunpack.c.l.b16 %v6411_v63  ;;  %v7257_v6 = vunpack.c.h.b16 %v6411_v63  ;;  %5698 = vadd.xlane.f32.xlu0 %v3911_v52  ;;  %v5561_v9 = vpop.xlane.xlu1 %5560  ;;  %v3917_v52 = vadd.f32 %v3405_v33, %v1357_v32 }
 0x240   :  { %v8488_v13 = vsel %vm12362_vm14, %v8487_v45, %v8483_v1  ;;  %v5559_v14 = vpop.xlane.xlu0 %5558 }
 0x241   :  { %v11271_v39 = vsel %vm12357_vm15, %v8488_v13, %v11131_v24  ;;  %v6412_v20 = vpack.c.bf16 %v5561_v9, %v5559_v14  ;;  %v8492_v30 = vrot.slane %v7256_v5, %v10891_v3  ;;  %v8496_v40 = vrot.slane %v7257_v6, %v10894_v4 }
 0x242   :  { %5704 = vadd.xlane.f32.xlu1 %v3914_v2  ;;  %v3920_v2 = vadd.f32 %v3408_v54, %v1360_v53  ;;  %v1366_v54 = vld [vmem:[#allocation3 + $0x1070] sm:$0xff] }
 0x243   :  { %v7258_v22 = vunpack.c.l.b16 %v6412_v20  ;;  %v7259_v23 = vunpack.c.h.b16 %v6412_v20  ;;  %5702 = vadd.xlane.f32.xlu0 %v3913_v10  ;;  %v5565_v27 = vpop.xlane.xlu1 %5564  ;;  %v8497_v41 = vsel %vm6688_vm0, %v8496_v40, %v8492_v30  ;;  %v3919_v10 = vadd.f32 %v3407_v60, %v1359_v58  ;;  %v1365_v60 = vld [vmem:[#allocation3 + $0x1060] sm:$0xff] }
 0x244   :  { %v5563_v31 = vpop.xlane.xlu0 %5562 }
 0x245   :  { %v8501_v24 = vrot.slane %v7258_v22, %v10835_v49  ;;  %v8506_v34 = vrot.slane %v7259_v23, %v10838_v50  ;;  %v6413_v38 = vpack.c.bf16 %v5565_v27, %v5563_v31  ;;  %v3412_v31 = vld [vmem:[#allocation3 + $0x1058] sm:$0xff] }
 0x246   :  { %5708 = vadd.xlane.f32.xlu1 %v3916_v21  ;;  %v3922_v21 = vadd.f32 %v3410_v0, %v1362_v12  ;;  %v1368_v0 = vld [vmem:[#allocation3 + $0x1090] sm:$0xff] }
 0x247   :  { %v8502_v44 = vsel %vm7606_vm1, %v8501_v24, %v8497_v41  ;;  %v7260_v46 = vunpack.c.l.b16 %v6413_v38  ;;  %v7261_v37 = vunpack.c.h.b16 %v6413_v38  ;;  %5706 = vadd.xlane.f32.xlu0 %v3915_v16  ;;  %v5569_v51 = vpop.xlane.xlu1 %5568  ;;  %v1363_v24 = vld [vmem:[#allocation3 + $0x1040] sm:$0xff] }
 0x248   :  { %v8507_v56 = vsel %vm7613_vm2, %v8506_v34, %v8502_v44  ;;  %v5567_v57 = vpop.xlane.xlu0 %5566  ;;  %v3411_v34 = vld [vmem:[#allocation3 + $0x1048] sm:$0xff]  ;;  %v3924_v44 = vadd.f32 %v3412_v31, %v1364_v29  ;;  %v1370_v31 = vld [vmem:[#allocation3 + $0x10b0] sm:$0xff] }
 0x249   :  { %v8511_v61 = vrot.slane %v7260_v46, %v10843_v59  ;;  %v8516_v45 = vrot.slane %v7261_v37, %v10846_v62  ;;  %v6414_v63 = vpack.c.bf16 %v5569_v51, %v5567_v57  ;;  %v3923_v53 = vadd.f32 %v3411_v34, %v1363_v24  ;;  %v1369_v34 = vld [vmem:[#allocation3 + $0x10a0] sm:$0xff] }
 0x24a   :  { %5712 = vadd.xlane.f32.xlu1 %v3918_v43 }
 0x24b   :  { %v8512_v1 = vsel %vm7620_vm3, %v8511_v61, %v8507_v56  ;;  %v7262_v5 = vunpack.c.l.b16 %v6414_v63  ;;  %v7263_v6 = vunpack.c.h.b16 %v6414_v63  ;;  %5710 = vadd.xlane.f32.xlu0 %v3917_v52  ;;  %v5573_v9 = vpop.xlane.xlu1 %5572  ;;  %v3414_v56 = vld [vmem:[#allocation3 + $0x1078] sm:$0xff]  ;;  %v3413_v61 = vld [vmem:[#allocation3 + $0x1068] sm:$0xff] }
 0x24c   :  { %v8517_v13 = vsel %vm12361_vm4, %v8516_v45, %v8512_v1  ;;  %v5571_v14 = vpop.xlane.xlu0 %5570  ;;  %v3926_v1 = vadd.f32 %v3414_v56, %v1366_v54  ;;  %v3925_v12 = vadd.f32 %v3413_v61, %v1365_v60  ;;  %v1372_v56 = vld [vmem:[#allocation3 + $0x10d0] sm:$0xff]  ;;  %v1371_v61 = vld [vmem:[#allocation3 + $0x10c0] sm:$0xff] }
 0x24d   :  { %v8521_v20 = vrot.slane %v7262_v5, %v10851_v7  ;;  %v8526_v30 = vrot.slane %v7263_v6, %v10854_v8  ;;  %v6415_v40 = vpack.c.bf16 %v5573_v9, %v5571_v14 }
 0x24e   :  { %5716 = vadd.xlane.f32.xlu1 %v3920_v2 }
 0x24f   :  { %v8522_v22 = vsel %vm7634_vm5, %v8521_v20, %v8517_v13  ;;  %v7264_v23 = vunpack.c.l.b16 %v6415_v40  ;;  %v7265_v27 = vunpack.c.h.b16 %v6415_v40  ;;  %5714 = vadd.xlane.f32.xlu0 %v3919_v10  ;;  %v5577_v16 = vpop.xlane.xlu1 %5576  ;;  %v3416_v13 = vld [vmem:[#allocation3 + $0x1098] sm:$0xff]  ;;  %v3415_v20 = vld [vmem:[#allocation3 + $0x1088] sm:$0xff] }
 0x250   :  { %v8527_v32 = vsel %vm12360_vm6, %v8526_v30, %v8522_v22  ;;  %v5575_v33 = vpop.xlane.xlu0 %5574  ;;  %v3928_v22 = vadd.f32 %v3416_v13, %v1368_v0  ;;  %v3927_v29 = vadd.f32 %v3415_v20, %v1367_v19  ;;  %v1374_v13 = vld [vmem:[#allocation3 + $0x10f0] sm:$0xff]  ;;  %v1373_v19 = vld [vmem:[#allocation3 + $0x10e0] sm:$0xff]  ;;  %v3421_v20 = vld [vmem:[#allocation3 + $0x10e8] sm:$0xff] }
 0x251   :  { %v8531_v38 = vrot.slane %v7264_v23, %v10859_v15  ;;  %v8536_v41 = vrot.slane %v7265_v27, %v10862_v18  ;;  %v6416_v43 = vpack.c.bf16 %v5577_v16, %v5575_v33 }
 0x252   :  { %5720 = vadd.xlane.f32.xlu1 %v3922_v21 }
 0x253   :  { %v8532_v46 = vsel %vm12359_vm7, %v8531_v38, %v8527_v32  ;;  %v7266_v37 = vunpack.c.l.b16 %v6416_v43  ;;  %v7267_v51 = vunpack.c.h.b16 %v6416_v43  ;;  %5718 = vadd.xlane.f32.xlu0 %v3921_v28  ;;  %v5581_v52 = vpop.xlane.xlu1 %5580  ;;  %v3418_v32 = vld [vmem:[#allocation3 + $0x10b8] sm:$0xff]  ;;  %v3417_v38 = vld [vmem:[#allocation3 + $0x10a8] sm:$0xff] }
 0x254   :  { %v8537_v57 = vsel %vm7655_vm8, %v8536_v41, %v8532_v46  ;;  %v5579_v58 = vpop.xlane.xlu0 %5578  ;;  %v3930_v46 = vadd.f32 %v3418_v32, %v1370_v31  ;;  %v3929_v54 = vadd.f32 %v3417_v38, %v1369_v34  ;;  %v1376_v31 = vld [vmem:[#allocation3 + $0x1110] sm:$0xff]  ;;  %v3424_v32 = vld [vmem:[#allocation3 + $0x1118] sm:$0xff]  ;;  %v1375_v34 = vld [vmem:[#allocation3 + $0x1100] sm:$0xff] }
 0x255   :  { %v8541_v45 = vrot.slane %v7266_v37, %v10867_v25  ;;  %v8546_v63 = vrot.slane %v7267_v51, %v10870_v26  ;;  %v6417_v2 = vpack.c.bf16 %v5581_v52, %v5579_v58  ;;  %v3423_v38 = vld [vmem:[#allocation3 + $0x1108] sm:$0xff] }
 0x256   :  { %5724 = vadd.xlane.f32.xlu1 %v3924_v44 }
 0x257   :  { %v8542_v5 = vsel %vm7662_vm9, %v8541_v45, %v8537_v57  ;;  %v7268_v6 = vunpack.c.l.b16 %v6417_v2  ;;  %v7269_v9 = vunpack.c.h.b16 %v6417_v2  ;;  %5722 = vadd.xlane.f32.xlu0 %v3923_v53  ;;  %v5585_v10 = vpop.xlane.xlu1 %5584  ;;  %v3420_v57 = vld [vmem:[#allocation3 + $0x10d8] sm:$0xff]  ;;  %v3419_v45 = vld [vmem:[#allocation3 + $0x10c8] sm:$0xff] }
 0x258   :  { %v8547_v14 = vsel %vm7669_vm10, %v8546_v63, %v8542_v5  ;;  %v5583_v17 = vpop.xlane.xlu0 %5582  ;;  %v3931_v0 = vadd.f32 %v3419_v45, %v1371_v61  ;;  %v1377_v61 = vld [vmem:[#allocation3 + $0x1120] sm:$0xff]  ;;  %v3425_v45 = vld [vmem:[#allocation3 + $0x1128] sm:$0xff] }
 0x259   :  { %v8551_v30 = vrot.slane %v7268_v6, %v10875_v35  ;;  %v8556_v40 = vrot.slane %v7269_v9, %v10878_v36  ;;  %v6418_v21 = vpack.c.bf16 %v5585_v10, %v5583_v17  ;;  %v3932_v6 = vadd.f32 %v3420_v57, %v1372_v56  ;;  %v1378_v56 = vld [vmem:[#allocation3 + $0x1130] sm:$0xff]  ;;  %v3426_v57 = vld [vmem:[#allocation3 + $0x1138] sm:$0xff] }
 0x25a   :  { %5728 = vadd.xlane.f32.xlu1 %v3926_v1 }
 0x25b   :  { %v8552_v23 = vsel %vm7676_vm11, %v8551_v30, %v8547_v14  ;;  %v7270_v27 = vunpack.c.l.b16 %v6418_v21  ;;  %v7271_v16 = vunpack.c.h.b16 %v6418_v21  ;;  %5726 = vadd.xlane.f32.xlu0 %v3925_v12  ;;  %v5589_v28 = vpop.xlane.xlu1 %5588  ;;  %v3422_v14 = vld [vmem:[#allocation3 + $0x10f8] sm:$0xff] }
 0x25c   :  { %v8557_v33 = vsel %vm7683_vm12, %v8556_v40, %v8552_v23  ;;  %v5587_v24 = vpop.xlane.xlu0 %5586 }
 0x25d   :  { %v8561_v41 = vrot.slane %v7270_v27, %v10883_v47  ;;  %v8566_v43 = vrot.slane %v7271_v16, %v10886_v48  ;;  %v6419_v44 = vpack.c.bf16 %v5589_v28, %v5587_v24 }
 0x25e   :  { %5732 = vadd.xlane.f32.xlu1 %v3928_v22  ;;  %v3934_v22 = vadd.f32 %v3422_v14, %v1374_v13  ;;  %v3937_v13 = vadd.f32 %v3425_v45, %v1377_v61  ;;  %v1380_v14 = vld [vmem:[#allocation3 + $0x1150] sm:$0xff]  ;;  %v1383_v45 = vld [vmem:[#allocation3 + $0x1180] sm:$0xff] }
 0x25f   :  { %v8562_v37 = vsel %vm12363_vm13, %v8561_v41, %v8557_v33  ;;  %v7272_v51 = vunpack.c.l.b16 %v6419_v44  ;;  %v7273_v52 = vunpack.c.h.b16 %v6419_v44  ;;  %5730 = vadd.xlane.f32.xlu0 %v3927_v29  ;;  %v5593_v53 = vpop.xlane.xlu1 %5592  ;;  %v3933_v29 = vadd.f32 %v3421_v20, %v1373_v19 }
 0x260   :  { %v8567_v58 = vsel %vm12362_vm14, %v8566_v43, %v8562_v37  ;;  %v5591_v60 = vpop.xlane.xlu0 %5590 }
 0x261   :  { %v11306_v63 = vsel %vm12357_vm15, %v8567_v58, %v11166_v11  ;;  %v6420_v2 = vpack.c.bf16 %v5593_v53, %v5591_v60  ;;  %v8571_v1 = vrot.slane %v7272_v51, %v10891_v3  ;;  %v8575_v5 = vrot.slane %v7273_v52, %v10894_v4 }
 0x262   :  { %5736 = vadd.xlane.f32.xlu1 %v3930_v46  ;;  %v3936_v46 = vadd.f32 %v3424_v32, %v1376_v31  ;;  %v1382_v32 = vld [vmem:[#allocation3 + $0x1170] sm:$0xff]  ;;  %vm12358_vm15 = vcmask 1043459  }
 0x263   :  { %v7274_v9 = vunpack.c.l.b16 %v6420_v2  ;;  %v7275_v10 = vunpack.c.h.b16 %v6420_v2  ;;  %5734 = vadd.xlane.f32.xlu0 %v3929_v54  ;;  %v5597_v12 = vpop.xlane.xlu1 %5596  ;;  %v8576_v21 = vsel %vm6688_vm0, %v8575_v5, %v8571_v1  ;;  %v3935_v54 = vadd.f32 %v3423_v38, %v1375_v34  ;;  %v1381_v38 = vld [vmem:[#allocation3 + $0x1160] sm:$0xff] }
 0x264   :  { %v5595_v17 = vpop.xlane.xlu0 %5594 }
 0x265   :  { %v8580_v11 = vrot.slane %v7274_v9, %v10835_v49  ;;  %v8585_v30 = vrot.slane %v7275_v10, %v10838_v50  ;;  %v6421_v40 = vpack.c.bf16 %v5597_v12, %v5595_v17  ;;  %v3428_v17 = vld [vmem:[#allocation3 + $0x1158] sm:$0xff] }
 0x266   :  { %5740 = vadd.xlane.f32.xlu1 %v3932_v6  ;;  %v3938_v6 = vadd.f32 %v3426_v57, %v1378_v56  ;;  %v1384_v57 = vld [vmem:[#allocation3 + $0x1190] sm:$0xff] }
 0x267   :  { %v8581_v23 = vsel %vm7606_vm1, %v8580_v11, %v8576_v21  ;;  %v7276_v27 = vunpack.c.l.b16 %v6421_v40  ;;  %v7277_v16 = vunpack.c.h.b16 %v6421_v40  ;;  %5738 = vadd.xlane.f32.xlu0 %v3931_v0  ;;  %v5601_v28 = vpop.xlane.xlu1 %5600  ;;  %v1379_v11 = vld [vmem:[#allocation3 + $0x1140] sm:$0xff] }
 0x268   :  { %v8586_v33 = vsel %vm7613_vm2, %v8585_v30, %v8581_v23  ;;  %v5599_v24 = vpop.xlane.xlu0 %5598  ;;  %v3427_v30 = vld [vmem:[#allocation3 + $0x1148] sm:$0xff]  ;;  %v3940_v23 = vadd.f32 %v3428_v17, %v1380_v14  ;;  %v1386_v17 = vld [vmem:[#allocation3 + $0x11b0] sm:$0xff] }
 0x269   :  { %v8590_v41 = vrot.slane %v7276_v27, %v10843_v59  ;;  %v8595_v43 = vrot.slane %v7277_v16, %v10846_v62  ;;  %v6422_v44 = vpack.c.bf16 %v5601_v28, %v5599_v24  ;;  %v3939_v31 = vadd.f32 %v3427_v30, %v1379_v11  ;;  %v1385_v30 = vld [vmem:[#allocation3 + $0x11a0] sm:$0xff] }
 0x26a   :  { %5744 = vadd.xlane.f32.xlu1 %v3934_v22 }
 0x26b   :  { %v8591_v37 = vsel %vm7620_vm3, %v8590_v41, %v8586_v33  ;;  %v7278_v51 = vunpack.c.l.b16 %v6422_v44  ;;  %v7279_v52 = vunpack.c.h.b16 %v6422_v44  ;;  %5742 = vadd.xlane.f32.xlu0 %v3933_v29  ;;  %v5605_v53 = vpop.xlane.xlu1 %5604  ;;  %v3430_v33 = vld [vmem:[#allocation3 + $0x1178] sm:$0xff]  ;;  %v3429_v41 = vld [vmem:[#allocation3 + $0x1168] sm:$0xff] }
 0x26c   :  { %v8596_v58 = vsel %vm12361_vm4, %v8595_v43, %v8591_v37  ;;  %v5603_v60 = vpop.xlane.xlu0 %5602  ;;  %v3942_v37 = vadd.f32 %v3430_v33, %v1382_v32  ;;  %v3941_v56 = vadd.f32 %v3429_v41, %v1381_v38  ;;  %v1388_v33 = vld [vmem:[#allocation3 + $0x11d0] sm:$0xff]  ;;  %v1387_v41 = vld [vmem:[#allocation3 + $0x11c0] sm:$0xff] }
 0x26d   :  { %v8600_v2 = vrot.slane %v7278_v51, %v10851_v7  ;;  %v8605_v1 = vrot.slane %v7279_v52, %v10854_v8  ;;  %v6423_v5 = vpack.c.bf16 %v5605_v53, %v5603_v60 }
 0x26e   :  { %5748 = vadd.xlane.f32.xlu1 %v3936_v46 }
 0x26f   :  { %v8601_v9 = vsel %vm7634_vm5, %v8600_v2, %v8596_v58  ;;  %v7280_v10 = vunpack.c.l.b16 %v6423_v5  ;;  %v7281_v12 = vunpack.c.h.b16 %v6423_v5  ;;  %5746 = vadd.xlane.f32.xlu0 %v3935_v54  ;;  %v5609_v0 = vpop.xlane.xlu1 %5608  ;;  %v3432_v58 = vld [vmem:[#allocation3 + $0x1198] sm:$0xff]  ;;  %v3431_v2 = vld [vmem:[#allocation3 + $0x1188] sm:$0xff] }
 0x270   :  { %v8606_v19 = vsel %vm12360_vm6, %v8605_v1, %v8601_v9  ;;  %v5607_v20 = vpop.xlane.xlu0 %5606  ;;  %v3944_v9 = vadd.f32 %v3432_v58, %v1384_v57  ;;  %v3943_v14 = vadd.f32 %v3431_v2, %v1383_v45  ;;  %v1390_v58 = vld [vmem:[#allocation3 + $0x11f0] sm:$0xff]  ;;  %v1389_v45 = vld [vmem:[#allocation3 + $0x11e0] sm:$0xff]  ;;  %v3437_v2 = vld [vmem:[#allocation3 + $0x11e8] sm:$0xff] }
 0x271   :  { %v8610_v40 = vrot.slane %v7280_v10, %v10859_v15  ;;  %v8615_v21 = vrot.slane %v7281_v12, %v10862_v18  ;;  %v6424_v22 = vpack.c.bf16 %v5609_v0, %v5607_v20 }
 0x272   :  { %5752 = vadd.xlane.f32.xlu1 %v3938_v6 }
 0x273   :  { %v8611_v27 = vsel %vm12359_vm7, %v8610_v40, %v8606_v19  ;;  %v7282_v16 = vunpack.c.l.b16 %v6424_v22  ;;  %v7283_v28 = vunpack.c.h.b16 %v6424_v22  ;;  %5750 = vadd.xlane.f32.xlu0 %v3937_v13  ;;  %v5613_v29 = vpop.xlane.xlu1 %5612  ;;  %v3434_v19 = vld [vmem:[#allocation3 + $0x11b8] sm:$0xff]  ;;  %v3433_v40 = vld [vmem:[#allocation3 + $0x11a8] sm:$0xff] }
 0x274   :  { %v8616_v24 = vsel %vm7655_vm8, %v8615_v21, %v8611_v27  ;;  %v5611_v34 = vpop.xlane.xlu0 %5610  ;;  %v3946_v27 = vadd.f32 %v3434_v19, %v1386_v17  ;;  %v3945_v32 = vadd.f32 %v3433_v40, %v1385_v30  ;;  %v1392_v17 = vld [vmem:[#allocation3 + $0x1210] sm:$0xff]  ;;  %v3440_v19 = vld [vmem:[#allocation3 + $0x1218] sm:$0xff]  ;;  %v1391_v30 = vld [vmem:[#allocation3 + $0x1200] sm:$0xff] }
 0x275   :  { %v8620_v43 = vrot.slane %v7282_v16, %v10867_v25  ;;  %v8625_v44 = vrot.slane %v7283_v28, %v10870_v26  ;;  %v6425_v46 = vpack.c.bf16 %v5613_v29, %v5611_v34  ;;  %v3439_v40 = vld [vmem:[#allocation3 + $0x1208] sm:$0xff] }
 0x276   :  { %5756 = vadd.xlane.f32.xlu1 %v3940_v23 }
 0x277   :  { %v8621_v51 = vsel %vm7662_vm9, %v8620_v43, %v8616_v24  ;;  %v7284_v52 = vunpack.c.l.b16 %v6425_v46  ;;  %v7285_v53 = vunpack.c.h.b16 %v6425_v46  ;;  %5754 = vadd.xlane.f32.xlu0 %v3939_v31  ;;  %v5617_v54 = vpop.xlane.xlu1 %5616  ;;  %v3436_v24 = vld [vmem:[#allocation3 + $0x11d8] sm:$0xff]  ;;  %v3435_v43 = vld [vmem:[#allocation3 + $0x11c8] sm:$0xff] }
 0x278   :  { %v8626_v60 = vsel %vm7669_vm10, %v8625_v44, %v8621_v51  ;;  %v5615_v61 = vpop.xlane.xlu0 %5614  ;;  %v3947_v57 = vadd.f32 %v3435_v43, %v1387_v41  ;;  %v1393_v41 = vld [vmem:[#allocation3 + $0x1220] sm:$0xff]  ;;  %v3441_v43 = vld [vmem:[#allocation3 + $0x1228] sm:$0xff] }
 0x279   :  { %v8630_v1 = vrot.slane %v7284_v52, %v10875_v35  ;;  %v8635_v5 = vrot.slane %v7285_v53, %v10878_v36  ;;  %v6426_v6 = vpack.c.bf16 %v5617_v54, %v5615_v61  ;;  %v3948_v52 = vadd.f32 %v3436_v24, %v1388_v33  ;;  %v1394_v33 = vld [vmem:[#allocation3 + $0x1230] sm:$0xff]  ;;  %v3442_v24 = vld [vmem:[#allocation3 + $0x1238] sm:$0xff] }
 0x27a   :  { %5760 = vadd.xlane.f32.xlu1 %v3942_v37 }
 0x27b   :  { %v8631_v10 = vsel %vm7676_vm11, %v8630_v1, %v8626_v60  ;;  %v7286_v12 = vunpack.c.l.b16 %v6426_v6  ;;  %v7287_v0 = vunpack.c.h.b16 %v6426_v6  ;;  %5758 = vadd.xlane.f32.xlu0 %v3941_v56  ;;  %v5621_v13 = vpop.xlane.xlu1 %5620  ;;  %v3438_v60 = vld [vmem:[#allocation3 + $0x11f8] sm:$0xff] }
 0x27c   :  { %v8636_v20 = vsel %vm7683_vm12, %v8635_v5, %v8631_v10  ;;  %v5619_v11 = vpop.xlane.xlu0 %5618 }
 0x27d   :  { %v8640_v21 = vrot.slane %v7286_v12, %v10883_v47  ;;  %v8645_v22 = vrot.slane %v7287_v0, %v10886_v48  ;;  %v6427_v23 = vpack.c.bf16 %v5621_v13, %v5619_v11 }
 0x27e   :  { %5764 = vadd.xlane.f32.xlu1 %v3944_v9  ;;  %v3950_v9 = vadd.f32 %v3438_v60, %v1390_v58  ;;  %v3953_v58 = vadd.f32 %v3441_v43, %v1393_v41  ;;  %v1396_v60 = vld [vmem:[#allocation3 + $0x1250] sm:$0xff]  ;;  %v1399_v43 = vld [vmem:[#allocation3 + $0x1280] sm:$0xff] }
 0x27f   :  { %v8641_v16 = vsel %vm12363_vm13, %v8640_v21, %v8636_v20  ;;  %v7288_v28 = vunpack.c.l.b16 %v6427_v23  ;;  %v7289_v29 = vunpack.c.h.b16 %v6427_v23  ;;  %5762 = vadd.xlane.f32.xlu0 %v3943_v14  ;;  %v5625_v31 = vpop.xlane.xlu1 %5624  ;;  %v3949_v14 = vadd.f32 %v3437_v2, %v1389_v45 }
 0x280   :  { %v8646_v34 = vsel %vm12362_vm14, %v8645_v22, %v8641_v16  ;;  %v5623_v38 = vpop.xlane.xlu0 %5622 }
 0x281   :  { %v11341_v44 = vsel %vm12358_vm15, %v8646_v34, %v11201_v55  ;;  %v6428_v46 = vpack.c.bf16 %v5625_v31, %v5623_v38  ;;  %v8650_v37 = vrot.slane %v7288_v28, %v10891_v3  ;;  %v8654_v51 = vrot.slane %v7289_v29, %v10894_v4 }
 0x282   :  { %5768 = vadd.xlane.f32.xlu1 %v3946_v27  ;;  %v3952_v27 = vadd.f32 %v3440_v19, %v1392_v17  ;;  %v1398_v19 = vld [vmem:[#allocation3 + $0x1270] sm:$0xff] }
 0x283   :  { %v7290_v53 = vunpack.c.l.b16 %v6428_v46  ;;  %v7291_v54 = vunpack.c.h.b16 %v6428_v46  ;;  %5766 = vadd.xlane.f32.xlu0 %v3945_v32  ;;  %v5629_v56 = vpop.xlane.xlu1 %5628  ;;  %v8655_v6 = vsel %vm6688_vm0, %v8654_v51, %v8650_v37  ;;  %v3951_v32 = vadd.f32 %v3439_v40, %v1391_v30  ;;  %v1397_v40 = vld [vmem:[#allocation3 + $0x1260] sm:$0xff] }
 0x284   :  { %v5627_v61 = vpop.xlane.xlu0 %5626 }
 0x285   :  { %v8659_v55 = vrot.slane %v7290_v53, %v10835_v49  ;;  %v8664_v1 = vrot.slane %v7291_v54, %v10838_v50  ;;  %v6429_v5 = vpack.c.bf16 %v5629_v56, %v5627_v61  ;;  %v3444_v61 = vld [vmem:[#allocation3 + $0x1258] sm:$0xff] }
 0x286   :  { %5772 = vadd.xlane.f32.xlu1 %v3948_v52  ;;  %v3954_v52 = vadd.f32 %v3442_v24, %v1394_v33  ;;  %v1400_v24 = vld [vmem:[#allocation3 + $0x1290] sm:$0xff] }
 0x287   :  { %v8660_v10 = vsel %vm7606_vm1, %v8659_v55, %v8655_v6  ;;  %v7292_v12 = vunpack.c.l.b16 %v6429_v5  ;;  %v7293_v0 = vunpack.c.h.b16 %v6429_v5  ;;  %5770 = vadd.xlane.f32.xlu0 %v3947_v57  ;;  %v5633_v13 = vpop.xlane.xlu1 %5632  ;;  %v1395_v55 = vld [vmem:[#allocation3 + $0x1240] sm:$0xff] }
 0x288   :  { %v8665_v20 = vsel %vm7613_vm2, %v8664_v1, %v8660_v10  ;;  %v5631_v11 = vpop.xlane.xlu0 %5630  ;;  %v3443_v1 = vld [vmem:[#allocation3 + $0x1248] sm:$0xff]  ;;  %v3956_v10 = vadd.f32 %v3444_v61, %v1396_v60  ;;  %v1402_v61 = vld [vmem:[#allocation3 + $0x12b0] sm:$0xff] }
 0x289   :  { %v8669_v21 = vrot.slane %v7292_v12, %v10843_v59  ;;  %v8674_v22 = vrot.slane %v7293_v0, %v10846_v62  ;;  %v6430_v23 = vpack.c.bf16 %v5633_v13, %v5631_v11  ;;  %v3955_v17 = vadd.f32 %v3443_v1, %v1395_v55  ;;  %v1401_v1 = vld [vmem:[#allocation3 + $0x12a0] sm:$0xff] }
 0x28a   :  { %5776 = vadd.xlane.f32.xlu1 %v3950_v9 }
 0x28b   :  { %v8670_v16 = vsel %vm7620_vm3, %v8669_v21, %v8665_v20  ;;  %v7294_v28 = vunpack.c.l.b16 %v6430_v23  ;;  %v7295_v29 = vunpack.c.h.b16 %v6430_v23  ;;  %5774 = vadd.xlane.f32.xlu0 %v3949_v14  ;;  %v5637_v31 = vpop.xlane.xlu1 %5636  ;;  %v3446_v20 = vld [vmem:[#allocation3 + $0x1278] sm:$0xff]  ;;  %v3445_v21 = vld [vmem:[#allocation3 + $0x1268] sm:$0xff] }
 0x28c   :  { %v8675_v34 = vsel %vm12361_vm4, %v8674_v22, %v8670_v16  ;;  %v5635_v38 = vpop.xlane.xlu0 %5634  ;;  %v3958_v16 = vadd.f32 %v3446_v20, %v1398_v19  ;;  %v3957_v33 = vadd.f32 %v3445_v21, %v1397_v40  ;;  %v1404_v20 = vld [vmem:[#allocation3 + $0x12d0] sm:$0xff]  ;;  %v1403_v21 = vld [vmem:[#allocation3 + $0x12c0] sm:$0xff] }
 0x28d   :  { %v8679_v46 = vrot.slane %v7294_v28, %v10851_v7  ;;  %v8684_v37 = vrot.slane %v7295_v29, %v10854_v8  ;;  %v6431_v51 = vpack.c.bf16 %v5637_v31, %v5635_v38 }
 0x28e   :  { %5780 = vadd.xlane.f32.xlu1 %v3952_v27 }
 0x28f   :  { %v8680_v53 = vsel %vm7634_vm5, %v8679_v46, %v8675_v34  ;;  %v7296_v54 = vunpack.c.l.b16 %v6431_v51  ;;  %v7297_v56 = vunpack.c.h.b16 %v6431_v51  ;;  %5778 = vadd.xlane.f32.xlu0 %v3951_v32  ;;  %v5641_v57 = vpop.xlane.xlu1 %5640  ;;  %v3448_v34 = vld [vmem:[#allocation3 + $0x1298] sm:$0xff]  ;;  %v3447_v46 = vld [vmem:[#allocation3 + $0x1288] sm:$0xff] }
 0x290   :  { %v8685_v45 = vsel %vm12360_vm6, %v8684_v37, %v8680_v53  ;;  %v5639_v2 = vpop.xlane.xlu0 %5638  ;;  %v3960_v53 = vadd.f32 %v3448_v34, %v1400_v24  ;;  %v3959_v60 = vadd.f32 %v3447_v46, %v1399_v43  ;;  %v1406_v34 = vld [vmem:[#allocation3 + $0x12f0] sm:$0xff]  ;;  %v1405_v43 = vld [vmem:[#allocation3 + $0x12e0] sm:$0xff]  ;;  %v3453_v46 = vld [vmem:[#allocation3 + $0x12e8] sm:$0xff] }
 0x291   :  { %v8689_v5 = vrot.slane %v7296_v54, %v10859_v15  ;;  %v8694_v6 = vrot.slane %v7297_v56, %v10862_v18  ;;  %v6432_v9 = vpack.c.bf16 %v5641_v57, %v5639_v2 }
 0x292   :  { %5784 = vadd.xlane.f32.xlu1 %v3954_v52 }
 0x293   :  { %v8690_v12 = vsel %vm12359_vm7, %v8689_v5, %v8685_v45  ;;  %v7298_v0 = vunpack.c.l.b16 %v6432_v9  ;;  %v7299_v13 = vunpack.c.h.b16 %v6432_v9  ;;  %5782 = vadd.xlane.f32.xlu0 %v3953_v58  ;;  %v5645_v14 = vpop.xlane.xlu1 %5644  ;;  %v3450_v45 = vld [vmem:[#allocation3 + $0x12b8] sm:$0xff]  ;;  %v3449_v5 = vld [vmem:[#allocation3 + $0x12a8] sm:$0xff] }
 0x294   :  { %v8695_v11 = vsel %vm7655_vm8, %v8694_v6, %v8690_v12  ;;  %v5643_v30 = vpop.xlane.xlu0 %5642  ;;  %v3962_v12 = vadd.f32 %v3450_v45, %v1402_v61  ;;  %v3961_v19 = vadd.f32 %v3449_v5, %v1401_v1  ;;  %v1408_v61 = vld [vmem:[#allocation3 + $0x1310] sm:$0xff]  ;;  %v3456_v45 = vld [vmem:[#allocation3 + $0x1318] sm:$0xff]  ;;  %v1407_v1 = vld [vmem:[#allocation3 + $0x1300] sm:$0xff] }
 0x295   :  { %v8699_v22 = vrot.slane %v7298_v0, %v10867_v25  ;;  %v8704_v23 = vrot.slane %v7299_v13, %v10870_v26  ;;  %v6433_v27 = vpack.c.bf16 %v5645_v14, %v5643_v30  ;;  %v3455_v5 = vld [vmem:[#allocation3 + $0x1308] sm:$0xff] }
 0x296   :  { %5788 = vadd.xlane.f32.xlu1 %v3956_v10 }
 0x297   :  { %v8700_v28 = vsel %vm7662_vm9, %v8699_v22, %v8695_v11  ;;  %v7300_v29 = vunpack.c.l.b16 %v6433_v27  ;;  %v7301_v31 = vunpack.c.h.b16 %v6433_v27  ;;  %5786 = vadd.xlane.f32.xlu0 %v3955_v17  ;;  %v5649_v32 = vpop.xlane.xlu1 %5648  ;;  %v3452_v11 = vld [vmem:[#allocation3 + $0x12d8] sm:$0xff]  ;;  %v3451_v22 = vld [vmem:[#allocation3 + $0x12c8] sm:$0xff] }
 0x298   :  { %v8705_v38 = vsel %vm7669_vm10, %v8704_v23, %v8700_v28  ;;  %v5647_v41 = vpop.xlane.xlu0 %5646  ;;  %v3964_v28 = vadd.f32 %v3452_v11, %v1404_v20  ;;  %v3963_v24 = vadd.f32 %v3451_v22, %v1403_v21  ;;  %v1410_v20 = vld [vmem:[#allocation3 + $0x1330] sm:$0xff]  ;;  %v3458_v11 = vld [vmem:[#allocation3 + $0x1338] sm:$0xff]  ;;  %v1409_v21 = vld [vmem:[#allocation3 + $0x1320] sm:$0xff] }
 0x299   :  { %v8709_v37 = vrot.slane %v7300_v29, %v10875_v35  ;;  %v8714_v51 = vrot.slane %v7301_v31, %v10878_v36  ;;  %v6434_v52 = vpack.c.bf16 %v5649_v32, %v5647_v41  ;;  %v3457_v22 = vld [vmem:[#allocation3 + $0x1328] sm:$0xff] }
 0x29a   :  { %5792 = vadd.xlane.f32.xlu1 %v3958_v16 }
 0x29b   :  { %v8710_v54 = vsel %vm7676_vm11, %v8709_v37, %v8705_v38  ;;  %v7302_v56 = vunpack.c.l.b16 %v6434_v52  ;;  %v7303_v57 = vunpack.c.h.b16 %v6434_v52  ;;  %5790 = vadd.xlane.f32.xlu0 %v3957_v33  ;;  %v5653_v58 = vpop.xlane.xlu1 %5652  ;;  %v3454_v38 = vld [vmem:[#allocation3 + $0x12f8] sm:$0xff] }
 0x29c   :  { %v8715_v2 = vsel %vm7683_vm12, %v8714_v51, %v8710_v54  ;;  %v5651_v55 = vpop.xlane.xlu0 %5650 }
 0x29d   :  { %v8719_v6 = vrot.slane %v7302_v56, %v10883_v47  ;;  %v8724_v9 = vrot.slane %v7303_v57, %v10886_v48  ;;  %v6435_v10 = vpack.c.bf16 %v5653_v58, %v5651_v55 }
 0x29e   :  { %5796 = vadd.xlane.f32.xlu1 %v3960_v53 }
 0x29f   :  { %v8720_v0 = vsel %vm12363_vm13, %v8719_v6, %v8715_v2  ;;  %v7304_v13 = vunpack.c.l.b16 %v6435_v10  ;;  %v7305_v14 = vunpack.c.h.b16 %v6435_v10  ;;  %5794 = vadd.xlane.f32.xlu0 %v3959_v60  ;;  %v5657_v17 = vpop.xlane.xlu1 %5656  ;;  %v3965_v60 = vadd.f32 %v3453_v46, %v1405_v43 }
 0x2a0   :  { %v8725_v30 = vsel %vm12362_vm14, %v8724_v9, %v8720_v0  ;;  %v5655_v40 = vpop.xlane.xlu0 %5654 }
 0x2a1   :  { %v6436_v23 = vpack.c.bf16 %v5657_v17, %v5655_v40  ;;  %v8729_v27 = vrot.slane %v7304_v13, %v10891_v3  ;;  %v8733_v16 = vrot.slane %v7305_v14, %v10894_v4  ;;  %v11378_v29 = vsel %vm12358_vm15, %v8725_v30, %v11238_v42 }
 0x2a2   :  { %5800 = vadd.xlane.f32.xlu1 %v3962_v12  ;;  %v3966_v42 = vadd.f32 %v3454_v38, %v1406_v34  ;;  %v3968_v12 = vadd.f32 %v3456_v45, %v1408_v61  ;;  %v3969_v34 = vadd.f32 %v3457_v22, %v1409_v21  ;;  %v1412_v38 = vld [vmem:[#allocation3 + $0x1350] sm:$0xff]  ;;  %v1415_v22 = vld [vmem:[#allocation3 + $0x1380] sm:$0xff] }
 0x2a3   :  { %v7306_v31 = vunpack.c.l.b16 %v6436_v23  ;;  %v7307_v32 = vunpack.c.h.b16 %v6436_v23  ;;  %5798 = vadd.xlane.f32.xlu0 %v3961_v19  ;;  %v5661_v33 = vpop.xlane.xlu1 %5660  ;;  %v8734_v53 = vsel %vm6688_vm0, %v8733_v16, %v8729_v27  ;;  %v3967_v19 = vadd.f32 %v3455_v5, %v1407_v1  ;;  %v1414_v45 = vld [vmem:[#allocation3 + $0x1370] sm:$0xff]  ;;  %v1413_v5 = vld [vmem:[#allocation3 + $0x1360] sm:$0xff] }
 0x2a4   :  { %v5659_v41 = vpop.xlane.xlu0 %5658 }
 0x2a5   :  { %v8738_v37 = vrot.slane %v7306_v31, %v10835_v49  ;;  %v8743_v51 = vrot.slane %v7307_v32, %v10838_v50  ;;  %v6437_v52 = vpack.c.bf16 %v5661_v33, %v5659_v41  ;;  %v3460_v41 = vld [vmem:[#allocation3 + $0x1358] sm:$0xff] }
 0x2a6   :  { %5804 = vadd.xlane.f32.xlu1 %v3964_v28  ;;  %v3970_v28 = vadd.f32 %v3458_v11, %v1410_v20  ;;  %v1416_v11 = vld [vmem:[#allocation3 + $0x1390] sm:$0xff] }
 0x2a7   :  { %v8739_v54 = vsel %vm7606_vm1, %v8738_v37, %v8734_v53  ;;  %v7308_v56 = vunpack.c.l.b16 %v6437_v52  ;;  %v7309_v57 = vunpack.c.h.b16 %v6437_v52  ;;  %5802 = vadd.xlane.f32.xlu0 %v3963_v24  ;;  %v5665_v58 = vpop.xlane.xlu1 %5664  ;;  %v1411_v37 = vld [vmem:[#allocation3 + $0x1340] sm:$0xff] }
 0x2a8   :  { %v8744_v2 = vsel %vm7613_vm2, %v8743_v51, %v8739_v54  ;;  %v5663_v55 = vpop.xlane.xlu0 %5662  ;;  %v3459_v51 = vld [vmem:[#allocation3 + $0x1348] sm:$0xff]  ;;  %v3972_v54 = vadd.f32 %v3460_v41, %v1412_v38  ;;  %v1418_v41 = vld [vmem:[#allocation3 + $0x13b0] sm:$0xff] }
 0x2a9   :  { %v8748_v6 = vrot.slane %v7308_v56, %v10843_v59  ;;  %v8753_v9 = vrot.slane %v7309_v57, %v10846_v62  ;;  %v6438_v10 = vpack.c.bf16 %v5665_v58, %v5663_v55  ;;  %v3971_v61 = vadd.f32 %v3459_v51, %v1411_v37  ;;  %v1417_v51 = vld [vmem:[#allocation3 + $0x13a0] sm:$0xff] }
 0x2aa   :  { %5808 = vadd.xlane.f32.xlu1 %v3966_v42 }
 0x2ab   :  { %v8749_v0 = vsel %vm7620_vm3, %v8748_v6, %v8744_v2  ;;  %v7310_v13 = vunpack.c.l.b16 %v6438_v10  ;;  %v7311_v14 = vunpack.c.h.b16 %v6438_v10  ;;  %5806 = vadd.xlane.f32.xlu0 %v3965_v60  ;;  %v5669_v17 = vpop.xlane.xlu1 %5668  ;;  %v3462_v2 = vld [vmem:[#allocation3 + $0x1378] sm:$0xff]  ;;  %v3461_v6 = vld [vmem:[#allocation3 + $0x1368] sm:$0xff] }
 0x2ac   :  { %v8754_v30 = vsel %vm12361_vm4, %v8753_v9, %v8749_v0  ;;  %v5667_v40 = vpop.xlane.xlu0 %5666  ;;  %v3974_v0 = vadd.f32 %v3462_v2, %v1414_v45  ;;  %v3973_v20 = vadd.f32 %v3461_v6, %v1413_v5  ;;  %v1420_v2 = vld [vmem:[#allocation3 + $0x13d0] sm:$0xff]  ;;  %v1419_v6 = vld [vmem:[#allocation3 + $0x13c0] sm:$0xff] }
 0x2ad   :  { %v8758_v23 = vrot.slane %v7310_v13, %v10851_v7  ;;  %v8763_v27 = vrot.slane %v7311_v14, %v10854_v8  ;;  %v6439_v16 = vpack.c.bf16 %v5669_v17, %v5667_v40 }
 0x2ae   :  { %5812 = vadd.xlane.f32.xlu1 %v3968_v12 }
 0x2af   :  { %v8759_v31 = vsel %vm7634_vm5, %v8758_v23, %v8754_v30  ;;  %v7312_v32 = vunpack.c.l.b16 %v6439_v16  ;;  %v7313_v33 = vunpack.c.h.b16 %v6439_v16  ;;  %5810 = vadd.xlane.f32.xlu0 %v3967_v19  ;;  %v5673_v24 = vpop.xlane.xlu1 %5672  ;;  %v3464_v30 = vld [vmem:[#allocation3 + $0x1398] sm:$0xff]  ;;  %v3463_v23 = vld [vmem:[#allocation3 + $0x1388] sm:$0xff] }
 0x2b0   :  { %v8764_v43 = vsel %vm12360_vm6, %v8763_v27, %v8759_v31  ;;  %v5671_v46 = vpop.xlane.xlu0 %5670  ;;  %v3976_v31 = vadd.f32 %v3464_v30, %v1416_v11  ;;  %v3975_v38 = vadd.f32 %v3463_v23, %v1415_v22  ;;  %v1422_v30 = vld [vmem:[#allocation3 + $0x13f0] sm:$0xff]  ;;  %v1421_v22 = vld [vmem:[#allocation3 + $0x13e0] sm:$0xff]  ;;  %v3469_v23 = vld [vmem:[#allocation3 + $0x13e8] sm:$0xff] }
 0x2b1   :  { %v8768_v52 = vrot.slane %v7312_v32, %v10859_v15  ;;  %v8773_v53 = vrot.slane %v7313_v33, %v10862_v18  ;;  %v6440_v42 = vpack.c.bf16 %v5673_v24, %v5671_v46 }
 0x2b2   :  { %5816 = vadd.xlane.f32.xlu1 %v3970_v28 }
 0x2b3   :  { %v8769_v56 = vsel %vm12359_vm7, %v8768_v52, %v8764_v43  ;;  %v7314_v57 = vunpack.c.l.b16 %v6440_v42  ;;  %v7315_v58 = vunpack.c.h.b16 %v6440_v42  ;;  %5814 = vadd.xlane.f32.xlu0 %v3969_v34  ;;  %v5677_v60 = vpop.xlane.xlu1 %5676  ;;  %v3466_v43 = vld [vmem:[#allocation3 + $0x13b8] sm:$0xff]  ;;  %v3465_v52 = vld [vmem:[#allocation3 + $0x13a8] sm:$0xff] }
 0x2b4   :  { %v8774_v55 = vsel %vm7655_vm8, %v8773_v53, %v8769_v56  ;;  %v5675_v1 = vpop.xlane.xlu0 %5674  ;;  %v3978_v56 = vadd.f32 %v3466_v43, %v1418_v41  ;;  %v3977_v45 = vadd.f32 %v3465_v52, %v1417_v51  ;;  %v1424_v41 = vld [vmem:[#allocation3 + $0x1410] sm:$0xff]  ;;  %v3472_v43 = vld [vmem:[#allocation3 + $0x1418] sm:$0xff]  ;;  %v1423_v51 = vld [vmem:[#allocation3 + $0x1400] sm:$0xff] }
 0x2b5   :  { %v8778_v9 = vrot.slane %v7314_v57, %v10867_v25  ;;  %v8783_v10 = vrot.slane %v7315_v58, %v10870_v26  ;;  %v6441_v12 = vpack.c.bf16 %v5677_v60, %v5675_v1  ;;  %v3471_v52 = vld [vmem:[#allocation3 + $0x1408] sm:$0xff] }
 0x2b6   :  { %5820 = vadd.xlane.f32.xlu1 %v3972_v54 }
 0x2b7   :  { %v8779_v13 = vsel %vm7662_vm9, %v8778_v9, %v8774_v55  ;;  %v7316_v14 = vunpack.c.l.b16 %v6441_v12  ;;  %v7317_v17 = vunpack.c.h.b16 %v6441_v12  ;;  %5818 = vadd.xlane.f32.xlu0 %v3971_v61  ;;  %v5681_v19 = vpop.xlane.xlu1 %5680  ;;  %v3468_v55 = vld [vmem:[#allocation3 + $0x13d8] sm:$0xff]  ;;  %v3467_v9 = vld [vmem:[#allocation3 + $0x13c8] sm:$0xff] }
 0x2b8   :  { %v8784_v40 = vsel %vm7669_vm10, %v8783_v10, %v8779_v13  ;;  %v5679_v21 = vpop.xlane.xlu0 %5678  ;;  %v3979_v11 = vadd.f32 %v3467_v9, %v1419_v6  ;;  %v1425_v6 = vld [vmem:[#allocation3 + $0x1420] sm:$0xff]  ;;  %v3473_v9 = vld [vmem:[#allocation3 + $0x1428] sm:$0xff] }
 0x2b9   :  { %v8788_v27 = vrot.slane %v7316_v14, %v10875_v35  ;;  %v8793_v16 = vrot.slane %v7317_v17, %v10878_v36  ;;  %v6442_v28 = vpack.c.bf16 %v5681_v19, %v5679_v21  ;;  %v3980_v14 = vadd.f32 %v3468_v55, %v1420_v2  ;;  %v1426_v2 = vld [vmem:[#allocation3 + $0x1430] sm:$0xff]  ;;  %v3474_v55 = vld [vmem:[#allocation3 + $0x1438] sm:$0xff] }
 0x2ba   :  { %5824 = vadd.xlane.f32.xlu1 %v3974_v0 }
 0x2bb   :  { %v8789_v32 = vsel %vm7676_vm11, %v8788_v27, %v8784_v40  ;;  %v7318_v33 = vunpack.c.l.b16 %v6442_v28  ;;  %v7319_v24 = vunpack.c.h.b16 %v6442_v28  ;;  %5822 = vadd.xlane.f32.xlu0 %v3973_v20  ;;  %v5685_v34 = vpop.xlane.xlu1 %5684  ;;  %v3470_v40 = vld [vmem:[#allocation3 + $0x13f8] sm:$0xff] }
 0x2bc   :  { %v8794_v46 = vsel %vm7683_vm12, %v8793_v16, %v8789_v32  ;;  %v5683_v37 = vpop.xlane.xlu0 %5682 }
 0x2bd   :  { %v8798_v53 = vrot.slane %v7318_v33, %v10883_v47  ;;  %v8803_v42 = vrot.slane %v7319_v24, %v10886_v48  ;;  %v6443_v54 = vpack.c.bf16 %v5685_v34, %v5683_v37 }
 0x2be   :  { %5828 = vadd.xlane.f32.xlu1 %v3976_v31  ;;  %v3982_v31 = vadd.f32 %v3470_v40, %v1422_v30  ;;  %v3985_v30 = vadd.f32 %v3473_v9, %v1425_v6  ;;  %v1428_v40 = vld [vmem:[#allocation3 + $0x1450] sm:$0xff]  ;;  %v1431_v9 = vld [vmem:[#allocation3 + $0x1480] sm:$0xff] }
 0x2bf   :  { %v8799_v57 = vsel %vm12363_vm13, %v8798_v53, %v8794_v46  ;;  %v7320_v58 = vunpack.c.l.b16 %v6443_v54  ;;  %v7321_v60 = vunpack.c.h.b16 %v6443_v54  ;;  %5826 = vadd.xlane.f32.xlu0 %v3975_v38  ;;  %v5689_v61 = vpop.xlane.xlu1 %5688  ;;  %v3981_v38 = vadd.f32 %v3469_v23, %v1421_v22 }
 0x2c0   :  { %v8804_v1 = vsel %vm12362_vm14, %v8803_v42, %v8799_v57  ;;  %v5687_v5 = vpop.xlane.xlu0 %5686 }
 0x2c1   :  { %v11411_v10 = vsel %vm12358_vm15, %v8804_v1, %v11271_v39  ;;  %v6444_v12 = vpack.c.bf16 %v5689_v61, %v5687_v5  ;;  %v8808_v0 = vrot.slane %v7320_v58, %v10891_v3  ;;  %v8812_v13 = vrot.slane %v7321_v60, %v10894_v4 }
 0x2c2   :  { %5832 = vadd.xlane.f32.xlu1 %v3978_v56  ;;  %v3984_v56 = vadd.f32 %v3472_v43, %v1424_v41  ;;  %v1430_v43 = vld [vmem:[#allocation3 + $0x1470] sm:$0xff] }
 0x2c3   :  { %v7322_v17 = vunpack.c.l.b16 %v6444_v12  ;;  %v7323_v19 = vunpack.c.h.b16 %v6444_v12  ;;  %5830 = vadd.xlane.f32.xlu0 %v3977_v45  ;;  %v5693_v20 = vpop.xlane.xlu1 %5692  ;;  %v8813_v28 = vsel %vm6688_vm0, %v8812_v13, %v8808_v0  ;;  %v3983_v45 = vadd.f32 %v3471_v52, %v1423_v51  ;;  %v1429_v52 = vld [vmem:[#allocation3 + $0x1460] sm:$0xff] }
 0x2c4   :  { %v5691_v21 = vpop.xlane.xlu0 %5690 }
 0x2c5   :  { %v8817_v39 = vrot.slane %v7322_v17, %v10835_v49  ;;  %v8822_v27 = vrot.slane %v7323_v19, %v10838_v50  ;;  %v6445_v16 = vpack.c.bf16 %v5693_v20, %v5691_v21  ;;  %v3476_v21 = vld [vmem:[#allocation3 + $0x1458] sm:$0xff] }
 0x2c6   :  { %5836 = vadd.xlane.f32.xlu1 %v3980_v14  ;;  %v3986_v14 = vadd.f32 %v3474_v55, %v1426_v2  ;;  %v1432_v55 = vld [vmem:[#allocation3 + $0x1490] sm:$0xff] }
 0x2c7   :  { %v8818_v32 = vsel %vm7606_vm1, %v8817_v39, %v8813_v28  ;;  %v7324_v33 = vunpack.c.l.b16 %v6445_v16  ;;  %v7325_v24 = vunpack.c.h.b16 %v6445_v16  ;;  %5834 = vadd.xlane.f32.xlu0 %v3979_v11  ;;  %v5697_v34 = vpop.xlane.xlu1 %5696  ;;  %v1427_v39 = vld [vmem:[#allocation3 + $0x1440] sm:$0xff] }
 0x2c8   :  { %v8823_v46 = vsel %vm7613_vm2, %v8822_v27, %v8818_v32  ;;  %v5695_v37 = vpop.xlane.xlu0 %5694  ;;  %v3475_v27 = vld [vmem:[#allocation3 + $0x1448] sm:$0xff]  ;;  %v3988_v32 = vadd.f32 %v3476_v21, %v1428_v40  ;;  %v1434_v21 = vld [vmem:[#allocation3 + $0x14b0] sm:$0xff] }
 0x2c9   :  { %v8827_v53 = vrot.slane %v7324_v33, %v10843_v59  ;;  %v8832_v42 = vrot.slane %v7325_v24, %v10846_v62  ;;  %v6446_v54 = vpack.c.bf16 %v5697_v34, %v5695_v37  ;;  %v3987_v41 = vadd.f32 %v3475_v27, %v1427_v39  ;;  %v1433_v27 = vld [vmem:[#allocation3 + $0x14a0] sm:$0xff] }
 0x2ca   :  { %5840 = vadd.xlane.f32.xlu1 %v3982_v31 }
 0x2cb   :  { %v8828_v57 = vsel %vm7620_vm3, %v8827_v53, %v8823_v46  ;;  %v7326_v58 = vunpack.c.l.b16 %v6446_v54  ;;  %v7327_v60 = vunpack.c.h.b16 %v6446_v54  ;;  %5838 = vadd.xlane.f32.xlu0 %v3981_v38  ;;  %v5701_v61 = vpop.xlane.xlu1 %5700  ;;  %v3478_v46 = vld [vmem:[#allocation3 + $0x1478] sm:$0xff]  ;;  %v3477_v53 = vld [vmem:[#allocation3 + $0x1468] sm:$0xff] }
 0x2cc   :  { %v8833_v1 = vsel %vm12361_vm4, %v8832_v42, %v8828_v57  ;;  %v5699_v5 = vpop.xlane.xlu0 %5698  ;;  %v3990_v57 = vadd.f32 %v3478_v46, %v1430_v43  ;;  %v3989_v2 = vadd.f32 %v3477_v53, %v1429_v52  ;;  %v1436_v46 = vld [vmem:[#allocation3 + $0x14d0] sm:$0xff]  ;;  %v1435_v53 = vld [vmem:[#allocation3 + $0x14c0] sm:$0xff] }
 0x2cd   :  { %v8837_v12 = vrot.slane %v7326_v58, %v10851_v7  ;;  %v8842_v0 = vrot.slane %v7327_v60, %v10854_v8  ;;  %v6447_v13 = vpack.c.bf16 %v5701_v61, %v5699_v5 }
 0x2ce   :  { %5844 = vadd.xlane.f32.xlu1 %v3984_v56 }
 0x2cf   :  { %v8838_v17 = vsel %vm7634_vm5, %v8837_v12, %v8833_v1  ;;  %v7328_v19 = vunpack.c.l.b16 %v6447_v13  ;;  %v7329_v20 = vunpack.c.h.b16 %v6447_v13  ;;  %5842 = vadd.xlane.f32.xlu0 %v3983_v45  ;;  %v5705_v11 = vpop.xlane.xlu1 %5704  ;;  %v3480_v1 = vld [vmem:[#allocation3 + $0x1498] sm:$0xff]  ;;  %v3479_v12 = vld [vmem:[#allocation3 + $0x1488] sm:$0xff] }
 0x2d0   :  { %v8843_v22 = vsel %vm12360_vm6, %v8842_v0, %v8838_v17  ;;  %v5703_v23 = vpop.xlane.xlu0 %5702  ;;  %v3992_v17 = vadd.f32 %v3480_v1, %v1432_v55  ;;  %v3991_v40 = vadd.f32 %v3479_v12, %v1431_v9  ;;  %v1438_v1 = vld [vmem:[#allocation3 + $0x14f0] sm:$0xff]  ;;  %v1437_v9 = vld [vmem:[#allocation3 + $0x14e0] sm:$0xff]  ;;  %v3485_v12 = vld [vmem:[#allocation3 + $0x14e8] sm:$0xff] }
 0x2d1   :  { %v8847_v16 = vrot.slane %v7328_v19, %v10859_v15  ;;  %v8852_v28 = vrot.slane %v7329_v20, %v10862_v18  ;;  %v6448_v31 = vpack.c.bf16 %v5705_v11, %v5703_v23 }
 0x2d2   :  { %5848 = vadd.xlane.f32.xlu1 %v3986_v14 }
 0x2d3   :  { %v8848_v33 = vsel %vm12359_vm7, %v8847_v16, %v8843_v22  ;;  %v7330_v24 = vunpack.c.l.b16 %v6448_v31  ;;  %v7331_v34 = vunpack.c.h.b16 %v6448_v31  ;;  %5846 = vadd.xlane.f32.xlu0 %v3985_v30  ;;  %v5709_v38 = vpop.xlane.xlu1 %5708  ;;  %v3482_v22 = vld [vmem:[#allocation3 + $0x14b8] sm:$0xff]  ;;  %v3481_v16 = vld [vmem:[#allocation3 + $0x14a8] sm:$0xff] }
 0x2d4   :  { %v8853_v37 = vsel %vm7655_vm8, %v8852_v28, %v8848_v33  ;;  %v5707_v51 = vpop.xlane.xlu0 %5706  ;;  %v3994_v33 = vadd.f32 %v3482_v22, %v1434_v21  ;;  %v3993_v43 = vadd.f32 %v3481_v16, %v1433_v27  ;;  %v1440_v21 = vld [vmem:[#allocation3 + $0x1510] sm:$0xff]  ;;  %v3488_v22 = vld [vmem:[#allocation3 + $0x1518] sm:$0xff]  ;;  %v1439_v27 = vld [vmem:[#allocation3 + $0x1500] sm:$0xff] }
 0x2d5   :  { %v8857_v42 = vrot.slane %v7330_v24, %v10867_v25  ;;  %v8862_v54 = vrot.slane %v7331_v34, %v10870_v26  ;;  %v6449_v56 = vpack.c.bf16 %v5709_v38, %v5707_v51  ;;  %v3487_v16 = vld [vmem:[#allocation3 + $0x1508] sm:$0xff] }
 0x2d6   :  { %5852 = vadd.xlane.f32.xlu1 %v3988_v32 }
 0x2d7   :  { %v8858_v58 = vsel %vm7662_vm9, %v8857_v42, %v8853_v37  ;;  %v7332_v60 = vunpack.c.l.b16 %v6449_v56  ;;  %v7333_v61 = vunpack.c.h.b16 %v6449_v56  ;;  %5850 = vadd.xlane.f32.xlu0 %v3987_v41  ;;  %v5713_v45 = vpop.xlane.xlu1 %5712  ;;  %v3484_v37 = vld [vmem:[#allocation3 + $0x14d8] sm:$0xff]  ;;  %v3483_v42 = vld [vmem:[#allocation3 + $0x14c8] sm:$0xff] }
 0x2d8   :  { %v8863_v5 = vsel %vm7669_vm10, %v8862_v54, %v8858_v58  ;;  %v5711_v6 = vpop.xlane.xlu0 %5710  ;;  %v3995_v55 = vadd.f32 %v3483_v42, %v1435_v53  ;;  %v1441_v53 = vld [vmem:[#allocation3 + $0x1520] sm:$0xff]  ;;  %v3489_v42 = vld [vmem:[#allocation3 + $0x1528] sm:$0xff] }
 0x2d9   :  { %v8867_v0 = vrot.slane %v7332_v60, %v10875_v35  ;;  %v8872_v13 = vrot.slane %v7333_v61, %v10878_v36  ;;  %v6450_v14 = vpack.c.bf16 %v5713_v45, %v5711_v6  ;;  %v3996_v60 = vadd.f32 %v3484_v37, %v1436_v46  ;;  %v1442_v46 = vld [vmem:[#allocation3 + $0x1530] sm:$0xff]  ;;  %v3490_v37 = vld [vmem:[#allocation3 + $0x1538] sm:$0xff] }
 0x2da   :  { %5856 = vadd.xlane.f32.xlu1 %v3990_v57 }
 0x2db   :  { %v8868_v19 = vsel %vm7676_vm11, %v8867_v0, %v8863_v5  ;;  %v7334_v20 = vunpack.c.l.b16 %v6450_v14  ;;  %v7335_v11 = vunpack.c.h.b16 %v6450_v14  ;;  %5854 = vadd.xlane.f32.xlu0 %v3989_v2  ;;  %v5717_v30 = vpop.xlane.xlu1 %5716  ;;  %v3486_v5 = vld [vmem:[#allocation3 + $0x14f8] sm:$0xff] }
 0x2dc   :  { %v8873_v23 = vsel %vm7683_vm12, %v8872_v13, %v8868_v19  ;;  %v5715_v39 = vpop.xlane.xlu0 %5714 }
 0x2dd   :  { %v8877_v28 = vrot.slane %v7334_v20, %v10883_v47  ;;  %v8882_v31 = vrot.slane %v7335_v11, %v10886_v48  ;;  %v6451_v32 = vpack.c.bf16 %v5717_v30, %v5715_v39 }
 0x2de   :  { %5860 = vadd.xlane.f32.xlu1 %v3992_v17  ;;  %v3998_v17 = vadd.f32 %v3486_v5, %v1438_v1  ;;  %v4001_v1 = vadd.f32 %v3489_v42, %v1441_v53  ;;  %v1444_v5 = vld [vmem:[#allocation3 + $0x1550] sm:$0xff]  ;;  %v1447_v42 = vld [vmem:[#allocation3 + $0x1580] sm:$0xff] }
 0x2df   :  { %v8878_v24 = vsel %vm12363_vm13, %v8877_v28, %v8873_v23  ;;  %v7336_v34 = vunpack.c.l.b16 %v6451_v32  ;;  %v7337_v38 = vunpack.c.h.b16 %v6451_v32  ;;  %5858 = vadd.xlane.f32.xlu0 %v3991_v40  ;;  %v5721_v41 = vpop.xlane.xlu1 %5720  ;;  %v3997_v40 = vadd.f32 %v3485_v12, %v1437_v9 }
 0x2e0   :  { %v8883_v51 = vsel %vm12362_vm14, %v8882_v31, %v8878_v24  ;;  %v5719_v52 = vpop.xlane.xlu0 %5718 }
 0x2e1   :  { %v11446_v54 = vsel %vm12358_vm15, %v8883_v51, %v11306_v63  ;;  %v6452_v56 = vpack.c.bf16 %v5721_v41, %v5719_v52  ;;  %v8887_v57 = vrot.slane %v7336_v34, %v10891_v3  ;;  %v8891_v58 = vrot.slane %v7337_v38, %v10894_v4 }
 0x2e2   :  { %5864 = vadd.xlane.f32.xlu1 %v3994_v33  ;;  %v4000_v33 = vadd.f32 %v3488_v22, %v1440_v21  ;;  %v1446_v22 = vld [vmem:[#allocation3 + $0x1570] sm:$0xff]  ;;  %vm6759_vm15 = vcmask 1044484  }
 0x2e3   :  { %v7338_v61 = vunpack.c.l.b16 %v6452_v56  ;;  %v7339_v45 = vunpack.c.h.b16 %v6452_v56  ;;  %5862 = vadd.xlane.f32.xlu0 %v3993_v43  ;;  %v5725_v2 = vpop.xlane.xlu1 %5724  ;;  %v8892_v14 = vsel %vm6688_vm0, %v8891_v58, %v8887_v57  ;;  %v3999_v43 = vadd.f32 %v3487_v16, %v1439_v27  ;;  %v1445_v16 = vld [vmem:[#allocation3 + $0x1560] sm:$0xff] }
 0x2e4   :  { %v5723_v6 = vpop.xlane.xlu0 %5722 }
 0x2e5   :  { %v8896_v63 = vrot.slane %v7338_v61, %v10835_v49  ;;  %v8901_v0 = vrot.slane %v7339_v45, %v10838_v50  ;;  %v6453_v13 = vpack.c.bf16 %v5725_v2, %v5723_v6  ;;  %v3492_v6 = vld [vmem:[#allocation3 + $0x1558] sm:$0xff] }
 0x2e6   :  { %5868 = vadd.xlane.f32.xlu1 %v3996_v60  ;;  %v4002_v60 = vadd.f32 %v3490_v37, %v1442_v46  ;;  %v1448_v37 = vld [vmem:[#allocation3 + $0x1590] sm:$0xff] }
 0x2e7   :  { %v8897_v19 = vsel %vm7606_vm1, %v8896_v63, %v8892_v14  ;;  %v7340_v20 = vunpack.c.l.b16 %v6453_v13  ;;  %v7341_v11 = vunpack.c.h.b16 %v6453_v13  ;;  %5866 = vadd.xlane.f32.xlu0 %v3995_v55  ;;  %v5729_v30 = vpop.xlane.xlu1 %5728  ;;  %v1443_v63 = vld [vmem:[#allocation3 + $0x1540] sm:$0xff] }
 0x2e8   :  { %v8902_v23 = vsel %vm7613_vm2, %v8901_v0, %v8897_v19  ;;  %v5727_v39 = vpop.xlane.xlu0 %5726  ;;  %v3491_v0 = vld [vmem:[#allocation3 + $0x1548] sm:$0xff]  ;;  %v4004_v19 = vadd.f32 %v3492_v6, %v1444_v5  ;;  %v1450_v6 = vld [vmem:[#allocation3 + $0x15b0] sm:$0xff] }
 0x2e9   :  { %v8906_v28 = vrot.slane %v7340_v20, %v10843_v59  ;;  %v8911_v31 = vrot.slane %v7341_v11, %v10846_v62  ;;  %v6454_v32 = vpack.c.bf16 %v5729_v30, %v5727_v39  ;;  %v4003_v21 = vadd.f32 %v3491_v0, %v1443_v63  ;;  %v1449_v0 = vld [vmem:[#allocation3 + $0x15a0] sm:$0xff] }
 0x2ea   :  { %5872 = vadd.xlane.f32.xlu1 %v3998_v17 }
 0x2eb   :  { %v8907_v24 = vsel %vm7620_vm3, %v8906_v28, %v8902_v23  ;;  %v7342_v34 = vunpack.c.l.b16 %v6454_v32  ;;  %v7343_v38 = vunpack.c.h.b16 %v6454_v32  ;;  %5870 = vadd.xlane.f32.xlu0 %v3997_v40  ;;  %v5733_v41 = vpop.xlane.xlu1 %5732  ;;  %v3494_v23 = vld [vmem:[#allocation3 + $0x1578] sm:$0xff]  ;;  %v3493_v28 = vld [vmem:[#allocation3 + $0x1568] sm:$0xff] }
 0x2ec   :  { %v8912_v51 = vsel %vm12361_vm4, %v8911_v31, %v8907_v24  ;;  %v5731_v52 = vpop.xlane.xlu0 %5730  ;;  %v4006_v24 = vadd.f32 %v3494_v23, %v1446_v22  ;;  %v4005_v46 = vadd.f32 %v3493_v28, %v1445_v16  ;;  %v1452_v23 = vld [vmem:[#allocation3 + $0x15d0] sm:$0xff]  ;;  %v1451_v28 = vld [vmem:[#allocation3 + $0x15c0] sm:$0xff] }
 0x2ed   :  { %v8916_v56 = vrot.slane %v7342_v34, %v10851_v7  ;;  %v8921_v57 = vrot.slane %v7343_v38, %v10854_v8  ;;  %v6455_v58 = vpack.c.bf16 %v5733_v41, %v5731_v52 }
 0x2ee   :  { %5876 = vadd.xlane.f32.xlu1 %v4000_v33 }
 0x2ef   :  { %v8917_v61 = vsel %vm7634_vm5, %v8916_v56, %v8912_v51  ;;  %v7344_v45 = vunpack.c.l.b16 %v6455_v58  ;;  %v7345_v2 = vunpack.c.h.b16 %v6455_v58  ;;  %5874 = vadd.xlane.f32.xlu0 %v3999_v43  ;;  %v5737_v55 = vpop.xlane.xlu1 %5736  ;;  %v3496_v51 = vld [vmem:[#allocation3 + $0x1598] sm:$0xff]  ;;  %v3495_v56 = vld [vmem:[#allocation3 + $0x1588] sm:$0xff] }
 0x2f0   :  { %v8922_v9 = vsel %vm12360_vm6, %v8921_v57, %v8917_v61  ;;  %v5735_v12 = vpop.xlane.xlu0 %5734  ;;  %v4008_v61 = vadd.f32 %v3496_v51, %v1448_v37  ;;  %v4007_v5 = vadd.f32 %v3495_v56, %v1447_v42  ;;  %v1454_v51 = vld [vmem:[#allocation3 + $0x15f0] sm:$0xff]  ;;  %v1453_v42 = vld [vmem:[#allocation3 + $0x15e0] sm:$0xff]  ;;  %v3501_v56 = vld [vmem:[#allocation3 + $0x15e8] sm:$0xff] }
 0x2f1   :  { %v8926_v13 = vrot.slane %v7344_v45, %v10859_v15  ;;  %v8931_v14 = vrot.slane %v7345_v2, %v10862_v18  ;;  %v6456_v17 = vpack.c.bf16 %v5737_v55, %v5735_v12 }
 0x2f2   :  { %5880 = vadd.xlane.f32.xlu1 %v4002_v60 }
 0x2f3   :  { %v8927_v20 = vsel %vm12359_vm7, %v8926_v13, %v8922_v9  ;;  %v7346_v11 = vunpack.c.l.b16 %v6456_v17  ;;  %v7347_v30 = vunpack.c.h.b16 %v6456_v17  ;;  %5878 = vadd.xlane.f32.xlu0 %v4001_v1  ;;  %v5741_v40 = vpop.xlane.xlu1 %5740  ;;  %v3498_v9 = vld [vmem:[#allocation3 + $0x15b8] sm:$0xff]  ;;  %v3497_v13 = vld [vmem:[#allocation3 + $0x15a8] sm:$0xff] }
 0x2f4   :  { %v8932_v39 = vsel %vm7655_vm8, %v8931_v14, %v8927_v20  ;;  %v5739_v27 = vpop.xlane.xlu0 %5738  ;;  %v4010_v20 = vadd.f32 %v3498_v9, %v1450_v6  ;;  %v4009_v22 = vadd.f32 %v3497_v13, %v1449_v0  ;;  %v1456_v6 = vld [vmem:[#allocation3 + $0x1610] sm:$0xff]  ;;  %v3504_v9 = vld [vmem:[#allocation3 + $0x1618] sm:$0xff]  ;;  %v1455_v0 = vld [vmem:[#allocation3 + $0x1600] sm:$0xff] }
 0x2f5   :  { %v8936_v31 = vrot.slane %v7346_v11, %v10867_v25  ;;  %v8941_v32 = vrot.slane %v7347_v30, %v10870_v26  ;;  %v6457_v33 = vpack.c.bf16 %v5741_v40, %v5739_v27  ;;  %v3503_v13 = vld [vmem:[#allocation3 + $0x1608] sm:$0xff] }
 0x2f6   :  { %5884 = vadd.xlane.f32.xlu1 %v4004_v19 }
 0x2f7   :  { %v8937_v34 = vsel %vm7662_vm9, %v8936_v31, %v8932_v39  ;;  %v7348_v38 = vunpack.c.l.b16 %v6457_v33  ;;  %v7349_v41 = vunpack.c.h.b16 %v6457_v33  ;;  %5882 = vadd.xlane.f32.xlu0 %v4003_v21  ;;  %v5745_v43 = vpop.xlane.xlu1 %5744  ;;  %v3500_v39 = vld [vmem:[#allocation3 + $0x15d8] sm:$0xff]  ;;  %v3499_v31 = vld [vmem:[#allocation3 + $0x15c8] sm:$0xff] }
 0x2f8   :  { %v8942_v52 = vsel %vm7669_vm10, %v8941_v32, %v8937_v34  ;;  %v5743_v53 = vpop.xlane.xlu0 %5742  ;;  %v4012_v34 = vadd.f32 %v3500_v39, %v1452_v23  ;;  %v4011_v37 = vadd.f32 %v3499_v31, %v1451_v28  ;;  %v1458_v23 = vld [vmem:[#allocation3 + $0x1630] sm:$0xff]  ;;  %v3506_v39 = vld [vmem:[#allocation3 + $0x1638] sm:$0xff]  ;;  %v1457_v28 = vld [vmem:[#allocation3 + $0x1620] sm:$0xff] }
 0x2f9   :  { %v8946_v57 = vrot.slane %v7348_v38, %v10875_v35  ;;  %v8951_v58 = vrot.slane %v7349_v41, %v10878_v36  ;;  %v6458_v60 = vpack.c.bf16 %v5745_v43, %v5743_v53  ;;  %v3505_v31 = vld [vmem:[#allocation3 + $0x1628] sm:$0xff] }
 0x2fa   :  { %5888 = vadd.xlane.f32.xlu1 %v4006_v24 }
 0x2fb   :  { %v8947_v45 = vsel %vm7676_vm11, %v8946_v57, %v8942_v52  ;;  %v7350_v2 = vunpack.c.l.b16 %v6458_v60  ;;  %v7351_v55 = vunpack.c.h.b16 %v6458_v60  ;;  %5886 = vadd.xlane.f32.xlu0 %v4005_v46  ;;  %v5749_v1 = vpop.xlane.xlu1 %5748  ;;  %v3502_v52 = vld [vmem:[#allocation3 + $0x15f8] sm:$0xff] }
 0x2fc   :  { %v8952_v12 = vsel %vm7683_vm12, %v8951_v58, %v8947_v45  ;;  %v5747_v63 = vpop.xlane.xlu0 %5746 }
 0x2fd   :  { %v8956_v14 = vrot.slane %v7350_v2, %v10883_v47  ;;  %v8961_v17 = vrot.slane %v7351_v55, %v10886_v48  ;;  %v6459_v19 = vpack.c.bf16 %v5749_v1, %v5747_v63 }
 0x2fe   :  { %5892 = vadd.xlane.f32.xlu1 %v4008_v61 }
 0x2ff   :  { %v8957_v11 = vsel %vm12363_vm13, %v8956_v14, %v8952_v12  ;;  %v7352_v30 = vunpack.c.l.b16 %v6459_v19  ;;  %v7353_v40 = vunpack.c.h.b16 %v6459_v19  ;;  %5890 = vadd.xlane.f32.xlu0 %v4007_v5  ;;  %v5753_v21 = vpop.xlane.xlu1 %5752  ;;  %v4013_v5 = vadd.f32 %v3501_v56, %v1453_v42 }
 0x300   :  { %v8962_v27 = vsel %vm12362_vm14, %v8961_v17, %v8957_v11  ;;  %v5751_v16 = vpop.xlane.xlu0 %5750 }
 0x301   :  { %v6460_v32 = vpack.c.bf16 %v5753_v21, %v5751_v16  ;;  %v8966_v33 = vrot.slane %v7352_v30, %v10891_v3  ;;  %v8970_v24 = vrot.slane %v7353_v40, %v10894_v4  ;;  %v11483_v38 = vsel %vm6759_vm15, %v8962_v27, %v11341_v44 }
 0x302   :  { %5896 = vadd.xlane.f32.xlu1 %v4010_v20  ;;  %v4014_v44 = vadd.f32 %v3502_v52, %v1454_v51  ;;  %v4016_v20 = vadd.f32 %v3504_v9, %v1456_v6  ;;  %v4017_v51 = vadd.f32 %v3505_v31, %v1457_v28  ;;  %v1460_v52 = vld [vmem:[#allocation3 + $0x1650] sm:$0xff]  ;;  %v6226_v9 = vld [vmem:[%s12350_s0] sm:$0xff]  ;;  %v6231_v28 = vld [vmem:[%s12350_s0 + $0x28] sm:$0xff] }
 0x303   :  { %v7354_v41 = vunpack.c.l.b16 %v6460_v32  ;;  %v7355_v43 = vunpack.c.h.b16 %v6460_v32  ;;  %5894 = vadd.xlane.f32.xlu0 %v4009_v22  ;;  %v5757_v46 = vpop.xlane.xlu1 %5756  ;;  %v8971_v61 = vsel %vm6688_vm0, %v8970_v24, %v8966_v33  ;;  %v4015_v22 = vadd.f32 %v3503_v13, %v1455_v0  ;;  %v1461_v13 = vld [vmem:[#allocation3 + $0x1660] sm:$0xff] }
 0x304   :  { %v5755_v53 = vpop.xlane.xlu0 %5754 }
 0x305   :  { %v8975_v57 = vrot.slane %v7354_v41, %v10835_v49  ;;  %v8980_v58 = vrot.slane %v7355_v43, %v10838_v50  ;;  %v6461_v60 = vpack.c.bf16 %v5757_v46, %v5755_v53  ;;  %v3508_v53 = vld [vmem:[#allocation3 + $0x1658] sm:$0xff] }
 0x306   :  { %5900 = vadd.xlane.f32.xlu1 %v4012_v34  ;;  %v4018_v34 = vadd.f32 %v3506_v39, %v1458_v23 }
 0x307   :  { %v8976_v45 = vsel %vm7606_vm1, %v8975_v57, %v8971_v61  ;;  %v7356_v2 = vunpack.c.l.b16 %v6461_v60  ;;  %v7357_v55 = vunpack.c.h.b16 %v6461_v60  ;;  %5898 = vadd.xlane.f32.xlu0 %v4011_v37  ;;  %v5761_v1 = vpop.xlane.xlu1 %5760  ;;  %v1459_v57 = vld [vmem:[#allocation3 + $0x1640] sm:$0xff] }
 0x308   :  { %v8981_v12 = vsel %vm7613_vm2, %v8980_v58, %v8976_v45  ;;  %v5759_v63 = vpop.xlane.xlu0 %5758  ;;  %v3507_v58 = vld [vmem:[#allocation3 + $0x1648] sm:$0xff]  ;;  %v4020_v45 = vadd.f32 %v3508_v53, %v1460_v52 }
 0x309   :  { %v8985_v14 = vrot.slane %v7356_v2, %v10843_v59  ;;  %v8990_v17 = vrot.slane %v7357_v55, %v10846_v62  ;;  %v6462_v19 = vpack.c.bf16 %v5761_v1, %v5759_v63  ;;  %v4019_v6 = vadd.f32 %v3507_v58, %v1459_v57  ;;  %v6234_v58 = vld [vmem:[%s12350_s0 + $0x40] sm:$0xff] }
 0x30a   :  { %5904 = vadd.xlane.f32.xlu1 %v4014_v44 }
 0x30b   :  { %v8986_v11 = vsel %vm7620_vm3, %v8985_v14, %v8981_v12  ;;  %v7358_v30 = vunpack.c.l.b16 %v6462_v19  ;;  %v7359_v40 = vunpack.c.h.b16 %v6462_v19  ;;  %5902 = vadd.xlane.f32.xlu0 %v4013_v5  ;;  %v5765_v21 = vpop.xlane.xlu1 %5764  ;;  %v6227_v12 = vld [vmem:[%s12350_s0 + $0x8] sm:$0xff] }
 0x30c   :  { %v8991_v27 = vsel %vm12361_vm4, %v8990_v17, %v8986_v11  ;;  %v5763_v16 = vpop.xlane.xlu0 %5762  ;;  %v3509_v14 = vld [vmem:[#allocation3 + $0x1668] sm:$0xff]  ;;  %v6228_v11 = vld [vmem:[%s12350_s0 + $0x10] sm:$0x1] }
 0x30d   :  { %v8995_v32 = vrot.slane %v7358_v30, %v10851_v7  ;;  %v9000_v33 = vrot.slane %v7359_v40, %v10854_v8  ;;  %v6463_v24 = vpack.c.bf16 %v5765_v21, %v5763_v16  ;;  %v6229_v30 = vld [vmem:[%s12350_s0 + $0x18] sm:$0x1]  ;;  %v6258_v40 = vadd.f32 %v6227_v12, %v6226_v9  ;;  %v6230_v16 = vld [vmem:[%s12350_s0 + $0x20] sm:$0xff] }
 0x30e   :  { %5908 = vadd.xlane.f32.xlu1 %v4016_v20  ;;  %v6237_v9 = vld [vmem:[%s12350_s0 + $0x58] sm:$0x1] }
 0x30f   :  { %v8996_v41 = vsel %vm7634_vm5, %v8995_v32, %v8991_v27  ;;  %v7360_v43 = vunpack.c.l.b16 %v6463_v24  ;;  %v7361_v46 = vunpack.c.h.b16 %v6463_v24  ;;  %5906 = vadd.xlane.f32.xlu0 %v4015_v22  ;;  %v5769_v37 = vpop.xlane.xlu1 %5768  ;;  %v4021_v27 = vadd.f32 %v3509_v14, %v1461_v13 }
 0x310   :  { %v9001_v42 = vsel %vm12360_vm6, %v9000_v33, %v8996_v41  ;;  %v5767_v56 = vpop.xlane.xlu0 %5766 }
 0x311   :  { %v9005_v60 = vrot.slane %v7360_v43, %v10859_v15  ;;  %v9010_v61 = vrot.slane %v7361_v46, %v10862_v18  ;;  %v6464_v44 = vpack.c.bf16 %v5769_v37, %v5767_v56  ;;  %v6232_v46 = vld [vmem:[%s12350_s0 + $0x30] sm:$0x1]  ;;  %v6233_v37 = vld [vmem:[%s12350_s0 + $0x38] sm:$0x1] }
 0x312   :  { %5912 = vadd.xlane.f32.xlu1 %v4018_v34 }
 0x313   :  { %v9006_v2 = vsel %vm12359_vm7, %v9005_v60, %v9001_v42  ;;  %v7362_v55 = vunpack.c.l.b16 %v6464_v44  ;;  %v7363_v1 = vunpack.c.h.b16 %v6464_v44  ;;  %5910 = vadd.xlane.f32.xlu0 %v4017_v51  ;;  %v5773_v5 = vpop.xlane.xlu1 %5772  ;;  %vm6261_vm7 = vcmask 1040384   ;;  %v6235_v60 = vld [vmem:[%s12350_s0 + $0x48] sm:$0xff] }
 0x314   :  { %v9011_v63 = vsel %vm7655_vm8, %v9010_v61, %v9006_v2  ;;  %v5771_v0 = vpop.xlane.xlu0 %5770  ;;  %v6262_v33 = vsel %vm6261_vm7, %v6228_v11, 0.0  ;;  %v6263_v24 = vsel %vm6261_vm7, %v6229_v30, 0.0  ;;  %v6267_v51 = vadd.f32 %v6231_v28, %v6230_v16 }
 0x315   :  { %v9015_v17 = vrot.slane %v7362_v55, %v10867_v25  ;;  %v9020_v19 = vrot.slane %v7363_v1, %v10870_v26  ;;  %v6465_v20 = vpack.c.bf16 %v5773_v5, %v5771_v0  ;;  %v6264_v57 = vadd.f32 %v6263_v24, %v6262_v33 }
 0x316   :  { %5916 = vadd.xlane.f32.xlu1 %v4020_v45  ;;  %v6270_v45 = vsel %vm6261_vm7, %v6232_v46, 0.0  ;;  %v6271_v2 = vsel %vm6261_vm7, %v6233_v37, 0.0  ;;  %v6275_v12 = vadd.f32 %v6235_v60, %v6234_v58 }
 0x317   :  { %v9016_v21 = vsel %vm7662_vm9, %v9015_v17, %v9011_v63  ;;  %v7364_v22 = vunpack.c.l.b16 %v6465_v20  ;;  %v7365_v23 = vunpack.c.h.b16 %v6465_v20  ;;  %5914 = vadd.xlane.f32.xlu0 %v4019_v6  ;;  %v5777_v39 = vpop.xlane.xlu1 %5776  ;;  %v6236_v6 = vld [vmem:[%s12350_s0 + $0x50] sm:$0x1]  ;;  %v6272_v17 = vadd.f32 %v6271_v2, %v6270_v45  ;;  %v6239_v20 = vld [vmem:[%s12350_s0 + $0x68] sm:$0xff] }
 0x318   :  { %v9021_v31 = vsel %vm7669_vm10, %v9020_v19, %v9016_v21  ;;  %v5775_v32 = vpop.xlane.xlu0 %5774  ;;  %v6238_v19 = vld [vmem:[%s12350_s0 + $0x60] sm:$0xff]  ;;  %v6278_v30 = vsel %vm6261_vm7, %v6236_v6, 0.0 }
 0x319   :  { %v9025_v34 = vrot.slane %v7364_v22, %v10875_v35  ;;  %v9030_v41 = vrot.slane %v7365_v23, %v10878_v36  ;;  %v6466_v43 = vpack.c.bf16 %v5777_v39, %v5775_v32  ;;  %v6240_v23 = vld [vmem:[%s12350_s0 + $0x70] sm:$0x1]  ;;  %v6241_v39 = vld [vmem:[%s12350_s0 + $0x78] sm:$0x1]  ;;  %v6283_v28 = vadd.f32 %v6239_v20, %v6238_v19 }
 0x31a   :  { %6259 = vadd.xlane.f32.xlu1 %v6258_v40  ;;  %v6279_v40 = vsel %vm6261_vm7, %v6237_v9, 0.0  ;;  %v6286_v37 = vsel %vm6261_vm7, %v6240_v23, 0.0  ;;  %v6251_v23 = vld [vmem:[%s12350_s0 + $0xc8] sm:$0xff] }
 0x31b   :  { %v9026_v52 = vsel %vm7676_vm11, %v9025_v34, %v9021_v31  ;;  %v7366_v53 = vunpack.c.l.b16 %v6466_v43  ;;  %v7367_v42 = vunpack.c.h.b16 %v6466_v43  ;;  %5918 = vadd.xlane.f32.xlu0 %v4021_v27  ;;  %v5781_v56 = vpop.xlane.xlu1 %5780  ;;  %v6280_v34 = vadd.f32 %v6279_v40, %v6278_v30  ;;  %v6243_v43 = vld [vmem:[%s12350_s0 + $0x88] sm:$0xff] }
 0x31c   :  { %v9031_v61 = vsel %vm7683_vm12, %v9030_v41, %v9026_v52  ;;  %v5779_v44 = vpop.xlane.xlu0 %5778  ;;  %v6242_v41 = vld [vmem:[%s12350_s0 + $0x80] sm:$0xff] }
 0x31d   :  { %v9035_v55 = vrot.slane %v7366_v53, %v10883_v47  ;;  %v9040_v1 = vrot.slane %v7367_v42, %v10886_v48  ;;  %v6467_v5 = vpack.c.bf16 %v5781_v56, %v5779_v44  ;;  %v6244_v42 = vld [vmem:[%s12350_s0 + $0x90] sm:$0x1]  ;;  %v6245_v56 = vld [vmem:[%s12350_s0 + $0x98] sm:$0x1]  ;;  %v6291_v58 = vadd.f32 %v6243_v43, %v6242_v41 }
 0x31e   :  { %6268 = vadd.xlane.f32.xlu1 %v6267_v51  ;;  %v6287_v51 = vsel %vm6261_vm7, %v6241_v39, 0.0  ;;  %v6294_v9 = vsel %vm6261_vm7, %v6244_v42, 0.0  ;;  %v6253_v41 = vld [vmem:[%s12350_s0 + $0xd8] sm:$0x1]  ;;  %v6255_v42 = vld [vmem:[%s12350_s0 + $0xe8] sm:$0xff] }
 0x31f   :  { %v9036_v63 = vsel %vm12363_vm13, %v9035_v55, %v9031_v61  ;;  %v7368_v0 = vunpack.c.l.b16 %v6467_v5  ;;  %v7369_v13 = vunpack.c.h.b16 %v6467_v5  ;;  %6265 = vadd.xlane.f32.xlu0 %v6264_v57  ;;  %v5785_v14 = vpop.xlane.xlu1 %5784  ;;  %v6288_v2 = vadd.f32 %v6287_v51, %v6286_v37  ;;  %v6246_v55 = vld [vmem:[%s12350_s0 + $0xa0] sm:$0xff] }
 0x320   :  { %v5783_v11 = vpop.xlane.xlu0 %5782  ;;  %v9041_v21 = vsel %vm12362_vm14, %v9040_v1, %v9036_v63  ;;  %v6247_v1 = vld [vmem:[%s12350_s0 + $0xa8] sm:$0xff] }
 0x321   :  { %v6468_v22 = vpack.c.bf16 %v5785_v14, %v5783_v11  ;;  %v9045_v27 = vrot.slane %v7368_v0, %v10891_v3  ;;  %v9049_v16 = vrot.slane %v7369_v13, %v10894_v4  ;;  %v11572_v31 = vsel %vm6759_vm15, %v9041_v21, %v11378_v29  ;;  %v6248_v14 = vld [vmem:[%s12350_s0 + $0xb0] sm:$0x1] }
 0x322   :  { %6276 = vadd.xlane.f32.xlu1 %v6275_v12  ;;  %v6295_v12 = vsel %vm6261_vm7, %v6245_v56, 0.0  ;;  %v6299_v19 = vadd.f32 %v6247_v1, %v6246_v55  ;;  %v6257_v55 = vld [vmem:[%s12350_s0 + $0xf8] sm:$0x1] }
 0x323   :  { %v7370_v32 = vunpack.c.l.b16 %v6468_v22  ;;  %v7371_v33 = vunpack.c.h.b16 %v6468_v22  ;;  %6273 = vadd.xlane.f32.xlu0 %v6272_v17  ;;  %v5789_v24 = vpop.xlane.xlu1 %5788  ;;  %v9050_v57 = vsel %vm6688_vm0, %v9049_v16, %v9045_v27  ;;  %v6249_v17 = vld [vmem:[%s12350_s0 + $0xb8] sm:$0x1]  ;;  %v6296_v21 = vadd.f32 %v6295_v12, %v6294_v9  ;;  %v6250_v22 = vld [vmem:[%s12350_s0 + $0xc0] sm:$0xff] }
 0x324   :  { %v5787_v46 = vpop.xlane.xlu0 %5786  ;;  %v6302_v16 = vsel %vm6261_vm7, %v6248_v14, 0.0  ;;  %v6307_v43 = vadd.f32 %v6251_v23, %v6250_v22 }
 0x325   :  { %v9054_v29 = vrot.slane %v7370_v32, %v10835_v49  ;;  %v9059_v52 = vrot.slane %v7371_v33, %v10838_v50  ;;  %v6469_v53 = vpack.c.bf16 %v5789_v24, %v5787_v46 }
 0x326   :  { %6284 = vadd.xlane.f32.xlu1 %v6283_v28  ;;  %v6303_v28 = vsel %vm6261_vm7, %v6249_v17, 0.0 }
 0x327   :  { %v9055_v60 = vsel %vm7606_vm1, %v9054_v29, %v9050_v57  ;;  %v7372_v61 = vunpack.c.l.b16 %v6469_v53  ;;  %v7373_v44 = vunpack.c.h.b16 %v6469_v53  ;;  %6281 = vadd.xlane.f32.xlu0 %v6280_v34  ;;  %v5793_v45 = vpop.xlane.xlu1 %5792  ;;  %v6252_v34 = vld [vmem:[%s12350_s0 + $0xd0] sm:$0x1]  ;;  %v6254_v53 = vld [vmem:[%s12350_s0 + $0xe0] sm:$0xff] }
 0x328   :  { %v9060_v5 = vsel %vm7613_vm2, %v9059_v52, %v9055_v60  ;;  %v5791_v6 = vpop.xlane.xlu0 %5790  ;;  %v6304_v52 = vadd.f32 %v6303_v28, %v6302_v16  ;;  %v6311_v60 = vsel %vm6261_vm7, %v6253_v41, 0.0  ;;  %v6315_v1 = vadd.f32 %v6255_v42, %v6254_v53  ;;  %v1471_v28 = vld [vmem:[#allocation3 + $0x1700] sm:$0xff]  ;;  %v3552_v41 = vld [vmem:[#allocation3 + $0x1918] sm:$0xff] }
 0x329   :  { %v9064_v63 = vrot.slane %v7372_v61, %v10843_v59  ;;  %v9069_v0 = vrot.slane %v7373_v44, %v10846_v62  ;;  %v6470_v13 = vpack.c.bf16 %v5793_v45, %v5791_v6 }
 0x32a   :  { %6292 = vadd.xlane.f32.xlu1 %v6291_v58  ;;  %v6310_v58 = vsel %vm6261_vm7, %v6252_v34, 0.0  ;;  %v1504_v34 = vld [vmem:[#allocation3 + $0x1910] sm:$0xff] }
 0x32b   :  { %v9065_v20 = vsel %vm7620_vm3, %v9064_v63, %v9060_v5  ;;  %v7374_v11 = vunpack.c.l.b16 %v6470_v13  ;;  %v7375_v30 = vunpack.c.h.b16 %v6470_v13  ;;  %6289 = vadd.xlane.f32.xlu0 %v6288_v2  ;;  %v5797_v40 = vpop.xlane.xlu1 %5796  ;;  %v6256_v2 = vld [vmem:[%s12350_s0 + $0xf0] sm:$0x1]  ;;  %v6312_v63 = vadd.f32 %v6311_v60, %v6310_v58  ;;  %v3551_v13 = vld [vmem:[#allocation3 + $0x1908] sm:$0xff]  ;;  %s10743_s0 = smov [#allocation11]  }
 0x32c   :  { %v9070_v39 = vsel %vm12361_vm4, %v9069_v0, %v9065_v20  ;;  %v5795_v27 = vpop.xlane.xlu0 %5794  ;;  %v1503_v0 = vld [vmem:[#allocation3 + $0x1900] sm:$0xff]  ;;  %v6319_v20 = vsel %vm6261_vm7, %v6257_v55, 0.0  ;;  %v3535_v58 = vld [vmem:[#allocation3 + $0x1808] sm:$0xff]  ;;  %s10471_s22 = sshll.u32 %s10743_s0, 4  ;;  %s10472_s22 = int_to_ptr.vmem [resolvable:$true] %s10471_s22 }
 0x32d   :  { %v9074_v32 = vrot.slane %v7374_v11, %v10851_v7  ;;  %v9079_v33 = vrot.slane %v7375_v30, %v10854_v8  ;;  %v6471_v24 = vpack.c.bf16 %v5797_v40, %v5795_v27  ;;  %s10702_s23 = scalar_lea.vmem %s10472_s22, 128  ;;  %p10707_p5 = scmp.lt.s32.totalorder %s10472_s22, %s10472_s22 }
 0x32e   :  { %6300 = vadd.xlane.f32.xlu1 %v6299_v19  ;;  %v6318_v19 = vsel %vm6261_vm7, %v6256_v2, 0.0  ;;  %vm6778_vm7 = vcmask 1044480   ;;  %p10703_p4 = scmp.ne.s32.totalorder %s10472_s22, %s10702_s23  ;;  %p10708_p6 = scmp.lt.s32.totalorder %s10702_s23, %s10702_s23 }
 0x32f   :  { %v9075_v46 = vsel %vm7634_vm5, %v9074_v32, %v9070_v39  ;;  %v7376_v37 = vunpack.c.l.b16 %v6471_v24  ;;  %v7377_v51 = vunpack.c.h.b16 %v6471_v24  ;;  %6297 = vadd.xlane.f32.xlu0 %v6296_v21  ;;  %v5801_v29 = vpop.xlane.xlu1 %5800  ;;  %v4063_v21 = vadd.f32 %v3551_v13, %v1503_v0  ;;  %v3519_v32 = vld [vmem:[#allocation3 + $0x1708] sm:$0xff]  ;;  %v1505_v13 = vld [vmem:[#allocation3 + $0x1920] sm:$0xff] }
 0x330   :  { %v9080_v56 = vsel %vm12360_vm6, %v9079_v33, %v9075_v46  ;;  %v5799_v57 = vpop.xlane.xlu0 %5798  ;;  %vm12364_vm6 = vcmask 589312   ;;  %v6320_v16 = vadd.f32 %v6319_v20, %v6318_v19  ;;  %v1488_v20 = vld [vmem:[#allocation3 + $0x1810] sm:$0xff]  ;;  %p10709_p7 = por %p10708_p6, %p10707_p5 }
 0x331   :  { %v9084_v61 = vrot.slane %v7376_v37, %v10859_v15  ;;  %v9089_v44 = vrot.slane %v7377_v51, %v10862_v18  ;;  %v6472_v45 = vpack.c.bf16 %v5801_v29, %v5799_v57  ;;  %v4031_v51 = vadd.f32 %v3519_v32, %v1471_v28  ;;  %v1487_v57 = vld [vmem:[#allocation3 + $0x1800] sm:$0xff] }
 0x332   :  { %6308 = vadd.xlane.f32.xlu1 %v6307_v43  ;;  %v1567_v32 = vld [vmem:[#allocation3 + $0x1d00] sm:$0xff]  ;;  %p10710_p8 = pnand %p10709_p7, %p10703_p4 }
 0x333   :  { %v9085_v5 = vsel %vm12364_vm6, %v9084_v61, %v9080_v56  ;;  %v7378_v6 = vunpack.c.l.b16 %v6472_v45  ;;  %v7379_v9 = vunpack.c.h.b16 %v6472_v45  ;;  %6305 = vadd.xlane.f32.xlu0 %v6304_v52  ;;  %v5805_v12 = vpop.xlane.xlu1 %5804  ;;  %v4064_v56 = vadd.f32 %v3552_v41, %v1504_v34  ;;  %v3520_v45 = vld [vmem:[#allocation3 + $0x1718] sm:$0xff]  ;;  %v1506_v34 = vld [vmem:[#allocation3 + $0x1930] sm:$0xff] }
 0x334   :  { %v9090_v14 = vsel %vm7655_vm8, %v9089_v44, %v9085_v5  ;;  %v5803_v17 = vpop.xlane.xlu0 %5802  ;;  %v1472_v44 = vld [vmem:[#allocation3 + $0x1710] sm:$0xff]  ;;  %v4047_v5 = vadd.f32 %v3535_v58, %v1487_v57  ;;  %v3554_v41 = vld [vmem:[#allocation3 + $0x1938] sm:$0xff]  ;;  %v3521_v58 = vld [vmem:[#allocation3 + $0x1728] sm:$0xff]  ;;  %vm6777_vm6 = vcmask 1043456  }
 0x335   :  { %v9094_v11 = vrot.slane %v7378_v6, %v10867_v25  ;;  %v9099_v30 = vrot.slane %v7379_v9, %v10870_v26  ;;  %v6473_v40 = vpack.c.bf16 %v5805_v12, %v5803_v17  ;;  %v4032_v0 = vadd.f32 %v3520_v45, %v1472_v44 }
 0x336   :  { %6316 = vadd.xlane.f32.xlu1 %v6315_v1  ;;  %v4066_v57 = vadd.f32 %v3554_v41, %v1506_v34  ;;  %v1535_v41 = vld [vmem:[#allocation3 + $0x1b00] sm:$0xff] }
 0x337   :  { %v9095_v22 = vsel %vm7662_vm9, %v9094_v11, %v9090_v14  ;;  %v7380_v23 = vunpack.c.l.b16 %v6473_v40  ;;  %v7381_v39 = vunpack.c.h.b16 %v6473_v40  ;;  %6313 = vadd.xlane.f32.xlu0 %v6312_v63  ;;  %v5809_v27 = vpop.xlane.xlu1 %5808  ;;  %v3553_v14 = vld [vmem:[#allocation3 + $0x1928] sm:$0xff]  ;;  %v3536_v11 = vld [vmem:[#allocation3 + $0x1818] sm:$0xff] }
 0x338   :  { %v9100_v33 = vsel %vm7669_vm10, %v9099_v30, %v9095_v22  ;;  %v5807_v24 = vpop.xlane.xlu0 %5806  ;;  %v4048_v28 = vadd.f32 %v3536_v11, %v1488_v20 }
 0x339   :  { %v9104_v43 = vrot.slane %v7380_v23, %v10875_v35  ;;  %v9109_v46 = vrot.slane %v7381_v39, %v10878_v36  ;;  %v6474_v37 = vpack.c.bf16 %v5809_v27, %v5807_v24  ;;  %v4065_v23 = vadd.f32 %v3553_v14, %v1505_v13  ;;  %v3537_v14 = vld [vmem:[#allocation3 + $0x1828] sm:$0xff] }
 0x33a   :  { %6002 = vadd.xlane.f32.xlu1 %v4063_v21 }
 0x33b   :  { %v9105_v29 = vsel %vm7676_vm11, %v9104_v43, %v9100_v33  ;;  %v7382_v52 = vunpack.c.l.b16 %v6474_v37  ;;  %v7383_v53 = vunpack.c.h.b16 %v6474_v37  ;;  %6321 = vadd.xlane.f32.xlu0 %v6320_v16  ;;  %v5813_v42 = vpop.xlane.xlu1 %5812  ;;  %v3615_v33 = vld [vmem:[#allocation3 + $0x1d08] sm:$0xff] }
 0x33c   :  { %v9110_v60 = vsel %vm7683_vm12, %v9109_v46, %v9105_v29  ;;  %v5811_v61 = vpop.xlane.xlu0 %5810  ;;  %v1473_v29 = vld [vmem:[#allocation3 + $0x1720] sm:$0xff] }
 0x33d   :  { %v9114_v2 = vrot.slane %v7382_v52, %v10883_v47  ;;  %v9119_v55 = vrot.slane %v7383_v53, %v10886_v48  ;;  %v6475_v1 = vpack.c.bf16 %v5813_v42, %v5811_v61  ;;  %v3616_v61 = vld [vmem:[#allocation3 + $0x1d18] sm:$0xff] }
 0x33e   :  { %5938 = vadd.xlane.f32.xlu1 %v4031_v51  ;;  %v4127_v51 = vadd.f32 %v3615_v33, %v1567_v32 }
 0x33f   :  { %v9115_v6 = vsel %vm12363_vm13, %v9114_v2, %v9110_v60  ;;  %v7384_v9 = vunpack.c.l.b16 %v6475_v1  ;;  %v7385_v12 = vunpack.c.h.b16 %v6475_v1  ;;  %6004 = vadd.xlane.f32.xlu0 %v4064_v56  ;;  %v5817_v63 = vpop.xlane.xlu1 %5816  ;;  %v1568_v60 = vld [vmem:[#allocation3 + $0x1d10] sm:$0xff] }
 0x340   :  { %v9120_v17 = vsel %vm12362_vm14, %v9119_v55, %v9115_v6  ;;  %v5815_v19 = vpop.xlane.xlu0 %5814  ;;  %v4128_v6 = vadd.f32 %v3616_v61, %v1568_v60 }
 0x341   :  { %v11663_v30 = vsel %vm6759_vm15, %v9120_v17, %v11411_v10  ;;  %v6476_v40 = vpack.c.bf16 %v5817_v63, %v5815_v19  ;;  %v9124_v21 = vrot.slane %v7384_v9, %v10891_v3  ;;  %v9128_v22 = vrot.slane %v7385_v12, %v10894_v4  ;;  %v1489_v9 = vld [vmem:[#allocation3 + $0x1820] sm:$0xff]  ;;  %v1474_v17 = vld [vmem:[#allocation3 + $0x1730] sm:$0xff]  ;;  %v3522_v19 = vld [vmem:[#allocation3 + $0x1738] sm:$0xff] }
 0x342   :  { %5970 = vadd.xlane.f32.xlu1 %v4047_v5  ;;  %v4033_v5 = vadd.f32 %v3521_v58, %v1473_v29  ;;  %v1490_v29 = vld [vmem:[#allocation3 + $0x1830] sm:$0xff] }
 0x343   :  { %v7386_v39 = vunpack.c.l.b16 %v6476_v40  ;;  %v7387_v27 = vunpack.c.h.b16 %v6476_v40  ;;  %5940 = vadd.xlane.f32.xlu0 %v4032_v0  ;;  %v5821_v16 = vpop.xlane.xlu1 %5820  ;;  %v9129_v37 = vsel %vm6688_vm0, %v9128_v22, %v9124_v21 }
 0x344   :  { %v5819_v24 = vpop.xlane.xlu0 %5818 }
 0x345   :  { %v9133_v10 = vrot.slane %v7386_v39, %v10835_v49  ;;  %v9138_v43 = vrot.slane %v7387_v27, %v10838_v50  ;;  %v6477_v46 = vpack.c.bf16 %v5821_v16, %v5819_v24  ;;  %v4049_v39 = vadd.f32 %v3537_v14, %v1489_v9  ;;  %v1536_v9 = vld [vmem:[#allocation3 + $0x1b10] sm:$0xff] }
 0x346   :  { %6006 = vadd.xlane.f32.xlu1 %v4065_v23  ;;  %v10581_v23 = vld [vmem:[#allocation8] sm:$0x1f]   ;;  %v4034_v27 = vadd.f32 %v3522_v19, %v1474_v17  ;;  %v10740_v16 = vmov 65535  }
 0x347   :  { %v9134_v52 = vsel %vm7606_vm1, %v9133_v10, %v9129_v37  ;;  %v7388_v53 = vunpack.c.l.b16 %v6477_v46  ;;  %v7389_v42 = vunpack.c.h.b16 %v6477_v46  ;;  %5972 = vadd.xlane.f32.xlu0 %v4048_v28  ;;  %v5825_v56 = vpop.xlane.xlu1 %5824  ;;  %v6779_v28 = vsel %vm6777_vm6, 4294967295, %v10740_v16  ;;  %v3583_v10 = vld [vmem:[#allocation3 + $0x1b08] sm:$0xff]  ;;  %v3600_v16 = vld [vmem:[#allocation3 + $0x1c18] sm:$0xff] }
 0x348   :  { %v9139_v44 = vsel %vm7613_vm2, %v9138_v43, %v9134_v52  ;;  %v5823_v45 = vpop.xlane.xlu0 %5822  ;;  %v10741_v43 = vmov 0.0   ;;  %v6780_v46 = vsel %vm6778_vm7, %v6779_v28, 0  ;;  %v3538_v52 = vld [vmem:[#allocation3 + $0x1838] sm:$0xff]  ;;  %v4095_v58 = vadd.f32 %v3583_v10, %v1535_v41 }
 0x349   :  { %v9143_v2 = vrot.slane %v7388_v53, %v10843_v59  ;;  %v9148_v55 = vrot.slane %v7389_v42, %v10846_v62  ;;  %v6478_v1 = vpack.c.bf16 %v5825_v56, %v5823_v45  ;;  %10563 = vmatprep.subr.bf16.mxu0 %v10741_v43  ;;  %v6782_v53 = vand.u32 %v10581_v23, %v6780_v46 }
 0x34a   :  { %6130 = vadd.xlane.f32.xlu1 %v4127_v51  ;;  %vm12366_vm6 = vcmask 589312   ;;  %vm12367_vm7 = vcmask 392512  }
 0x34b   :  { %v9144_v12 = vsel %vm7620_vm3, %v9143_v2, %v9139_v44  ;;  %v7390_v63 = vunpack.c.l.b16 %v6478_v1  ;;  %v7391_v0 = vunpack.c.h.b16 %v6478_v1  ;;  %6008 = vadd.xlane.f32.xlu0 %v4066_v57  ;;  %v5829_v13 = vpop.xlane.xlu1 %5828  ;;  %10564 = vmatpush3.bf16.msra.mxu0 %v6782_v53  ;;  %v4050_v2 = vadd.f32 %v3538_v52, %v1490_v29  ;;  %v3599_v1 = vld [vmem:[#allocation3 + $0x1c08] sm:$0xff]  ;;  %v1570_v53 = vld [vmem:[#allocation3 + $0x1d30] sm:$0xff] }
 0x34c   :  { %v9149_v20 = vsel %vm12361_vm4, %v9148_v55, %v9144_v12  ;;  %v5827_v11 = vpop.xlane.xlu0 %5826  ;;  %vm12365_vm4 = vcmask 523712   ;;  %v1551_v55 = vld [vmem:[#allocation3 + $0x1c00] sm:$0xff]  ;;  %v3584_v12 = vld [vmem:[#allocation3 + $0x1b18] sm:$0xff] }
 0x34d   :  { %v9153_v40 = vrot.slane %v7390_v63, %v10851_v7  ;;  %v9158_v21 = vrot.slane %v7391_v0, %v10854_v8  ;;  %v6479_v22 = vpack.c.bf16 %v5829_v13, %v5827_v11  ;;  %v4111_v14 = vadd.f32 %v3599_v1, %v1551_v55  ;;  %v1519_v1 = vld [vmem:[#allocation3 + $0x1a00] sm:$0xff] }
 0x34e   :  { %5942 = vadd.xlane.f32.xlu1 %v4033_v5 }
 0x34f   :  { %v9154_v32 = vsel %vm7634_vm5, %v9153_v40, %v9149_v20  ;;  %v7392_v33 = vunpack.c.l.b16 %v6479_v22  ;;  %v7393_v24 = vunpack.c.h.b16 %v6479_v22  ;;  %6132 = vadd.xlane.f32.xlu0 %v4128_v6  ;;  %v5833_v34 = vpop.xlane.xlu1 %5832  ;;  %v4096_v40 = vadd.f32 %v3584_v12, %v1536_v9  ;;  %v3617_v22 = vld [vmem:[#allocation3 + $0x1d28] sm:$0xff]  ;;  %v1508_v12 = vld [vmem:[#allocation3 + $0x1950] sm:$0xff] }
 0x350   :  { %v9159_v37 = vsel %vm12365_vm4, %v9158_v21, %v9154_v32  ;;  %v5831_v51 = vpop.xlane.xlu0 %5830  ;;  %vm10742_vm4 = vmmov 0   ;;  %v1569_v21 = vld [vmem:[#allocation3 + $0x1d20] sm:$0xff] }
 0x351   :  { %v9163_v42 = vrot.slane %v7392_v33, %v10859_v15  ;;  %v9168_v56 = vrot.slane %v7393_v24, %v10862_v18  ;;  %v6480_v57 = vpack.c.bf16 %v5833_v34, %v5831_v51  ;;  %10565 = vmatprep.mubr.msk.bf16.mxu0 %vm10742_vm4, %v10741_v43  ;;  %v4129_v24 = vadd.f32 %v3617_v22, %v1569_v21  ;;  %v3555_v51 = vld [vmem:[#allocation3 + $0x1948] sm:$0xff]  ;;  %v1537_v22 = vld [vmem:[#allocation3 + $0x1b20] sm:$0xff] }
 0x352   :  { %5974 = vadd.xlane.f32.xlu1 %v4049_v39  ;;  %vm12369_vm4 = vcmask 589312  }
 0x353   :  { %v9164_v60 = vsel %vm12366_vm6, %v9163_v42, %v9159_v37  ;;  %v7394_v61 = vunpack.c.l.b16 %v6480_v57  ;;  %v7395_v44 = vunpack.c.h.b16 %v6480_v57  ;;  %5944 = vadd.xlane.f32.xlu0 %v4034_v27  ;;  %v5837_v45 = vpop.xlane.xlu1 %5836  ;;  %v1552_v27 = vld [vmem:[#allocation3 + $0x1c10] sm:$0xff]  ;;  %v1507_v37 = vld [vmem:[#allocation3 + $0x1940] sm:$0xff]  ;;  %v3618_v42 = vld [vmem:[#allocation3 + $0x1d38] sm:$0xff]  ;;  %vm12368_vm6 = vcmask 523712  }
 0x354   :  { %v9169_v5 = vsel %vm7655_vm8, %v9168_v56, %v9164_v60  ;;  %v5835_v6 = vpop.xlane.xlu0 %5834  ;;  %v4112_v46 = vadd.f32 %v3600_v16, %v1552_v27  ;;  %v4067_v60 = vadd.f32 %v3555_v51, %v1507_v37  ;;  %v4130_v55 = vadd.f32 %v3618_v42, %v1570_v53  ;;  %v1520_v27 = vld [vmem:[#allocation3 + $0x1a10] sm:$0xff]  ;;  %v3568_v16 = vld [vmem:[#allocation3 + $0x1a18] sm:$0xff]  ;;  %v1553_v37 = vld [vmem:[#allocation3 + $0x1c20] sm:$0xff] }
 0x355   :  { %v9173_v63 = vrot.slane %v7394_v61, %v10867_v25  ;;  %v9178_v0 = vrot.slane %v7395_v44, %v10870_v26  ;;  %v6481_v13 = vpack.c.bf16 %v5837_v45, %v5835_v6  ;;  %v3601_v51 = vld [vmem:[#allocation3 + $0x1c28] sm:$0xff]  ;;  %v1538_v53 = vld [vmem:[#allocation3 + $0x1b30] sm:$0xff]  ;;  %v3586_v42 = vld [vmem:[#allocation3 + $0x1b38] sm:$0xff] }
 0x356   :  { %6066 = vadd.xlane.f32.xlu1 %v4095_v58 }
 0x357   :  { %v9174_v17 = vsel %vm7662_vm9, %v9173_v63, %v9169_v5  ;;  %v7396_v19 = vunpack.c.l.b16 %v6481_v13  ;;  %v7397_v20 = vunpack.c.h.b16 %v6481_v13  ;;  %5976 = vadd.xlane.f32.xlu0 %v4050_v2  ;;  %v5841_v11 = vpop.xlane.xlu1 %5840  ;;  %v3567_v5 = vld [vmem:[#allocation3 + $0x1a08] sm:$0xff]  ;;  %v3556_v63 = vld [vmem:[#allocation3 + $0x1958] sm:$0xff] }
 0x358   :  { %v9179_v23 = vsel %vm7669_vm10, %v9178_v0, %v9174_v17  ;;  %v5839_v39 = vpop.xlane.xlu0 %5838  ;;  %v4079_v17 = vadd.f32 %v3567_v5, %v1519_v1  ;;  %v4068_v21 = vadd.f32 %v3556_v63, %v1508_v12  ;;  %v1599_v1 = vld [vmem:[#allocation3 + $0x1f00] sm:$0xff]  ;;  %v3647_v5 = vld [vmem:[#allocation3 + $0x1f08] sm:$0xff]  ;;  %v1554_v12 = vld [vmem:[#allocation3 + $0x1c30] sm:$0xff] }
 0x359   :  { %v9183_v28 = vrot.slane %v7396_v19, %v10875_v35  ;;  %v9188_v32 = vrot.slane %v7397_v20, %v10878_v36  ;;  %v6482_v33 = vpack.c.bf16 %v5841_v11, %v5839_v39  ;;  %v3602_v63 = vld [vmem:[#allocation3 + $0x1c38] sm:$0xff] }
 0x35a   :  { %6098 = vadd.xlane.f32.xlu1 %v4111_v14 }
 0x35b   :  { %v9184_v34 = vsel %vm7676_vm11, %v9183_v28, %v9179_v23  ;;  %v7398_v41 = vunpack.c.l.b16 %v6482_v33  ;;  %v7399_v10 = vunpack.c.h.b16 %v6482_v33  ;;  %6068 = vadd.xlane.f32.xlu0 %v4096_v40  ;;  %v5845_v43 = vpop.xlane.xlu1 %5844  ;;  %v3585_v23 = vld [vmem:[#allocation3 + $0x1b28] sm:$0xff] }
 0x35c   :  { %v9189_v29 = vsel %vm7683_vm12, %v9188_v32, %v9184_v34  ;;  %v5843_v52 = vpop.xlane.xlu0 %5842 }
 0x35d   :  { %v9193_v56 = vrot.slane %v7398_v41, %v10883_v47  ;;  %v9198_v57 = vrot.slane %v7399_v10, %v10886_v48  ;;  %v6483_v58 = vpack.c.bf16 %v5845_v43, %v5843_v52 }
 0x35e   :  { %6134 = vadd.xlane.f32.xlu1 %v4129_v24 }
 0x35f   :  { %v9194_v61 = vsel %vm12363_vm13, %v9193_v56, %v9189_v29  ;;  %v7400_v44 = vunpack.c.l.b16 %v6483_v58  ;;  %v7401_v45 = vunpack.c.h.b16 %v6483_v58  ;;  %6100 = vadd.xlane.f32.xlu0 %v4112_v46  ;;  %v5849_v2 = vpop.xlane.xlu1 %5848  ;;  %v4080_v46 = vadd.f32 %v3568_v16, %v1520_v27 }
 0x360   :  { %v9199_v6 = vsel %vm12362_vm14, %v9198_v57, %v9194_v61  ;;  %v5847_v9 = vpop.xlane.xlu0 %5846 }
 0x361   :  { %v6484_v0 = vpack.c.bf16 %v5849_v2, %v5847_v9  ;;  %v9203_v13 = vrot.slane %v7400_v44, %v10891_v3  ;;  %v9207_v14 = vrot.slane %v7401_v45, %v10894_v4  ;;  %v11701_v19 = vsel %vm6759_vm15, %v9199_v6, %v11446_v54 }
 0x362   :  { %6010 = vadd.xlane.f32.xlu1 %v4067_v60  ;;  %v4097_v54 = vadd.f32 %v3585_v23, %v1537_v22  ;;  %v4113_v60 = vadd.f32 %v3601_v51, %v1553_v37  ;;  %v4114_v22 = vadd.f32 %v3602_v63, %v1554_v12  ;;  %v1475_v23 = vld [vmem:[#allocation3 + $0x1740] sm:$0xff]  ;;  %v1492_v63 = vld [vmem:[#allocation3 + $0x1850] sm:$0xff] }
 0x363   :  { %v7402_v20 = vunpack.c.l.b16 %v6484_v0  ;;  %v7403_v11 = vunpack.c.h.b16 %v6484_v0  ;;  %6136 = vadd.xlane.f32.xlu0 %v4130_v55  ;;  %v5853_v40 = vpop.xlane.xlu1 %5852  ;;  %v9208_v24 = vsel %vm6688_vm0, %v9207_v14, %v9203_v13  ;;  %v4098_v55 = vadd.f32 %v3586_v42, %v1538_v53  ;;  %v1491_v51 = vld [vmem:[#allocation3 + $0x1840] sm:$0xff]  ;;  %v1476_v42 = vld [vmem:[#allocation3 + $0x1750] sm:$0xff] }
 0x364   :  { %v5851_v39 = vpop.xlane.xlu0 %5850 }
 0x365   :  { %v9212_v28 = vrot.slane %v7402_v20, %v10835_v49  ;;  %v9217_v32 = vrot.slane %v7403_v11, %v10838_v50  ;;  %v6485_v33 = vpack.c.bf16 %v5853_v40, %v5851_v39  ;;  %v3523_v39 = vld [vmem:[#allocation3 + $0x1748] sm:$0xff] }
 0x366   :  { %6034 = vadd.xlane.f32.xlu1 %v4079_v17  ;;  %v4159_v17 = vadd.f32 %v3647_v5, %v1599_v1  ;;  %v1521_v5 = vld [vmem:[#allocation3 + $0x1a20] sm:$0xff] }
 0x367   :  { %v9213_v34 = vsel %vm7606_vm1, %v9212_v28, %v9208_v24  ;;  %v7404_v41 = vunpack.c.l.b16 %v6485_v33  ;;  %v7405_v10 = vunpack.c.h.b16 %v6485_v33  ;;  %6012 = vadd.xlane.f32.xlu0 %v4068_v21  ;;  %v5857_v43 = vpop.xlane.xlu1 %5856  ;;  %v1600_v28 = vld [vmem:[#allocation3 + $0x1f10] sm:$0xff] }
 0x368   :  { %v9218_v29 = vsel %vm7613_vm2, %v9217_v32, %v9213_v34  ;;  %v5855_v52 = vpop.xlane.xlu0 %5854  ;;  %v3648_v32 = vld [vmem:[#allocation3 + $0x1f18] sm:$0xff]  ;;  %v4035_v34 = vadd.f32 %v3523_v39, %v1475_v23  ;;  %v1571_v39 = vld [vmem:[#allocation3 + $0x1d40] sm:$0xff] }
 0x369   :  { %v9222_v56 = vrot.slane %v7404_v41, %v10843_v59  ;;  %v9227_v57 = vrot.slane %v7405_v10, %v10846_v62  ;;  %v6486_v58 = vpack.c.bf16 %v5857_v43, %v5855_v52  ;;  %v4160_v37 = vadd.f32 %v3648_v32, %v1600_v28  ;;  %v1522_v32 = vld [vmem:[#allocation3 + $0x1a30] sm:$0xff] }
 0x36a   :  { %6070 = vadd.xlane.f32.xlu1 %v4097_v54 }
 0x36b   :  { %v9223_v61 = vsel %vm7620_vm3, %v9222_v56, %v9218_v29  ;;  %v7406_v44 = vunpack.c.l.b16 %v6486_v58  ;;  %v7407_v45 = vunpack.c.h.b16 %v6486_v58  ;;  %6036 = vadd.xlane.f32.xlu0 %v4080_v46  ;;  %v5861_v2 = vpop.xlane.xlu1 %5860  ;;  %v3539_v29 = vld [vmem:[#allocation3 + $0x1848] sm:$0xff]  ;;  %v3524_v56 = vld [vmem:[#allocation3 + $0x1758] sm:$0xff] }
 0x36c   :  { %v9228_v6 = vsel %vm12367_vm7, %v9227_v57, %v9223_v61  ;;  %v5859_v9 = vpop.xlane.xlu0 %5858  ;;  %v4051_v61 = vadd.f32 %v3539_v29, %v1491_v51  ;;  %v4036_v1 = vadd.f32 %v3524_v56, %v1476_v42  ;;  %vm6761_vm7 = vcmask 1045509   ;;  %v1583_v29 = vld [vmem:[#allocation3 + $0x1e00] sm:$0xff]  ;;  %v1572_v56 = vld [vmem:[#allocation3 + $0x1d50] sm:$0xff] }
 0x36d   :  { %v9232_v0 = vrot.slane %v7406_v44, %v10851_v7  ;;  %v9237_v13 = vrot.slane %v7407_v45, %v10854_v8  ;;  %v6487_v14 = vpack.c.bf16 %v5861_v2, %v5859_v9 }
 0x36e   :  { %6102 = vadd.xlane.f32.xlu1 %v4113_v60 }
 0x36f   :  { %v9233_v20 = vsel %vm7634_vm5, %v9232_v0, %v9228_v6  ;;  %v7408_v11 = vunpack.c.l.b16 %v6487_v14  ;;  %v7409_v40 = vunpack.c.h.b16 %v6487_v14  ;;  %6072 = vadd.xlane.f32.xlu0 %v4098_v55  ;;  %v5865_v21 = vpop.xlane.xlu1 %5864  ;;  %v3569_v6 = vld [vmem:[#allocation3 + $0x1a28] sm:$0xff]  ;;  %v3540_v0 = vld [vmem:[#allocation3 + $0x1858] sm:$0xff] }
 0x370   :  { %v9238_v27 = vsel %vm12368_vm6, %v9237_v13, %v9233_v20  ;;  %v5863_v16 = vpop.xlane.xlu0 %5862  ;;  %v4081_v20 = vadd.f32 %v3569_v6, %v1521_v5  ;;  %v4052_v23 = vadd.f32 %v3540_v0, %v1492_v63  ;;  %v1601_v6 = vld [vmem:[#allocation3 + $0x1f20] sm:$0xff]  ;;  %v1584_v63 = vld [vmem:[#allocation3 + $0x1e10] sm:$0xff]  ;;  %v3632_v0 = vld [vmem:[#allocation3 + $0x1e18] sm:$0xff]  ;;  %vm12370_vm6 = vcmask 392512  }
 0x371   :  { %v9242_v33 = vrot.slane %v7408_v11, %v10859_v15  ;;  %v9247_v24 = vrot.slane %v7409_v40, %v10862_v18  ;;  %v6488_v54 = vpack.c.bf16 %v5865_v21, %v5863_v16 }
 0x372   :  { %6194 = vadd.xlane.f32.xlu1 %v4159_v17 }
 0x373   :  { %v9243_v41 = vsel %vm12369_vm4, %v9242_v33, %v9238_v27  ;;  %v7410_v10 = vunpack.c.l.b16 %v6488_v54  ;;  %v7411_v43 = vunpack.c.h.b16 %v6488_v54  ;;  %6104 = vadd.xlane.f32.xlu0 %v4114_v22  ;;  %v5869_v46 = vpop.xlane.xlu1 %5868  ;;  %v3619_v27 = vld [vmem:[#allocation3 + $0x1d48] sm:$0xff]  ;;  %v3570_v33 = vld [vmem:[#allocation3 + $0x1a38] sm:$0xff]  ;;  %vm12371_vm4 = vcmask 523712  }
 0x374   :  { %v9248_v52 = vsel %vm7655_vm8, %v9247_v24, %v9243_v41  ;;  %v5867_v53 = vpop.xlane.xlu0 %5866  ;;  %v4131_v41 = vadd.f32 %v3619_v27, %v1571_v39  ;;  %v4082_v51 = vadd.f32 %v3570_v33, %v1522_v32  ;;  %v1509_v39 = vld [vmem:[#allocation3 + $0x1960] sm:$0xff]  ;;  %v3557_v27 = vld [vmem:[#allocation3 + $0x1968] sm:$0xff]  ;;  %v1602_v32 = vld [vmem:[#allocation3 + $0x1f30] sm:$0xff] }
 0x375   :  { %v9252_v57 = vrot.slane %v7410_v10, %v10867_v25  ;;  %v9257_v58 = vrot.slane %v7411_v43, %v10870_v26  ;;  %v6489_v60 = vpack.c.bf16 %v5869_v46, %v5867_v53  ;;  %v3650_v33 = vld [vmem:[#allocation3 + $0x1f38] sm:$0xff] }
 0x376   :  { %5946 = vadd.xlane.f32.xlu1 %v4035_v34 }
 0x377   :  { %v9253_v44 = vsel %vm7662_vm9, %v9252_v57, %v9248_v52  ;;  %v7412_v45 = vunpack.c.l.b16 %v6489_v60  ;;  %v7413_v2 = vunpack.c.h.b16 %v6489_v60  ;;  %6196 = vadd.xlane.f32.xlu0 %v4160_v37  ;;  %v5873_v55 = vpop.xlane.xlu1 %5872  ;;  %v3631_v52 = vld [vmem:[#allocation3 + $0x1e08] sm:$0xff]  ;;  %v3620_v57 = vld [vmem:[#allocation3 + $0x1d58] sm:$0xff] }
 0x378   :  { %v9258_v9 = vsel %vm7669_vm10, %v9257_v58, %v9253_v44  ;;  %v5871_v12 = vpop.xlane.xlu0 %5870  ;;  %v4143_v44 = vadd.f32 %v3631_v52, %v1583_v29  ;;  %v4132_v5 = vadd.f32 %v3620_v57, %v1572_v56  ;;  %v1539_v29 = vld [vmem:[#allocation3 + $0x1b40] sm:$0xff]  ;;  %v3587_v52 = vld [vmem:[#allocation3 + $0x1b48] sm:$0xff]  ;;  %v1510_v56 = vld [vmem:[#allocation3 + $0x1970] sm:$0xff] }
 0x379   :  { %v9262_v13 = vrot.slane %v7412_v45, %v10875_v35  ;;  %v9267_v14 = vrot.slane %v7413_v2, %v10878_v36  ;;  %v6490_v17 = vpack.c.bf16 %v5873_v55, %v5871_v12  ;;  %v3558_v57 = vld [vmem:[#allocation3 + $0x1978] sm:$0xff] }
 0x37a   :  { %5978 = vadd.xlane.f32.xlu1 %v4051_v61 }
 0x37b   :  { %v9263_v11 = vsel %vm7676_vm11, %v9262_v13, %v9258_v9  ;;  %v7414_v40 = vunpack.c.l.b16 %v6490_v17  ;;  %v7415_v21 = vunpack.c.h.b16 %v6490_v17  ;;  %5948 = vadd.xlane.f32.xlu0 %v4036_v1  ;;  %v5877_v22 = vpop.xlane.xlu1 %5876  ;;  %v3649_v9 = vld [vmem:[#allocation3 + $0x1f28] sm:$0xff] }
 0x37c   :  { %v9268_v16 = vsel %vm7683_vm12, %v9267_v14, %v9263_v11  ;;  %v5875_v28 = vpop.xlane.xlu0 %5874 }
 0x37d   :  { %v9272_v24 = vrot.slane %v7414_v40, %v10883_v47  ;;  %v9277_v54 = vrot.slane %v7415_v21, %v10886_v48  ;;  %v6491_v34 = vpack.c.bf16 %v5877_v22, %v5875_v28 }
 0x37e   :  { %6038 = vadd.xlane.f32.xlu1 %v4081_v20 }
 0x37f   :  { %v9273_v10 = vsel %vm12363_vm13, %v9272_v24, %v9268_v16  ;;  %v7416_v43 = vunpack.c.l.b16 %v6491_v34  ;;  %v7417_v46 = vunpack.c.h.b16 %v6491_v34  ;;  %5980 = vadd.xlane.f32.xlu0 %v4052_v23  ;;  %v5881_v37 = vpop.xlane.xlu1 %5880  ;;  %v4144_v23 = vadd.f32 %v3632_v0, %v1584_v63 }
 0x380   :  { %v9278_v53 = vsel %vm12362_vm14, %v9277_v54, %v9273_v10  ;;  %v5879_v42 = vpop.xlane.xlu0 %5878 }
 0x381   :  { %v6492_v58 = vpack.c.bf16 %v5881_v37, %v5879_v42  ;;  %v9282_v60 = vrot.slane %v7416_v43, %v10891_v3  ;;  %v9286_v61 = vrot.slane %v7417_v46, %v10894_v4  ;;  %v11736_v45 = vsel %vm6761_vm7, %v9278_v53, %v11483_v38 }
 0x382   :  { %6138 = vadd.xlane.f32.xlu1 %v4131_v41  ;;  %v4161_v38 = vadd.f32 %v3649_v9, %v1601_v6  ;;  %v4069_v41 = vadd.f32 %v3557_v27, %v1509_v39  ;;  %v4070_v6 = vadd.f32 %v3558_v57, %v1510_v56  ;;  %v1555_v9 = vld [vmem:[#allocation3 + $0x1c40] sm:$0xff]  ;;  %v1586_v57 = vld [vmem:[#allocation3 + $0x1e30] sm:$0xff] }
 0x383   :  { %v7418_v2 = vunpack.c.l.b16 %v6492_v58  ;;  %v7419_v55 = vunpack.c.h.b16 %v6492_v58  ;;  %6040 = vadd.xlane.f32.xlu0 %v4082_v51  ;;  %v5885_v1 = vpop.xlane.xlu1 %5884  ;;  %v9287_v20 = vsel %vm6688_vm0, %v9286_v61, %v9282_v60  ;;  %v4162_v51 = vadd.f32 %v3650_v33, %v1602_v32  ;;  %v1585_v27 = vld [vmem:[#allocation3 + $0x1e20] sm:$0xff]  ;;  %v1556_v33 = vld [vmem:[#allocation3 + $0x1c50] sm:$0xff] }
 0x384   :  { %v5883_v12 = vpop.xlane.xlu0 %5882 }
 0x385   :  { %v9291_v13 = vrot.slane %v7418_v2, %v10835_v49  ;;  %v9296_v14 = vrot.slane %v7419_v55, %v10838_v50  ;;  %v6493_v17 = vpack.c.bf16 %v5885_v1, %v5883_v12  ;;  %v3603_v12 = vld [vmem:[#allocation3 + $0x1c48] sm:$0xff] }
 0x386   :  { %6162 = vadd.xlane.f32.xlu1 %v4143_v44  ;;  %v4099_v44 = vadd.f32 %v3587_v52, %v1539_v29  ;;  %v1477_v52 = vld [vmem:[#allocation3 + $0x1760] sm:$0xff] }
 0x387   :  { %v9292_v11 = vsel %vm7606_vm1, %v9291_v13, %v9287_v20  ;;  %v7420_v40 = vunpack.c.l.b16 %v6493_v17  ;;  %v7421_v21 = vunpack.c.h.b16 %v6493_v17  ;;  %6140 = vadd.xlane.f32.xlu0 %v4132_v5  ;;  %v5889_v22 = vpop.xlane.xlu1 %5888  ;;  %v1540_v13 = vld [vmem:[#allocation3 + $0x1b50] sm:$0xff] }
 0x388   :  { %v9297_v16 = vsel %vm7613_vm2, %v9296_v14, %v9292_v11  ;;  %v5887_v28 = vpop.xlane.xlu0 %5886  ;;  %v3588_v14 = vld [vmem:[#allocation3 + $0x1b58] sm:$0xff]  ;;  %v4115_v11 = vadd.f32 %v3603_v12, %v1555_v9  ;;  %v1493_v12 = vld [vmem:[#allocation3 + $0x1860] sm:$0xff] }
 0x389   :  { %v9301_v24 = vrot.slane %v7420_v40, %v10843_v59  ;;  %v9306_v54 = vrot.slane %v7421_v21, %v10846_v62  ;;  %v6494_v34 = vpack.c.bf16 %v5889_v22, %v5887_v28  ;;  %v4100_v39 = vadd.f32 %v3588_v14, %v1540_v13  ;;  %v1478_v14 = vld [vmem:[#allocation3 + $0x1770] sm:$0xff] }
 0x38a   :  { %6198 = vadd.xlane.f32.xlu1 %v4161_v38 }
 0x38b   :  { %v9302_v10 = vsel %vm7620_vm3, %v9301_v24, %v9297_v16  ;;  %v7422_v43 = vunpack.c.l.b16 %v6494_v34  ;;  %v7423_v46 = vunpack.c.h.b16 %v6494_v34  ;;  %6164 = vadd.xlane.f32.xlu0 %v4144_v23  ;;  %v5893_v37 = vpop.xlane.xlu1 %5892  ;;  %v3633_v16 = vld [vmem:[#allocation3 + $0x1e28] sm:$0xff]  ;;  %v3604_v24 = vld [vmem:[#allocation3 + $0x1c58] sm:$0xff] }
 0x38c   :  { %v9307_v53 = vsel %vm12370_vm6, %v9306_v54, %v9302_v10  ;;  %v5891_v42 = vpop.xlane.xlu0 %5890  ;;  %vm12372_vm6 = vcmask 589312   ;;  %v4145_v10 = vadd.f32 %v3633_v16, %v1585_v27  ;;  %v4116_v29 = vadd.f32 %v3604_v24, %v1556_v33  ;;  %v1523_v27 = vld [vmem:[#allocation3 + $0x1a40] sm:$0xff]  ;;  %v3571_v16 = vld [vmem:[#allocation3 + $0x1a48] sm:$0xff]  ;;  %v1494_v33 = vld [vmem:[#allocation3 + $0x1870] sm:$0xff] }
 0x38d   :  { %v9311_v58 = vrot.slane %v7422_v43, %v10851_v7  ;;  %v9316_v60 = vrot.slane %v7423_v46, %v10854_v8  ;;  %v6495_v61 = vpack.c.bf16 %v5893_v37, %v5891_v42  ;;  %v3542_v24 = vld [vmem:[#allocation3 + $0x1878] sm:$0xff] }
 0x38e   :  { %6014 = vadd.xlane.f32.xlu1 %v4069_v41 }
 0x38f   :  { %v9312_v2 = vsel %vm7634_vm5, %v9311_v58, %v9307_v53  ;;  %v7424_v55 = vunpack.c.l.b16 %v6495_v61  ;;  %v7425_v1 = vunpack.c.h.b16 %v6495_v61  ;;  %6200 = vadd.xlane.f32.xlu0 %v4162_v51  ;;  %v5897_v5 = vpop.xlane.xlu1 %5896  ;;  %v3525_v53 = vld [vmem:[#allocation3 + $0x1768] sm:$0xff]  ;;  %v3634_v58 = vld [vmem:[#allocation3 + $0x1e38] sm:$0xff] }
 0x390   :  { %v9317_v63 = vsel %vm12371_vm4, %v9316_v60, %v9312_v2  ;;  %v5895_v0 = vpop.xlane.xlu0 %5894  ;;  %v4037_v2 = vadd.f32 %v3525_v53, %v1477_v52  ;;  %v4146_v9 = vadd.f32 %v3634_v58, %v1586_v57  ;;  %v4054_v52 = vadd.f32 %v3542_v24, %v1494_v33  ;;  %v1573_v53 = vld [vmem:[#allocation3 + $0x1d60] sm:$0xff]  ;;  %v1524_v57 = vld [vmem:[#allocation3 + $0x1a50] sm:$0xff]  ;;  %v3572_v58 = vld [vmem:[#allocation3 + $0x1a58] sm:$0xff] }
 0x391   :  { %v9321_v17 = vrot.slane %v7424_v55, %v10859_v15  ;;  %v9326_v20 = vrot.slane %v7425_v1, %v10862_v18  ;;  %v6496_v38 = vpack.c.bf16 %v5897_v5, %v5895_v0  ;;  %vm12373_vm4 = vcmask 392512  }
 0x392   :  { %6074 = vadd.xlane.f32.xlu1 %v4099_v44 }
 0x393   :  { %v9322_v40 = vsel %vm12372_vm6, %v9321_v17, %v9317_v63  ;;  %v7426_v21 = vunpack.c.l.b16 %v6496_v38  ;;  %v7427_v22 = vunpack.c.h.b16 %v6496_v38  ;;  %6016 = vadd.xlane.f32.xlu0 %v4070_v6  ;;  %v5901_v23 = vpop.xlane.xlu1 %5900  ;;  %v3541_v63 = vld [vmem:[#allocation3 + $0x1868] sm:$0xff]  ;;  %v3526_v17 = vld [vmem:[#allocation3 + $0x1778] sm:$0xff]  ;;  %vm12374_vm6 = vcmask 1041409  }
 0x394   :  { %v9327_v28 = vsel %vm7655_vm8, %v9326_v20, %v9322_v40  ;;  %v5899_v32 = vpop.xlane.xlu0 %5898  ;;  %v4053_v40 = vadd.f32 %v3541_v63, %v1493_v12  ;;  %v1603_v12 = vld [vmem:[#allocation3 + $0x1f40] sm:$0xff]  ;;  %v3651_v63 = vld [vmem:[#allocation3 + $0x1f48] sm:$0xff] }
 0x395   :  { %v9331_v54 = vrot.slane %v7426_v21, %v10867_v25  ;;  %v9336_v34 = vrot.slane %v7427_v22, %v10870_v26  ;;  %v6497_v41 = vpack.c.bf16 %v5901_v23, %v5899_v32 }
 0x396   :  { %6106 = vadd.xlane.f32.xlu1 %v4115_v11 }
 0x397   :  { %v9332_v43 = vsel %vm7662_vm9, %v9331_v54, %v9327_v28  ;;  %v7428_v46 = vunpack.c.l.b16 %v6497_v41  ;;  %v7429_v37 = vunpack.c.h.b16 %v6497_v41  ;;  %6076 = vadd.xlane.f32.xlu0 %v4100_v39  ;;  %v5905_v51 = vpop.xlane.xlu1 %5904  ;;  %v4038_v39 = vadd.f32 %v3526_v17, %v1478_v14  ;;  %v1574_v14 = vld [vmem:[#allocation3 + $0x1d70] sm:$0xff]  ;;  %v3622_v17 = vld [vmem:[#allocation3 + $0x1d78] sm:$0xff] }
 0x398   :  { %v9337_v42 = vsel %vm7669_vm10, %v9336_v34, %v9332_v43  ;;  %v5903_v56 = vpop.xlane.xlu0 %5902  ;;  %v4083_v43 = vadd.f32 %v3571_v16, %v1523_v27 }
 0x399   :  { %v9341_v60 = vrot.slane %v7428_v46, %v10875_v35  ;;  %v9346_v61 = vrot.slane %v7429_v37, %v10878_v36  ;;  %v6498_v44 = vpack.c.bf16 %v5905_v51, %v5903_v56 }
 0x39a   :  { %6166 = vadd.xlane.f32.xlu1 %v4145_v10 }
 0x39b   :  { %v9342_v55 = vsel %vm7676_vm11, %v9341_v60, %v9337_v42  ;;  %v7430_v1 = vunpack.c.l.b16 %v6498_v44  ;;  %v7431_v5 = vunpack.c.h.b16 %v6498_v44  ;;  %6108 = vadd.xlane.f32.xlu0 %v4116_v29  ;;  %v5909_v6 = vpop.xlane.xlu1 %5908  ;;  %v3621_v42 = vld [vmem:[#allocation3 + $0x1d68] sm:$0xff] }
 0x39c   :  { %v9347_v0 = vsel %vm7683_vm12, %v9346_v61, %v9342_v55  ;;  %v5907_v13 = vpop.xlane.xlu0 %5906 }
 0x39d   :  { %v9351_v20 = vrot.slane %v7430_v1, %v10883_v47  ;;  %v9356_v38 = vrot.slane %v7431_v5, %v10886_v48  ;;  %v6499_v11 = vpack.c.bf16 %v5909_v6, %v5907_v13 }
 0x39e   :  { %5950 = vadd.xlane.f32.xlu1 %v4037_v2 }
 0x39f   :  { %v7432_v21 = vunpack.c.l.b16 %v6499_v11  ;;  %v7433_v22 = vunpack.c.h.b16 %v6499_v11  ;;  %6168 = vadd.xlane.f32.xlu0 %v4146_v9  ;;  %v5913_v23 = vpop.xlane.xlu1 %5912  ;;  %v9352_v28 = vsel %vm12363_vm13, %v9351_v20, %v9347_v0  ;;  %v4084_v9 = vadd.f32 %v3572_v58, %v1524_v57  ;;  %v1541_v57 = vld [vmem:[#allocation3 + $0x1b60] sm:$0xff]  ;;  %v3589_v58 = vld [vmem:[#allocation3 + $0x1b68] sm:$0xff] }
 0x3a0   :  { %v5911_v32 = vpop.xlane.xlu0 %5910  ;;  %v9357_v54 = vsel %vm12362_vm14, %v9356_v38, %v9352_v28  ;;  %v4163_v11 = vadd.f32 %v3651_v63, %v1603_v12  ;;  %v1604_v28 = vld [vmem:[#allocation3 + $0x1f50] sm:$0xff]  ;;  %vm12376_vm14 = vcmask 1043459   ;;  %vm6765_vm13 = vcmask 1047559  }
 0x3a1   :  { %v6500_v34 = vpack.c.bf16 %v5913_v23, %v5911_v32  ;;  %v9361_v41 = vrot.slane %v7432_v21, %v10891_v3  ;;  %v9365_v10 = vrot.slane %v7433_v22, %v10894_v4  ;;  %v11771_v46 = vsel %vm6761_vm7, %v9357_v54, %v11572_v31  ;;  %v1462_v23 = vld [vmem:[#allocation3 + $0x1670] sm:$0xff]  ;;  %v3652_v32 = vld [vmem:[#allocation3 + $0x1f58] sm:$0xff] }
 0x3a2   :  { %5982 = vadd.xlane.f32.xlu1 %v4053_v40  ;;  %v4133_v31 = vadd.f32 %v3621_v42, %v1573_v53  ;;  %v4134_v22 = vadd.f32 %v3622_v17, %v1574_v14  ;;  %v4164_v54 = vadd.f32 %v3652_v32, %v1604_v28  ;;  %v1542_v53 = vld [vmem:[#allocation3 + $0x1b70] sm:$0xff]  ;;  %v3590_v42 = vld [vmem:[#allocation3 + $0x1b78] sm:$0xff] }
 0x3a3   :  { %v7434_v37 = vunpack.c.l.b16 %v6500_v34  ;;  %v7435_v51 = vunpack.c.h.b16 %v6500_v34  ;;  %5952 = vadd.xlane.f32.xlu0 %v4038_v39  ;;  %v5917_v29 = vpop.xlane.xlu1 %5916  ;;  %v9366_v2 = vsel %vm6688_vm0, %v9365_v10, %v9361_v41  ;;  %v3510_v39 = vld [vmem:[#allocation3 + $0x1678] sm:$0xff]  ;;  %v1512_v34 = vld [vmem:[#allocation3 + $0x1990] sm:$0xff] }
 0x3a4   :  { %v5915_v56 = vpop.xlane.xlu0 %5914  ;;  %v4022_v33 = vadd.f32 %v3510_v39, %v1462_v23  ;;  %v3560_v41 = vld [vmem:[#allocation3 + $0x1998] sm:$0xff]  ;;  %v1588_v14 = vld [vmem:[#allocation3 + $0x1e50] sm:$0xff] }
 0x3a5   :  { %v9370_v60 = vrot.slane %v7434_v37, %v10835_v49  ;;  %v9375_v61 = vrot.slane %v7435_v51, %v10838_v50  ;;  %v6501_v44 = vpack.c.bf16 %v5917_v29, %v5915_v56  ;;  %v3559_v37 = vld [vmem:[#allocation3 + $0x1988] sm:$0xff]  ;;  %v4072_v51 = vadd.f32 %v3560_v41, %v1512_v34  ;;  %v3636_v17 = vld [vmem:[#allocation3 + $0x1e58] sm:$0xff] }
 0x3a6   :  { %6042 = vadd.xlane.f32.xlu1 %v4083_v43  ;;  %v1511_v43 = vld [vmem:[#allocation3 + $0x1980] sm:$0xff] }
 0x3a7   :  { %v9371_v55 = vsel %vm7606_vm1, %v9370_v60, %v9366_v2  ;;  %v7436_v1 = vunpack.c.l.b16 %v6501_v44  ;;  %v7437_v5 = vunpack.c.h.b16 %v6501_v44  ;;  %5984 = vadd.xlane.f32.xlu0 %v4054_v52  ;;  %v6260_v6 = vpop.xlane.xlu1 %6259  ;;  %v4071_v52 = vadd.f32 %v3559_v37, %v1511_v43  ;;  %v1558_v2 = vld [vmem:[#allocation3 + $0x1c70] sm:$0xff] }
 0x3a8   :  { %v9376_v0 = vsel %vm7613_vm2, %v9375_v61, %v9371_v55  ;;  %v11778_v13 = vpop.xlane.xlu0 %5918  ;;  %v4102_v60 = vadd.f32 %v3590_v42, %v1542_v53  ;;  %v4101_v44 = vadd.f32 %v3589_v58, %v1541_v57 }
 0x3a9   :  { %v9380_v20 = vrot.slane %v7436_v1, %v10843_v59  ;;  %v9385_v38 = vrot.slane %v7437_v5, %v10846_v62  ;;  %v1557_v1 = vld [vmem:[#allocation3 + $0x1c60] sm:$0xff]  ;;  %v3605_v5 = vld [vmem:[#allocation3 + $0x1c68] sm:$0xff] }
 0x3aa   :  { %6142 = vadd.xlane.f32.xlu1 %v4133_v31  ;;  %v3606_v31 = vld [vmem:[#allocation3 + $0x1c78] sm:$0xff] }
 0x3ab   :  { %v9381_v40 = vsel %vm7620_vm3, %v9380_v20, %v9376_v0  ;;  %6044 = vadd.xlane.f32.xlu0 %v4084_v9  ;;  %v6269_v21 = vpop.xlane.xlu1 %6268  ;;  %v4118_v12 = vadd.f32 %v3606_v31, %v1558_v2  ;;  %v4117_v0 = vadd.f32 %v3605_v5, %v1557_v1  ;;  %v1495_v5 = vld [vmem:[#allocation3 + $0x1880] sm:$0xff] }
 0x3ac   :  { %v11784_v27 = vsel %vm12373_vm4, %v9385_v38, %v9381_v40  ;;  %v6266_v16 = vpop.xlane.xlu0 %6265  ;;  %v1587_v40 = vld [vmem:[#allocation3 + $0x1e40] sm:$0xff]  ;;  %vm12375_vm4 = vcmask 1042434  }
 0x3ad   :  { %v6643_v20 = vpack.c.bf16 %v6266_v16, %v6260_v6  ;;  %v1479_v16 = vld [vmem:[#allocation3 + $0x1780] sm:$0xff] }
 0x3ae   :  { %6202 = vadd.xlane.f32.xlu1 %v4163_v11 }
 0x3af   :  { %6144 = vadd.xlane.f32.xlu0 %v4134_v22  ;;  %v6277_v24 = vpop.xlane.xlu1 %6276  ;;  %v3635_v22 = vld [vmem:[#allocation3 + $0x1e48] sm:$0xff]  ;;  %v6662_v43 = vunpack.c.h.b16 %v6643_v20 }
 0x3b0   :  { %v6274_v10 = vpop.xlane.xlu0 %6273  ;;  %v4147_v41 = vadd.f32 %v3635_v22, %v1587_v40 }
 0x3b1   :  { %v6644_v9 = vpack.c.bf16 %v6274_v10, %v6269_v21  ;;  %v3528_v21 = vld [vmem:[#allocation3 + $0x1798] sm:$0xff]  ;;  %v6661_v10 = vunpack.c.l.b16 %v6643_v20 }
 0x3b2   :  { %5920 = vadd.xlane.f32.xlu1 %v4022_v33  ;;  %v4148_v33 = vadd.f32 %v3636_v17, %v1588_v14 }
 0x3b3   :  { %6204 = vadd.xlane.f32.xlu0 %v4164_v54  ;;  %v6285_v29 = vpop.xlane.xlu1 %6284  ;;  %v6663_v39 = vunpack.c.l.b16 %v6644_v9  ;;  %v6664_v28 = vunpack.c.h.b16 %v6644_v9  ;;  %v1480_v54 = vld [vmem:[#allocation3 + $0x1790] sm:$0xff]  ;;  %v3543_v9 = vld [vmem:[#allocation3 + $0x1888] sm:$0xff] }
 0x3b4   :  { %v6282_v56 = vpop.xlane.xlu0 %6281  ;;  %v4040_v42 = vadd.f32 %v3528_v21, %v1480_v54 }
 0x3b5   :  { %v6645_v38 = vpack.c.bf16 %v6282_v56, %v6277_v24  ;;  %v3527_v24 = vld [vmem:[#allocation3 + $0x1788] sm:$0xff]  ;;  %v6693_v56 = vrot.slane %v6663_v39, %v10891_v3  ;;  %v6697_v57 = vrot.slane %v6664_v28, %v10894_v4  ;;  %v4055_v28 = vadd.f32 %v3543_v9, %v1495_v5  ;;  %v3624_v5 = vld [vmem:[#allocation3 + $0x1d98] sm:$0xff] }
 0x3b6   :  { %6020 = vadd.xlane.f32.xlu1 %v4072_v51  ;;  %v4039_v1 = vadd.f32 %v3527_v24, %v1479_v16 }
 0x3b7   :  { %6018 = vadd.xlane.f32.xlu0 %v4071_v52  ;;  %v6293_v61 = vpop.xlane.xlu1 %6292  ;;  %v6665_v37 = vunpack.c.l.b16 %v6645_v38  ;;  %v6666_v51 = vunpack.c.h.b16 %v6645_v38  ;;  %v6698_v22 = vsel %vm6688_vm0, %v6697_v57, %v6693_v56 }
 0x3b8   :  { %v6290_v55 = vpop.xlane.xlu0 %6289 }
 0x3b9   :  { %v6646_v23 = vpack.c.bf16 %v6290_v55, %v6285_v29  ;;  %v6706_v14 = vrot.slane %v6666_v51, %v10894_v4 }
 0x3ba   :  { %6080 = vadd.xlane.f32.xlu1 %v4102_v60 }
 0x3bb   :  { %6078 = vadd.xlane.f32.xlu0 %v4101_v44  ;;  %v6301_v63 = vpop.xlane.xlu1 %6300  ;;  %v6667_v52 = vunpack.c.l.b16 %v6646_v23  ;;  %v6668_v53 = vunpack.c.h.b16 %v6646_v23  ;;  %v3544_v44 = vld [vmem:[#allocation3 + $0x1898] sm:$0xff] }
 0x3bc   :  { %v6298_v11 = vpop.xlane.xlu0 %6297 }
 0x3bd   :  { %v6647_v32 = vpack.c.bf16 %v6298_v11, %v6293_v61  ;;  %v1496_v61 = vld [vmem:[#allocation3 + $0x1890] sm:$0xff]  ;;  %v6711_v20 = vrot.slane %v6667_v52, %v10891_v3  ;;  %v6715_v38 = vrot.slane %v6668_v53, %v10894_v4 }
 0x3be   :  { %6112 = vadd.xlane.f32.xlu1 %v4118_v12  ;;  %v6682_v12 = vrot.slane %v6661_v10, %v10891_v3  ;;  %v4056_v40 = vadd.f32 %v3544_v44, %v1496_v61 }
 0x3bf   :  { %6110 = vadd.xlane.f32.xlu0 %v4117_v0  ;;  %v6309_v34 = vpop.xlane.xlu1 %6308  ;;  %v6669_v58 = vunpack.c.l.b16 %v6647_v32  ;;  %v6670_v60 = vunpack.c.h.b16 %v6647_v32  ;;  %v6702_v0 = vrot.slane %v6665_v37, %v10891_v3  ;;  %v1526_v32 = vld [vmem:[#allocation3 + $0x1a70] sm:$0xff]  ;;  %v3573_v37 = vld [vmem:[#allocation3 + $0x1a68] sm:$0xff]  ;;  %v6716_v24 = vsel %vm6688_vm0, %v6715_v38, %v6711_v20 }
 0x3c0   :  { %v6306_v6 = vpop.xlane.xlu0 %6305 }
 0x3c1   :  { %v6648_v29 = vpack.c.bf16 %v6306_v6, %v6301_v63  ;;  %v6687_v63 = vrot.slane %v6662_v43, %v10894_v4  ;;  %v6720_v23 = vrot.slane %v6669_v58, %v10891_v3  ;;  %v6724_v39 = vrot.slane %v6670_v60, %v10894_v4  ;;  %v3574_v43 = vld [vmem:[#allocation3 + $0x1a78] sm:$0xff] }
 0x3c2   :  { %6172 = vadd.xlane.f32.xlu1 %v4148_v33  ;;  %v6707_v6 = vsel %vm6688_vm0, %v6706_v14, %v6702_v0  ;;  %v4086_v57 = vadd.f32 %v3574_v43, %v1526_v32  ;;  %v3623_v0 = vld [vmem:[#allocation3 + $0x1d88] sm:$0xff]  ;;  %v1606_v32 = vld [vmem:[#allocation3 + $0x1f70] sm:$0xff] }
 0x3c3   :  { %v6671_v2 = vunpack.c.l.b16 %v6648_v29  ;;  %v6672_v31 = vunpack.c.h.b16 %v6648_v29  ;;  %6170 = vadd.xlane.f32.xlu0 %v4147_v41  ;;  %v6317_v55 = vpop.xlane.xlu1 %6316  ;;  %v6689_v51 = vsel %vm6688_vm0, %v6687_v63, %v6682_v12  ;;  %v6725_v56 = vsel %vm6688_vm0, %v6724_v39, %v6720_v23  ;;  %v1575_v63 = vld [vmem:[#allocation3 + $0x1d80] sm:$0xff]  ;;  %v3653_v43 = vld [vmem:[#allocation3 + $0x1f68] sm:$0xff] }
 0x3c4   :  { %v6314_v17 = vpop.xlane.xlu0 %6313  ;;  %v4135_v23 = vadd.f32 %v3623_v0, %v1575_v63 }
 0x3c5   :  { %v6649_v11 = vpack.c.bf16 %v6314_v17, %v6309_v34  ;;  %v6729_v33 = vrot.slane %v6671_v2, %v10891_v3  ;;  %v6733_v54 = vrot.slane %v6672_v31, %v10894_v4  ;;  %v1525_v34 = vld [vmem:[#allocation3 + $0x1a60] sm:$0xff] }
 0x3c6   :  { %5956 = vadd.xlane.f32.xlu1 %v4040_v42  ;;  %v6754_v42 = vsel %vm12374_vm6, %v6698_v22, %v6689_v51  ;;  %v4085_v58 = vadd.f32 %v3573_v37, %v1525_v34  ;;  %vm6763_vm6 = vcmask 1046534  }
 0x3c7   :  { %v6673_v21 = vunpack.c.l.b16 %v6649_v11  ;;  %v6674_v41 = vunpack.c.h.b16 %v6649_v11  ;;  %5954 = vadd.xlane.f32.xlu0 %v4039_v1  ;;  %v6003_v10 = vpop.xlane.xlu1 %6002  ;;  %v6756_v60 = vsel %vm12375_vm4, %v6707_v6, %v6754_v42  ;;  %v6734_v61 = vsel %vm6688_vm0, %v6733_v54, %v6729_v33  ;;  %v1576_v1 = vld [vmem:[#allocation3 + $0x1d90] sm:$0xff]  ;;  %v3654_v33 = vld [vmem:[#allocation3 + $0x1f78] sm:$0xff] }
 0x3c8   :  { %v6322_v16 = vpop.xlane.xlu0 %6321  ;;  %v6758_v9 = vsel %vm12376_vm14, %v6716_v24, %v6756_v60  ;;  %v4136_v11 = vadd.f32 %v3624_v5, %v1576_v1  ;;  %vm6773_vm14 = vcmask 72704   ;;  %v4166_v37 = vadd.f32 %v3654_v33, %v1606_v32  ;;  %v3512_v24 = vld [vmem:[#allocation3 + $0x1698] sm:$0xff]  ;;  %v1513_v1 = vld [vmem:[#allocation3 + $0x19a0] sm:$0xff]  ;;  %v3561_v5 = vld [vmem:[#allocation3 + $0x19a8] sm:$0xff] }
 0x3c9   :  { %v6738_v52 = vrot.slane %v6673_v21, %v10891_v3  ;;  %v6742_v53 = vrot.slane %v6674_v41, %v10894_v4  ;;  %v6650_v29 = vpack.c.bf16 %v6322_v16, %v6317_v55  ;;  %v6760_v14 = vsel %vm6759_vm15, %v6725_v56, %v6758_v9  ;;  %v1605_v41 = vld [vmem:[#allocation3 + $0x1f60] sm:$0xff]  ;;  %v1464_v16 = vld [vmem:[#allocation3 + $0x1690] sm:$0xff] }
 0x3ca   :  { %5988 = vadd.xlane.f32.xlu1 %v4056_v40  ;;  %v6762_v40 = vsel %vm6761_vm7, %v6734_v61, %v6760_v14  ;;  %v4165_v6 = vadd.f32 %v3653_v43, %v1605_v41  ;;  %v1560_v43 = vld [vmem:[#allocation3 + $0x1c90] sm:$0xff]  ;;  %vm12377_vm15 = vcmask 392512  }
 0x3cb   :  { %v6675_v44 = vunpack.c.l.b16 %v6650_v29  ;;  %v6676_v2 = vunpack.c.h.b16 %v6650_v29  ;;  %5986 = vadd.xlane.f32.xlu0 %v4055_v28  ;;  %v5939_v31 = vpop.xlane.xlu1 %5938  ;;  %v6743_v55 = vsel %vm6688_vm0, %v6742_v53, %v6738_v52  ;;  %v1463_v53 = vld [vmem:[#allocation3 + $0x1680] sm:$0xff]  ;;  %v3511_v29 = vld [vmem:[#allocation3 + $0x1688] sm:$0xff]  ;;  %vm12378_vm4 = vmmov %vm12377_vm15 }
 0x3cc   :  { %v6005_v12 = vpop.xlane.xlu0 %6004  ;;  %v6764_v28 = vsel %vm6763_vm6, %v6743_v55, %v6762_v40  ;;  %v4023_v61 = vadd.f32 %v3511_v29, %v1463_v53  ;;  %v3607_v53 = vld [vmem:[#allocation3 + $0x1c88] sm:$0xff] }
 0x3cd   :  { %v6747_v17 = vrot.slane %v6675_v44, %v10891_v3  ;;  %v6751_v20 = vrot.slane %v6676_v2, %v10894_v4  ;;  %v6523_v38 = vpack.c.bf16 %v6005_v12, %v6003_v10  ;;  %v1514_v44 = vld [vmem:[#allocation3 + $0x19b0] sm:$0xff]  ;;  %v3562_v2 = vld [vmem:[#allocation3 + $0x19b8] sm:$0xff] }
 0x3ce   :  { %6048 = vadd.xlane.f32.xlu1 %v4086_v57  ;;  %v4074_v63 = vadd.f32 %v3562_v2, %v1514_v44 }
 0x3cf   :  { %6046 = vadd.xlane.f32.xlu0 %v4085_v58  ;;  %v5971_v22 = vpop.xlane.xlu1 %5970  ;;  %v6752_v39 = vsel %vm6688_vm0, %v6751_v20, %v6747_v17  ;;  %v7480_v56 = vunpack.c.l.b16 %v6523_v38  ;;  %v7481_v57 = vunpack.c.h.b16 %v6523_v38  ;;  %v4024_v58 = vadd.f32 %v3512_v24, %v1464_v16  ;;  %v1544_v38 = vld [vmem:[#allocation3 + $0x1b90] sm:$0xff] }
 0x3d0   :  { %v5941_v54 = vpop.xlane.xlu0 %5940  ;;  %v6766_v21 = vsel %vm6765_vm13, %v6752_v39, %v6764_v28  ;;  %v4073_v20 = vadd.f32 %v3561_v5, %v1513_v1  ;;  %v1590_v1 = vld [vmem:[#allocation3 + $0x1e70] sm:$0xff]  ;;  %v3638_v5 = vld [vmem:[#allocation3 + $0x1e78] sm:$0xff] }
 0x3d1   :  { %v11817_v10 = vpack.c.bf16 %v5941_v54, %v5939_v31  ;;  %v6767_v34 = vpack.c.b16 %v6766_v21, %v6766_v21  ;;  %v9598_v55 = vrot.slane %v7480_v56, %v10891_v3  ;;  %v9602_v12 = vrot.slane %v7481_v57, %v10894_v4 }
 0x3d2   :  { %6148 = vadd.xlane.f32.xlu1 %v4136_v11  ;;  %v3592_v11 = vld [vmem:[#allocation3 + $0x1b98] sm:$0xff] }
 0x3d3   :  { %6146 = vadd.xlane.f32.xlu0 %v4135_v23  ;;  %10566 = vmatmul.mubr.msk.bf16.vlgmr.msra.gmra.mrb[0].mxu0 %vm6773_vm14, %v6767_v34  ;;  %v6007_v51 = vpop.xlane.xlu1 %6006  ;;  %v3591_v23 = vld [vmem:[#allocation3 + $0x1b88] sm:$0xff]  ;;  %v9603_v33 = vsel %vm6688_vm0, %v9602_v12, %v9598_v55  ;;  %v7448_v54 = vunpack.c.l.b16 %v11817_v10  ;;  %v7449_v21 = vunpack.c.h.b16 %v11817_v10  ;;  %v4104_v41 = vadd.f32 %v3592_v11, %v1544_v38  ;;  %v3608_v34 = vld [vmem:[#allocation3 + $0x1c98] sm:$0xff]  ;;  %v1589_v55 = vld [vmem:[#allocation3 + $0x1e60] sm:$0xff] }
 0x3d4   :  { %v5973_v52 = vpop.xlane.xlu0 %5972  ;;  %v4120_v56 = vadd.f32 %v3608_v34, %v1560_v43  ;;  %v3637_v12 = vld [vmem:[#allocation3 + $0x1e68] sm:$0xff]  ;;  %v4150_v38 = vadd.f32 %v3638_v5, %v1590_v1  ;;  %vm12379_vm14 = vmmov %vm12378_vm4 }
 0x3d5   :  { %v11819_v42 = vpack.c.bf16 %v5973_v52, %v5971_v22  ;;  %v1543_v22 = vld [vmem:[#allocation3 + $0x1b80] sm:$0xff]  ;;  %v9440_v57 = vrot.slane %v7448_v54, %v10891_v3  ;;  %v9444_v10 = vrot.slane %v7449_v21, %v10894_v4  ;;  %v3529_v43 = vld [vmem:[#allocation3 + $0x17a8] sm:$0xff] }
 0x3d6   :  { %6208 = vadd.xlane.f32.xlu1 %v4166_v37  ;;  %v1559_v52 = vld [vmem:[#allocation3 + $0x1c80] sm:$0xff] }
 0x3d7   :  { %6206 = vadd.xlane.f32.xlu0 %v4165_v6  ;;  %v6131_v60 = vpop.xlane.xlu1 %6130  ;;  %v4103_v6 = vadd.f32 %v3591_v23, %v1543_v22 }
 0x3d8   :  { %v6009_v31 = vpop.xlane.xlu0 %6008 }
 0x3d9   :  { %v6524_v9 = vpack.c.bf16 %v6009_v31, %v6007_v51  ;;  %v4119_v31 = vadd.f32 %v3607_v53, %v1559_v52 }
 0x3da   :  { %5924 = vadd.xlane.f32.xlu1 %v4024_v58  ;;  %v7464_v58 = vunpack.c.l.b16 %v11819_v42 }
 0x3db   :  { %v7482_v0 = vunpack.c.l.b16 %v6524_v9  ;;  %v7483_v14 = vunpack.c.h.b16 %v6524_v9  ;;  %5922 = vadd.xlane.f32.xlu0 %v4023_v61  ;;  %v5943_v17 = vpop.xlane.xlu1 %5942 }
 0x3dc   :  { %v6133_v40 = vpop.xlane.xlu0 %6132 }
 0x3dd   :  { %v9607_v39 = vrot.slane %v7482_v0, %v10835_v49  ;;  %v9612_v28 = vrot.slane %v7483_v14, %v10838_v50  ;;  %v11825_v32 = vpack.c.bf16 %v6133_v40, %v6131_v60  ;;  %v7465_v60 = vunpack.c.h.b16 %v11819_v42 }
 0x3de   :  { %6024 = vadd.xlane.f32.xlu1 %v4074_v63  ;;  %v9519_v42 = vrot.slane %v7464_v58, %v10891_v3 }
 0x3df   :  { %v9608_v37 = vsel %vm7606_vm1, %v9607_v39, %v9603_v33  ;;  %6022 = vadd.xlane.f32.xlu0 %v4073_v20  ;;  %v5975_v51 = vpop.xlane.xlu1 %5974  ;;  %v9523_v20 = vrot.slane %v7465_v60, %v10894_v4  ;;  %v4149_v39 = vadd.f32 %v3637_v12, %v1589_v55  ;;  %v3530_v33 = vld [vmem:[#allocation3 + $0x17b8] sm:$0xff]  ;;  %v1497_v60 = vld [vmem:[#allocation3 + $0x18a0] sm:$0xff]  ;;  %v1528_v55 = vld [vmem:[#allocation3 + $0x1a90] sm:$0xff] }
 0x3e0   :  { %v11832_v16 = vsel %vm7613_vm2, %v9612_v28, %v9608_v37  ;;  %v5945_v24 = vpop.xlane.xlu0 %5944  ;;  %v1482_v28 = vld [vmem:[#allocation3 + $0x17b0] sm:$0xff]  ;;  %v3576_v12 = vld [vmem:[#allocation3 + $0x1a98] sm:$0xff] }
 0x3e1   :  { %v6508_v29 = vpack.c.bf16 %v5945_v24, %v5943_v17  ;;  %v9445_v17 = vsel %vm6688_vm0, %v9444_v10, %v9440_v57  ;;  %v4042_v24 = vadd.f32 %v3530_v33, %v1482_v28  ;;  %v3546_v57 = vld [vmem:[#allocation3 + $0x18b8] sm:$0xff]  ;;  %v1577_v33 = vld [vmem:[#allocation3 + $0x1da0] sm:$0xff] }
 0x3e2   :  { %6084 = vadd.xlane.f32.xlu1 %v4104_v41  ;;  %v1481_v41 = vld [vmem:[#allocation3 + $0x17a0] sm:$0xff] }
 0x3e3   :  { %v7450_v61 = vunpack.c.l.b16 %v6508_v29  ;;  %v7451_v44 = vunpack.c.h.b16 %v6508_v29  ;;  %6082 = vadd.xlane.f32.xlu0 %v4103_v6  ;;  %v6067_v2 = vpop.xlane.xlu1 %6066  ;;  %v9524_v6 = vsel %vm6688_vm0, %v9523_v20, %v9519_v42  ;;  %v4041_v29 = vadd.f32 %v3529_v43, %v1481_v41 }
 0x3e4   :  { %v5977_v9 = vpop.xlane.xlu0 %5976 }
 0x3e5   :  { %v9449_v63 = vrot.slane %v7450_v61, %v10835_v49  ;;  %v9454_v0 = vrot.slane %v7451_v44, %v10838_v50  ;;  %v6516_v14 = vpack.c.bf16 %v5977_v9, %v5975_v51  ;;  %v3545_v61 = vld [vmem:[#allocation3 + $0x18a8] sm:$0xff] }
 0x3e6   :  { %6116 = vadd.xlane.f32.xlu1 %v4120_v56  ;;  %v1498_v56 = vld [vmem:[#allocation3 + $0x18b0] sm:$0xff]  ;;  %v4057_v9 = vadd.f32 %v3545_v61, %v1497_v60 }
 0x3e7   :  { %v9450_v11 = vsel %vm7606_vm1, %v9449_v63, %v9445_v17  ;;  %v7466_v40 = vunpack.c.l.b16 %v6516_v14  ;;  %v7467_v22 = vunpack.c.h.b16 %v6516_v14  ;;  %6114 = vadd.xlane.f32.xlu0 %v4119_v31  ;;  %v6099_v23 = vpop.xlane.xlu1 %6098  ;;  %v7545_v31 = vunpack.c.h.b16 %v11825_v32  ;;  %v3575_v14 = vld [vmem:[#allocation3 + $0x1a88] sm:$0xff] }
 0x3e8   :  { %v11845_v54 = vsel %vm7613_vm2, %v9454_v0, %v9450_v11  ;;  %v6069_v21 = vpop.xlane.xlu0 %6068  ;;  %v4058_v1 = vadd.f32 %v3546_v57, %v1498_v56  ;;  %v1527_v0 = vld [vmem:[#allocation3 + $0x1a80] sm:$0xff]  ;;  %v1608_v57 = vld [vmem:[#allocation3 + $0x1f90] sm:$0xff] }
 0x3e9   :  { %v9528_v34 = vrot.slane %v7466_v40, %v10835_v49  ;;  %v9533_v37 = vrot.slane %v7467_v22, %v10838_v50  ;;  %v11849_v51 = vpack.c.bf16 %v6069_v21, %v6067_v2  ;;  %v7544_v2 = vunpack.c.l.b16 %v11825_v32  ;;  %v3625_v21 = vld [vmem:[#allocation3 + $0x1da8] sm:$0xff] }
 0x3ea   :  { %6176 = vadd.xlane.f32.xlu1 %v4150_v38  ;;  %v9918_v20 = vrot.slane %v7545_v31, %v10894_v4  ;;  %v4088_v38 = vadd.f32 %v3576_v12, %v1528_v55  ;;  %v4087_v22 = vadd.f32 %v3575_v14, %v1527_v0  ;;  %v4137_v56 = vadd.f32 %v3625_v21, %v1577_v33  ;;  %v3655_v31 = vld [vmem:[#allocation3 + $0x1f88] sm:$0xff]  ;;  %v1466_v0 = vld [vmem:[#allocation3 + $0x16b0] sm:$0xff]  ;;  %v3514_v14 = vld [vmem:[#allocation3 + $0x16b8] sm:$0xff] }
 0x3eb   :  { %v9529_v52 = vsel %vm7606_vm1, %v9528_v34, %v9524_v6  ;;  %6174 = vadd.xlane.f32.xlu0 %v4149_v39  ;;  %v6135_v53 = vpop.xlane.xlu1 %6134  ;;  %v9914_v42 = vrot.slane %v7544_v2, %v10891_v3  ;;  %v3626_v39 = vld [vmem:[#allocation3 + $0x1db8] sm:$0xff]  ;;  %v1607_v2 = vld [vmem:[#allocation3 + $0x1f80] sm:$0xff]  ;;  %v7512_v55 = vunpack.c.l.b16 %v11849_v51  ;;  %v7513_v12 = vunpack.c.h.b16 %v11849_v51 }
 0x3ec   :  { %v11854_v10 = vsel %vm7613_vm2, %v9533_v37, %v9529_v52  ;;  %v6101_v58 = vpop.xlane.xlu0 %6100 }
 0x3ed   :  { %v11856_v44 = vpack.c.bf16 %v6101_v58, %v6099_v23  ;;  %v1578_v23 = vld [vmem:[#allocation3 + $0x1db0] sm:$0xff]  ;;  %v9919_v37 = vsel %vm6688_vm0, %v9918_v20, %v9914_v42  ;;  %v3656_v58 = vld [vmem:[#allocation3 + $0x1f98] sm:$0xff]  ;;  %v4167_v20 = vadd.f32 %v3655_v31, %v1607_v2  ;;  %v9756_v51 = vrot.slane %v7512_v55, %v10891_v3 }
 0x3ee   :  { %5960 = vadd.xlane.f32.xlu1 %v4042_v24  ;;  %v4138_v6 = vadd.f32 %v3626_v39, %v1578_v23  ;;  %v4026_v23 = vadd.f32 %v3514_v14, %v1466_v0  ;;  %v9760_v39 = vrot.slane %v7513_v12, %v10894_v4  ;;  %v1546_v12 = vld [vmem:[#allocation3 + $0x1bb0] sm:$0xff] }
 0x3ef   :  { %5958 = vadd.xlane.f32.xlu0 %v4041_v29  ;;  %v6011_v5 = vpop.xlane.xlu1 %6010  ;;  %v7529_v33 = vunpack.c.h.b16 %v11856_v44 }
 0x3f0   :  { %v6137_v63 = vpop.xlane.xlu0 %6136 }
 0x3f1   :  { %v6556_v17 = vpack.c.bf16 %v6137_v63, %v6135_v53  ;;  %v4168_v63 = vadd.f32 %v3656_v58, %v1608_v57  ;;  %v9761_v57 = vsel %vm6688_vm0, %v9760_v39, %v9756_v51  ;;  %v9839_v58 = vrot.slane %v7529_v33, %v10894_v4  ;;  %v3610_v33 = vld [vmem:[#allocation3 + $0x1cb8] sm:$0xff] }
 0x3f2   :  { %5992 = vadd.xlane.f32.xlu1 %v4058_v1 }
 0x3f3   :  { %v7546_v11 = vunpack.c.l.b16 %v6556_v17  ;;  %v7547_v40 = vunpack.c.h.b16 %v6556_v17  ;;  %5990 = vadd.xlane.f32.xlu0 %v4057_v9  ;;  %v6035_v32 = vpop.xlane.xlu1 %6034 }
 0x3f4   :  { %v6013_v28 = vpop.xlane.xlu0 %6012 }
 0x3f5   :  { %v9923_v41 = vrot.slane %v7546_v11, %v10835_v49  ;;  %v9928_v43 = vrot.slane %v7547_v40, %v10838_v50  ;;  %v6525_v34 = vpack.c.bf16 %v6013_v28, %v6011_v5  ;;  %v1465_v40 = vld [vmem:[#allocation3 + $0x16a0] sm:$0xff]  ;;  %v7528_v28 = vunpack.c.l.b16 %v11856_v44 }
 0x3f6   :  { %6052 = vadd.xlane.f32.xlu1 %v4088_v38 }
 0x3f7   :  { %v9924_v24 = vsel %vm7606_vm1, %v9923_v41, %v9919_v37  ;;  %v7484_v52 = vunpack.c.l.b16 %v6525_v34  ;;  %v7485_v53 = vunpack.c.h.b16 %v6525_v34  ;;  %6050 = vadd.xlane.f32.xlu0 %v4087_v22  ;;  %v6071_v29 = vpop.xlane.xlu1 %6070  ;;  %v1516_v34 = vld [vmem:[#allocation3 + $0x19d0] sm:$0xff]  ;;  %v3564_v37 = vld [vmem:[#allocation3 + $0x19d8] sm:$0xff]  ;;  %v9835_v44 = vrot.slane %v7528_v28, %v10891_v3 }
 0x3f8   :  { %v11867_v60 = vsel %vm7613_vm2, %v9928_v43, %v9924_v24  ;;  %v6037_v61 = vpop.xlane.xlu0 %6036  ;;  %v1515_v24 = vld [vmem:[#allocation3 + $0x19c0] sm:$0xff]  ;;  %v1562_v28 = vld [vmem:[#allocation3 + $0x1cb0] sm:$0xff] }
 0x3f9   :  { %v9617_v1 = vrot.slane %v7484_v52, %v10843_v59  ;;  %v9622_v5 = vrot.slane %v7485_v53, %v10846_v62  ;;  %v11871_v9 = vpack.c.bf16 %v6037_v61, %v6035_v32  ;;  %v3513_v32 = vld [vmem:[#allocation3 + $0x16a8] sm:$0xff]  ;;  %v4076_v61 = vadd.f32 %v3564_v37, %v1516_v34 }
 0x3fa   :  { %6152 = vadd.xlane.f32.xlu1 %v4138_v6  ;;  %v4025_v43 = vadd.f32 %v3513_v32, %v1465_v40  ;;  %v3563_v52 = vld [vmem:[#allocation3 + $0x19c8] sm:$0xff]  ;;  %v9840_v32 = vsel %vm6688_vm0, %v9839_v58, %v9835_v44  ;;  %v1591_v44 = vld [vmem:[#allocation3 + $0x1e80] sm:$0xff] }
 0x3fb   :  { %v9618_v17 = vsel %vm7620_vm3, %v9617_v1, %v11832_v16  ;;  %6150 = vadd.xlane.f32.xlu0 %v4137_v56  ;;  %v6103_v42 = vpop.xlane.xlu1 %6102  ;;  %v4075_v55 = vadd.f32 %v3563_v52, %v1515_v24  ;;  %v3609_v34 = vld [vmem:[#allocation3 + $0x1ca8] sm:$0xff] }
 0x3fc   :  { %v11878_v38 = vsel %vm12377_vm15, %v9622_v5, %v9618_v17  ;;  %v6073_v11 = vpop.xlane.xlu0 %6072  ;;  %v1545_v17 = vld [vmem:[#allocation3 + $0x1ba0] sm:$0xff]  ;;  %v3639_v58 = vld [vmem:[#allocation3 + $0x1e88] sm:$0xff]  ;;  %vm12380_vm15 = vmmov %vm12378_vm4 }
 0x3fd   :  { %v6540_v22 = vpack.c.bf16 %v6073_v11, %v6071_v29 }
 0x3fe   :  { %6212 = vadd.xlane.f32.xlu1 %v4168_v63  ;;  %v3594_v63 = vld [vmem:[#allocation3 + $0x1bb8] sm:$0xff] }
 0x3ff   :  { %v7514_v16 = vunpack.c.l.b16 %v6540_v22  ;;  %v7515_v21 = vunpack.c.h.b16 %v6540_v22  ;;  %6210 = vadd.xlane.f32.xlu0 %v4167_v20  ;;  %v6195_v41 = vpop.xlane.xlu1 %6194  ;;  %v4106_v22 = vadd.f32 %v3594_v63, %v1546_v12 }
 0x400   :  { %v6105_v6 = vpop.xlane.xlu0 %6104 }
 0x401   :  { %v9765_v53 = vrot.slane %v7514_v16, %v10835_v49  ;;  %v9770_v29 = vrot.slane %v7515_v21, %v10838_v50  ;;  %v6548_v56 = vpack.c.bf16 %v6105_v6, %v6103_v42  ;;  %v3593_v42 = vld [vmem:[#allocation3 + $0x1ba8] sm:$0xff] }
 0x402   :  { %5928 = vadd.xlane.f32.xlu1 %v4026_v23  ;;  %v4105_v39 = vadd.f32 %v3593_v42, %v1545_v17  ;;  %v4151_v42 = vadd.f32 %v3639_v58, %v1591_v44 }
 0x403   :  { %v9766_v2 = vsel %vm7606_vm1, %v9765_v53, %v9761_v57  ;;  %v7530_v31 = vunpack.c.l.b16 %v6548_v56  ;;  %v7531_v1 = vunpack.c.h.b16 %v6548_v56  ;;  %5926 = vadd.xlane.f32.xlu0 %v4025_v43  ;;  %v5947_v5 = vpop.xlane.xlu1 %5946  ;;  %v1561_v43 = vld [vmem:[#allocation3 + $0x1ca0] sm:$0xff]  ;;  %v3640_v56 = vld [vmem:[#allocation3 + $0x1e98] sm:$0xff] }
 0x404   :  { %v11891_v0 = vsel %vm7613_vm2, %v9770_v29, %v9766_v2  ;;  %v6197_v14 = vpop.xlane.xlu0 %6196  ;;  %v4121_v53 = vadd.f32 %v3609_v34, %v1561_v43  ;;  %v1592_v29 = vld [vmem:[#allocation3 + $0x1e90] sm:$0xff] }
 0x405   :  { %v9844_v20 = vrot.slane %v7530_v31, %v10835_v49  ;;  %v9849_v11 = vrot.slane %v7531_v1, %v10838_v50  ;;  %v11895_v40 = vpack.c.bf16 %v6197_v14, %v6195_v41  ;;  %v4122_v41 = vadd.f32 %v3610_v33, %v1562_v28 }
 0x406   :  { %6028 = vadd.xlane.f32.xlu1 %v4076_v61  ;;  %v7496_v1 = vunpack.c.l.b16 %v11871_v9 }
 0x407   :  { %v9845_v23 = vsel %vm7606_vm1, %v9844_v20, %v9840_v32  ;;  %6026 = vadd.xlane.f32.xlu0 %v4075_v55  ;;  %v5979_v51 = vpop.xlane.xlu1 %5978  ;;  %v4152_v55 = vadd.f32 %v3640_v56, %v1592_v29  ;;  %v1484_v20 = vld [vmem:[#allocation3 + $0x17d0] sm:$0xff]  ;;  %v1499_v56 = vld [vmem:[#allocation3 + $0x18c0] sm:$0xff] }
 0x408   :  { %v11900_v16 = vsel %vm7613_vm2, %v9849_v11, %v9845_v23  ;;  %v5949_v21 = vpop.xlane.xlu0 %5948  ;;  %v3532_v11 = vld [vmem:[#allocation3 + $0x17d8] sm:$0xff]  ;;  %v1483_v23 = vld [vmem:[#allocation3 + $0x17c0] sm:$0xff] }
 0x409   :  { %v6509_v37 = vpack.c.bf16 %v5949_v21, %v5947_v5  ;;  %v7497_v5 = vunpack.c.h.b16 %v11871_v9  ;;  %v4044_v21 = vadd.f32 %v3532_v11, %v1484_v20  ;;  %v1529_v11 = vld [vmem:[#allocation3 + $0x1aa0] sm:$0xff] }
 0x40a   :  { %6088 = vadd.xlane.f32.xlu1 %v4106_v22 }
 0x40b   :  { %v7452_v6 = vunpack.c.l.b16 %v6509_v37  ;;  %v7453_v24 = vunpack.c.h.b16 %v6509_v37  ;;  %6086 = vadd.xlane.f32.xlu0 %v4105_v39  ;;  %v6039_v52 = vpop.xlane.xlu1 %6038  ;;  %v9681_v33 = vrot.slane %v7497_v5, %v10894_v4 }
 0x40c   :  { %v5981_v57 = vpop.xlane.xlu0 %5980 }
 0x40d   :  { %v9459_v61 = vrot.slane %v7452_v6, %v10843_v59  ;;  %v9464_v2 = vrot.slane %v7453_v24, %v10846_v62  ;;  %v6517_v31 = vpack.c.bf16 %v5981_v57, %v5979_v51  ;;  %v3531_v51 = vld [vmem:[#allocation3 + $0x17c8] sm:$0xff]  ;;  %v1500_v24 = vld [vmem:[#allocation3 + $0x18d0] sm:$0xff] }
 0x40e   :  { %6120 = vadd.xlane.f32.xlu1 %v4122_v41  ;;  %v4043_v6 = vadd.f32 %v3531_v51, %v1483_v23  ;;  %v3547_v57 = vld [vmem:[#allocation3 + $0x18c8] sm:$0xff] }
 0x40f   :  { %v9460_v12 = vsel %vm7620_vm3, %v9459_v61, %v11845_v54  ;;  %v7468_v63 = vunpack.c.l.b16 %v6517_v31  ;;  %v7469_v14 = vunpack.c.h.b16 %v6517_v31  ;;  %6118 = vadd.xlane.f32.xlu0 %v4121_v53  ;;  %v6139_v17 = vpop.xlane.xlu1 %6138  ;;  %v9677_v54 = vrot.slane %v7496_v1, %v10891_v3  ;;  %v3548_v53 = vld [vmem:[#allocation3 + $0x18d8] sm:$0xff] }
 0x410   :  { %v11909_v32 = vsel %vm12378_vm4, %v9464_v2, %v9460_v12  ;;  %v6041_v22 = vpop.xlane.xlu0 %6040  ;;  %v4060_v2 = vadd.f32 %v3548_v53, %v1500_v24  ;;  %v4059_v12 = vadd.f32 %v3547_v57, %v1499_v56  ;;  %v3627_v24 = vld [vmem:[#allocation3 + $0x1dc8] sm:$0xff]  ;;  %vm12381_vm4 = vcmask 523712  }
 0x411   :  { %v9538_v9 = vrot.slane %v7468_v63, %v10843_v59  ;;  %v9543_v39 = vrot.slane %v7469_v14, %v10846_v62  ;;  %v6532_v28 = vpack.c.bf16 %v6041_v22, %v6039_v52  ;;  %v1530_v63 = vld [vmem:[#allocation3 + $0x1ab0] sm:$0xff]  ;;  %v3578_v14 = vld [vmem:[#allocation3 + $0x1ab8] sm:$0xff]  ;;  %v3577_v22 = vld [vmem:[#allocation3 + $0x1aa8] sm:$0xff] }
 0x412   :  { %6180 = vadd.xlane.f32.xlu1 %v4152_v55 }
 0x413   :  { %v9539_v43 = vsel %vm7620_vm3, %v9538_v9, %v11854_v10  ;;  %v7498_v34 = vunpack.c.l.b16 %v6532_v28  ;;  %v7499_v37 = vunpack.c.h.b16 %v6532_v28  ;;  %6178 = vadd.xlane.f32.xlu0 %v4151_v42  ;;  %v6163_v41 = vpop.xlane.xlu1 %6162  ;;  %v9682_v10 = vsel %vm6688_vm0, %v9681_v33, %v9677_v54 }
 0x414   :  { %v11918_v29 = vsel %vm12379_vm14, %v9543_v39, %v9539_v43  ;;  %v6141_v52 = vpop.xlane.xlu0 %6140  ;;  %v7576_v9 = vunpack.c.l.b16 %v11895_v40  ;;  %v7577_v39 = vunpack.c.h.b16 %v11895_v40  ;;  %v4090_v28 = vadd.f32 %v3578_v14, %v1530_v63  ;;  %v1580_v43 = vld [vmem:[#allocation3 + $0x1dd0] sm:$0xff] }
 0x415   :  { %v9686_v44 = vrot.slane %v7498_v34, %v10835_v49  ;;  %v9691_v58 = vrot.slane %v7499_v37, %v10838_v50  ;;  %v6557_v61 = vpack.c.bf16 %v6141_v52, %v6139_v17  ;;  %v3628_v34 = vld [vmem:[#allocation3 + $0x1dd8] sm:$0xff] }
 0x416   :  { %5964 = vadd.xlane.f32.xlu1 %v4044_v21  ;;  %v4089_v21 = vadd.f32 %v3577_v22, %v1529_v11  ;;  %v10072_v52 = vrot.slane %v7576_v9, %v10891_v3  ;;  %v10076_v40 = vrot.slane %v7577_v39, %v10894_v4  ;;  %v4140_v56 = vadd.f32 %v3628_v34, %v1580_v43  ;;  %v1468_v9 = vld [vmem:[#allocation3 + $0x16d0] sm:$0xff]  ;;  %v3516_v39 = vld [vmem:[#allocation3 + $0x16d8] sm:$0xff]  ;;  %v3515_v43 = vld [vmem:[#allocation3 + $0x16c8] sm:$0xff] }
 0x417   :  { %v9687_v31 = vsel %vm7606_vm1, %v9686_v44, %v9682_v10  ;;  %v7548_v1 = vunpack.c.l.b16 %v6557_v61  ;;  %v7549_v5 = vunpack.c.h.b16 %v6557_v61  ;;  %5962 = vadd.xlane.f32.xlu0 %v4043_v6  ;;  %v6199_v55 = vpop.xlane.xlu1 %6198  ;;  %v1610_v61 = vld [vmem:[#allocation3 + $0x1fb0] sm:$0xff]  ;;  %v3658_v10 = vld [vmem:[#allocation3 + $0x1fb8] sm:$0xff] }
 0x418   :  { %v11925_v42 = vsel %vm7613_vm2, %v9691_v58, %v9687_v31  ;;  %v6165_v20 = vpop.xlane.xlu0 %6164  ;;  %v1609_v31 = vld [vmem:[#allocation3 + $0x1fa0] sm:$0xff]  ;;  %v10077_v63 = vsel %vm6688_vm0, %v10076_v40, %v10072_v52  ;;  %v4170_v14 = vadd.f32 %v3658_v10, %v1610_v61 }
 0x419   :  { %v9933_v17 = vrot.slane %v7548_v1, %v10843_v59  ;;  %v9938_v23 = vrot.slane %v7549_v5, %v10846_v62  ;;  %v11929_v51 = vpack.c.bf16 %v6165_v20, %v6163_v41  ;;  %v1579_v41 = vld [vmem:[#allocation3 + $0x1dc0] sm:$0xff]  ;;  %v3657_v1 = vld [vmem:[#allocation3 + $0x1fa8] sm:$0xff] }
 0x41a   :  { %5996 = vadd.xlane.f32.xlu1 %v4060_v2  ;;  %v4139_v58 = vadd.f32 %v3627_v24, %v1579_v41  ;;  %v4028_v41 = vadd.f32 %v3516_v39, %v1468_v9  ;;  %v1517_v10 = vld [vmem:[#allocation3 + $0x19e0] sm:$0xff] }
 0x41b   :  { %v9934_v54 = vsel %vm7620_vm3, %v9933_v17, %v11867_v60  ;;  %5994 = vadd.xlane.f32.xlu0 %v4059_v12  ;;  %v6015_v33 = vpop.xlane.xlu1 %6014  ;;  %v1547_v39 = vld [vmem:[#allocation3 + $0x1bc0] sm:$0xff] }
 0x41c   :  { %v11936_v37 = vsel %vm12380_vm15, %v9938_v23, %v9934_v54  ;;  %v6201_v6 = vpop.xlane.xlu0 %6200  ;;  %v4169_v23 = vadd.f32 %v3657_v1, %v1609_v31  ;;  %vm12382_vm15 = vmmov %vm12379_vm14 }
 0x41d   :  { %v6572_v53 = vpack.c.bf16 %v6201_v6, %v6199_v55 }
 0x41e   :  { %6056 = vadd.xlane.f32.xlu1 %v4090_v28 }
 0x41f   :  { %v7578_v57 = vunpack.c.l.b16 %v6572_v53  ;;  %v7579_v60 = vunpack.c.h.b16 %v6572_v53  ;;  %6054 = vadd.xlane.f32.xlu0 %v4089_v21  ;;  %v6075_v44 = vpop.xlane.xlu1 %6074  ;;  %v1467_v21 = vld [vmem:[#allocation3 + $0x16c0] sm:$0xff] }
 0x420   :  { %v6017_v2 = vpop.xlane.xlu0 %6016 }
 0x421   :  { %v10081_v5 = vrot.slane %v7578_v57, %v10835_v49  ;;  %v10086_v55 = vrot.slane %v7579_v60, %v10838_v50  ;;  %v6526_v12 = vpack.c.bf16 %v6017_v2, %v6015_v33  ;;  %v1518_v57 = vld [vmem:[#allocation3 + $0x19f0] sm:$0xff]  ;;  %v3566_v60 = vld [vmem:[#allocation3 + $0x19f8] sm:$0xff]  ;;  %v3565_v2 = vld [vmem:[#allocation3 + $0x19e8] sm:$0xff] }
 0x422   :  { %6156 = vadd.xlane.f32.xlu1 %v4140_v56  ;;  %v4027_v56 = vadd.f32 %v3515_v43, %v1467_v21 }
 0x423   :  { %v10082_v20 = vsel %vm7606_vm1, %v10081_v5, %v10077_v63  ;;  %v7486_v11 = vunpack.c.l.b16 %v6526_v12  ;;  %v7487_v22 = vunpack.c.h.b16 %v6526_v12  ;;  %6154 = vadd.xlane.f32.xlu0 %v4139_v58  ;;  %v6107_v17 = vpop.xlane.xlu1 %6106  ;;  %v7561_v5 = vunpack.c.h.b16 %v11929_v51 }
 0x424   :  { %v11945_v28 = vsel %vm7613_vm2, %v10086_v55, %v10082_v20  ;;  %v6077_v54 = vpop.xlane.xlu0 %6076  ;;  %v4078_v55 = vadd.f32 %v3566_v60, %v1518_v57  ;;  %v3612_v57 = vld [vmem:[#allocation3 + $0x1cd8] sm:$0xff] }
 0x425   :  { %v9627_v33 = vrot.slane %v7486_v11, %v10851_v7  ;;  %v9632_v34 = vrot.slane %v7487_v22, %v10854_v8  ;;  %v6541_v6 = vpack.c.bf16 %v6077_v54, %v6075_v44  ;;  %v4077_v11 = vadd.f32 %v3565_v2, %v1517_v10  ;;  %v1548_v22 = vld [vmem:[#allocation3 + $0x1bd0] sm:$0xff]  ;;  %v3595_v54 = vld [vmem:[#allocation3 + $0x1bc8] sm:$0xff] }
 0x426   :  { %6216 = vadd.xlane.f32.xlu1 %v4170_v14 }
 0x427   :  { %v9628_v24 = vsel %vm7634_vm5, %v9627_v33, %v11878_v38  ;;  %v7516_v53 = vunpack.c.l.b16 %v6541_v6  ;;  %v7517_v52 = vunpack.c.h.b16 %v6541_v6  ;;  %6214 = vadd.xlane.f32.xlu0 %v4169_v23  ;;  %v6167_v40 = vpop.xlane.xlu1 %6166  ;;  %v7560_v38 = vunpack.c.l.b16 %v11929_v51  ;;  %v3596_v23 = vld [vmem:[#allocation3 + $0x1bd8] sm:$0xff] }
 0x428   :  { %v11952_v58 = vsel %vm12381_vm4, %v9632_v34, %v9628_v24  ;;  %v6109_v61 = vpop.xlane.xlu0 %6108  ;;  %v9997_v33 = vrot.slane %v7561_v5, %v10894_v4  ;;  %v4108_v34 = vadd.f32 %v3596_v23, %v1548_v22 }
 0x429   :  { %v9775_v44 = vrot.slane %v7516_v53, %v10843_v59  ;;  %v9780_v31 = vrot.slane %v7517_v52, %v10846_v62  ;;  %v6549_v1 = vpack.c.bf16 %v6109_v61, %v6107_v17  ;;  %v4107_v52 = vadd.f32 %v3595_v54, %v1547_v39  ;;  %v1563_v61 = vld [vmem:[#allocation3 + $0x1cc0] sm:$0xff] }
 0x42a   :  { %5932 = vadd.xlane.f32.xlu1 %v4028_v41 }
 0x42b   :  { %v9776_v12 = vsel %vm7620_vm3, %v9775_v44, %v11891_v0  ;;  %v7532_v63 = vunpack.c.l.b16 %v6549_v1  ;;  %v7533_v14 = vunpack.c.h.b16 %v6549_v1  ;;  %5930 = vadd.xlane.f32.xlu0 %v4027_v56  ;;  %v5951_v20 = vpop.xlane.xlu1 %5950  ;;  %v9993_v0 = vrot.slane %v7560_v38, %v10891_v3  ;;  %v1564_v56 = vld [vmem:[#allocation3 + $0x1cd0] sm:$0xff]  ;;  %v3611_v3 = vld [vmem:[#allocation3 + $0x1cc8] sm:$0xff] }
 0x42c   :  { %v11961_v9 = vsel %vm12379_vm14, %v9780_v31, %v9776_v12  ;;  %v6169_v17 = vpop.xlane.xlu0 %6168  ;;  %v4124_v44 = vadd.f32 %v3612_v57, %v1564_v56  ;;  %v1594_v12 = vld [vmem:[#allocation3 + $0x1eb0] sm:$0xff] }
 0x42d   :  { %v9854_v51 = vrot.slane %v7532_v63, %v10843_v59  ;;  %v9859_v21 = vrot.slane %v7533_v14, %v10846_v62  ;;  %v6564_v43 = vpack.c.bf16 %v6169_v17, %v6167_v40  ;;  %v3642_v63 = vld [vmem:[#allocation3 + $0x1eb8] sm:$0xff] }
 0x42e   :  { %6032 = vadd.xlane.f32.xlu1 %v4078_v55  ;;  %v4123_v55 = vadd.f32 %v3611_v3, %v1563_v61  ;;  %v4154_v17 = vadd.f32 %v3642_v63, %v1594_v12 }
 0x42f   :  { %v9855_v6 = vsel %vm7620_vm3, %v9854_v51, %v11900_v16  ;;  %v7562_v41 = vunpack.c.l.b16 %v6564_v43  ;;  %v7563_v24 = vunpack.c.h.b16 %v6564_v43  ;;  %6030 = vadd.xlane.f32.xlu0 %v4077_v11  ;;  %v5983_v53 = vpop.xlane.xlu1 %5982  ;;  %v9998_v16 = vsel %vm6688_vm0, %v9997_v33, %v9993_v0  ;;  %v1593_v11 = vld [vmem:[#allocation3 + $0x1ea0] sm:$0xff]  ;;  %v1486_v0 = vld [vmem:[#allocation3 + $0x17f0] sm:$0xff]  ;;  %v3534_v33 = vld [vmem:[#allocation3 + $0x17f8] sm:$0xff] }
 0x430   :  { %v11970_v60 = vsel %vm12382_vm15, %v9859_v21, %v9855_v6  ;;  %v5953_v40 = vpop.xlane.xlu0 %5952  ;;  %vm12383_vm0 = vmmov %vm12381_vm4 }
 0x431   :  { %v10002_v4 = vrot.slane %v7562_v41, %v10835_v49  ;;  %v10007_v10 = vrot.slane %v7563_v24, %v10838_v50  ;;  %v6510_v2 = vpack.c.bf16 %v5953_v40, %v5951_v20  ;;  %v3641_v50 = vld [vmem:[#allocation3 + $0x1ea8] sm:$0xff]  ;;  %v1485_v41 = vld [vmem:[#allocation3 + $0x17e0] sm:$0xff]  ;;  %vm12386_vm4 = vmmov %vm12383_vm0 }
 0x432   :  { %6092 = vadd.xlane.f32.xlu1 %v4108_v34  ;;  %v4153_v43 = vadd.f32 %v3641_v50, %v1593_v11  ;;  %v3533_v24 = vld [vmem:[#allocation3 + $0x17e8] sm:$0xff] }
 0x433   :  { %v10003_v31 = vsel %vm7606_vm1, %v10002_v4, %v9998_v16  ;;  %v7454_v1 = vunpack.c.l.b16 %v6510_v2  ;;  %v7455_v38 = vunpack.c.h.b16 %v6510_v2  ;;  %6090 = vadd.xlane.f32.xlu0 %v4107_v52  ;;  %v6043_v5 = vpop.xlane.xlu1 %6042  ;;  %v4045_v4 = vadd.f32 %v3533_v24, %v1485_v41  ;;  %v3550_v2 = vld [vmem:[#allocation3 + $0x18f8] sm:$0xff]  ;;  %vm12384_vm1 = vmmov %vm12383_vm0  ;;  %v1582_v41 = vld [vmem:[#allocation3 + $0x1df0] sm:$0xff] }
 0x434   :  { %v11977_v14 = vsel %vm7613_vm2, %v10007_v10, %v10003_v31  ;;  %v5985_v49 = vpop.xlane.xlu0 %5984  ;;  %v1502_v10 = vld [vmem:[#allocation3 + $0x18f0] sm:$0xff]  ;;  %v1501_v31 = vld [vmem:[#allocation3 + $0x18e0] sm:$0xff]  ;;  %vm12385_vm2 = vmmov %vm12379_vm14 }
 0x435   :  { %v9469_v20 = vrot.slane %v7454_v1, %v10851_v7  ;;  %v9474_v22 = vrot.slane %v7455_v38, %v10854_v8  ;;  %v6518_v23 = vpack.c.bf16 %v5985_v49, %v5983_v53  ;;  %v3549_v1 = vld [vmem:[#allocation3 + $0x18e8] sm:$0xff]  ;;  %vm12387_vm14 = vmmov %vm12383_vm0 }
 0x436   :  { %6124 = vadd.xlane.f32.xlu1 %v4124_v44  ;;  %v4061_v50 = vadd.f32 %v3549_v1, %v1501_v31  ;;  %vm12388_vm15 = vmmov %vm12385_vm2 }
 0x437   :  { %v9470_v39 = vsel %vm7634_vm5, %v9469_v20, %v11909_v32  ;;  %v7470_v54 = vunpack.c.l.b16 %v6518_v23  ;;  %v7471_v51 = vunpack.c.h.b16 %v6518_v23  ;;  %6122 = vadd.xlane.f32.xlu0 %v4123_v55  ;;  %v6143_v21 = vpop.xlane.xlu1 %6142  ;;  %v4046_v32 = vadd.f32 %v3534_v33, %v1486_v0  ;;  %v1532_v20 = vld [vmem:[#allocation3 + $0x1ad0] sm:$0xff] }
 0x438   :  { %v11984_v34 = vsel %vm12383_vm0, %v9474_v22, %v9470_v39  ;;  %v6045_v6 = vpop.xlane.xlu0 %6044  ;;  %v3580_v22 = vld [vmem:[#allocation3 + $0x1ad8] sm:$0xff]  ;;  %vm12389_vm0 = vcmask 589312  }
 0x439   :  { %v9548_v53 = vrot.slane %v7470_v54, %v10851_v7  ;;  %v9553_v52 = vrot.slane %v7471_v51, %v10854_v8  ;;  %v6533_v56 = vpack.c.bf16 %v6045_v6, %v6043_v5  ;;  %v1531_v54 = vld [vmem:[#allocation3 + $0x1ac0] sm:$0xff]  ;;  %v3579_v51 = vld [vmem:[#allocation3 + $0x1ac8] sm:$0xff]  ;;  %v4092_v6 = vadd.f32 %v3580_v22, %v1532_v20 }
 0x43a   :  { %6184 = vadd.xlane.f32.xlu1 %v4154_v17  ;;  %v3659_v22 = vld [vmem:[#allocation3 + $0x1fc8] sm:$0xff] }
 0x43b   :  { %v9549_v57 = vsel %vm7634_vm5, %v9548_v53, %v11918_v29  ;;  %v7500_v40 = vunpack.c.l.b16 %v6533_v56  ;;  %v7501_v61 = vunpack.c.h.b16 %v6533_v56  ;;  %6182 = vadd.xlane.f32.xlu0 %v4153_v43  ;;  %v6203_v3 = vpop.xlane.xlu1 %6202  ;;  %v4062_v29 = vadd.f32 %v3550_v2, %v1502_v10 }
 0x43c   :  { %v11991_v16 = vsel %vm12384_vm1, %v9553_v52, %v9549_v57  ;;  %v6145_v44 = vpop.xlane.xlu0 %6144  ;;  %v4091_v56 = vadd.f32 %v3579_v51, %v1531_v54  ;;  %v1581_v57 = vld [vmem:[#allocation3 + $0x1de0] sm:$0xff] }
 0x43d   :  { %v9696_v38 = vrot.slane %v7500_v40, %v10843_v59  ;;  %v9701_v5 = vrot.slane %v7501_v61, %v10846_v62  ;;  %v6558_v55 = vpack.c.bf16 %v6145_v44, %v6143_v21  ;;  %v3629_v40 = vld [vmem:[#allocation3 + $0x1de8] sm:$0xff] }
 0x43e   :  { %5968 = vadd.xlane.f32.xlu1 %v4046_v32  ;;  %v3630_v32 = vld [vmem:[#allocation3 + $0x1df8] sm:$0xff] }
 0x43f   :  { %v9697_v12 = vsel %vm7620_vm3, %v9696_v38, %v11925_v42  ;;  %v7550_v63 = vunpack.c.l.b16 %v6558_v55  ;;  %v7551_v49 = vunpack.c.h.b16 %v6558_v55  ;;  %5966 = vadd.xlane.f32.xlu0 %v4045_v4  ;;  %v5921_v11 = vpop.xlane.xlu1 %5920  ;;  %v4142_v1 = vadd.f32 %v3630_v32, %v1582_v41 }
 0x440   :  { %v11998_v23 = vsel %vm12385_vm2, %v9701_v5, %v9697_v12  ;;  %v6502_v17 = vpack.c.bf16 %v5921_v11, %v11778_v13  ;;  %v6205_v39 = vpop.xlane.xlu0 %6204  ;;  %v4141_v38 = vadd.f32 %v3629_v40, %v1581_v57  ;;  %v3660_v11 = vld [vmem:[#allocation3 + $0x1fd8] sm:$0xff]  ;;  %vm12390_vm2 = vmmov %vm12384_vm1 }
 0x441   :  { %v9943_v21 = vrot.slane %v7550_v63, %v10851_v7  ;;  %v9948_v43 = vrot.slane %v7551_v49, %v10854_v8  ;;  %v6573_v42 = vpack.c.bf16 %v6205_v39, %v6203_v3  ;;  %v1612_v49 = vld [vmem:[#allocation3 + $0x1fd0] sm:$0xff] }
 0x442   :  { %v7438_v0 = vunpack.c.l.b16 %v6502_v17  ;;  %v7439_v33 = vunpack.c.h.b16 %v6502_v17  ;;  %6000 = vadd.xlane.f32.xlu1 %v4062_v29  ;;  %v4172_v51 = vadd.f32 %v3660_v11, %v1612_v49 }
 0x443   :  { %v9944_v24 = vsel %vm7634_vm5, %v9943_v21, %v11936_v37  ;;  %v7580_v53 = vunpack.c.l.b16 %v6573_v42  ;;  %v7581_v52 = vunpack.c.h.b16 %v6573_v42  ;;  %5998 = vadd.xlane.f32.xlu0 %v4061_v50  ;;  %v6021_v13 = vpop.xlane.xlu1 %6020 }
 0x444   :  { %v12006_v61 = vsel %vm12386_vm4, %v9948_v43, %v9944_v24  ;;  %v9390_v3 = vrot.slane %v7438_v0, %v10851_v7  ;;  %v9395_v4 = vrot.slane %v7439_v33, %v10854_v8  ;;  %v6019_v10 = vpop.xlane.xlu0 %6018  ;;  %v1470_v33 = vld [vmem:[#allocation3 + $0x16f0] sm:$0xff]  ;;  %vm12391_vm4 = vmmov %vm12388_vm15 }
 0x445   :  { %v10091_v2 = vrot.slane %v7580_v53, %v10843_v59  ;;  %v10096_v37 = vrot.slane %v7581_v52, %v10846_v62  ;;  %v6527_v44 = vpack.c.bf16 %v6021_v13, %v6019_v10  ;;  %v1469_v53 = vld [vmem:[#allocation3 + $0x16e0] sm:$0xff]  ;;  %v3517_v52 = vld [vmem:[#allocation3 + $0x16e8] sm:$0xff] }
 0x446   :  { %v9391_v31 = vsel %vm7634_vm5, %v9390_v3, %v11784_v27  ;;  %6060 = vadd.xlane.f32.xlu1 %v4092_v6  ;;  %v1611_v27 = vld [vmem:[#allocation3 + $0x1fc0] sm:$0xff]  ;;  %v3518_v6 = vld [vmem:[#allocation3 + $0x16f8] sm:$0xff]  ;;  %v4029_v10 = vadd.f32 %v3517_v52, %v1469_v53 }
 0x447   :  { %v12015_v5 = vsel %vm12387_vm14, %v9395_v4, %v9391_v31  ;;  %v10092_v55 = vsel %vm7620_vm3, %v10091_v2, %v11945_v28  ;;  %v7488_v29 = vunpack.c.l.b16 %v6527_v44  ;;  %v7489_v12 = vunpack.c.h.b16 %v6527_v44  ;;  %6058 = vadd.xlane.f32.xlu0 %v4091_v56  ;;  %v6081_v63 = vpop.xlane.xlu1 %6080  ;;  %v1550_v2 = vld [vmem:[#allocation3 + $0x1bf0] sm:$0xff]  ;;  %vm12393_vm14 = vmmov %vm12389_vm0 }
 0x448   :  { %v12020_v50 = vsel %vm12388_vm15, %v10096_v37, %v10092_v55  ;;  %v6079_v20 = vpop.xlane.xlu0 %6078  ;;  %v4171_v0 = vadd.f32 %v3659_v22, %v1611_v27  ;;  %v3598_v37 = vld [vmem:[#allocation3 + $0x1bf8] sm:$0xff]  ;;  %vm12394_vm15 = vmmov %vm12384_vm1 }
 0x449   :  { %v9637_v17 = vrot.slane %v7488_v29, %v10859_v15  ;;  %v9642_v39 = vrot.slane %v7489_v12, %v10862_v18  ;;  %v6542_v54 = vpack.c.bf16 %v6081_v63, %v6079_v20  ;;  %v10582_v63 = vld [vmem:[#allocation6 + $0x40] sm:$0xff]  }
 0x44a   :  { %6160 = vadd.xlane.f32.xlu1 %v4142_v1  ;;  %v1549_v1 = vld [vmem:[#allocation3 + $0x1be0] sm:$0xff]  ;;  %10519 = vmatprep.subr.bf16.mxu1 %v10582_v63  ;;  %v10587_v63 = vld [vmem:[#allocation6 + $0x10] sm:$0xff]  }
 0x44b   :  { %v9638_v28 = vsel %vm12389_vm0, %v9637_v17, %v11952_v58  ;;  %v7518_v21 = vunpack.c.l.b16 %v6542_v54  ;;  %v7519_v43 = vunpack.c.h.b16 %v6542_v54  ;;  %6158 = vadd.xlane.f32.xlu0 %v4141_v38  ;;  %v6113_v42 = vpop.xlane.xlu1 %6112  ;;  %v4030_v58 = vadd.f32 %v3518_v6, %v1470_v33  ;;  %v3597_v38 = vld [vmem:[#allocation3 + $0x1be8] sm:$0xff]  ;;  %v1566_v17 = vld [vmem:[#allocation3 + $0x1cf0] sm:$0xff]  ;;  %v10583_v54 = vld [vmem:[#allocation6] sm:$0xff]  }
 0x44c   :  { %v12027_v41 = vsel %vm7655_vm8, %v9642_v39, %v9638_v28  ;;  %v6111_v24 = vpop.xlane.xlu0 %6110  ;;  %v4109_v22 = vadd.f32 %v3597_v38, %v1549_v1  ;;  %v3614_v39 = vld [vmem:[#allocation3 + $0x1cf8] sm:$0xff]  ;;  %10520 = vmatpush3.bf16.msra.mxu1 %v10583_v54  ;;  %v10584_v6 = vld [vmem:[#allocation6 + $0x48] sm:$0xff]  }
 0x44d   :  { %v9785_v13 = vrot.slane %v7518_v21, %v10851_v7  ;;  %v9790_v56 = vrot.slane %v7519_v43, %v10854_v8  ;;  %v6550_v32 = vpack.c.bf16 %v6113_v42, %v6111_v24  ;;  %v1565_v21 = vld [vmem:[#allocation3 + $0x1ce0] sm:$0xff]  ;;  %v3613_v43 = vld [vmem:[#allocation3 + $0x1ce8] sm:$0xff]  ;;  %v4126_v33 = vadd.f32 %v3614_v39, %v1566_v17  ;;  %10521 = vmatprep.subr.bf16.mxu1 %v10584_v6  ;;  %v10588_v54 = vld [vmem:[#allocation6 + $0x58] sm:$0xff]  }
 0x44e   :  { %6220 = vadd.xlane.f32.xlu1 %v4172_v51  ;;  %v10589_v6 = vld [vmem:[#allocation6 + $0x18] sm:$0xff]  }
 0x44f   :  { %v9786_v57 = vsel %vm7634_vm5, %v9785_v13, %v11961_v9  ;;  %v7534_v40 = vunpack.c.l.b16 %v6550_v32  ;;  %v7535_v3 = vunpack.c.h.b16 %v6550_v32  ;;  %6218 = vadd.xlane.f32.xlu0 %v4171_v0  ;;  %v6173_v4 = vpop.xlane.xlu1 %6172  ;;  %v4110_v9 = vadd.f32 %v3598_v37, %v1550_v2  ;;  %v1596_v32 = vld [vmem:[#allocation3 + $0x1ed0] sm:$0xff] }
 0x450   :  { %v12034_v44 = vsel %vm12384_vm1, %v9790_v56, %v9786_v57  ;;  %v6171_v31 = vpop.xlane.xlu0 %6170  ;;  %v4125_v56 = vadd.f32 %v3613_v43, %v1565_v21  ;;  %v10585_v57 = vld [vmem:[#allocation6 + $0x8] sm:$0xff]   ;;  %v10586_v37 = vld [vmem:[#allocation6 + $0x50] sm:$0xff]  }
 0x451   :  { %v9864_v55 = vrot.slane %v7534_v40, %v10851_v7  ;;  %v9869_v29 = vrot.slane %v7535_v3, %v10854_v8  ;;  %v6565_v12 = vpack.c.bf16 %v6173_v4, %v6171_v31  ;;  %v1595_v40 = vld [vmem:[#allocation3 + $0x1ec0] sm:$0xff]  ;;  %v3643_v3 = vld [vmem:[#allocation3 + $0x1ec8] sm:$0xff]  ;;  %10522 = vmatpush3.bf16.msra.mxu1 %v10585_v57 }
 0x452   :  { %5936 = vadd.xlane.f32.xlu1 %v4030_v58  ;;  %v3644_v58 = vld [vmem:[#allocation3 + $0x1ed8] sm:$0xff]  ;;  %10523 = vmatprep.subr.bf16.mxu1 %v10586_v37  ;;  %v10590_v57 = vld [vmem:[#allocation6 + $0x60] sm:$0xff]  }
 0x453   :  { %v9865_v49 = vsel %vm7634_vm5, %v9864_v55, %v11970_v60  ;;  %v7564_v11 = vunpack.c.l.b16 %v6565_v12  ;;  %v7565_v20 = vunpack.c.h.b16 %v6565_v12  ;;  %5934 = vadd.xlane.f32.xlu0 %v4029_v10  ;;  %v5957_v27 = vpop.xlane.xlu1 %5956  ;;  %v4156_v2 = vadd.f32 %v3644_v58, %v1596_v32  ;;  %v1534_v12 = vld [vmem:[#allocation3 + $0x1af0] sm:$0xff]  ;;  %v3646_v37 = vld [vmem:[#allocation3 + $0x1ef8] sm:$0xff] }
 0x454   :  { %v12041_v51 = vsel %vm12390_vm2, %v9869_v29, %v9865_v49  ;;  %v5955_v28 = vpop.xlane.xlu0 %5954  ;;  %v4155_v29 = vadd.f32 %v3643_v3, %v1595_v40  ;;  %vm12395_vm2 = vmmov %vm12389_vm0 }
 0x455   :  { %v10012_v42 = vrot.slane %v7564_v11, %v10843_v59  ;;  %v10017_v0 = vrot.slane %v7565_v20, %v10846_v62  ;;  %v6511_v60 = vpack.c.bf16 %v5957_v27, %v5955_v28  ;;  %v1533_v20 = vld [vmem:[#allocation3 + $0x1ae0] sm:$0xff]  ;;  %v3581_v27 = vld [vmem:[#allocation3 + $0x1ae8] sm:$0xff]  ;;  %10524 = vmatpush3.bf16.msra.mxu1 %v10587_v63 }
 0x456   :  { %6096 = vadd.xlane.f32.xlu1 %v4110_v9  ;;  %v3582_v9 = vld [vmem:[#allocation3 + $0x1af8] sm:$0xff]  ;;  %10525 = vmatprep.subr.bf16.mxu1 %v10588_v54  ;;  %v10595_v54 = vld [vmem:[#allocation6 + $0xc8] sm:$0xff]  }
 0x457   :  { %v10013_v24 = vsel %vm7620_vm3, %v10012_v42, %v11977_v14  ;;  %v7456_v53 = vunpack.c.l.b16 %v6511_v60  ;;  %v7457_v52 = vunpack.c.h.b16 %v6511_v60  ;;  %6094 = vadd.xlane.f32.xlu0 %v4109_v22  ;;  %v5989_v13 = vpop.xlane.xlu1 %5988  ;;  %vm12392_vm3 = vmmov %vm12389_vm0  ;;  %v4094_v39 = vadd.f32 %v3582_v9, %v1534_v12  ;;  %v1614_v60 = vld [vmem:[#allocation3 + $0x1ff0] sm:$0xff]  ;;  %v10593_v12 = vld [vmem:[#allocation6 + $0x80] sm:$0xff]  }
 0x458   :  { %v12048_v59 = vsel %vm12391_vm4, %v10017_v0, %v10013_v24  ;;  %v5987_v62 = vpop.xlane.xlu0 %5986  ;;  %v4093_v0 = vadd.f32 %v3581_v27, %v1533_v20  ;;  %vm12396_vm4 = vmmov %vm12389_vm0 }
 0x459   :  { %v9479_v4 = vrot.slane %v7456_v53, %v10859_v15  ;;  %v9484_v10 = vrot.slane %v7457_v52, %v10862_v18  ;;  %v6519_v14 = vpack.c.bf16 %v5989_v13, %v5987_v62  ;;  %v1613_v52 = vld [vmem:[#allocation3 + $0x1fe0] sm:$0xff]  ;;  %v3661_v13 = vld [vmem:[#allocation3 + $0x1fe8] sm:$0xff]  ;;  %10526 = vmatpush3.bf16.msra.mxu1 %v10589_v6 }
 0x45a   :  { %6128 = vadd.xlane.f32.xlu1 %v4126_v33  ;;  %v3662_v33 = vld [vmem:[#allocation3 + $0x1ff8] sm:$0xff]  ;;  %v10591_v62 = vld [vmem:[#allocation6 + $0xc0] sm:$0xff]   ;;  %10527 = vmatprep.subr.bf16.mxu1 %v10590_v57  ;;  %v10601_v57 = vld [vmem:[#allocation6 + $0x90] sm:$0xff]  }
 0x45b   :  { %v9480_v31 = vsel %vm12392_vm3, %v9479_v4, %v11984_v34  ;;  %v7472_v1 = vunpack.c.l.b16 %v6519_v14  ;;  %v7473_v38 = vunpack.c.h.b16 %v6519_v14  ;;  %6126 = vadd.xlane.f32.xlu0 %v4125_v56  ;;  %v6049_v55 = vpop.xlane.xlu1 %6048  ;;  %v4174_v58 = vadd.f32 %v3662_v33, %v1614_v60  ;;  %10541 = vmatprep.subr.bf16.mxu0 %v10591_v62  ;;  %vm12397_vm3 = vmmov %vm12389_vm0 }
 0x45c   :  { %v12055_v49 = vsel %vm7655_vm8, %v9484_v10, %v9480_v31  ;;  %v6047_v11 = vpop.xlane.xlu0 %6046  ;;  %v4173_v14 = vadd.f32 %v3661_v13, %v1613_v52  ;;  %v1597_v31 = vld [vmem:[#allocation3 + $0x1ee0] sm:$0xff]  ;;  %10542 = vmatpush3.bf16.msra.mxu0 %v10593_v12  ;;  %v10598_v13 = vld [vmem:[#allocation6 + $0x70] sm:$0xff]  }
 0x45d   :  { %v9558_v22 = vrot.slane %v7472_v1, %v10859_v15  ;;  %v9563_v17 = vrot.slane %v7473_v38, %v10862_v18  ;;  %v6534_v34 = vpack.c.bf16 %v6049_v55, %v6047_v11  ;;  %v3645_v55 = vld [vmem:[#allocation3 + $0x1ee8] sm:$0xff]  ;;  %10543 = vmatprep.subr.bf16.mxu0 %v10595_v54 }
 0x45e   :  { %6188 = vadd.xlane.f32.xlu1 %v4156_v2  ;;  %v1598_v2 = vld [vmem:[#allocation3 + $0x1ef0] sm:$0xff] }
 0x45f   :  { %v9559_v28 = vsel %vm12393_vm14, %v9558_v22, %v11991_v16  ;;  %v7502_v21 = vunpack.c.l.b16 %v6534_v34  ;;  %v7503_v43 = vunpack.c.h.b16 %v6534_v34  ;;  %6186 = vadd.xlane.f32.xlu0 %v4155_v29  ;;  %v6149_v42 = vpop.xlane.xlu1 %6148  ;;  %v10592_v29 = vld [vmem:[#allocation6 + $0x20] sm:$0xff]   ;;  %v4158_v11 = vadd.f32 %v3646_v37, %v1598_v2  ;;  %v10602_v2 = vld [vmem:[#allocation6 + $0x78] sm:$0xff]   ;;  %vm12398_vm14 = vmmov %vm12384_vm1 }
 0x460   :  { %v12062_v24 = vsel %vm7655_vm8, %v9563_v17, %v9559_v28  ;;  %v6147_v53 = vpop.xlane.xlu0 %6146  ;;  %10528 = vmatpush3.bf16.msra.mxu1 %v10592_v29  ;;  %v4157_v34 = vadd.f32 %v3645_v55, %v1597_v31  ;;  %v10603_v37 = vld [vmem:[#allocation6 + $0xd8] sm:$0xff]  }
 0x461   :  { %v9706_v56 = vrot.slane %v7502_v21, %v10851_v7  ;;  %v9711_v32 = vrot.slane %v7503_v43, %v10854_v8  ;;  %v6559_v16 = vpack.c.bf16 %v6149_v42, %v6147_v53  ;;  %v10596_v43 = vld [vmem:[#allocation6 + $0x28] sm:$0xff]   ;;  %v10604_v55 = vld [vmem:[#allocation6 + $0x38] sm:$0xff]  }
 0x462   :  { %6064 = vadd.xlane.f32.xlu1 %v4094_v39  ;;  %v10594_v39 = vld [vmem:[#allocation6 + $0x68] sm:$0xff]   ;;  %v10605_v29 = vld [vmem:[#allocation6 + $0x98] sm:$0xff]  }
 0x463   :  { %v9707_v40 = vsel %vm7634_vm5, %v9706_v56, %v11998_v23  ;;  %v7552_v3 = vunpack.c.l.b16 %v6559_v16  ;;  %v7553_v4 = vunpack.c.h.b16 %v6559_v16  ;;  %6062 = vadd.xlane.f32.xlu0 %v4093_v0  ;;  %v6209_v10 = vpop.xlane.xlu1 %6208  ;;  %v10597_v42 = vld [vmem:[#allocation6 + $0x88] sm:$0xff]   ;;  %10529 = vmatprep.subr.bf16.mxu1 %v10594_v39  ;;  %v10599_v56 = vld [vmem:[#allocation6 + $0xd0] sm:$0xff]  }
 0x464   :  { %v12069_v1 = vsel %vm12394_vm15, %v9711_v32, %v9707_v40  ;;  %v6207_v38 = vpop.xlane.xlu0 %6206  ;;  %10530 = vmatpush3.bf16.msra.mxu1 %v10596_v43  ;;  %10544 = vmatpush3.bf16.msra.mxu0 %v10597_v42  ;;  %vm12400_vm15 = vmmov %vm12389_vm0 }
 0x465   :  { %v9953_v9 = vrot.slane %v7552_v3, %v10859_v15  ;;  %v9958_v23 = vrot.slane %v7553_v4, %v10862_v18  ;;  %v6574_v63 = vpack.c.bf16 %v6209_v10, %v6207_v38  ;;  %10531 = vmatprep.subr.bf16.mxu1 %v10598_v13  ;;  %10545 = vmatprep.subr.bf16.mxu0 %v10599_v56 }
 0x466   :  { %6224 = vadd.xlane.f32.xlu1 %v4174_v58  ;;  %v10600_v58 = vld [vmem:[#allocation6 + $0x30] sm:$0xff]  }
 0x467   :  { %v9954_v20 = vsel %vm12389_vm0, %v9953_v9, %v12006_v61  ;;  %v7582_v27 = vunpack.c.l.b16 %v6574_v63  ;;  %v7583_v22 = vunpack.c.h.b16 %v6574_v63  ;;  %6222 = vadd.xlane.f32.xlu0 %v4173_v14  ;;  %v5925_v17 = vpop.xlane.xlu1 %5924 }
 0x468   :  { %v12076_v28 = vsel %vm7655_vm8, %v9958_v23, %v9954_v20  ;;  %v5923_v21 = vpop.xlane.xlu0 %5922  ;;  %10532 = vmatpush3.bf16.msra.mxu1 %v10600_v58  ;;  %10546 = vmatpush3.bf16.msra.mxu0 %v10601_v57  ;;  %v10610_v57 = vld [vmem:[#allocation6 + $0xf0] sm:$0xff]  }
 0x469   :  { %v10101_v0 = vrot.slane %v7582_v27, %v10851_v7  ;;  %v10106_v60 = vrot.slane %v7583_v22, %v10854_v8  ;;  %v6503_v33 = vpack.c.bf16 %v5925_v17, %v5923_v21  ;;  %10533 = vmatprep.subr.bf16.mxu1 %v10602_v2  ;;  %10547 = vmatprep.subr.bf16.mxu0 %v10603_v37  ;;  %v10606_v27 = vld [vmem:[#allocation6 + $0xe0] sm:$0xff]  }
 0x46a   :  { %6192 = vadd.xlane.f32.xlu1 %v4158_v11 }
 0x46b   :  { %v10102_v61 = vsel %vm7634_vm5, %v10101_v0, %v12020_v50  ;;  %v7440_v6 = vunpack.c.l.b16 %v6503_v33  ;;  %v7441_v53 = vunpack.c.h.b16 %v6503_v33  ;;  %6190 = vadd.xlane.f32.xlu0 %v4157_v34  ;;  %v6025_v52 = vpop.xlane.xlu1 %6024  ;;  %v10607_v34 = vld [vmem:[#allocation6 + $0xa0] sm:$0xff]  }
 0x46c   :  { %v12083_v32 = vsel %vm12384_vm1, %v10106_v60, %v10102_v61  ;;  %v6023_v16 = vpop.xlane.xlu0 %6022  ;;  %10534 = vmatpush3.bf16.msra.mxu1 %v10604_v55  ;;  %10548 = vmatpush3.bf16.msra.mxu0 %v10605_v29  ;;  %v10608_v60 = vld [vmem:[#allocation6 + $0xe8] sm:$0xff]   ;;  %vm12402_vm1 = vcmask 1048512  }
 0x46d   :  { %v9400_v62 = vrot.slane %v7440_v6, %v10859_v15  ;;  %v9405_v40 = vrot.slane %v7441_v53, %v10862_v18  ;;  %v6528_v3 = vpack.c.bf16 %v6025_v52, %v6023_v16  ;;  %10549 = vmatprep.subr.bf16.mxu0 %v10606_v27  ;;  %v10609_v6 = vld [vmem:[#allocation6 + $0xa8] sm:$0xff]  }
 0x46f   :  { %v9401_v50 = vsel %vm12395_vm2, %v9400_v62, %v12015_v5  ;;  %v7490_v4 = vunpack.c.l.b16 %v6528_v3  ;;  %v7491_v10 = vunpack.c.h.b16 %v6528_v3  ;;  %v6085_v14 = vpop.xlane.xlu1 %6084  ;;  %v10611_v3 = vld [vmem:[#allocation6 + $0xb0] sm:$0xff]  }
 0x470   :  { %v12090_v31 = vsel %vm7655_vm8, %v9405_v40, %v9401_v50  ;;  %v6083_v38 = vpop.xlane.xlu0 %6082  ;;  %10550 = vmatpush3.bf16.msra.mxu0 %v10607_v34 }
 0x471   :  { %v9647_v12 = vrot.slane %v7490_v4, %v10867_v25  ;;  %v9652_v9 = vrot.slane %v7491_v10, %v10870_v26  ;;  %v6543_v23 = vpack.c.bf16 %v6085_v14, %v6083_v38  ;;  %10551 = vmatprep.subr.bf16.mxu0 %v10608_v60  ;;  %v10612_v38 = vld [vmem:[#allocation6 + $0xf8] sm:$0xff]  }
 0x473   :  { %v9648_v5 = vsel %vm7662_vm9, %v9647_v12, %v12027_v41  ;;  %v7520_v63 = vunpack.c.l.b16 %v6543_v23  ;;  %v7521_v11 = vunpack.c.h.b16 %v6543_v23  ;;  %v6117_v20 = vpop.xlane.xlu1 %6116  ;;  %v10613_v12 = vld [vmem:[#allocation6 + $0xb8] sm:$0xff]  }
 0x474   :  { %v12097_v22 = vsel %vm7669_vm10, %v9652_v9, %v9648_v5  ;;  %v6115_v17 = vpop.xlane.xlu0 %6114  ;;  %10552 = vmatpush3.bf16.msra.mxu0 %v10609_v6 }
 0x475   :  { %v9795_v39 = vrot.slane %v7520_v63, %v10859_v15  ;;  %v9800_v54 = vrot.slane %v7521_v11, %v10862_v18  ;;  %v6551_v21 = vpack.c.bf16 %v6117_v20, %v6115_v17  ;;  %10553 = vmatprep.subr.bf16.mxu0 %v10610_v57 }
 0x477   :  { %v9796_v43 = vsel %vm12396_vm4, %v9795_v39, %v12034_v44  ;;  %v7536_v41 = vunpack.c.l.b16 %v6551_v21  ;;  %v7537_v42 = vunpack.c.h.b16 %v6551_v21  ;;  %v6177_v0 = vpop.xlane.xlu1 %6176  ;;  %vm12404_vm4 = vmmov %vm12402_vm1 }
 0x478   :  { %v12104_v33 = vsel %vm7655_vm8, %v9800_v54, %v9796_v43  ;;  %v6175_v61 = vpop.xlane.xlu0 %6174  ;;  %10554 = vmatpush3.bf16.msra.mxu0 %v10611_v3 }
 0x479   :  { %v9874_v53 = vrot.slane %v7536_v41, %v10859_v15  ;;  %v9879_v52 = vrot.slane %v7537_v42, %v10862_v18  ;;  %v6566_v13 = vpack.c.bf16 %v6177_v0, %v6175_v61  ;;  %10555 = vmatprep.subr.bf16.mxu0 %v10612_v38 }
 0x47b   :  { %v9875_v56 = vsel %vm12397_vm3, %v9874_v53, %v12041_v51  ;;  %v7566_v44 = vunpack.c.l.b16 %v6566_v13  ;;  %v7567_v16 = vunpack.c.h.b16 %v6566_v13  ;;  %v5961_v58 = vpop.xlane.xlu1 %5960 }
 0x47c   :  { %v12111_v62 = vsel %vm7655_vm8, %v9879_v52, %v9875_v56  ;;  %v5959_v40 = vpop.xlane.xlu0 %5958  ;;  %10556 = vmatpush3.bf16.msra.mxu0 %v10613_v12 }
 0x47d   :  { %v10022_v50 = vrot.slane %v7566_v44, %v10851_v7  ;;  %v10027_v4 = vrot.slane %v7567_v16, %v10854_v8  ;;  %v6512_v10 = vpack.c.bf16 %v5961_v58, %v5959_v40 }
 0x47f   :  { %v10023_v14 = vsel %vm7634_vm5, %v10022_v50, %v12048_v59  ;;  %v7458_v51 = vunpack.c.l.b16 %v6512_v10  ;;  %v7459_v2 = vunpack.c.h.b16 %v6512_v10  ;;  %v5993_v37 = vpop.xlane.xlu1 %5992  ;;  %vm12399_vm5 = vmmov %vm12389_vm0 }
 0x480   :  { %v12118_v55 = vsel %vm12398_vm14, %v10027_v4, %v10023_v14  ;;  %v5991_v29 = vpop.xlane.xlu0 %5990  ;;  %vm12408_vm14 = vmmov %vm12402_vm1 }
 0x481   :  { %v9489_v9 = vrot.slane %v7458_v51, %v10867_v25  ;;  %v9494_v7 = vrot.slane %v7459_v2, %v10870_v26  ;;  %v6520_v8 = vpack.c.bf16 %v5993_v37, %v5991_v29 }
 0x483   :  { %v9490_v23 = vsel %vm7662_vm9, %v9489_v9, %v12055_v49  ;;  %v7474_v59 = vunpack.c.l.b16 %v6520_v8  ;;  %v7475_v5 = vunpack.c.h.b16 %v6520_v8  ;;  %v6053_v63 = vpop.xlane.xlu1 %6052 }
 0x484   :  { %v12125_v11 = vsel %vm7669_vm10, %v9494_v7, %v9490_v23  ;;  %v6051_v20 = vpop.xlane.xlu0 %6050 }
 0x485   :  { %v9568_v27 = vrot.slane %v7474_v59, %v10867_v25  ;;  %v9573_v17 = vrot.slane %v7475_v5, %v10870_v26  ;;  %v6535_v34 = vpack.c.bf16 %v6053_v63, %v6051_v20 }
 0x487   :  { %v9569_v39 = vsel %vm7662_vm9, %v9568_v27, %v12062_v24  ;;  %v7504_v54 = vunpack.c.l.b16 %v6535_v34  ;;  %v7505_v21 = vunpack.c.h.b16 %v6535_v34  ;;  %v6153_v43 = vpop.xlane.xlu1 %6152 }
 0x488   :  { %v12132_v49 = vsel %vm7669_vm10, %v9573_v17, %v9569_v39  ;;  %v6151_v41 = vpop.xlane.xlu0 %6150 }
 0x489   :  { %v9716_v42 = vrot.slane %v7504_v54, %v10859_v15  ;;  %v9721_v0 = vrot.slane %v7505_v21, %v10862_v18  ;;  %v6560_v60 = vpack.c.bf16 %v6153_v43, %v6151_v41 }
 0x48b   :  { %v9717_v61 = vsel %vm12399_vm5, %v9716_v42, %v12069_v1  ;;  %v7554_v6 = vunpack.c.l.b16 %v6560_v60  ;;  %v7555_v53 = vunpack.c.h.b16 %v6560_v60  ;;  %v6213_v52 = vpop.xlane.xlu1 %6212 }
 0x48c   :  { %v12139_v24 = vsel %vm7655_vm8, %v9721_v0, %v9717_v61  ;;  %v6211_v13 = vpop.xlane.xlu0 %6210 }
 0x48d   :  { %v9963_v56 = vrot.slane %v7554_v6, %v10867_v25  ;;  %v9968_v44 = vrot.slane %v7555_v53, %v10870_v26  ;;  %v6575_v16 = vpack.c.bf16 %v6213_v52, %v6211_v13 }
 0x48f   :  { %v9964_v58 = vsel %vm7662_vm9, %v9963_v56, %v12076_v28  ;;  %v7584_v57 = vunpack.c.l.b16 %v6575_v16  ;;  %v7585_v40 = vunpack.c.h.b16 %v6575_v16  ;;  %v5929_v3 = vpop.xlane.xlu1 %5928 }
 0x490   :  { %v12146_v1 = vsel %vm7669_vm10, %v9968_v44, %v9964_v58  ;;  %v5927_v50 = vpop.xlane.xlu0 %5926 }
 0x491   :  { %v10111_v4 = vrot.slane %v7584_v57, %v10859_v15  ;;  %v10116_v10 = vrot.slane %v7585_v40, %v10862_v18  ;;  %v6504_v14 = vpack.c.bf16 %v5929_v3, %v5927_v50 }
 0x493   :  { %v10112_v51 = vsel %vm12400_vm15, %v10111_v4, %v12083_v32  ;;  %v7442_v2 = vunpack.c.l.b16 %v6504_v14  ;;  %v7443_v37 = vunpack.c.h.b16 %v6504_v14  ;;  %v6029_v38 = vpop.xlane.xlu1 %6028  ;;  %vm12410_vm15 = vmmov %vm12402_vm1 }
 0x494   :  { %v12153_v28 = vsel %vm7655_vm8, %v10116_v10, %v10112_v51  ;;  %v6027_v29 = vpop.xlane.xlu0 %6026 }
 0x495   :  { %v9410_v12 = vrot.slane %v7442_v2, %v10867_v25  ;;  %v9415_v9 = vrot.slane %v7443_v37, %v10870_v26  ;;  %v6529_v7 = vpack.c.bf16 %v6029_v38, %v6027_v29 }
 0x497   :  { %v9411_v8 = vsel %vm7662_vm9, %v9410_v12, %v12090_v31  ;;  %v7492_v23 = vunpack.c.l.b16 %v6529_v7  ;;  %v7493_v59 = vunpack.c.h.b16 %v6529_v7  ;;  %v6089_v5 = vpop.xlane.xlu1 %6088 }
 0x498   :  { %v12160_v32 = vsel %vm7669_vm10, %v9415_v9, %v9411_v8  ;;  %v6087_v63 = vpop.xlane.xlu0 %6086 }
 0x499   :  { %v9657_v20 = vrot.slane %v7492_v23, %v10875_v35  ;;  %v9662_v27 = vrot.slane %v7493_v59, %v10878_v36  ;;  %v6544_v17 = vpack.c.bf16 %v6089_v5, %v6087_v63 }
 0x49b   :  { %v9658_v34 = vsel %vm7676_vm11, %v9657_v20, %v12097_v22  ;;  %v7522_v39 = vunpack.c.l.b16 %v6544_v17  ;;  %v7523_v54 = vunpack.c.h.b16 %v6544_v17  ;;  %v6121_v21 = vpop.xlane.xlu1 %6120 }
 0x49c   :  { %v12167_v31 = vsel %vm7683_vm12, %v9662_v27, %v9658_v34  ;;  %v6119_v43 = vpop.xlane.xlu0 %6118 }
 0x49d   :  { %v9805_v41 = vrot.slane %v7522_v39, %v10867_v25  ;;  %v9810_v42 = vrot.slane %v7523_v54, %v10870_v26  ;;  %v6552_v0 = vpack.c.bf16 %v6121_v21, %v6119_v43 }
 0x49f   :  { %v9806_v60 = vsel %vm7662_vm9, %v9805_v41, %v12104_v33  ;;  %v7538_v61 = vunpack.c.l.b16 %v6552_v0  ;;  %v7539_v6 = vunpack.c.h.b16 %v6552_v0  ;;  %v6181_v53 = vpop.xlane.xlu1 %6180 }
 0x4a0   :  { %v12174_v22 = vsel %vm7669_vm10, %v9810_v42, %v9806_v60  ;;  %v6179_v52 = vpop.xlane.xlu0 %6178 }
 0x4a1   :  { %v9884_v13 = vrot.slane %v7538_v61, %v10867_v25  ;;  %v9889_v56 = vrot.slane %v7539_v6, %v10870_v26  ;;  %v6567_v44 = vpack.c.bf16 %v6181_v53, %v6179_v52 }
 0x4a3   :  { %v9885_v16 = vsel %vm7662_vm9, %v9884_v13, %v12111_v62  ;;  %v7568_v58 = vunpack.c.l.b16 %v6567_v44  ;;  %v7569_v57 = vunpack.c.h.b16 %v6567_v44  ;;  %v5965_v40 = vpop.xlane.xlu1 %5964 }
 0x4a4   :  { %v12181_v33 = vsel %vm7669_vm10, %v9889_v56, %v9885_v16  ;;  %v5963_v3 = vpop.xlane.xlu0 %5962 }
 0x4a5   :  { %v10032_v50 = vrot.slane %v7568_v58, %v10859_v15  ;;  %v10037_v4 = vrot.slane %v7569_v57, %v10862_v18  ;;  %v6513_v10 = vpack.c.bf16 %v5965_v40, %v5963_v3 }
 0x4a6   :  { %v12185_v14 = vpop.f32.mrb[0].mxu0 }
 0x4a7   :  { %v10033_v51 = vsel %vm12389_vm0, %v10032_v50, %v12118_v55  ;;  %v7460_v2 = vunpack.c.l.b16 %v6513_v10  ;;  %v7461_v37 = vunpack.c.h.b16 %v6513_v10  ;;  %v10567_v62 = vpop.f32.mrb[1].mxu0  ;;  %v5997_v38 = vpop.xlane.xlu1 %5996 }
 0x4a8   :  { %v12190_v29 = vsel %vm7655_vm8, %v10037_v4, %v10033_v51  ;;  %v6821_v12 = vpop.f32.mrb[2].mxu0  ;;  %v5995_v9 = vpop.xlane.xlu0 %5994  ;;  %vm12401_vm8 = vcmask 982912  }
 0x4a9   :  { %v9499_v7 = vrot.slane %v7460_v2, %v10875_v35  ;;  %v9504_v15 = vrot.slane %v7461_v37, %v10878_v36  ;;  %v6521_v18 = vpack.c.bf16 %v5997_v38, %v5995_v9  ;;  %v10568_v8 = vpop.f32.mrb[3].mxu0  ;;  %vm12403_vm2 = vmmov %vm12401_vm8 }
 0x4aa   :  { %vm12407_vm3 = vmmov %vm12403_vm2 }
 0x4ab   :  { %v9500_v23 = vsel %vm7676_vm11, %v9499_v7, %v12125_v11  ;;  %v7476_v59 = vunpack.c.l.b16 %v6521_v18  ;;  %v7477_v55 = vunpack.c.h.b16 %v6521_v18  ;;  %v6057_v5 = vpop.xlane.xlu1 %6056  ;;  %vm12409_vm5 = vmmov %vm12403_vm2 }
 0x4ac   :  { %v12197_v63 = vsel %vm7683_vm12, %v9504_v15, %v9500_v23  ;;  %v6055_v20 = vpop.xlane.xlu0 %6054  ;;  %vm12411_vm0 = vmmov %vm12403_vm2 }
 0x4ad   :  { %v9578_v27 = vrot.slane %v7476_v59, %v10875_v35  ;;  %v9583_v17 = vrot.slane %v7477_v55, %v10878_v36  ;;  %v6536_v34 = vpack.c.bf16 %v6057_v5, %v6055_v20 }
 0x4af   :  { %v9579_v39 = vsel %vm7676_vm11, %v9578_v27, %v12132_v49  ;;  %v7506_v54 = vunpack.c.l.b16 %v6536_v34  ;;  %v7507_v21 = vunpack.c.h.b16 %v6536_v34  ;;  %v6157_v43 = vpop.xlane.xlu1 %6156 }
 0x4b0   :  { %v12204_v11 = vsel %vm7683_vm12, %v9583_v17, %v9579_v39  ;;  %v6155_v41 = vpop.xlane.xlu0 %6154 }
 0x4b1   :  { %v9726_v42 = vrot.slane %v7506_v54, %v10867_v25  ;;  %v9731_v0 = vrot.slane %v7507_v21, %v10870_v26  ;;  %v6561_v60 = vpack.c.bf16 %v6157_v43, %v6155_v41 }
 0x4b3   :  { %v9727_v61 = vsel %vm7662_vm9, %v9726_v42, %v12139_v24  ;;  %v7556_v6 = vunpack.c.l.b16 %v6561_v60  ;;  %v7557_v53 = vunpack.c.h.b16 %v6561_v60  ;;  %v6217_v52 = vpop.xlane.xlu1 %6216 }
 0x4b4   :  { %v12211_v49 = vsel %vm7669_vm10, %v9731_v0, %v9727_v61  ;;  %v6215_v13 = vpop.xlane.xlu0 %6214 }
 0x4b5   :  { %v9973_v56 = vrot.slane %v7556_v6, %v10875_v35  ;;  %v9978_v44 = vrot.slane %v7557_v53, %v10878_v36  ;;  %v6576_v16 = vpack.c.bf16 %v6217_v52, %v6215_v13 }
 0x4b7   :  { %v9974_v58 = vsel %vm7676_vm11, %v9973_v56, %v12146_v1  ;;  %v7586_v57 = vunpack.c.l.b16 %v6576_v16  ;;  %v7587_v40 = vunpack.c.h.b16 %v6576_v16  ;;  %v5933_v3 = vpop.xlane.xlu1 %5932 }
 0x4b8   :  { %v5931_v50 = vpop.xlane.xlu0 %5930  ;;  %v12218_v24 = vsel %vm7683_vm12, %v9978_v44, %v9974_v58 }
 0x4b9   :  { %v10121_v4 = vrot.slane %v7586_v57, %v10867_v25  ;;  %v10126_v10 = vrot.slane %v7587_v40, %v10870_v26  ;;  %v6505_v51 = vpack.c.bf16 %v5933_v3, %v5931_v50 }
 0x4bb   :  { %v10122_v2 = vsel %vm7662_vm9, %v10121_v4, %v12153_v28  ;;  %v7444_v37 = vunpack.c.l.b16 %v6505_v51  ;;  %v7445_v62 = vunpack.c.h.b16 %v6505_v51  ;;  %v6033_v38 = vpop.xlane.xlu1 %6032 }
 0x4bc   :  { %v12225_v1 = vsel %vm7669_vm10, %v10126_v10, %v10122_v2  ;;  %v6031_v12 = vpop.xlane.xlu0 %6030 }
 0x4bd   :  { %v9420_v9 = vrot.slane %v7444_v37, %v10875_v35  ;;  %v9425_v7 = vrot.slane %v7445_v62, %v10878_v36  ;;  %v6530_v15 = vpack.c.bf16 %v6033_v38, %v6031_v12 }
 0x4bf   :  { %v9421_v18 = vsel %vm7676_vm11, %v9420_v9, %v12160_v32  ;;  %v7494_v8 = vunpack.c.l.b16 %v6530_v15  ;;  %v7495_v23 = vunpack.c.h.b16 %v6530_v15  ;;  %v6093_v59 = vpop.xlane.xlu1 %6092 }
 0x4c0   :  { %v12232_v28 = vsel %vm7683_vm12, %v9425_v7, %v9421_v18  ;;  %v6091_v55 = vpop.xlane.xlu0 %6090 }
 0x4c1   :  { %v9667_v5 = vrot.slane %v7494_v8, %v10883_v47  ;;  %v9672_v20 = vrot.slane %v7495_v23, %v10886_v48  ;;  %v6545_v27 = vpack.c.bf16 %v6093_v59, %v6091_v55 }
 0x4c3   :  { %v7524_v17 = vunpack.c.l.b16 %v6545_v27  ;;  %v7525_v34 = vunpack.c.h.b16 %v6545_v27  ;;  %v6125_v39 = vpop.xlane.xlu1 %6124  ;;  %v9668_v54 = vsel %vm12401_vm8, %v9667_v5, %v12167_v31  ;;  %vm12412_vm8 = vmmov %vm12402_vm1 }
 0x4c4   :  { %v6123_v21 = vpop.xlane.xlu0 %6122  ;;  %v9673_v32 = vsel %vm12402_vm1, %v9672_v20, %v9668_v54 }
 0x4c5   :  { %v9815_v43 = vrot.slane %v7524_v17, %v10875_v35  ;;  %v9820_v41 = vrot.slane %v7525_v34, %v10878_v36  ;;  %v6553_v42 = vpack.c.bf16 %v6125_v39, %v6123_v21  ;;  %v12243_v0 = vsel %vm6763_vm6, %v9673_v32, %v11771_v46 }
 0x4c7   :  { %v9816_v60 = vsel %vm7676_vm11, %v9815_v43, %v12174_v22  ;;  %v7540_v61 = vunpack.c.l.b16 %v6553_v42  ;;  %v7541_v6 = vunpack.c.h.b16 %v6553_v42  ;;  %v6185_v53 = vpop.xlane.xlu1 %6184 }
 0x4c8   :  { %v12248_v31 = vsel %vm7683_vm12, %v9820_v41, %v9816_v60  ;;  %v6183_v52 = vpop.xlane.xlu0 %6182 }
 0x4c9   :  { %v9894_v13 = vrot.slane %v7540_v61, %v10875_v35  ;;  %v9899_v56 = vrot.slane %v7541_v6, %v10878_v36  ;;  %v6568_v44 = vpack.c.bf16 %v6185_v53, %v6183_v52 }
 0x4cb   :  { %v9895_v16 = vsel %vm7676_vm11, %v9894_v13, %v12181_v33  ;;  %v7570_v46 = vunpack.c.l.b16 %v6568_v44  ;;  %v7571_v58 = vunpack.c.h.b16 %v6568_v44  ;;  %v5969_v57 = vpop.xlane.xlu1 %5968 }
 0x4cc   :  { %v12255_v22 = vsel %vm7683_vm12, %v9899_v56, %v9895_v16  ;;  %v5967_v40 = vpop.xlane.xlu0 %5966 }
 0x4cd   :  { %v10042_v3 = vrot.slane %v7570_v46, %v10867_v25  ;;  %v10047_v50 = vrot.slane %v7571_v58, %v10870_v26  ;;  %v6514_v4 = vpack.c.bf16 %v5969_v57, %v5967_v40 }
 0x4cf   :  { %v10043_v10 = vsel %vm7662_vm9, %v10042_v3, %v12190_v29  ;;  %v7462_v51 = vunpack.c.l.b16 %v6514_v4  ;;  %v7463_v2 = vunpack.c.h.b16 %v6514_v4  ;;  %v6001_v37 = vpop.xlane.xlu1 %6000  ;;  %vm12405_vm9 = vmmov %vm12403_vm2 }
 0x4d0   :  { %v12262_v33 = vsel %vm7669_vm10, %v10047_v50, %v10043_v10  ;;  %v5999_v62 = vpop.xlane.xlu0 %5998  ;;  %vm12406_vm10 = vmmov %vm12402_vm1 }
 0x4d1   :  { %v9509_v38 = vrot.slane %v7462_v51, %v10883_v47  ;;  %v9514_v12 = vrot.slane %v7463_v2, %v10886_v48  ;;  %v6522_v9 = vpack.c.bf16 %v6001_v37, %v5999_v62 }
 0x4d3   :  { %v9510_v25 = vsel %vm12403_vm2, %v9509_v38, %v12197_v63  ;;  %v7478_v26 = vunpack.c.l.b16 %v6522_v9  ;;  %v7479_v7 = vunpack.c.h.b16 %v6522_v9  ;;  %v6061_v15 = vpop.xlane.xlu1 %6060  ;;  %vm12414_vm2 = vmmov %vm12411_vm0 }
 0x4d4   :  { %v9515_v29 = vsel %vm12404_vm4, %v9514_v12, %v9510_v25  ;;  %v6059_v18 = vpop.xlane.xlu0 %6058  ;;  %vm12415_vm4 = vmmov %vm12402_vm1 }
 0x4d5   :  { %v9588_v8 = vrot.slane %v7478_v26, %v10883_v47  ;;  %v9593_v23 = vrot.slane %v7479_v7, %v10886_v48  ;;  %v6537_v59 = vpack.c.bf16 %v6061_v15, %v6059_v18  ;;  %v10173_v55 = vsel %vm6761_vm7, %v9515_v29, %v11701_v19 }
 0x4d7   :  { %v9589_v5 = vsel %vm12405_vm9, %v9588_v8, %v12204_v11  ;;  %v7508_v20 = vunpack.c.l.b16 %v6537_v59  ;;  %v7509_v27 = vunpack.c.h.b16 %v6537_v59  ;;  %v6161_v63 = vpop.xlane.xlu1 %6160  ;;  %vm12418_vm9 = vmmov %vm12411_vm0 }
 0x4d8   :  { %v6159_v17 = vpop.xlane.xlu0 %6158  ;;  %v9594_v34 = vsel %vm12406_vm10, %v9593_v23, %v9589_v5  ;;  %vm12419_vm10 = vmmov %vm12402_vm1 }
 0x4d9   :  { %v9736_v39 = vrot.slane %v7508_v20, %v10875_v35  ;;  %v9741_v54 = vrot.slane %v7509_v27, %v10878_v36  ;;  %v6562_v21 = vpack.c.bf16 %v6161_v63, %v6159_v17  ;;  %v10153_v32 = vsel %vm6763_vm6, %v9594_v34, %v11736_v45 }
 0x4db   :  { %v9737_v19 = vsel %vm7676_vm11, %v9736_v39, %v12211_v49  ;;  %v7558_v43 = vunpack.c.l.b16 %v6562_v21  ;;  %v7559_v41 = vunpack.c.h.b16 %v6562_v21  ;;  %v6221_v11 = vpop.xlane.xlu1 %6220 }
 0x4dc   :  { %v12283_v42 = vsel %vm7683_vm12, %v9741_v54, %v9737_v19  ;;  %v6219_v60 = vpop.xlane.xlu0 %6218 }
 0x4dd   :  { %v9983_v61 = vrot.slane %v7558_v43, %v10883_v47  ;;  %v9988_v6 = vrot.slane %v7559_v41, %v10886_v48  ;;  %v6577_v53 = vpack.c.bf16 %v6221_v11, %v6219_v60 }
 0x4df   :  { %v7588_v52 = vunpack.c.l.b16 %v6577_v53  ;;  %v7589_v13 = vunpack.c.h.b16 %v6577_v53  ;;  %v5937_v56 = vpop.xlane.xlu1 %5936  ;;  %v9984_v45 = vsel %vm12407_vm3, %v9983_v61, %v12218_v24 }
 0x4e0   :  { %v5935_v44 = vpop.xlane.xlu0 %5934  ;;  %v9989_v49 = vsel %vm12408_vm14, %v9988_v6, %v9984_v45 }
 0x4e1   :  { %v10131_v16 = vrot.slane %v7588_v52, %v10875_v35  ;;  %v10136_v46 = vrot.slane %v7589_v13, %v10878_v36  ;;  %v6506_v58 = vpack.c.bf16 %v5937_v56, %v5935_v44  ;;  %v10161_v57 = vsel %vm6765_vm13, %v9989_v49, %v12243_v0 }
 0x4e2   :  { %v10177_v40 = vpack.c.b16 %v10161_v57, %v10161_v57 }
 0x4e3   :  { %v10132_v3 = vsel %vm7676_vm11, %v10131_v16, %v12225_v1  ;;  %v7446_v50 = vunpack.c.l.b16 %v6506_v58  ;;  %v7447_v4 = vunpack.c.h.b16 %v6506_v58  ;;  %v6097_v10 = vpop.xlane.xlu1 %6096 }
 0x4e4   :  { %v10137_v24 = vsel %vm7683_vm12, %v10136_v46, %v10132_v3  ;;  %10408 = vmatprep.mubr.bf16.mxu1 %v10177_v40  ;;  %v6095_v51 = vpop.xlane.xlu0 %6094 }
 0x4e5   :  { %v9430_v2 = vrot.slane %v7446_v50, %v10883_v47  ;;  %v9435_v37 = vrot.slane %v7447_v4, %v10886_v48  ;;  %v6546_v62 = vpack.c.bf16 %v6097_v10, %v6095_v51 }
 0x4e7   :  { %v9431_v38 = vsel %vm12409_vm5, %v9430_v2, %v12232_v28  ;;  %v7526_v0 = vunpack.c.l.b16 %v6546_v62  ;;  %v7527_v12 = vunpack.c.h.b16 %v6546_v62  ;;  %v6129_v9 = vpop.xlane.xlu1 %6128 }
 0x4e8   :  { %v9436_v1 = vsel %vm12410_vm15, %v9435_v37, %v9431_v38  ;;  %v6127_v25 = vpop.xlane.xlu0 %6126 }
 0x4e9   :  { %v10166_v26 = vsel %vm6761_vm7, %v9436_v1, %v11663_v30  ;;  %v9825_v7 = vrot.slane %v7526_v0, %v10883_v47  ;;  %v9830_v15 = vrot.slane %v7527_v12, %v10886_v48  ;;  %v6554_v29 = vpack.c.bf16 %v6129_v9, %v6127_v25  ;;  %vm12413_vm7 = vmmov %vm12411_vm0 }
 0x4eb   :  { %v9826_v18 = vsel %vm12411_vm0, %v9825_v7, %v12248_v31  ;;  %v7542_v8 = vunpack.c.l.b16 %v6554_v29  ;;  %v7543_v23 = vunpack.c.h.b16 %v6554_v29  ;;  %v6189_v28 = vpop.xlane.xlu1 %6188 }
 0x4ec   :  { %v6187_v59 = vpop.xlane.xlu0 %6186  ;;  %v9831_v5 = vsel %vm12412_vm8, %v9830_v15, %v9826_v18  ;;  %v10516_v18 = vld [vmem:[#allocation9] ss:$0 sm:$0xff] }
 0x4ed   :  { %v9904_v20 = vrot.slane %v7542_v8, %v10883_v47  ;;  %v9909_v27 = vrot.slane %v7543_v23, %v10886_v48  ;;  %v6569_v63 = vpack.c.bf16 %v6189_v28, %v6187_v59  ;;  %v10174_v30 = vsel %vm6763_vm6, %v9831_v5, %v10173_v55 }
 0x4ef   :  { %v7572_v17 = vunpack.c.l.b16 %v6569_v63  ;;  %v7573_v34 = vunpack.c.h.b16 %v6569_v63  ;;  %v6065_v39 = vpop.xlane.xlu1 %6064  ;;  %v9905_v54 = vsel %vm12413_vm7, %v9904_v20, %v12255_v22 }
 0x4f0   :  { %v6063_v31 = vpop.xlane.xlu0 %6062  ;;  %v9910_v21 = vsel %vm12402_vm1, %v9909_v27, %v9905_v54 }
 0x4f1   :  { %v10052_v19 = vrot.slane %v7572_v17, %v10875_v35  ;;  %v10057_v43 = vrot.slane %v7573_v34, %v10878_v36  ;;  %v6538_v41 = vpack.c.bf16 %v6065_v39, %v6063_v31  ;;  %v10154_v11 = vsel %vm6765_vm13, %v9910_v21, %v10153_v32 }
 0x4f2   :  { %v10176_v60 = vpack.c.b16 %v10154_v11, %v10154_v11 }
 0x4f3   :  { %v10053_v55 = vsel %vm7676_vm11, %v10052_v19, %v12262_v33  ;;  %v7510_v61 = vunpack.c.l.b16 %v6538_v41  ;;  %v7511_v6 = vunpack.c.h.b16 %v6538_v41  ;;  %v6225_v53 = vpop.xlane.xlu1 %6224  ;;  %vm12416_vm11 = vmmov %vm12411_vm0 }
 0x4f4   :  { %v10058_v52 = vsel %vm7683_vm12, %v10057_v43, %v10053_v55  ;;  %10409 = vmatmul.mubr.bf16.vlgmr.msra.gmra.mrb[0].mxu1 %v10176_v60  ;;  %v6223_v22 = vpop.xlane.xlu0 %6222  ;;  %vm12417_vm12 = vmmov %vm12402_vm1 }
 0x4f5   :  { %v9746_v13 = vrot.slane %v7510_v61, %v10883_v47  ;;  %v9751_v35 = vrot.slane %v7511_v6, %v10886_v48  ;;  %v6578_v56 = vpack.c.bf16 %v6225_v53, %v6223_v22 }
 0x4f7   :  { %v9747_v36 = vsel %vm12414_vm2, %v9746_v13, %v12283_v42  ;;  %v7590_v32 = vunpack.c.l.b16 %v6578_v56  ;;  %v7591_v45 = vunpack.c.h.b16 %v6578_v56  ;;  %v6193_v44 = vpop.xlane.xlu1 %6192 }
 0x4f8   :  { %v9752_v33 = vsel %vm12415_vm4, %v9751_v35, %v9747_v36  ;;  %v6191_v49 = vpop.xlane.xlu0 %6190 }
 0x4f9   :  { %v10141_v16 = vrot.slane %v7590_v32, %v10883_v47  ;;  %v10146_v46 = vrot.slane %v7591_v45, %v10886_v48  ;;  %v6570_v58 = vpack.c.bf16 %v6193_v44, %v6191_v49  ;;  %v10167_v57 = vsel %vm6763_vm6, %v9752_v33, %v10166_v26 }
 0x4fb   :  { %v7574_v40 = vunpack.c.l.b16 %v6570_v58  ;;  %v7575_v3 = vunpack.c.h.b16 %v6570_v58  ;;  %v10142_v50 = vsel %vm12416_vm11, %v10141_v16, %v10137_v24 }
 0x4fc   :  { %v10147_v4 = vsel %vm12417_vm12, %v10146_v46, %v10142_v50 }
 0x4fd   :  { %v10062_v42 = vrot.slane %v7574_v40, %v10883_v47  ;;  %v10067_v10 = vrot.slane %v7575_v3, %v10886_v48  ;;  %v10175_v51 = vsel %vm6765_vm13, %v10147_v4, %v10174_v30 }
 0x4fe   :  { %v10179_v2 = vpack.c.b16 %v10175_v51, %v10175_v51 }
 0x4ff   :  { %v10063_v37 = vsel %vm12418_vm9, %v10062_v42, %v10058_v52 }
 0x500   :  { %v10068_v62 = vsel %vm12419_vm10, %v10067_v10, %v10063_v37  ;;  %10448 = vmatprep.mubr.bf16.mxu0 %v10179_v2 }
 0x501   :  { %v10168_v38 = vsel %vm6765_vm13, %v10068_v62, %v10167_v57 }
 0x502   :  { %v10178_v0 = vpack.c.b16 %v10168_v38, %v10168_v38 }
 0x504   :  { %10449 = vmatmul.mubr.bf16.vlgmr.msra.gmra.mrb[4].mxu0 %v10178_v0 }
 0x5c7   :  { %v10535_v12 = vpop.f32.mrb[0].mxu1 }
 0x5c8   :  { %v10536_v24 = vpop.f32.mrb[1].mxu1 }
 0x5c9   :  { %v10537_v9 = vadd.f32 %v10536_v24, %v10535_v12  ;;  %v10538_v1 = vpop.f32.mrb[2].mxu1 }
 0x5ca   :  { %v10539_v25 = vpop.f32.mrb[3].mxu1 }
 0x5cb   :  { %v10411_v47 = vadd.f32 %v10537_v9, %v12185_v14 }
 0x5d7   :  { %v10557_v48 = vpop.f32.mrb[4].mxu0 }
 0x5d8   :  { %v10558_v26 = vpop.f32.mrb[5].mxu0 }
 0x5d9   :  { %v10559_v7 = vadd.f32 %v10558_v26, %v10557_v48  ;;  %v10560_v15 = vpop.f32.mrb[6].mxu0 }
 0x5da   :  { %v10561_v29 = vpop.f32.mrb[7].mxu0 }
 0x5db   :  { %v10451_v8 = vadd.f32 %v10559_v7, %v10411_v47 }
 0x5dd   :  { %v10463_v23 = vadd.f32 %v10516_v18, %v10451_v8 }
 0x5df   :  { %10464 = vst [vmem:[#allocation11] sm:$0xff] %v10463_v23 }
 0x5e0   :  { %10713 = shalt.err (!%p10710_p8)
}
 0x5e1   :  { %s10714_s26 = scalar_lea.hbm %s12355_s5, 128 }
 0x5e2   :  { %p10715_p9 = scmp.ne.s32.totalorder %s12355_s5, %s10714_s26  ;;  %p10718_p10 = scmp.lt.u32.totalorder %s10714_s26, %s12355_s5 }
 0x5e4   :  { %p10720_p11 = pnand %p10718_p10, %p10715_p9 }
 0x5e6   :  { %10723 = shalt.err (!%p10720_p11)
}
 0x5e7   :  { %10474 = dma.vmem_to_hbm [thread:$0]  %s10472_s22, 128, %s12355_s5, [#allocation5]  }
 0x5e8   :  { %10730 = dma.done.wait [#allocation5], 128  }
 0x5e9   :  { %10731 = vsyncadd [#allocation5], 4294967168 }
 0x5ea   :  { %10478 = vsyncpa [#allocation4], 1 }
 0x5eb   :  { %10479 = vsyncpa [#allocation7], 1 }
 0x5ec   :  { %10480 = vsyncpa [#allocation10], 1 }
 0x5ed   :  { %10481 = vsyncpa [#allocation5], 1 }

</bundles_post_ra>
